<compile_context>
chip_gen: v7x
topology: tpu7x:2x2x1
jax: 0.10.0
libtpu: 0.0.40
codegen_flags: <defaults>
</compile_context>

<pallas_src>
import functools

import jax
import jax.numpy as jnp
from jax.experimental import pallas as pl
from jax.experimental.pallas import tpu as pltpu

LRELU_SLOPE = 0.1


def _round_up(x, m):
    return ((x + m - 1) // m) * m


def _cdiv(a, b):
    return (a + b - 1) // b


def _leaky(x, slope):
    return jnp.where(x >= 0, x, slope * x)


@functools.lru_cache(maxsize=1)
def _vmem_limit_bytes():
    # v5e/v6e have 128 MiB of VMEM, v7x only 64 MiB: derive the scoped limit
    # from the hardware instead of hard-coding a v7x-safe number everywhere.
    try:
        cap = int(pltpu.get_tpu_info().vmem_capacity_bytes)
        return max(32 * 1024 * 1024,
                   min(cap - 16 * 1024 * 1024, 100 * 1024 * 1024))
    except Exception:
        return 48 * 1024 * 1024


def _pick_tile(channels, t_out, requested=None):
    """Stage-dependent time tile: keep the VMEM window roughly constant in
    bytes so long, narrow late stages get big tiles (fewer grid steps, bigger
    matmul M) while wide early stages stay VMEM-safe."""
    if requested is not None:
        base = requested
    elif channels >= 512:
        base = 512
    elif channels >= 256:
        base = 1024
    elif channels >= 128:
        base = 2048
    else:
        base = 4096
    return _round_up(min(base, _round_up(max(t_out, 8), 8)), 8)


# ----------------------------------------------------------------------------
# Generic time-tiled conv1d kernel (channels-last).
#   grid = (B, n_time_tiles), both parallel.  The window is supplied by two
#   auto-pipelined BlockSpec inputs (body tile + halo rows from the next
#   tile), so the input DMA is hidden behind the previous tile's compute.
# ----------------------------------------------------------------------------
def _conv_kernel(a_ref, h_ref, w_ref, b_ref, o_ref, *, K, dilation, TT, off0,
                 slope_in, out_tanh):
    win = jnp.concatenate([a_ref[0, 0], h_ref[0, 0]], axis=0)  # (TT+hp, Cin) bf16
    if slope_in is not None:
        # f32 VPU math (v5e has no bf16 VALU); lrelu(0)=0 so pads stay safe.
        win = _leaky(win.astype(jnp.float32), slope_in).astype(jnp.bfloat16)

    # Value-chain tap accumulation: no VMEM accumulator round-trip, the MXU
    # result path (MRB on v7x) can accumulate across taps.
    # TODO(synk): im2col the K taps into a single (TT, K*Cin) x (K*Cin, Cout)
    # matmul to fill the MXU contraction depth in the small-channel stages.
    acc = None
    for k in range(K):                                   # static, unrolled
        s = off0 + k * dilation
        tap = jnp.dot(win[s:s + TT, :], w_ref[k],
                      preferred_element_type=jnp.float32)
        acc = tap if acc is None else acc + tap

    out = acc + b_ref[...]
    if out_tanh:
        out = jnp.tanh(out)                              # EUP slot, ~free
    o_ref[0] = out.astype(o_ref.dtype)


def conv1d_tiled(x, w, b, *, dilation=1, pad_left=0, pad_right=0,
                 slope_in=None, out_tanh=False, out_dtype=jnp.bfloat16,
                 time_tile=None):
    """x: (B, T, Cin)   w: (K, Cin, Cout)   b: (Cout,) -> (B, T_out, Cout)."""
    B, T, Cin = x.shape
    K, _, Cout = w.shape
    halo = dilation * (K - 1)
    T_out = T + pad_left + pad_right - halo

    L = _round_up(pad_left, 8)              # 8-aligned left offset in layout
    need = L - pad_left + halo              # lookahead rows into the next tile
    hp = _round_up(max(need, 8), 8)
    TT = max(_pick_tile(max(Cin, Cout), T_out, time_tile), hp)
    nt = _cdiv(T_out, TT)
    nblk = max(nt + 1, _cdiv(L + T, TT))
    rows = nblk * TT
    # TODO(synk): the boundary pad (and the trailing slice) still costs one
    # fused XLA pass per conv; in-kernel boundary masking would remove it.
    x_pad = jnp.pad(x.astype(jnp.bfloat16),
                    ((0, 0), (L, rows - L - T), (0, 0)))
    x4 = x_pad.reshape(B, nblk, TT, Cin)
    wb = w.astype(jnp.bfloat16)
    b2 = b.astype(jnp.float32).reshape(1, Cout)

    flops = 2 * B * nt * TT * K * Cin * Cout
    bytes_acc = int(x_pad.size * 2 + wb.size * 2 + b2.size * 4
                    + B * nt * TT * Cout * jnp.dtype(out_dtype).itemsize)
    trans = B * nt * TT * Cout if out_tanh else 0

    kern = functools.partial(_conv_kernel, K=K, dilation=dilation, TT=TT,
                             off0=L - pad_left, slope_in=slope_in,
                             out_tanh=out_tanh)
    out = pl.pallas_call(
        kern,
        out_shape=jax.ShapeDtypeStruct((B, nt * TT, Cout), out_dtype),
        grid_spec=pltpu.PrefetchScalarGridSpec(
            num_scalar_prefetch=0,
            grid=(B, nt),
            in_specs=[
                # body tile + halo (first hp rows of the next tile): both are
                # regular, auto-pipelined BlockSpec inputs -> DMA overlapped.
                pl.BlockSpec((1, 1, TT, Cin), lambda bi, ti: (bi, ti, 0, 0)),
                pl.BlockSpec((1, 1, hp, Cin), lambda bi, ti: (bi, ti + 1, 0, 0)),
                # constant index_map -> weights/bias DMA'd once, stay resident
                # TODO(synk): single-buffer these via pipeline_mode to reclaim
                # the duplicate weight buffer under v7x's 64 MiB VMEM.
                pl.BlockSpec((K, Cin, Cout), lambda bi, ti: (0, 0, 0)),
                pl.BlockSpec((1, Cout), lambda bi, ti: (0, 0)),
            ],
            out_specs=pl.BlockSpec((1, TT, Cout), lambda bi, ti: (bi, ti, 0)),
        ),
        compiler_params=pltpu.CompilerParams(
            dimension_semantics=("parallel", "parallel"),
            vmem_limit_bytes=_vmem_limit_bytes()),
        cost_estimate=pl.CostEstimate(flops=flops, transcendentals=trans,
                                      bytes_accessed=bytes_acc),
    )(x4, x4, wb, b2)
    return out[:, :T_out, :]


# ----------------------------------------------------------------------------
# Fused ResBlock pair: out = x + conv2(lrelu(conv1(lrelu(x))))
# Optionally also adds a running sum (xs) and applies the 1/num_kernels scale
# in the epilogue, so the multi-resblock combine costs no extra HBM passes.
# ----------------------------------------------------------------------------
def _resblock_pair_kernel(*refs, K, d, TT, TI, L, H, slope, out_scale,
                          has_sum):
    if has_sum:
        a_ref, h_ref, w1_ref, b1_ref, w2_ref, b2_ref, s_ref, o_ref = refs
    else:
        a_ref, h_ref, w1_ref, b1_ref, w2_ref, b2_ref, o_ref = refs
        s_ref = None

    win = jnp.concatenate([a_ref[0, 0], h_ref[0, 0]], axis=0)  # (TT+hp, C) bf16
    xa = _leaky(win.astype(jnp.float32), slope).astype(jnp.bfloat16)

    # conv1 (dilation d) over the extended extent needed by conv2
    base1 = L - H
    acc1 = None
    for k in range(K):
        s = base1 + k * d
        tap = jnp.dot(xa[s:s + TI, :], w1_ref[k],
                      preferred_element_type=jnp.float32)
        acc1 = tap if acc1 is None else acc1 + tap
    inter = _leaky(acc1 + b1_ref[...], slope).astype(jnp.bfloat16)  # (TI, C)

    # conv2 (dilation 1)
    acc2 = None
    for k in range(K):
        tap = jnp.dot(inter[k:k + TT, :], w2_ref[k],
                      preferred_element_type=jnp.float32)
        acc2 = tap if acc2 is None else acc2 + tap

    res = win[L:L + TT, :].astype(jnp.float32)      # pre-lrelu residual (8-aligned)
    out = acc2 + b2_ref[...] + res
    if has_sum:
        out = out + s_ref[0].astype(jnp.float32)
    if out_scale != 1.0:
        out = out * out_scale
    o_ref[0] = out.astype(o_ref.dtype)


def resblock_pair(x, c1, c2, *, kernel_size, dilation, sum_in=None,
                  out_scale=1.0, time_tile=None):
    B, T, C = x.shape
    K, d = kernel_size, dilation
    p1 = d * (K - 1) // 2            # "same" padding of the dilated conv1
    p2 = (K - 1) // 2                # "same" padding of conv2
    H = p1 + p2
    L = _round_up(max(H, 1), 8)      # 8-aligned left offset (residual stays aligned)
    hp = _round_up(L + H, 8)         # halo rows needed from the next tile
    TT = max(_pick_tile(C, T, time_tile), hp)
    nt = _cdiv(T, TT)
    nblk = max(nt + 1, _cdiv(L + T, TT))
    rows = nblk * TT
    TI = TT + 2 * p2                 # intermediate extent needed by conv2
    x_pad = jnp.pad(x.astype(jnp.bfloat16),
                    ((0, 0), (L, rows - L - T), (0, 0)))
    x4 = x_pad.reshape(B, nblk, TT, C)
    w1 = c1['w'].astype(jnp.bfloat16)
    b1 = c1['b'].astype(jnp.float32).reshape(1, C)
    w2 = c2['w'].astype(jnp.bfloat16)
    b2 = c2['b'].astype(jnp.float32).reshape(1, C)

    has_sum = sum_in is not None
    in_specs = [
        pl.BlockSpec((1, 1, TT, C), lambda bi, ti: (bi, ti, 0, 0)),
        pl.BlockSpec((1, 1, hp, C), lambda bi, ti: (bi, ti + 1, 0, 0)),
        pl.BlockSpec((K, C, C), lambda bi, ti: (0, 0, 0)),
        pl.BlockSpec((1, C), lambda bi, ti: (0, 0)),
        pl.BlockSpec((K, C, C), lambda bi, ti: (0, 0, 0)),
        pl.BlockSpec((1, C), lambda bi, ti: (0, 0)),
    ]
    args = [x4, x4, w1, b1, w2, b2]
    if has_sum:
        in_specs.append(pl.BlockSpec((1, TT, C), lambda bi, ti: (bi, ti, 0)))
        args.append(sum_in.astype(jnp.bfloat16))

    flops = 2 * B * nt * (TI + TT) * K * C * C
    bytes_acc = int(x_pad.size * 2 + (w1.size + w2.size) * 2
                    + B * nt * TT * C * 2 * (2 if has_sum else 1))

    kern = functools.partial(_resblock_pair_kernel, K=K, d=d, TT=TT, TI=TI,
                             L=L, H=H, slope=LRELU_SLOPE,
                             out_scale=float(out_scale), has_sum=has_sum)
    out = pl.pallas_call(
        kern,
        out_shape=jax.ShapeDtypeStruct((B, nt * TT, C), jnp.bfloat16),
        grid_spec=pltpu.PrefetchScalarGridSpec(
            num_scalar_prefetch=0,
            grid=(B, nt),
            in_specs=in_specs,
            out_specs=pl.BlockSpec((1, TT, C), lambda bi, ti: (bi, ti, 0)),
        ),
        compiler_params=pltpu.CompilerParams(
            dimension_semantics=("parallel", "parallel"),
            vmem_limit_bytes=_vmem_limit_bytes()),
        cost_estimate=pl.CostEstimate(flops=flops, transcendentals=0,
                                      bytes_accessed=bytes_acc),
    )(*args)
    return out[:, :T, :]


# ----------------------------------------------------------------------------
# ConvTranspose1d via polyphase decomposition (no zero-insertion, no MACs on
# zeros).  Falls back to zero-insertion for non-standard stride/padding.
# ----------------------------------------------------------------------------
def _polyphase_weights(w_t, b, stride, padding):
    """w_t: (Cin, Cout, K) PyTorch ConvTranspose1d layout ->
       dense conv weight (G, Cin, stride*Cout) + bias, plus left/right pads,
       such that conv(x) reshaped (B, T*stride, Cout) == ConvTranspose1d(x)."""
    Cin, Cout, K = w_t.shape
    u = stride
    q = K - 1 - padding
    wf = jnp.transpose(w_t[:, :, ::-1], (2, 0, 1))     # flipped taps (K,Cin,Cout)
    a = [(q - r) // u for r in range(u)]
    k0 = [(q - r) % u for r in range(u)]
    n = [-(-(K - k0[r]) // u) for r in range(u)]
    a_max = max(a)
    off = [a_max - a[r] for r in range(u)]
    G = max(off[r] + n[r] for r in range(u))
    Wc = jnp.zeros((G, Cin, u * Cout), w_t.dtype)
    for r in range(u):
        for j in range(n[r]):
            Wc = Wc.at[off[r] + j, :, r * Cout:(r + 1) * Cout].set(
                wf[k0[r] + j * u])
    bc = jnp.tile(b, u)
    return Wc, bc, a_max, G - 1 - a_max


def conv_transpose1d(x, w_t, b, *, stride, padding, slope_in, time_tile=None):
    B, T, Cin = x.shape
    _, Cout, K = w_t.shape
    u = stride
    if u >= 1 and K >= u and 2 * padding == K - u:
        # Polyphase: one dense conv on the un-upsampled x producing all u
        # phases as extra (lane-dense) channels, then a free row-major reshape.
        # (Weight rearrangement is tiny relative to the conv itself.)
        Wc, bc, lpad, rpad = _polyphase_weights(w_t, b, u, padding)
        y = conv1d_tiled(x, Wc, bc, dilation=1, pad_left=lpad, pad_right=rpad,
                         slope_in=slope_in, time_tile=time_tile)
        return y.reshape(B, T * u, Cout)
    # Fallback (general stride/padding): zero-insertion + flipped-kernel conv.
    if u > 1:
        xz = jnp.zeros((B, (T - 1) * u + 1, Cin), x.dtype)
        xz = xz.at[:, ::u, :].set(x)
    else:
        xz = x
    w = jnp.transpose(w_t[:, :, ::-1], (2, 0, 1))
    pad = K - 1 - padding
    return conv1d_tiled(xz, w, b, dilation=1, pad_left=pad, pad_right=pad,
                        slope_in=slope_in, time_tile=time_tile)


# ----------------------------------------------------------------------------
# ResBlock (HiFi-GAN ResBlock1) and Generator forward
# ----------------------------------------------------------------------------
def resblock_forward(x, rb_params, kernel_size, dilations, sum_in=None,
                     out_scale=1.0):
    n = len(dilations)
    for idx, (d, c1, c2) in enumerate(zip(dilations, rb_params['convs1'],
                                          rb_params['convs2'])):
        last = idx == n - 1
        x = resblock_pair(x, c1, c2, kernel_size=kernel_size, dilation=d,
                          sum_in=sum_in if last else None,
                          out_scale=out_scale if last else 1.0)
    return x


def generator_forward(x_ncw, params, cfg):
    x = jnp.transpose(x_ncw, (0, 2, 1)).astype(jnp.bfloat16)   # NCW -> NTC
    x = conv1d_tiled(x, params['conv_pre_w'], params['conv_pre_b'],
                     pad_left=3, pad_right=3)

    num_kernels = len(cfg['resblock_kernel_sizes'])
    for i, (u, k) in enumerate(zip(cfg['upsample_rates'],
                                   cfg['upsample_kernel_sizes'])):
        # F.leaky_relu(x, LRELU_SLOPE) fused into the (polyphase) upsample conv
        x = conv_transpose1d(x, params['ups'][i]['w'], params['ups'][i]['b'],
                             stride=u, padding=(k - u) // 2,
                             slope_in=LRELU_SLOPE)
        # Running resblock sum and /num_kernels fused into the last pair of
        # each resblock (no extra full-tensor XLA passes for xs/add/divide).
        xs = None
        for j in range(num_kernels):
            rb = params['resblocks'][i * num_kernels + j]
            scale = 1.0 / num_kernels if j == num_kernels - 1 else 1.0
            xs = resblock_forward(x, rb, cfg['resblock_kernel_sizes'][j],
                                  cfg['resblock_dilation_sizes'][j],
                                  sum_in=xs, out_scale=scale)
        x = xs

    # F.leaky_relu (default slope 0.01) + tanh fused into conv_post
    # TODO(synk): conv_post (Cout=1) still uses a 1-lane-wide store; a
    # channels-first (time-on-lanes) layout for the final projection is left
    # out.
    x = conv1d_tiled(x, params['conv_post_w'], params['conv_post_b'],
                     pad_left=3, pad_right=3, slope_in=0.01, out_tanh=True,
                     out_dtype=jnp.float32)
    return jnp.transpose(x, (0, 2, 1))             # NTC -> NCW  (B, 1, T_out)


# ----------------------------------------------------------------------------
# Deterministic synthetic parameter init (shapes from Generator.__init__)
# ----------------------------------------------------------------------------
def init_params(key, cfg):
    keys = iter(jax.random.split(key, 512))

    def nrm(shape, std=0.05):
        return (std * jax.random.normal(next(keys), shape)).astype(jnp.float32)

    in_dim = cfg.get('model_in_dim', 80)
    upc = cfg['upsample_initial_channel']
    params = {
        'conv_pre_w': nrm((7, in_dim, upc)),       # (K, Cin, Cout)
        'conv_pre_b': nrm((upc,)),
        'ups': [],
        'resblocks': [],
    }
    for i, (u, k) in enumerate(zip(cfg['upsample_rates'],
                                   cfg['upsample_kernel_sizes'])):
        cin = upc // 2 ** i
        cout = upc // 2 ** (i + 1)
        params['ups'].append({'w': nrm((cin, cout, k)),   # ConvTranspose layout
                              'b': nrm((cout,))})
    ch = upc
    for i in range(len(cfg['upsample_rates'])):
        ch = upc // 2 ** (i + 1)
        for k, ds in zip(cfg['resblock_kernel_sizes'],
                         cfg['resblock_dilation_sizes']):
            rb = {'convs1': [], 'convs2': []}
            for d in ds:
                rb['convs1'].append({'w': nrm((k, ch, ch)), 'b': nrm((ch,))})
                rb['convs2'].append({'w': nrm((k, ch, ch)), 'b': nrm((ch,))})
            params['resblocks'].append(rb)
    params['conv_post_w'] = nrm((7, ch, 1))
    params['conv_post_b'] = nrm((1,))
    return params


if __name__ == "__main__":
    cfg = {
        'model_in_dim': 16,
        'upsample_initial_channel': 32,
        'upsample_rates': [2, 2],
        'upsample_kernel_sizes': [4, 4],
        'resblock_kernel_sizes': [3, 5],
        'resblock_dilation_sizes': [[1, 3], [1, 3]],
    }
    key = jax.random.PRNGKey(0)
    pkey, xkey = jax.random.split(key)
    params = init_params(pkey, cfg)

    B, Cin, T = 2, cfg['model_in_dim'], 8
    x = jax.random.normal(xkey, (B, Cin, T), jnp.float32)   # NCW like PyTorch

    fwd = jax.jit(functools.partial(generator_forward, cfg=cfg))
    y = fwd(x, params)
    jax.block_until_ready(y)

    expected_T = T
    for u in cfg['upsample_rates']:
        expected_T *= u
    assert y.shape == (B, 1, expected_T), y.shape
    assert bool(jnp.all(jnp.isfinite(y)))
    assert bool(jnp.all(jnp.abs(y) <= 1.0))        # tanh-bounded output
    print("KERNEL_OK")
</pallas_src>

<mosaic_0001>
module attributes {stable_mosaic.version = 11 : i64} {
  func.func @_conv_kernel(%arg0: i32, %arg1: i32, %arg2: memref<1x1x16x16xbf16, #tpu.memory_space<vmem>>, %arg3: memref<1x1x16x16xbf16, #tpu.memory_space<vmem>>, %arg4: memref<7x16x32xbf16, #tpu.memory_space<vmem>>, %arg5: memref<1x32xf32, #tpu.memory_space<vmem>>, %arg6: memref<1x16x32xbf16, #tpu.memory_space<vmem>>) attributes {dimension_semantics = [#tpu.dimension_semantics<parallel>, #tpu.dimension_semantics<parallel>], iteration_bounds = array<i64: 2, 1>, scalar_prefetch = 0 : i64, scratch_operands = 0 : i64, tpu.core_type = #tpu.core_type<tc>, window_params = [{transform_indices = @transform_0, window_bounds = array<i64: 1, 1, 16, 16>}, {transform_indices = @transform_1, window_bounds = array<i64: 1, 1, 16, 16>}, {pipeline_mode = #tpu.pipeline_mode<synchronous>, transform_indices = @transform_2, window_bounds = array<i64: 7, 16, 32>}, {pipeline_mode = #tpu.pipeline_mode<synchronous>, transform_indices = @transform_3, window_bounds = array<i64: 1, 32>}, {transform_indices = @transform_4, window_bounds = array<i64: 1, 16, 32>}]} {
    %c0 = arith.constant 0 : index
    %c0_0 = arith.constant 0 : index
    %c0_1 = arith.constant 0 : index
    %c0_2 = arith.constant 0 : index
    %0 = vector.load %arg2[%c0, %c0_0, %c0_1, %c0_2] : memref<1x1x16x16xbf16, #tpu.memory_space<vmem>>, vector<1x1x16x16xbf16>
    %1 = vector.shape_cast %0 : vector<1x1x16x16xbf16> to vector<16x16xbf16>
    %c0_3 = arith.constant 0 : index
    %c0_4 = arith.constant 0 : index
    %c0_5 = arith.constant 0 : index
    %c0_6 = arith.constant 0 : index
    %2 = vector.load %arg3[%c0_3, %c0_4, %c0_5, %c0_6] : memref<1x1x16x16xbf16, #tpu.memory_space<vmem>>, vector<1x1x16x16xbf16>
    %3 = vector.shape_cast %2 : vector<1x1x16x16xbf16> to vector<16x16xbf16>
    %4 = tpu.concatenate %1, %3 in 0 : vector<16x16xbf16>, vector<16x16xbf16> -> vector<32x16xbf16>
    %5 = vector.extract_strided_slice %4 {offsets = [5, 0], sizes = [16, 16], strides = [1, 1]} : vector<32x16xbf16> to vector<16x16xbf16>
    %c0_7 = arith.constant 0 : index
    %c0_8 = arith.constant 0 : index
    %c0_9 = arith.constant 0 : index
    %6 = vector.load %arg4[%c0_7, %c0_8, %c0_9] : memref<7x16x32xbf16, #tpu.memory_space<vmem>>, vector<1x16x32xbf16>
    %7 = vector.shape_cast %6 : vector<1x16x32xbf16> to vector<16x32xbf16>
    %cst = arith.constant dense<0.000000e+00> : vector<16x32xf32>
    %8 = tpu.matmul %5, %7, %cst {dimension_numbers = #tpu.dot_dimension_numbers<[1], [0], [0], [1], [0, 0, 1, 1], [], []>} : vector<16x16xbf16>, vector<16x32xbf16>, vector<16x32xf32> -> vector<16x32xf32>
    %9 = vector.extract_strided_slice %4 {offsets = [6, 0], sizes = [16, 16], strides = [1, 1]} : vector<32x16xbf16> to vector<16x16xbf16>
    %c1 = arith.constant 1 : index
    %c0_10 = arith.constant 0 : index
    %c0_11 = arith.constant 0 : index
    %10 = vector.load %arg4[%c1, %c0_10, %c0_11] : memref<7x16x32xbf16, #tpu.memory_space<vmem>>, vector<1x16x32xbf16>
    %11 = vector.shape_cast %10 : vector<1x16x32xbf16> to vector<16x32xbf16>
    %cst_12 = arith.constant dense<0.000000e+00> : vector<16x32xf32>
    %12 = tpu.matmul %9, %11, %cst_12 {dimension_numbers = #tpu.dot_dimension_numbers<[1], [0], [0], [1], [0, 0, 1, 1], [], []>} : vector<16x16xbf16>, vector<16x32xbf16>, vector<16x32xf32> -> vector<16x32xf32>
    %13 = arith.addf %8, %12 : vector<16x32xf32>
    %14 = vector.extract_strided_slice %4 {offsets = [7, 0], sizes = [16, 16], strides = [1, 1]} : vector<32x16xbf16> to vector<16x16xbf16>
    %c2 = arith.constant 2 : index
    %c0_13 = arith.constant 0 : index
    %c0_14 = arith.constant 0 : index
    %15 = vector.load %arg4[%c2, %c0_13, %c0_14] : memref<7x16x32xbf16, #tpu.memory_space<vmem>>, vector<1x16x32xbf16>
    %16 = vector.shape_cast %15 : vector<1x16x32xbf16> to vector<16x32xbf16>
    %cst_15 = arith.constant dense<0.000000e+00> : vector<16x32xf32>
    %17 = tpu.matmul %14, %16, %cst_15 {dimension_numbers = #tpu.dot_dimension_numbers<[1], [0], [0], [1], [0, 0, 1, 1], [], []>} : vector<16x16xbf16>, vector<16x32xbf16>, vector<16x32xf32> -> vector<16x32xf32>
    %18 = arith.addf %13, %17 : vector<16x32xf32>
    %19 = vector.extract_strided_slice %4 {offsets = [8, 0], sizes = [16, 16], strides = [1, 1]} : vector<32x16xbf16> to vector<16x16xbf16>
    %c3 = arith.constant 3 : index
    %c0_16 = arith.constant 0 : index
    %c0_17 = arith.constant 0 : index
    %20 = vector.load %arg4[%c3, %c0_16, %c0_17] : memref<7x16x32xbf16, #tpu.memory_space<vmem>>, vector<1x16x32xbf16>
    %21 = vector.shape_cast %20 : vector<1x16x32xbf16> to vector<16x32xbf16>
    %cst_18 = arith.constant dense<0.000000e+00> : vector<16x32xf32>
    %22 = tpu.matmul %19, %21, %cst_18 {dimension_numbers = #tpu.dot_dimension_numbers<[1], [0], [0], [1], [0, 0, 1, 1], [], []>} : vector<16x16xbf16>, vector<16x32xbf16>, vector<16x32xf32> -> vector<16x32xf32>
    %23 = arith.addf %18, %22 : vector<16x32xf32>
    %24 = vector.extract_strided_slice %4 {offsets = [9, 0], sizes = [16, 16], strides = [1, 1]} : vector<32x16xbf16> to vector<16x16xbf16>
    %c4 = arith.constant 4 : index
    %c0_19 = arith.constant 0 : index
    %c0_20 = arith.constant 0 : index
    %25 = vector.load %arg4[%c4, %c0_19, %c0_20] : memref<7x16x32xbf16, #tpu.memory_space<vmem>>, vector<1x16x32xbf16>
    %26 = vector.shape_cast %25 : vector<1x16x32xbf16> to vector<16x32xbf16>
    %cst_21 = arith.constant dense<0.000000e+00> : vector<16x32xf32>
    %27 = tpu.matmul %24, %26, %cst_21 {dimension_numbers = #tpu.dot_dimension_numbers<[1], [0], [0], [1], [0, 0, 1, 1], [], []>} : vector<16x16xbf16>, vector<16x32xbf16>, vector<16x32xf32> -> vector<16x32xf32>
    %28 = arith.addf %23, %27 : vector<16x32xf32>
    %29 = vector.extract_strided_slice %4 {offsets = [10, 0], sizes = [16, 16], strides = [1, 1]} : vector<32x16xbf16> to vector<16x16xbf16>
    %c5 = arith.constant 5 : index
    %c0_22 = arith.constant 0 : index
    %c0_23 = arith.constant 0 : index
    %30 = vector.load %arg4[%c5, %c0_22, %c0_23] : memref<7x16x32xbf16, #tpu.memory_space<vmem>>, vector<1x16x32xbf16>
    %31 = vector.shape_cast %30 : vector<1x16x32xbf16> to vector<16x32xbf16>
    %cst_24 = arith.constant dense<0.000000e+00> : vector<16x32xf32>
    %32 = tpu.matmul %29, %31, %cst_24 {dimension_numbers = #tpu.dot_dimension_numbers<[1], [0], [0], [1], [0, 0, 1, 1], [], []>} : vector<16x16xbf16>, vector<16x32xbf16>, vector<16x32xf32> -> vector<16x32xf32>
    %33 = arith.addf %28, %32 : vector<16x32xf32>
    %34 = vector.extract_strided_slice %4 {offsets = [11, 0], sizes = [16, 16], strides = [1, 1]} : vector<32x16xbf16> to vector<16x16xbf16>
    %c6 = arith.constant 6 : index
    %c0_25 = arith.constant 0 : index
    %c0_26 = arith.constant 0 : index
    %35 = vector.load %arg4[%c6, %c0_25, %c0_26] : memref<7x16x32xbf16, #tpu.memory_space<vmem>>, vector<1x16x32xbf16>
    %36 = vector.shape_cast %35 : vector<1x16x32xbf16> to vector<16x32xbf16>
    %cst_27 = arith.constant dense<0.000000e+00> : vector<16x32xf32>
    %37 = tpu.matmul %34, %36, %cst_27 {dimension_numbers = #tpu.dot_dimension_numbers<[1], [0], [0], [1], [0, 0, 1, 1], [], []>} : vector<16x16xbf16>, vector<16x32xbf16>, vector<16x32xf32> -> vector<16x32xf32>
    %38 = arith.addf %33, %37 : vector<16x32xf32>
    %c0_28 = arith.constant 0 : index
    %c0_29 = arith.constant 0 : index
    %39 = vector.load %arg5[%c0_28, %c0_29] : memref<1x32xf32, #tpu.memory_space<vmem>>, vector<1x32xf32>
    %40 = vector.broadcast %39 : vector<1x32xf32> to vector<16x32xf32>
    %41 = arith.addf %38, %40 : vector<16x32xf32>
    %42 = arith.truncf %41 : vector<16x32xf32> to vector<16x32xbf16>
    %c0_30 = arith.constant 0 : index
    %c0_31 = arith.constant 0 : index
    %c0_32 = arith.constant 0 : index
    %43 = vector.load %arg6[%c0_30, %c0_31, %c0_32] : memref<1x16x32xbf16, #tpu.memory_space<vmem>>, vector<1x16x32xbf16>
    %44 = vector.shape_cast %43 : vector<1x16x32xbf16> to vector<16x32xbf16>
    %45 = vector.shape_cast %42 : vector<16x32xbf16> to vector<1x16x32xbf16>
    tpu.vector_store %arg6[%c0_30, %c0_31, %c0_32], %45 {strides = array<i32>} : memref<1x16x32xbf16, #tpu.memory_space<vmem>>, vector<1x16x32xbf16>,
    return
  }
  func.func @transform_0(%arg0: i32, %arg1: i32) -> (i32, i32, i32, i32) {
    %c0_i32 = arith.constant 0 : i32
    %c0_i32_0 = arith.constant 0 : i32
    %c0_i32_1 = arith.constant 0 : i32
    return %arg0, %arg1, %c0_i32, %c0_i32_0 : i32, i32, i32, i32
  }
  func.func @transform_1(%arg0: i32, %arg1: i32) -> (i32, i32, i32, i32) {
    %c1_i32 = arith.constant 1 : i32
    %0 = arith.addi %arg1, %c1_i32 : i32
    %c0_i32 = arith.constant 0 : i32
    %c0_i32_0 = arith.constant 0 : i32
    %c0_i32_1 = arith.constant 0 : i32
    return %arg0, %0, %c0_i32, %c0_i32_0 : i32, i32, i32, i32
  }
  func.func @transform_2(%arg0: i32, %arg1: i32) -> (i32, i32, i32) {
    %c0_i32 = arith.constant 0 : i32
    %c0_i32_0 = arith.constant 0 : i32
    %c0_i32_1 = arith.constant 0 : i32
    %c0_i32_2 = arith.constant 0 : i32
    return %c0_i32, %c0_i32_0, %c0_i32_1 : i32, i32, i32
  }
  func.func @transform_3(%arg0: i32, %arg1: i32) -> (i32, i32) {
    %c0_i32 = arith.constant 0 : i32
    %c0_i32_0 = arith.constant 0 : i32
    %c0_i32_1 = arith.constant 0 : i32
    return %c0_i32, %c0_i32_0 : i32, i32
  }
  func.func @transform_4(%arg0: i32, %arg1: i32) -> (i32, i32, i32) {
    %c0_i32 = arith.constant 0 : i32
    %c0_i32_0 = arith.constant 0 : i32
    return %arg0, %arg1, %c0_i32 : i32, i32, i32
  }
}

module attributes {stable_mosaic.version = 11 : i64} {
  func.func @_resblock_pair_kernel(%arg0: i32, %arg1: i32, %arg2: memref<1x1x16x16xbf16, #tpu.memory_space<vmem>>, %arg3: memref<1x1x16x16xbf16, #tpu.memory_space<vmem>>, %arg4: memref<3x16x16xbf16, #tpu.memory_space<vmem>>, %arg5: memref<1x16xf32, #tpu.memory_space<vmem>>, %arg6: memref<3x16x16xbf16, #tpu.memory_space<vmem>>, %arg7: memref<1x16xf32, #tpu.memory_space<vmem>>, %arg8: memref<1x16x16xbf16, #tpu.memory_space<vmem>>) attributes {dimension_semantics = [#tpu.dimension_semantics<parallel>, #tpu.dimension_semantics<parallel>], iteration_bounds = array<i64: 2, 1>, scalar_prefetch = 0 : i64, scratch_operands = 0 : i64, tpu.core_type = #tpu.core_type<tc>, window_params = [{transform_indices = @transform_0, window_bounds = array<i64: 1, 1, 16, 16>}, {transform_indices = @transform_1, window_bounds = array<i64: 1, 1, 16, 16>}, {pipeline_mode = #tpu.pipeline_mode<synchronous>, transform_indices = @transform_2, window_bounds = array<i64: 3, 16, 16>}, {pipeline_mode = #tpu.pipeline_mode<synchronous>, transform_indices = @transform_3, window_bounds = array<i64: 1, 16>}, {pipeline_mode = #tpu.pipeline_mode<synchronous>, transform_indices = @transform_4, window_bounds = array<i64: 3, 16, 16>}, {pipeline_mode = #tpu.pipeline_mode<synchronous>, transform_indices = @transform_5, window_bounds = array<i64: 1, 16>}, {transform_indices = @transform_6, window_bounds = array<i64: 1, 16, 16>}]} {
    %c0 = arith.constant 0 : index
    %c0_0 = arith.constant 0 : index
    %c0_1 = arith.constant 0 : index
    %c0_2 = arith.constant 0 : index
    %0 = vector.load %arg2[%c0, %c0_0, %c0_1, %c0_2] : memref<1x1x16x16xbf16, #tpu.memory_space<vmem>>, vector<1x1x16x16xbf16>
    %1 = vector.shape_cast %0 : vector<1x1x16x16xbf16> to vector<16x16xbf16>
    %c0_3 = arith.constant 0 : index
    %c0_4 = arith.constant 0 : index
    %c0_5 = arith.constant 0 : index
    %c0_6 = arith.constant 0 : index
    %2 = vector.load %arg3[%c0_3, %c0_4, %c0_5, %c0_6] : memref<1x1x16x16xbf16, #tpu.memory_space<vmem>>, vector<1x1x16x16xbf16>
    %3 = vector.shape_cast %2 : vector<1x1x16x16xbf16> to vector<16x16xbf16>
    %4 = tpu.concatenate %1, %3 in 0 : vector<16x16xbf16>, vector<16x16xbf16> -> vector<32x16xbf16>
    %5 = arith.extf %4 : vector<32x16xbf16> to vector<32x16xf32>
    %cst = arith.constant 0.000000e+00 : f32
    %6 = vector.broadcast %cst : f32 to vector<32x16xf32>
    %7 = arith.cmpf oge, %5, %6 : vector<32x16xf32>
    %cst_7 = arith.constant 1.000000e-01 : f32
    %8 = vector.broadcast %cst_7 : f32 to vector<32x16xf32>
    %9 = arith.mulf %8, %5 : vector<32x16xf32>
    %10 = arith.select %7, %5, %9 : vector<32x16xi1>, vector<32x16xf32>
    %11 = arith.truncf %10 : vector<32x16xf32> to vector<32x16xbf16>
    %12 = vector.extract_strided_slice %11 {offsets = [4, 0], sizes = [18, 16], strides = [1, 1]} : vector<32x16xbf16> to vector<18x16xbf16>
    %c0_8 = arith.constant 0 : index
    %c0_9 = arith.constant 0 : index
    %c0_10 = arith.constant 0 : index
    %13 = vector.load %arg4[%c0_8, %c0_9, %c0_10] : memref<3x16x16xbf16, #tpu.memory_space<vmem>>, vector<1x16x16xbf16>
    %14 = vector.shape_cast %13 : vector<1x16x16xbf16> to vector<16x16xbf16>
    %cst_11 = arith.constant dense<0.000000e+00> : vector<18x16xf32>
    %15 = tpu.matmul %12, %14, %cst_11 {dimension_numbers = #tpu.dot_dimension_numbers<[1], [0], [0], [1], [0, 0, 1, 1], [], []>} : vector<18x16xbf16>, vector<16x16xbf16>, vector<18x16xf32> -> vector<18x16xf32>
    %16 = vector.extract_strided_slice %11 {offsets = [7, 0], sizes = [18, 16], strides = [1, 1]} : vector<32x16xbf16> to vector<18x16xbf16>
    %c1 = arith.constant 1 : index
    %c0_12 = arith.constant 0 : index
    %c0_13 = arith.constant 0 : index
    %17 = vector.load %arg4[%c1, %c0_12, %c0_13] : memref<3x16x16xbf16, #tpu.memory_space<vmem>>, vector<1x16x16xbf16>
    %18 = vector.shape_cast %17 : vector<1x16x16xbf16> to vector<16x16xbf16>
    %cst_14 = arith.constant dense<0.000000e+00> : vector<18x16xf32>
    %19 = tpu.matmul %16, %18, %cst_14 {dimension_numbers = #tpu.dot_dimension_numbers<[1], [0], [0], [1], [0, 0, 1, 1], [], []>} : vector<18x16xbf16>, vector<16x16xbf16>, vector<18x16xf32> -> vector<18x16xf32>
    %20 = arith.addf %15, %19 : vector<18x16xf32>
    %21 = vector.extract_strided_slice %11 {offsets = [10, 0], sizes = [18, 16], strides = [1, 1]} : vector<32x16xbf16> to vector<18x16xbf16>
    %c2 = arith.constant 2 : index
    %c0_15 = arith.constant 0 : index
    %c0_16 = arith.constant 0 : index
    %22 = vector.load %arg4[%c2, %c0_15, %c0_16] : memref<3x16x16xbf16, #tpu.memory_space<vmem>>, vector<1x16x16xbf16>
    %23 = vector.shape_cast %22 : vector<1x16x16xbf16> to vector<16x16xbf16>
    %cst_17 = arith.constant dense<0.000000e+00> : vector<18x16xf32>
    %24 = tpu.matmul %21, %23, %cst_17 {dimension_numbers = #tpu.dot_dimension_numbers<[1], [0], [0], [1], [0, 0, 1, 1], [], []>} : vector<18x16xbf16>, vector<16x16xbf16>, vector<18x16xf32> -> vector<18x16xf32>
    %25 = arith.addf %20, %24 : vector<18x16xf32>
    %c0_18 = arith.constant 0 : index
    %c0_19 = arith.constant 0 : index
    %26 = vector.load %arg5[%c0_18, %c0_19] : memref<1x16xf32, #tpu.memory_space<vmem>>, vector<1x16xf32>
    %27 = vector.broadcast %26 : vector<1x16xf32> to vector<18x16xf32>
    %28 = arith.addf %25, %27 : vector<18x16xf32>
    %cst_20 = arith.constant 0.000000e+00 : f32
    %29 = vector.broadcast %cst_20 : f32 to vector<18x16xf32>
    %30 = arith.cmpf oge, %28, %29 : vector<18x16xf32>
    %cst_21 = arith.constant 1.000000e-01 : f32
    %31 = vector.broadcast %cst_21 : f32 to vector<18x16xf32>
    %32 = arith.mulf %31, %28 : vector<18x16xf32>
    %33 = arith.select %30, %28, %32 : vector<18x16xi1>, vector<18x16xf32>
    %34 = arith.truncf %33 : vector<18x16xf32> to vector<18x16xbf16>
    %35 = vector.extract_strided_slice %34 {offsets = [0, 0], sizes = [16, 16], strides = [1, 1]} : vector<18x16xbf16> to vector<16x16xbf16>
    %c0_22 = arith.constant 0 : index
    %c0_23 = arith.constant 0 : index
    %c0_24 = arith.constant 0 : index
    %36 = vector.load %arg6[%c0_22, %c0_23, %c0_24] : memref<3x16x16xbf16, #tpu.memory_space<vmem>>, vector<1x16x16xbf16>
    %37 = vector.shape_cast %36 : vector<1x16x16xbf16> to vector<16x16xbf16>
    %cst_25 = arith.constant dense<0.000000e+00> : vector<16x16xf32>
    %38 = tpu.matmul %35, %37, %cst_25 {dimension_numbers = #tpu.dot_dimension_numbers<[1], [0], [0], [1], [0, 0, 1, 1], [], []>} : vector<16x16xbf16>, vector<16x16xbf16>, vector<16x16xf32> -> vector<16x16xf32>
    %39 = vector.extract_strided_slice %34 {offsets = [1, 0], sizes = [16, 16], strides = [1, 1]} : vector<18x16xbf16> to vector<16x16xbf16>
    %c1_26 = arith.constant 1 : index
    %c0_27 = arith.constant 0 : index
    %c0_28 = arith.constant 0 : index
    %40 = vector.load %arg6[%c1_26, %c0_27, %c0_28] : memref<3x16x16xbf16, #tpu.memory_space<vmem>>, vector<1x16x16xbf16>
    %41 = vector.shape_cast %40 : vector<1x16x16xbf16> to vector<16x16xbf16>
    %cst_29 = arith.constant dense<0.000000e+00> : vector<16x16xf32>
    %42 = tpu.matmul %39, %41, %cst_29 {dimension_numbers = #tpu.dot_dimension_numbers<[1], [0], [0], [1], [0, 0, 1, 1], [], []>} : vector<16x16xbf16>, vector<16x16xbf16>, vector<16x16xf32> -> vector<16x16xf32>
    %43 = arith.addf %38, %42 : vector<16x16xf32>
    %44 = vector.extract_strided_slice %34 {offsets = [2, 0], sizes = [16, 16], strides = [1, 1]} : vector<18x16xbf16> to vector<16x16xbf16>
    %c2_30 = arith.constant 2 : index
    %c0_31 = arith.constant 0 : index
    %c0_32 = arith.constant 0 : index
    %45 = vector.load %arg6[%c2_30, %c0_31, %c0_32] : memref<3x16x16xbf16, #tpu.memory_space<vmem>>, vector<1x16x16xbf16>
    %46 = vector.shape_cast %45 : vector<1x16x16xbf16> to vector<16x16xbf16>
    %cst_33 = arith.constant dense<0.000000e+00> : vector<16x16xf32>
    %47 = tpu.matmul %44, %46, %cst_33 {dimension_numbers = #tpu.dot_dimension_numbers<[1], [0], [0], [1], [0, 0, 1, 1], [], []>} : vector<16x16xbf16>, vector<16x16xbf16>, vector<16x16xf32> -> vector<16x16xf32>
    %48 = arith.addf %43, %47 : vector<16x16xf32>
    %49 = vector.extract_strided_slice %4 {offsets = [8, 0], sizes = [16, 16], strides = [1, 1]} : vector<32x16xbf16> to vector<16x16xbf16>
    %50 = arith.extf %49 : vector<16x16xbf16> to vector<16x16xf32>
    %c0_34 = arith.constant 0 : index
    %c0_35 = arith.constant 0 : index
    %51 = vector.load %arg7[%c0_34, %c0_35] : memref<1x16xf32, #tpu.memory_space<vmem>>, vector<1x16xf32>
    %52 = vector.broadcast %51 : vector<1x16xf32> to vector<16x16xf32>
    %53 = arith.addf %48, %52 : vector<16x16xf32>
    %54 = arith.addf %53, %50 : vector<16x16xf32>
    %55 = arith.truncf %54 : vector<16x16xf32> to vector<16x16xbf16>
    %c0_36 = arith.constant 0 : index
    %c0_37 = arith.constant 0 : index
    %c0_38 = arith.constant 0 : index
    %56 = vector.load %arg8[%c0_36, %c0_37, %c0_38] : memref<1x16x16xbf16, #tpu.memory_space<vmem>>, vector<1x16x16xbf16>
    %57 = vector.shape_cast %56 : vector<1x16x16xbf16> to vector<16x16xbf16>
    %58 = vector.shape_cast %55 : vector<16x16xbf16> to vector<1x16x16xbf16>
    tpu.vector_store %arg8[%c0_36, %c0_37, %c0_38], %58 {strides = array<i32>} : memref<1x16x16xbf16, #tpu.memory_space<vmem>>, vector<1x16x16xbf16>,
    return
  }
  func.func @transform_0(%arg0: i32, %arg1: i32) -> (i32, i32, i32, i32) {
    %c0_i32 = arith.constant 0 : i32
    %c0_i32_0 = arith.constant 0 : i32
    %c0_i32_1 = arith.constant 0 : i32
    return %arg0, %arg1, %c0_i32, %c0_i32_0 : i32, i32, i32, i32
  }
  func.func @transform_1(%arg0: i32, %arg1: i32) -> (i32, i32, i32, i32) {
    %c1_i32 = arith.constant 1 : i32
    %0 = arith.addi %arg1, %c1_i32 : i32
    %c0_i32 = arith.constant 0 : i32
    %c0_i32_0 = arith.constant 0 : i32
    %c0_i32_1 = arith.constant 0 : i32
    return %arg0, %0, %c0_i32, %c0_i32_0 : i32, i32, i32, i32
  }
  func.func @transform_2(%arg0: i32, %arg1: i32) -> (i32, i32, i32) {
    %c0_i32 = arith.constant 0 : i32
    %c0_i32_0 = arith.constant 0 : i32
    %c0_i32_1 = arith.constant 0 : i32
    %c0_i32_2 = arith.constant 0 : i32
    return %c0_i32, %c0_i32_0, %c0_i32_1 : i32, i32, i32
  }
  func.func @transform_3(%arg0: i32, %arg1: i32) -> (i32, i32) {
    %c0_i32 = arith.constant 0 : i32
    %c0_i32_0 = arith.constant 0 : i32
    %c0_i32_1 = arith.constant 0 : i32
    return %c0_i32, %c0_i32_0 : i32, i32
  }
  func.func @transform_4(%arg0: i32, %arg1: i32) -> (i32, i32, i32) {
    %c0_i32 = arith.constant 0 : i32
    %c0_i32_0 = arith.constant 0 : i32
    %c0_i32_1 = arith.constant 0 : i32
    %c0_i32_2 = arith.constant 0 : i32
    return %c0_i32, %c0_i32_0, %c0_i32_1 : i32, i32, i32
  }
  func.func @transform_5(%arg0: i32, %arg1: i32) -> (i32, i32) {
    %c0_i32 = arith.constant 0 : i32
    %c0_i32_0 = arith.constant 0 : i32
    %c0_i32_1 = arith.constant 0 : i32
    return %c0_i32, %c0_i32_0 : i32, i32
  }
  func.func @transform_6(%arg0: i32, %arg1: i32) -> (i32, i32, i32) {
    %c0_i32 = arith.constant 0 : i32
    %c0_i32_0 = arith.constant 0 : i32
    return %arg0, %arg1, %c0_i32 : i32, i32, i32
  }
}

module attributes {stable_mosaic.version = 11 : i64} {
  func.func @_conv_kernel(%arg0: i32, %arg1: i32, %arg2: memref<1x1x16x32xbf16, #tpu.memory_space<vmem>>, %arg3: memref<1x1x16x32xbf16, #tpu.memory_space<vmem>>, %arg4: memref<3x32x32xbf16, #tpu.memory_space<vmem>>, %arg5: memref<1x32xf32, #tpu.memory_space<vmem>>, %arg6: memref<1x16x32xbf16, #tpu.memory_space<vmem>>) attributes {dimension_semantics = [#tpu.dimension_semantics<parallel>, #tpu.dimension_semantics<parallel>], iteration_bounds = array<i64: 2, 1>, scalar_prefetch = 0 : i64, scratch_operands = 0 : i64, tpu.core_type = #tpu.core_type<tc>, window_params = [{transform_indices = @transform_0, window_bounds = array<i64: 1, 1, 16, 32>}, {transform_indices = @transform_1, window_bounds = array<i64: 1, 1, 16, 32>}, {pipeline_mode = #tpu.pipeline_mode<synchronous>, transform_indices = @transform_2, window_bounds = array<i64: 3, 32, 32>}, {pipeline_mode = #tpu.pipeline_mode<synchronous>, transform_indices = @transform_3, window_bounds = array<i64: 1, 32>}, {transform_indices = @transform_4, window_bounds = array<i64: 1, 16, 32>}]} {
    %c0 = arith.constant 0 : index
    %c0_0 = arith.constant 0 : index
    %c0_1 = arith.constant 0 : index
    %c0_2 = arith.constant 0 : index
    %0 = vector.load %arg2[%c0, %c0_0, %c0_1, %c0_2] : memref<1x1x16x32xbf16, #tpu.memory_space<vmem>>, vector<1x1x16x32xbf16>
    %1 = vector.shape_cast %0 : vector<1x1x16x32xbf16> to vector<16x32xbf16>
    %c0_3 = arith.constant 0 : index
    %c0_4 = arith.constant 0 : index
    %c0_5 = arith.constant 0 : index
    %c0_6 = arith.constant 0 : index
    %2 = vector.load %arg3[%c0_3, %c0_4, %c0_5, %c0_6] : memref<1x1x16x32xbf16, #tpu.memory_space<vmem>>, vector<1x1x16x32xbf16>
    %3 = vector.shape_cast %2 : vector<1x1x16x32xbf16> to vector<16x32xbf16>
    %4 = tpu.concatenate %1, %3 in 0 : vector<16x32xbf16>, vector<16x32xbf16> -> vector<32x32xbf16>
    %5 = arith.extf %4 : vector<32x32xbf16> to vector<32x32xf32>
    %cst = arith.constant 0.000000e+00 : f32
    %6 = vector.broadcast %cst : f32 to vector<32x32xf32>
    %7 = arith.cmpf oge, %5, %6 : vector<32x32xf32>
    %cst_7 = arith.constant 1.000000e-01 : f32
    %8 = vector.broadcast %cst_7 : f32 to vector<32x32xf32>
    %9 = arith.mulf %8, %5 : vector<32x32xf32>
    %10 = arith.select %7, %5, %9 : vector<32x32xi1>, vector<32x32xf32>
    %11 = arith.truncf %10 : vector<32x32xf32> to vector<32x32xbf16>
    %12 = vector.extract_strided_slice %11 {offsets = [7, 0], sizes = [16, 32], strides = [1, 1]} : vector<32x32xbf16> to vector<16x32xbf16>
    %c0_8 = arith.constant 0 : index
    %c0_9 = arith.constant 0 : index
    %c0_10 = arith.constant 0 : index
    %13 = vector.load %arg4[%c0_8, %c0_9, %c0_10] : memref<3x32x32xbf16, #tpu.memory_space<vmem>>, vector<1x32x32xbf16>
    %14 = vector.shape_cast %13 : vector<1x32x32xbf16> to vector<32x32xbf16>
    %cst_11 = arith.constant dense<0.000000e+00> : vector<16x32xf32>
    %15 = tpu.matmul %12, %14, %cst_11 {dimension_numbers = #tpu.dot_dimension_numbers<[1], [0], [0], [1], [0, 0, 1, 1], [], []>} : vector<16x32xbf16>, vector<32x32xbf16>, vector<16x32xf32> -> vector<16x32xf32>
    %16 = vector.extract_strided_slice %11 {offsets = [8, 0], sizes = [16, 32], strides = [1, 1]} : vector<32x32xbf16> to vector<16x32xbf16>
    %c1 = arith.constant 1 : index
    %c0_12 = arith.constant 0 : index
    %c0_13 = arith.constant 0 : index
    %17 = vector.load %arg4[%c1, %c0_12, %c0_13] : memref<3x32x32xbf16, #tpu.memory_space<vmem>>, vector<1x32x32xbf16>
    %18 = vector.shape_cast %17 : vector<1x32x32xbf16> to vector<32x32xbf16>
    %cst_14 = arith.constant dense<0.000000e+00> : vector<16x32xf32>
    %19 = tpu.matmul %16, %18, %cst_14 {dimension_numbers = #tpu.dot_dimension_numbers<[1], [0], [0], [1], [0, 0, 1, 1], [], []>} : vector<16x32xbf16>, vector<32x32xbf16>, vector<16x32xf32> -> vector<16x32xf32>
    %20 = arith.addf %15, %19 : vector<16x32xf32>
    %21 = vector.extract_strided_slice %11 {offsets = [9, 0], sizes = [16, 32], strides = [1, 1]} : vector<32x32xbf16> to vector<16x32xbf16>
    %c2 = arith.constant 2 : index
    %c0_15 = arith.constant 0 : index
    %c0_16 = arith.constant 0 : index
    %22 = vector.load %arg4[%c2, %c0_15, %c0_16] : memref<3x32x32xbf16, #tpu.memory_space<vmem>>, vector<1x32x32xbf16>
    %23 = vector.shape_cast %22 : vector<1x32x32xbf16> to vector<32x32xbf16>
    %cst_17 = arith.constant dense<0.000000e+00> : vector<16x32xf32>
    %24 = tpu.matmul %21, %23, %cst_17 {dimension_numbers = #tpu.dot_dimension_numbers<[1], [0], [0], [1], [0, 0, 1, 1], [], []>} : vector<16x32xbf16>, vector<32x32xbf16>, vector<16x32xf32> -> vector<16x32xf32>
    %25 = arith.addf %20, %24 : vector<16x32xf32>
    %c0_18 = arith.constant 0 : index
    %c0_19 = arith.constant 0 : index
    %26 = vector.load %arg5[%c0_18, %c0_19] : memref<1x32xf32, #tpu.memory_space<vmem>>, vector<1x32xf32>
    %27 = vector.broadcast %26 : vector<1x32xf32> to vector<16x32xf32>
    %28 = arith.addf %25, %27 : vector<16x32xf32>
    %29 = arith.truncf %28 : vector<16x32xf32> to vector<16x32xbf16>
    %c0_20 = arith.constant 0 : index
    %c0_21 = arith.constant 0 : index
    %c0_22 = arith.constant 0 : index
    %30 = vector.load %arg6[%c0_20, %c0_21, %c0_22] : memref<1x16x32xbf16, #tpu.memory_space<vmem>>, vector<1x16x32xbf16>
    %31 = vector.shape_cast %30 : vector<1x16x32xbf16> to vector<16x32xbf16>
    %32 = vector.shape_cast %29 : vector<16x32xbf16> to vector<1x16x32xbf16>
    tpu.vector_store %arg6[%c0_20, %c0_21, %c0_22], %32 {strides = array<i32>} : memref<1x16x32xbf16, #tpu.memory_space<vmem>>, vector<1x16x32xbf16>,
    return
  }
  func.func @transform_0(%arg0: i32, %arg1: i32) -> (i32, i32, i32, i32) {
    %c0_i32 = arith.constant 0 : i32
    %c0_i32_0 = arith.constant 0 : i32
    %c0_i32_1 = arith.constant 0 : i32
    return %arg0, %arg1, %c0_i32, %c0_i32_0 : i32, i32, i32, i32
  }
  func.func @transform_1(%arg0: i32, %arg1: i32) -> (i32, i32, i32, i32) {
    %c1_i32 = arith.constant 1 : i32
    %0 = arith.addi %arg1, %c1_i32 : i32
    %c0_i32 = arith.constant 0 : i32
    %c0_i32_0 = arith.constant 0 : i32
    %c0_i32_1 = arith.constant 0 : i32
    return %arg0, %0, %c0_i32, %c0_i32_0 : i32, i32, i32, i32
  }
  func.func @transform_2(%arg0: i32, %arg1: i32) -> (i32, i32, i32) {
    %c0_i32 = arith.constant 0 : i32
    %c0_i32_0 = arith.constant 0 : i32
    %c0_i32_1 = arith.constant 0 : i32
    %c0_i32_2 = arith.constant 0 : i32
    return %c0_i32, %c0_i32_0, %c0_i32_1 : i32, i32, i32
  }
  func.func @transform_3(%arg0: i32, %arg1: i32) -> (i32, i32) {
    %c0_i32 = arith.constant 0 : i32
    %c0_i32_0 = arith.constant 0 : i32
    %c0_i32_1 = arith.constant 0 : i32
    return %c0_i32, %c0_i32_0 : i32, i32
  }
  func.func @transform_4(%arg0: i32, %arg1: i32) -> (i32, i32, i32) {
    %c0_i32 = arith.constant 0 : i32
    %c0_i32_0 = arith.constant 0 : i32
    return %arg0, %arg1, %c0_i32 : i32, i32, i32
  }
}

module attributes {stable_mosaic.version = 11 : i64} {
  func.func @_resblock_pair_kernel(%arg0: i32, %arg1: i32, %arg2: memref<1x1x16x16xbf16, #tpu.memory_space<vmem>>, %arg3: memref<1x1x16x16xbf16, #tpu.memory_space<vmem>>, %arg4: memref<3x16x16xbf16, #tpu.memory_space<vmem>>, %arg5: memref<1x16xf32, #tpu.memory_space<vmem>>, %arg6: memref<3x16x16xbf16, #tpu.memory_space<vmem>>, %arg7: memref<1x16xf32, #tpu.memory_space<vmem>>, %arg8: memref<1x16x16xbf16, #tpu.memory_space<vmem>>) attributes {dimension_semantics = [#tpu.dimension_semantics<parallel>, #tpu.dimension_semantics<parallel>], iteration_bounds = array<i64: 2, 1>, scalar_prefetch = 0 : i64, scratch_operands = 0 : i64, tpu.core_type = #tpu.core_type<tc>, window_params = [{transform_indices = @transform_0, window_bounds = array<i64: 1, 1, 16, 16>}, {transform_indices = @transform_1, window_bounds = array<i64: 1, 1, 16, 16>}, {pipeline_mode = #tpu.pipeline_mode<synchronous>, transform_indices = @transform_2, window_bounds = array<i64: 3, 16, 16>}, {pipeline_mode = #tpu.pipeline_mode<synchronous>, transform_indices = @transform_3, window_bounds = array<i64: 1, 16>}, {pipeline_mode = #tpu.pipeline_mode<synchronous>, transform_indices = @transform_4, window_bounds = array<i64: 3, 16, 16>}, {pipeline_mode = #tpu.pipeline_mode<synchronous>, transform_indices = @transform_5, window_bounds = array<i64: 1, 16>}, {transform_indices = @transform_6, window_bounds = array<i64: 1, 16, 16>}]} {
    %c0 = arith.constant 0 : index
    %c0_0 = arith.constant 0 : index
    %c0_1 = arith.constant 0 : index
    %c0_2 = arith.constant 0 : index
    %0 = vector.load %arg2[%c0, %c0_0, %c0_1, %c0_2] : memref<1x1x16x16xbf16, #tpu.memory_space<vmem>>, vector<1x1x16x16xbf16>
    %1 = vector.shape_cast %0 : vector<1x1x16x16xbf16> to vector<16x16xbf16>
    %c0_3 = arith.constant 0 : index
    %c0_4 = arith.constant 0 : index
    %c0_5 = arith.constant 0 : index
    %c0_6 = arith.constant 0 : index
    %2 = vector.load %arg3[%c0_3, %c0_4, %c0_5, %c0_6] : memref<1x1x16x16xbf16, #tpu.memory_space<vmem>>, vector<1x1x16x16xbf16>
    %3 = vector.shape_cast %2 : vector<1x1x16x16xbf16> to vector<16x16xbf16>
    %4 = tpu.concatenate %1, %3 in 0 : vector<16x16xbf16>, vector<16x16xbf16> -> vector<32x16xbf16>
    %5 = arith.extf %4 : vector<32x16xbf16> to vector<32x16xf32>
    %cst = arith.constant 0.000000e+00 : f32
    %6 = vector.broadcast %cst : f32 to vector<32x16xf32>
    %7 = arith.cmpf oge, %5, %6 : vector<32x16xf32>
    %cst_7 = arith.constant 1.000000e-01 : f32
    %8 = vector.broadcast %cst_7 : f32 to vector<32x16xf32>
    %9 = arith.mulf %8, %5 : vector<32x16xf32>
    %10 = arith.select %7, %5, %9 : vector<32x16xi1>, vector<32x16xf32>
    %11 = arith.truncf %10 : vector<32x16xf32> to vector<32x16xbf16>
    %12 = vector.extract_strided_slice %11 {offsets = [6, 0], sizes = [18, 16], strides = [1, 1]} : vector<32x16xbf16> to vector<18x16xbf16>
    %c0_8 = arith.constant 0 : index
    %c0_9 = arith.constant 0 : index
    %c0_10 = arith.constant 0 : index
    %13 = vector.load %arg4[%c0_8, %c0_9, %c0_10] : memref<3x16x16xbf16, #tpu.memory_space<vmem>>, vector<1x16x16xbf16>
    %14 = vector.shape_cast %13 : vector<1x16x16xbf16> to vector<16x16xbf16>
    %cst_11 = arith.constant dense<0.000000e+00> : vector<18x16xf32>
    %15 = tpu.matmul %12, %14, %cst_11 {dimension_numbers = #tpu.dot_dimension_numbers<[1], [0], [0], [1], [0, 0, 1, 1], [], []>} : vector<18x16xbf16>, vector<16x16xbf16>, vector<18x16xf32> -> vector<18x16xf32>
    %16 = vector.extract_strided_slice %11 {offsets = [7, 0], sizes = [18, 16], strides = [1, 1]} : vector<32x16xbf16> to vector<18x16xbf16>
    %c1 = arith.constant 1 : index
    %c0_12 = arith.constant 0 : index
    %c0_13 = arith.constant 0 : index
    %17 = vector.load %arg4[%c1, %c0_12, %c0_13] : memref<3x16x16xbf16, #tpu.memory_space<vmem>>, vector<1x16x16xbf16>
    %18 = vector.shape_cast %17 : vector<1x16x16xbf16> to vector<16x16xbf16>
    %cst_14 = arith.constant dense<0.000000e+00> : vector<18x16xf32>
    %19 = tpu.matmul %16, %18, %cst_14 {dimension_numbers = #tpu.dot_dimension_numbers<[1], [0], [0], [1], [0, 0, 1, 1], [], []>} : vector<18x16xbf16>, vector<16x16xbf16>, vector<18x16xf32> -> vector<18x16xf32>
    %20 = arith.addf %15, %19 : vector<18x16xf32>
    %21 = vector.extract_strided_slice %11 {offsets = [8, 0], sizes = [18, 16], strides = [1, 1]} : vector<32x16xbf16> to vector<18x16xbf16>
    %c2 = arith.constant 2 : index
    %c0_15 = arith.constant 0 : index
    %c0_16 = arith.constant 0 : index
    %22 = vector.load %arg4[%c2, %c0_15, %c0_16] : memref<3x16x16xbf16, #tpu.memory_space<vmem>>, vector<1x16x16xbf16>
    %23 = vector.shape_cast %22 : vector<1x16x16xbf16> to vector<16x16xbf16>
    %cst_17 = arith.constant dense<0.000000e+00> : vector<18x16xf32>
    %24 = tpu.matmul %21, %23, %cst_17 {dimension_numbers = #tpu.dot_dimension_numbers<[1], [0], [0], [1], [0, 0, 1, 1], [], []>} : vector<18x16xbf16>, vector<16x16xbf16>, vector<18x16xf32> -> vector<18x16xf32>
    %25 = arith.addf %20, %24 : vector<18x16xf32>
    %c0_18 = arith.constant 0 : index
    %c0_19 = arith.constant 0 : index
    %26 = vector.load %arg5[%c0_18, %c0_19] : memref<1x16xf32, #tpu.memory_space<vmem>>, vector<1x16xf32>
    %27 = vector.broadcast %26 : vector<1x16xf32> to vector<18x16xf32>
    %28 = arith.addf %25, %27 : vector<18x16xf32>
    %cst_20 = arith.constant 0.000000e+00 : f32
    %29 = vector.broadcast %cst_20 : f32 to vector<18x16xf32>
    %30 = arith.cmpf oge, %28, %29 : vector<18x16xf32>
    %cst_21 = arith.constant 1.000000e-01 : f32
    %31 = vector.broadcast %cst_21 : f32 to vector<18x16xf32>
    %32 = arith.mulf %31, %28 : vector<18x16xf32>
    %33 = arith.select %30, %28, %32 : vector<18x16xi1>, vector<18x16xf32>
    %34 = arith.truncf %33 : vector<18x16xf32> to vector<18x16xbf16>
    %35 = vector.extract_strided_slice %34 {offsets = [0, 0], sizes = [16, 16], strides = [1, 1]} : vector<18x16xbf16> to vector<16x16xbf16>
    %c0_22 = arith.constant 0 : index
    %c0_23 = arith.constant 0 : index
    %c0_24 = arith.constant 0 : index
    %36 = vector.load %arg6[%c0_22, %c0_23, %c0_24] : memref<3x16x16xbf16, #tpu.memory_space<vmem>>, vector<1x16x16xbf16>
    %37 = vector.shape_cast %36 : vector<1x16x16xbf16> to vector<16x16xbf16>
    %cst_25 = arith.constant dense<0.000000e+00> : vector<16x16xf32>
    %38 = tpu.matmul %35, %37, %cst_25 {dimension_numbers = #tpu.dot_dimension_numbers<[1], [0], [0], [1], [0, 0, 1, 1], [], []>} : vector<16x16xbf16>, vector<16x16xbf16>, vector<16x16xf32> -> vector<16x16xf32>
    %39 = vector.extract_strided_slice %34 {offsets = [1, 0], sizes = [16, 16], strides = [1, 1]} : vector<18x16xbf16> to vector<16x16xbf16>
    %c1_26 = arith.constant 1 : index
    %c0_27 = arith.constant 0 : index
    %c0_28 = arith.constant 0 : index
    %40 = vector.load %arg6[%c1_26, %c0_27, %c0_28] : memref<3x16x16xbf16, #tpu.memory_space<vmem>>, vector<1x16x16xbf16>
    %41 = vector.shape_cast %40 : vector<1x16x16xbf16> to vector<16x16xbf16>
    %cst_29 = arith.constant dense<0.000000e+00> : vector<16x16xf32>
    %42 = tpu.matmul %39, %41, %cst_29 {dimension_numbers = #tpu.dot_dimension_numbers<[1], [0], [0], [1], [0, 0, 1, 1], [], []>} : vector<16x16xbf16>, vector<16x16xbf16>, vector<16x16xf32> -> vector<16x16xf32>
    %43 = arith.addf %38, %42 : vector<16x16xf32>
    %44 = vector.extract_strided_slice %34 {offsets = [2, 0], sizes = [16, 16], strides = [1, 1]} : vector<18x16xbf16> to vector<16x16xbf16>
    %c2_30 = arith.constant 2 : index
    %c0_31 = arith.constant 0 : index
    %c0_32 = arith.constant 0 : index
    %45 = vector.load %arg6[%c2_30, %c0_31, %c0_32] : memref<3x16x16xbf16, #tpu.memory_space<vmem>>, vector<1x16x16xbf16>
    %46 = vector.shape_cast %45 : vector<1x16x16xbf16> to vector<16x16xbf16>
    %cst_33 = arith.constant dense<0.000000e+00> : vector<16x16xf32>
    %47 = tpu.matmul %44, %46, %cst_33 {dimension_numbers = #tpu.dot_dimension_numbers<[1], [0], [0], [1], [0, 0, 1, 1], [], []>} : vector<16x16xbf16>, vector<16x16xbf16>, vector<16x16xf32> -> vector<16x16xf32>
    %48 = arith.addf %43, %47 : vector<16x16xf32>
    %49 = vector.extract_strided_slice %4 {offsets = [8, 0], sizes = [16, 16], strides = [1, 1]} : vector<32x16xbf16> to vector<16x16xbf16>
    %50 = arith.extf %49 : vector<16x16xbf16> to vector<16x16xf32>
    %c0_34 = arith.constant 0 : index
    %c0_35 = arith.constant 0 : index
    %51 = vector.load %arg7[%c0_34, %c0_35] : memref<1x16xf32, #tpu.memory_space<vmem>>, vector<1x16xf32>
    %52 = vector.broadcast %51 : vector<1x16xf32> to vector<16x16xf32>
    %53 = arith.addf %48, %52 : vector<16x16xf32>
    %54 = arith.addf %53, %50 : vector<16x16xf32>
    %55 = arith.truncf %54 : vector<16x16xf32> to vector<16x16xbf16>
    %c0_36 = arith.constant 0 : index
    %c0_37 = arith.constant 0 : index
    %c0_38 = arith.constant 0 : index
    %56 = vector.load %arg8[%c0_36, %c0_37, %c0_38] : memref<1x16x16xbf16, #tpu.memory_space<vmem>>, vector<1x16x16xbf16>
    %57 = vector.shape_cast %56 : vector<1x16x16xbf16> to vector<16x16xbf16>
    %58 = vector.shape_cast %55 : vector<16x16xbf16> to vector<1x16x16xbf16>
    tpu.vector_store %arg8[%c0_36, %c0_37, %c0_38], %58 {strides = array<i32>} : memref<1x16x16xbf16, #tpu.memory_space<vmem>>, vector<1x16x16xbf16>,
    return
  }
  func.func @transform_0(%arg0: i32, %arg1: i32) -> (i32, i32, i32, i32) {
    %c0_i32 = arith.constant 0 : i32
    %c0_i32_0 = arith.constant 0 : i32
    %c0_i32_1 = arith.constant 0 : i32
    return %arg0, %arg1, %c0_i32, %c0_i32_0 : i32, i32, i32, i32
  }
  func.func @transform_1(%arg0: i32, %arg1: i32) -> (i32, i32, i32, i32) {
    %c1_i32 = arith.constant 1 : i32
    %0 = arith.addi %arg1, %c1_i32 : i32
    %c0_i32 = arith.constant 0 : i32
    %c0_i32_0 = arith.constant 0 : i32
    %c0_i32_1 = arith.constant 0 : i32
    return %arg0, %0, %c0_i32, %c0_i32_0 : i32, i32, i32, i32
  }
  func.func @transform_2(%arg0: i32, %arg1: i32) -> (i32, i32, i32) {
    %c0_i32 = arith.constant 0 : i32
    %c0_i32_0 = arith.constant 0 : i32
    %c0_i32_1 = arith.constant 0 : i32
    %c0_i32_2 = arith.constant 0 : i32
    return %c0_i32, %c0_i32_0, %c0_i32_1 : i32, i32, i32
  }
  func.func @transform_3(%arg0: i32, %arg1: i32) -> (i32, i32) {
    %c0_i32 = arith.constant 0 : i32
    %c0_i32_0 = arith.constant 0 : i32
    %c0_i32_1 = arith.constant 0 : i32
    return %c0_i32, %c0_i32_0 : i32, i32
  }
  func.func @transform_4(%arg0: i32, %arg1: i32) -> (i32, i32, i32) {
    %c0_i32 = arith.constant 0 : i32
    %c0_i32_0 = arith.constant 0 : i32
    %c0_i32_1 = arith.constant 0 : i32
    %c0_i32_2 = arith.constant 0 : i32
    return %c0_i32, %c0_i32_0, %c0_i32_1 : i32, i32, i32
  }
  func.func @transform_5(%arg0: i32, %arg1: i32) -> (i32, i32) {
    %c0_i32 = arith.constant 0 : i32
    %c0_i32_0 = arith.constant 0 : i32
    %c0_i32_1 = arith.constant 0 : i32
    return %c0_i32, %c0_i32_0 : i32, i32
  }
  func.func @transform_6(%arg0: i32, %arg1: i32) -> (i32, i32, i32) {
    %c0_i32 = arith.constant 0 : i32
    %c0_i32_0 = arith.constant 0 : i32
    return %arg0, %arg1, %c0_i32 : i32, i32, i32
  }
}

module attributes {stable_mosaic.version = 11 : i64} {
  func.func @_resblock_pair_kernel(%arg0: i32, %arg1: i32, %arg2: memref<1x1x16x16xbf16, #tpu.memory_space<vmem>>, %arg3: memref<1x1x16x16xbf16, #tpu.memory_space<vmem>>, %arg4: memref<5x16x16xbf16, #tpu.memory_space<vmem>>, %arg5: memref<1x16xf32, #tpu.memory_space<vmem>>, %arg6: memref<5x16x16xbf16, #tpu.memory_space<vmem>>, %arg7: memref<1x16xf32, #tpu.memory_space<vmem>>, %arg8: memref<1x16x16xbf16, #tpu.memory_space<vmem>>, %arg9: memref<1x16x16xbf16, #tpu.memory_space<vmem>>) attributes {dimension_semantics = [#tpu.dimension_semantics<parallel>, #tpu.dimension_semantics<parallel>], iteration_bounds = array<i64: 2, 1>, scalar_prefetch = 0 : i64, scratch_operands = 0 : i64, tpu.core_type = #tpu.core_type<tc>, window_params = [{transform_indices = @transform_0, window_bounds = array<i64: 1, 1, 16, 16>}, {transform_indices = @transform_1, window_bounds = array<i64: 1, 1, 16, 16>}, {pipeline_mode = #tpu.pipeline_mode<synchronous>, transform_indices = @transform_2, window_bounds = array<i64: 5, 16, 16>}, {pipeline_mode = #tpu.pipeline_mode<synchronous>, transform_indices = @transform_3, window_bounds = array<i64: 1, 16>}, {pipeline_mode = #tpu.pipeline_mode<synchronous>, transform_indices = @transform_4, window_bounds = array<i64: 5, 16, 16>}, {pipeline_mode = #tpu.pipeline_mode<synchronous>, transform_indices = @transform_5, window_bounds = array<i64: 1, 16>}, {transform_indices = @transform_6, window_bounds = array<i64: 1, 16, 16>}, {transform_indices = @transform_7, window_bounds = array<i64: 1, 16, 16>}]} {
    %c0 = arith.constant 0 : index
    %c0_0 = arith.constant 0 : index
    %c0_1 = arith.constant 0 : index
    %c0_2 = arith.constant 0 : index
    %0 = vector.load %arg2[%c0, %c0_0, %c0_1, %c0_2] : memref<1x1x16x16xbf16, #tpu.memory_space<vmem>>, vector<1x1x16x16xbf16>
    %1 = vector.shape_cast %0 : vector<1x1x16x16xbf16> to vector<16x16xbf16>
    %c0_3 = arith.constant 0 : index
    %c0_4 = arith.constant 0 : index
    %c0_5 = arith.constant 0 : index
    %c0_6 = arith.constant 0 : index
    %2 = vector.load %arg3[%c0_3, %c0_4, %c0_5, %c0_6] : memref<1x1x16x16xbf16, #tpu.memory_space<vmem>>, vector<1x1x16x16xbf16>
    %3 = vector.shape_cast %2 : vector<1x1x16x16xbf16> to vector<16x16xbf16>
    %4 = tpu.concatenate %1, %3 in 0 : vector<16x16xbf16>, vector<16x16xbf16> -> vector<32x16xbf16>
    %5 = arith.extf %4 : vector<32x16xbf16> to vector<32x16xf32>
    %cst = arith.constant 0.000000e+00 : f32
    %6 = vector.broadcast %cst : f32 to vector<32x16xf32>
    %7 = arith.cmpf oge, %5, %6 : vector<32x16xf32>
    %cst_7 = arith.constant 1.000000e-01 : f32
    %8 = vector.broadcast %cst_7 : f32 to vector<32x16xf32>
    %9 = arith.mulf %8, %5 : vector<32x16xf32>
    %10 = arith.select %7, %5, %9 : vector<32x16xi1>, vector<32x16xf32>
    %11 = arith.truncf %10 : vector<32x16xf32> to vector<32x16xbf16>
    %12 = vector.extract_strided_slice %11 {offsets = [0, 0], sizes = [20, 16], strides = [1, 1]} : vector<32x16xbf16> to vector<20x16xbf16>
    %c0_8 = arith.constant 0 : index
    %c0_9 = arith.constant 0 : index
    %c0_10 = arith.constant 0 : index
    %13 = vector.load %arg4[%c0_8, %c0_9, %c0_10] : memref<5x16x16xbf16, #tpu.memory_space<vmem>>, vector<1x16x16xbf16>
    %14 = vector.shape_cast %13 : vector<1x16x16xbf16> to vector<16x16xbf16>
    %cst_11 = arith.constant dense<0.000000e+00> : vector<20x16xf32>
    %15 = tpu.matmul %12, %14, %cst_11 {dimension_numbers = #tpu.dot_dimension_numbers<[1], [0], [0], [1], [0, 0, 1, 1], [], []>} : vector<20x16xbf16>, vector<16x16xbf16>, vector<20x16xf32> -> vector<20x16xf32>
    %16 = vector.extract_strided_slice %11 {offsets = [3, 0], sizes = [20, 16], strides = [1, 1]} : vector<32x16xbf16> to vector<20x16xbf16>
    %c1 = arith.constant 1 : index
    %c0_12 = arith.constant 0 : index
    %c0_13 = arith.constant 0 : index
    %17 = vector.load %arg4[%c1, %c0_12, %c0_13] : memref<5x16x16xbf16, #tpu.memory_space<vmem>>, vector<1x16x16xbf16>
    %18 = vector.shape_cast %17 : vector<1x16x16xbf16> to vector<16x16xbf16>
    %cst_14 = arith.constant dense<0.000000e+00> : vector<20x16xf32>
    %19 = tpu.matmul %16, %18, %cst_14 {dimension_numbers = #tpu.dot_dimension_numbers<[1], [0], [0], [1], [0, 0, 1, 1], [], []>} : vector<20x16xbf16>, vector<16x16xbf16>, vector<20x16xf32> -> vector<20x16xf32>
    %20 = arith.addf %15, %19 : vector<20x16xf32>
    %21 = vector.extract_strided_slice %11 {offsets = [6, 0], sizes = [20, 16], strides = [1, 1]} : vector<32x16xbf16> to vector<20x16xbf16>
    %c2 = arith.constant 2 : index
    %c0_15 = arith.constant 0 : index
    %c0_16 = arith.constant 0 : index
    %22 = vector.load %arg4[%c2, %c0_15, %c0_16] : memref<5x16x16xbf16, #tpu.memory_space<vmem>>, vector<1x16x16xbf16>
    %23 = vector.shape_cast %22 : vector<1x16x16xbf16> to vector<16x16xbf16>
    %cst_17 = arith.constant dense<0.000000e+00> : vector<20x16xf32>
    %24 = tpu.matmul %21, %23, %cst_17 {dimension_numbers = #tpu.dot_dimension_numbers<[1], [0], [0], [1], [0, 0, 1, 1], [], []>} : vector<20x16xbf16>, vector<16x16xbf16>, vector<20x16xf32> -> vector<20x16xf32>
    %25 = arith.addf %20, %24 : vector<20x16xf32>
    %26 = vector.extract_strided_slice %11 {offsets = [9, 0], sizes = [20, 16], strides = [1, 1]} : vector<32x16xbf16> to vector<20x16xbf16>
    %c3 = arith.constant 3 : index
    %c0_18 = arith.constant 0 : index
    %c0_19 = arith.constant 0 : index
    %27 = vector.load %arg4[%c3, %c0_18, %c0_19] : memref<5x16x16xbf16, #tpu.memory_space<vmem>>, vector<1x16x16xbf16>
    %28 = vector.shape_cast %27 : vector<1x16x16xbf16> to vector<16x16xbf16>
    %cst_20 = arith.constant dense<0.000000e+00> : vector<20x16xf32>
    %29 = tpu.matmul %26, %28, %cst_20 {dimension_numbers = #tpu.dot_dimension_numbers<[1], [0], [0], [1], [0, 0, 1, 1], [], []>} : vector<20x16xbf16>, vector<16x16xbf16>, vector<20x16xf32> -> vector<20x16xf32>
    %30 = arith.addf %25, %29 : vector<20x16xf32>
    %31 = vector.extract_strided_slice %11 {offsets = [12, 0], sizes = [20, 16], strides = [1, 1]} : vector<32x16xbf16> to vector<20x16xbf16>
    %c4 = arith.constant 4 : index
    %c0_21 = arith.constant 0 : index
    %c0_22 = arith.constant 0 : index
    %32 = vector.load %arg4[%c4, %c0_21, %c0_22] : memref<5x16x16xbf16, #tpu.memory_space<vmem>>, vector<1x16x16xbf16>
    %33 = vector.shape_cast %32 : vector<1x16x16xbf16> to vector<16x16xbf16>
    %cst_23 = arith.constant dense<0.000000e+00> : vector<20x16xf32>
    %34 = tpu.matmul %31, %33, %cst_23 {dimension_numbers = #tpu.dot_dimension_numbers<[1], [0], [0], [1], [0, 0, 1, 1], [], []>} : vector<20x16xbf16>, vector<16x16xbf16>, vector<20x16xf32> -> vector<20x16xf32>
    %35 = arith.addf %30, %34 : vector<20x16xf32>
    %c0_24 = arith.constant 0 : index
    %c0_25 = arith.constant 0 : index
    %36 = vector.load %arg5[%c0_24, %c0_25] : memref<1x16xf32, #tpu.memory_space<vmem>>, vector<1x16xf32>
    %37 = vector.broadcast %36 : vector<1x16xf32> to vector<20x16xf32>
    %38 = arith.addf %35, %37 : vector<20x16xf32>
    %cst_26 = arith.constant 0.000000e+00 : f32
    %39 = vector.broadcast %cst_26 : f32 to vector<20x16xf32>
    %40 = arith.cmpf oge, %38, %39 : vector<20x16xf32>
    %cst_27 = arith.constant 1.000000e-01 : f32
    %41 = vector.broadcast %cst_27 : f32 to vector<20x16xf32>
    %42 = arith.mulf %41, %38 : vector<20x16xf32>
    %43 = arith.select %40, %38, %42 : vector<20x16xi1>, vector<20x16xf32>
    %44 = arith.truncf %43 : vector<20x16xf32> to vector<20x16xbf16>
    %45 = vector.extract_strided_slice %44 {offsets = [0, 0], sizes = [16, 16], strides = [1, 1]} : vector<20x16xbf16> to vector<16x16xbf16>
    %c0_28 = arith.constant 0 : index
    %c0_29 = arith.constant 0 : index
    %c0_30 = arith.constant 0 : index
    %46 = vector.load %arg6[%c0_28, %c0_29, %c0_30] : memref<5x16x16xbf16, #tpu.memory_space<vmem>>, vector<1x16x16xbf16>
    %47 = vector.shape_cast %46 : vector<1x16x16xbf16> to vector<16x16xbf16>
    %cst_31 = arith.constant dense<0.000000e+00> : vector<16x16xf32>
    %48 = tpu.matmul %45, %47, %cst_31 {dimension_numbers = #tpu.dot_dimension_numbers<[1], [0], [0], [1], [0, 0, 1, 1], [], []>} : vector<16x16xbf16>, vector<16x16xbf16>, vector<16x16xf32> -> vector<16x16xf32>
    %49 = vector.extract_strided_slice %44 {offsets = [1, 0], sizes = [16, 16], strides = [1, 1]} : vector<20x16xbf16> to vector<16x16xbf16>
    %c1_32 = arith.constant 1 : index
    %c0_33 = arith.constant 0 : index
    %c0_34 = arith.constant 0 : index
    %50 = vector.load %arg6[%c1_32, %c0_33, %c0_34] : memref<5x16x16xbf16, #tpu.memory_space<vmem>>, vector<1x16x16xbf16>
    %51 = vector.shape_cast %50 : vector<1x16x16xbf16> to vector<16x16xbf16>
    %cst_35 = arith.constant dense<0.000000e+00> : vector<16x16xf32>
    %52 = tpu.matmul %49, %51, %cst_35 {dimension_numbers = #tpu.dot_dimension_numbers<[1], [0], [0], [1], [0, 0, 1, 1], [], []>} : vector<16x16xbf16>, vector<16x16xbf16>, vector<16x16xf32> -> vector<16x16xf32>
    %53 = arith.addf %48, %52 : vector<16x16xf32>
    %54 = vector.extract_strided_slice %44 {offsets = [2, 0], sizes = [16, 16], strides = [1, 1]} : vector<20x16xbf16> to vector<16x16xbf16>
    %c2_36 = arith.constant 2 : index
    %c0_37 = arith.constant 0 : index
    %c0_38 = arith.constant 0 : index
    %55 = vector.load %arg6[%c2_36, %c0_37, %c0_38] : memref<5x16x16xbf16, #tpu.memory_space<vmem>>, vector<1x16x16xbf16>
    %56 = vector.shape_cast %55 : vector<1x16x16xbf16> to vector<16x16xbf16>
    %cst_39 = arith.constant dense<0.000000e+00> : vector<16x16xf32>
    %57 = tpu.matmul %54, %56, %cst_39 {dimension_numbers = #tpu.dot_dimension_numbers<[1], [0], [0], [1], [0, 0, 1, 1], [], []>} : vector<16x16xbf16>, vector<16x16xbf16>, vector<16x16xf32> -> vector<16x16xf32>
    %58 = arith.addf %53, %57 : vector<16x16xf32>
    %59 = vector.extract_strided_slice %44 {offsets = [3, 0], sizes = [16, 16], strides = [1, 1]} : vector<20x16xbf16> to vector<16x16xbf16>
    %c3_40 = arith.constant 3 : index
    %c0_41 = arith.constant 0 : index
    %c0_42 = arith.constant 0 : index
    %60 = vector.load %arg6[%c3_40, %c0_41, %c0_42] : memref<5x16x16xbf16, #tpu.memory_space<vmem>>, vector<1x16x16xbf16>
    %61 = vector.shape_cast %60 : vector<1x16x16xbf16> to vector<16x16xbf16>
    %cst_43 = arith.constant dense<0.000000e+00> : vector<16x16xf32>
    %62 = tpu.matmul %59, %61, %cst_43 {dimension_numbers = #tpu.dot_dimension_numbers<[1], [0], [0], [1], [0, 0, 1, 1], [], []>} : vector<16x16xbf16>, vector<16x16xbf16>, vector<16x16xf32> -> vector<16x16xf32>
    %63 = arith.addf %58, %62 : vector<16x16xf32>
    %64 = vector.extract_strided_slice %44 {offsets = [4, 0], sizes = [16, 16], strides = [1, 1]} : vector<20x16xbf16> to vector<16x16xbf16>
    %c4_44 = arith.constant 4 : index
    %c0_45 = arith.constant 0 : index
    %c0_46 = arith.constant 0 : index
    %65 = vector.load %arg6[%c4_44, %c0_45, %c0_46] : memref<5x16x16xbf16, #tpu.memory_space<vmem>>, vector<1x16x16xbf16>
    %66 = vector.shape_cast %65 : vector<1x16x16xbf16> to vector<16x16xbf16>
    %cst_47 = arith.constant dense<0.000000e+00> : vector<16x16xf32>
    %67 = tpu.matmul %64, %66, %cst_47 {dimension_numbers = #tpu.dot_dimension_numbers<[1], [0], [0], [1], [0, 0, 1, 1], [], []>} : vector<16x16xbf16>, vector<16x16xbf16>, vector<16x16xf32> -> vector<16x16xf32>
    %68 = arith.addf %63, %67 : vector<16x16xf32>
    %69 = vector.extract_strided_slice %4 {offsets = [8, 0], sizes = [16, 16], strides = [1, 1]} : vector<32x16xbf16> to vector<16x16xbf16>
    %70 = arith.extf %69 : vector<16x16xbf16> to vector<16x16xf32>
    %c0_48 = arith.constant 0 : index
    %c0_49 = arith.constant 0 : index
    %71 = vector.load %arg7[%c0_48, %c0_49] : memref<1x16xf32, #tpu.memory_space<vmem>>, vector<1x16xf32>
    %72 = vector.broadcast %71 : vector<1x16xf32> to vector<16x16xf32>
    %73 = arith.addf %68, %72 : vector<16x16xf32>
    %74 = arith.addf %73, %70 : vector<16x16xf32>
    %c0_50 = arith.constant 0 : index
    %c0_51 = arith.constant 0 : index
    %c0_52 = arith.constant 0 : index
    %75 = vector.load %arg8[%c0_50, %c0_51, %c0_52] : memref<1x16x16xbf16, #tpu.memory_space<vmem>>, vector<1x16x16xbf16>
    %76 = vector.shape_cast %75 : vector<1x16x16xbf16> to vector<16x16xbf16>
    %77 = arith.extf %76 : vector<16x16xbf16> to vector<16x16xf32>
    %78 = arith.addf %74, %77 : vector<16x16xf32>
    %cst_53 = arith.constant 5.000000e-01 : f32
    %79 = vector.broadcast %cst_53 : f32 to vector<16x16xf32>
    %80 = arith.mulf %78, %79 : vector<16x16xf32>
    %81 = arith.truncf %80 : vector<16x16xf32> to vector<16x16xbf16>
    %c0_54 = arith.constant 0 : index
    %c0_55 = arith.constant 0 : index
    %c0_56 = arith.constant 0 : index
    %82 = vector.load %arg9[%c0_54, %c0_55, %c0_56] : memref<1x16x16xbf16, #tpu.memory_space<vmem>>, vector<1x16x16xbf16>
    %83 = vector.shape_cast %82 : vector<1x16x16xbf16> to vector<16x16xbf16>
    %84 = vector.shape_cast %81 : vector<16x16xbf16> to vector<1x16x16xbf16>
    tpu.vector_store %arg9[%c0_54, %c0_55, %c0_56], %84 {strides = array<i32>} : memref<1x16x16xbf16, #tpu.memory_space<vmem>>, vector<1x16x16xbf16>,
    return
  }
  func.func @transform_0(%arg0: i32, %arg1: i32) -> (i32, i32, i32, i32) {
    %c0_i32 = arith.constant 0 : i32
    %c0_i32_0 = arith.constant 0 : i32
    %c0_i32_1 = arith.constant 0 : i32
    return %arg0, %arg1, %c0_i32, %c0_i32_0 : i32, i32, i32, i32
  }
  func.func @transform_1(%arg0: i32, %arg1: i32) -> (i32, i32, i32, i32) {
    %c1_i32 = arith.constant 1 : i32
    %0 = arith.addi %arg1, %c1_i32 : i32
    %c0_i32 = arith.constant 0 : i32
    %c0_i32_0 = arith.constant 0 : i32
    %c0_i32_1 = arith.constant 0 : i32
    return %arg0, %0, %c0_i32, %c0_i32_0 : i32, i32, i32, i32
  }
  func.func @transform_2(%arg0: i32, %arg1: i32) -> (i32, i32, i32) {
    %c0_i32 = arith.constant 0 : i32
    %c0_i32_0 = arith.constant 0 : i32
    %c0_i32_1 = arith.constant 0 : i32
    %c0_i32_2 = arith.constant 0 : i32
    return %c0_i32, %c0_i32_0, %c0_i32_1 : i32, i32, i32
  }
  func.func @transform_3(%arg0: i32, %arg1: i32) -> (i32, i32) {
    %c0_i32 = arith.constant 0 : i32
    %c0_i32_0 = arith.constant 0 : i32
    %c0_i32_1 = arith.constant 0 : i32
    return %c0_i32, %c0_i32_0 : i32, i32
  }
  func.func @transform_4(%arg0: i32, %arg1: i32) -> (i32, i32, i32) {
    %c0_i32 = arith.constant 0 : i32
    %c0_i32_0 = arith.constant 0 : i32
    %c0_i32_1 = arith.constant 0 : i32
    %c0_i32_2 = arith.constant 0 : i32
    return %c0_i32, %c0_i32_0, %c0_i32_1 : i32, i32, i32
  }
  func.func @transform_5(%arg0: i32, %arg1: i32) -> (i32, i32) {
    %c0_i32 = arith.constant 0 : i32
    %c0_i32_0 = arith.constant 0 : i32
    %c0_i32_1 = arith.constant 0 : i32
    return %c0_i32, %c0_i32_0 : i32, i32
  }
  func.func @transform_6(%arg0: i32, %arg1: i32) -> (i32, i32, i32) {
    %c0_i32 = arith.constant 0 : i32
    %c0_i32_0 = arith.constant 0 : i32
    return %arg0, %arg1, %c0_i32 : i32, i32, i32
  }
  func.func @transform_7(%arg0: i32, %arg1: i32) -> (i32, i32, i32) {
    %c0_i32 = arith.constant 0 : i32
    %c0_i32_0 = arith.constant 0 : i32
    return %arg0, %arg1, %c0_i32 : i32, i32, i32
  }
}

module attributes {stable_mosaic.version = 11 : i64} {
  func.func @_resblock_pair_kernel(%arg0: i32, %arg1: i32, %arg2: memref<1x1x16x16xbf16, #tpu.memory_space<vmem>>, %arg3: memref<1x1x16x16xbf16, #tpu.memory_space<vmem>>, %arg4: memref<5x16x16xbf16, #tpu.memory_space<vmem>>, %arg5: memref<1x16xf32, #tpu.memory_space<vmem>>, %arg6: memref<5x16x16xbf16, #tpu.memory_space<vmem>>, %arg7: memref<1x16xf32, #tpu.memory_space<vmem>>, %arg8: memref<1x16x16xbf16, #tpu.memory_space<vmem>>) attributes {dimension_semantics = [#tpu.dimension_semantics<parallel>, #tpu.dimension_semantics<parallel>], iteration_bounds = array<i64: 2, 1>, scalar_prefetch = 0 : i64, scratch_operands = 0 : i64, tpu.core_type = #tpu.core_type<tc>, window_params = [{transform_indices = @transform_0, window_bounds = array<i64: 1, 1, 16, 16>}, {transform_indices = @transform_1, window_bounds = array<i64: 1, 1, 16, 16>}, {pipeline_mode = #tpu.pipeline_mode<synchronous>, transform_indices = @transform_2, window_bounds = array<i64: 5, 16, 16>}, {pipeline_mode = #tpu.pipeline_mode<synchronous>, transform_indices = @transform_3, window_bounds = array<i64: 1, 16>}, {pipeline_mode = #tpu.pipeline_mode<synchronous>, transform_indices = @transform_4, window_bounds = array<i64: 5, 16, 16>}, {pipeline_mode = #tpu.pipeline_mode<synchronous>, transform_indices = @transform_5, window_bounds = array<i64: 1, 16>}, {transform_indices = @transform_6, window_bounds = array<i64: 1, 16, 16>}]} {
    %c0 = arith.constant 0 : index
    %c0_0 = arith.constant 0 : index
    %c0_1 = arith.constant 0 : index
    %c0_2 = arith.constant 0 : index
    %0 = vector.load %arg2[%c0, %c0_0, %c0_1, %c0_2] : memref<1x1x16x16xbf16, #tpu.memory_space<vmem>>, vector<1x1x16x16xbf16>
    %1 = vector.shape_cast %0 : vector<1x1x16x16xbf16> to vector<16x16xbf16>
    %c0_3 = arith.constant 0 : index
    %c0_4 = arith.constant 0 : index
    %c0_5 = arith.constant 0 : index
    %c0_6 = arith.constant 0 : index
    %2 = vector.load %arg3[%c0_3, %c0_4, %c0_5, %c0_6] : memref<1x1x16x16xbf16, #tpu.memory_space<vmem>>, vector<1x1x16x16xbf16>
    %3 = vector.shape_cast %2 : vector<1x1x16x16xbf16> to vector<16x16xbf16>
    %4 = tpu.concatenate %1, %3 in 0 : vector<16x16xbf16>, vector<16x16xbf16> -> vector<32x16xbf16>
    %5 = arith.extf %4 : vector<32x16xbf16> to vector<32x16xf32>
    %cst = arith.constant 0.000000e+00 : f32
    %6 = vector.broadcast %cst : f32 to vector<32x16xf32>
    %7 = arith.cmpf oge, %5, %6 : vector<32x16xf32>
    %cst_7 = arith.constant 1.000000e-01 : f32
    %8 = vector.broadcast %cst_7 : f32 to vector<32x16xf32>
    %9 = arith.mulf %8, %5 : vector<32x16xf32>
    %10 = arith.select %7, %5, %9 : vector<32x16xi1>, vector<32x16xf32>
    %11 = arith.truncf %10 : vector<32x16xf32> to vector<32x16xbf16>
    %12 = vector.extract_strided_slice %11 {offsets = [4, 0], sizes = [20, 16], strides = [1, 1]} : vector<32x16xbf16> to vector<20x16xbf16>
    %c0_8 = arith.constant 0 : index
    %c0_9 = arith.constant 0 : index
    %c0_10 = arith.constant 0 : index
    %13 = vector.load %arg4[%c0_8, %c0_9, %c0_10] : memref<5x16x16xbf16, #tpu.memory_space<vmem>>, vector<1x16x16xbf16>
    %14 = vector.shape_cast %13 : vector<1x16x16xbf16> to vector<16x16xbf16>
    %cst_11 = arith.constant dense<0.000000e+00> : vector<20x16xf32>
    %15 = tpu.matmul %12, %14, %cst_11 {dimension_numbers = #tpu.dot_dimension_numbers<[1], [0], [0], [1], [0, 0, 1, 1], [], []>} : vector<20x16xbf16>, vector<16x16xbf16>, vector<20x16xf32> -> vector<20x16xf32>
    %16 = vector.extract_strided_slice %11 {offsets = [5, 0], sizes = [20, 16], strides = [1, 1]} : vector<32x16xbf16> to vector<20x16xbf16>
    %c1 = arith.constant 1 : index
    %c0_12 = arith.constant 0 : index
    %c0_13 = arith.constant 0 : index
    %17 = vector.load %arg4[%c1, %c0_12, %c0_13] : memref<5x16x16xbf16, #tpu.memory_space<vmem>>, vector<1x16x16xbf16>
    %18 = vector.shape_cast %17 : vector<1x16x16xbf16> to vector<16x16xbf16>
    %cst_14 = arith.constant dense<0.000000e+00> : vector<20x16xf32>
    %19 = tpu.matmul %16, %18, %cst_14 {dimension_numbers = #tpu.dot_dimension_numbers<[1], [0], [0], [1], [0, 0, 1, 1], [], []>} : vector<20x16xbf16>, vector<16x16xbf16>, vector<20x16xf32> -> vector<20x16xf32>
    %20 = arith.addf %15, %19 : vector<20x16xf32>
    %21 = vector.extract_strided_slice %11 {offsets = [6, 0], sizes = [20, 16], strides = [1, 1]} : vector<32x16xbf16> to vector<20x16xbf16>
    %c2 = arith.constant 2 : index
    %c0_15 = arith.constant 0 : index
    %c0_16 = arith.constant 0 : index
    %22 = vector.load %arg4[%c2, %c0_15, %c0_16] : memref<5x16x16xbf16, #tpu.memory_space<vmem>>, vector<1x16x16xbf16>
    %23 = vector.shape_cast %22 : vector<1x16x16xbf16> to vector<16x16xbf16>
    %cst_17 = arith.constant dense<0.000000e+00> : vector<20x16xf32>
    %24 = tpu.matmul %21, %23, %cst_17 {dimension_numbers = #tpu.dot_dimension_numbers<[1], [0], [0], [1], [0, 0, 1, 1], [], []>} : vector<20x16xbf16>, vector<16x16xbf16>, vector<20x16xf32> -> vector<20x16xf32>
    %25 = arith.addf %20, %24 : vector<20x16xf32>
    %26 = vector.extract_strided_slice %11 {offsets = [7, 0], sizes = [20, 16], strides = [1, 1]} : vector<32x16xbf16> to vector<20x16xbf16>
    %c3 = arith.constant 3 : index
    %c0_18 = arith.constant 0 : index
    %c0_19 = arith.constant 0 : index
    %27 = vector.load %arg4[%c3, %c0_18, %c0_19] : memref<5x16x16xbf16, #tpu.memory_space<vmem>>, vector<1x16x16xbf16>
    %28 = vector.shape_cast %27 : vector<1x16x16xbf16> to vector<16x16xbf16>
    %cst_20 = arith.constant dense<0.000000e+00> : vector<20x16xf32>
    %29 = tpu.matmul %26, %28, %cst_20 {dimension_numbers = #tpu.dot_dimension_numbers<[1], [0], [0], [1], [0, 0, 1, 1], [], []>} : vector<20x16xbf16>, vector<16x16xbf16>, vector<20x16xf32> -> vector<20x16xf32>
    %30 = arith.addf %25, %29 : vector<20x16xf32>
    %31 = vector.extract_strided_slice %11 {offsets = [8, 0], sizes = [20, 16], strides = [1, 1]} : vector<32x16xbf16> to vector<20x16xbf16>
    %c4 = arith.constant 4 : index
    %c0_21 = arith.constant 0 : index
    %c0_22 = arith.constant 0 : index
    %32 = vector.load %arg4[%c4, %c0_21, %c0_22] : memref<5x16x16xbf16, #tpu.memory_space<vmem>>, vector<1x16x16xbf16>
    %33 = vector.shape_cast %32 : vector<1x16x16xbf16> to vector<16x16xbf16>
    %cst_23 = arith.constant dense<0.000000e+00> : vector<20x16xf32>
    %34 = tpu.matmul %31, %33, %cst_23 {dimension_numbers = #tpu.dot_dimension_numbers<[1], [0], [0], [1], [0, 0, 1, 1], [], []>} : vector<20x16xbf16>, vector<16x16xbf16>, vector<20x16xf32> -> vector<20x16xf32>
    %35 = arith.addf %30, %34 : vector<20x16xf32>
    %c0_24 = arith.constant 0 : index
    %c0_25 = arith.constant 0 : index
    %36 = vector.load %arg5[%c0_24, %c0_25] : memref<1x16xf32, #tpu.memory_space<vmem>>, vector<1x16xf32>
    %37 = vector.broadcast %36 : vector<1x16xf32> to vector<20x16xf32>
    %38 = arith.addf %35, %37 : vector<20x16xf32>
    %cst_26 = arith.constant 0.000000e+00 : f32
    %39 = vector.broadcast %cst_26 : f32 to vector<20x16xf32>
    %40 = arith.cmpf oge, %38, %39 : vector<20x16xf32>
    %cst_27 = arith.constant 1.000000e-01 : f32
    %41 = vector.broadcast %cst_27 : f32 to vector<20x16xf32>
    %42 = arith.mulf %41, %38 : vector<20x16xf32>
    %43 = arith.select %40, %38, %42 : vector<20x16xi1>, vector<20x16xf32>
    %44 = arith.truncf %43 : vector<20x16xf32> to vector<20x16xbf16>
    %45 = vector.extract_strided_slice %44 {offsets = [0, 0], sizes = [16, 16], strides = [1, 1]} : vector<20x16xbf16> to vector<16x16xbf16>
    %c0_28 = arith.constant 0 : index
    %c0_29 = arith.constant 0 : index
    %c0_30 = arith.constant 0 : index
    %46 = vector.load %arg6[%c0_28, %c0_29, %c0_30] : memref<5x16x16xbf16, #tpu.memory_space<vmem>>, vector<1x16x16xbf16>
    %47 = vector.shape_cast %46 : vector<1x16x16xbf16> to vector<16x16xbf16>
    %cst_31 = arith.constant dense<0.000000e+00> : vector<16x16xf32>
    %48 = tpu.matmul %45, %47, %cst_31 {dimension_numbers = #tpu.dot_dimension_numbers<[1], [0], [0], [1], [0, 0, 1, 1], [], []>} : vector<16x16xbf16>, vector<16x16xbf16>, vector<16x16xf32> -> vector<16x16xf32>
    %49 = vector.extract_strided_slice %44 {offsets = [1, 0], sizes = [16, 16], strides = [1, 1]} : vector<20x16xbf16> to vector<16x16xbf16>
    %c1_32 = arith.constant 1 : index
    %c0_33 = arith.constant 0 : index
    %c0_34 = arith.constant 0 : index
    %50 = vector.load %arg6[%c1_32, %c0_33, %c0_34] : memref<5x16x16xbf16, #tpu.memory_space<vmem>>, vector<1x16x16xbf16>
    %51 = vector.shape_cast %50 : vector<1x16x16xbf16> to vector<16x16xbf16>
    %cst_35 = arith.constant dense<0.000000e+00> : vector<16x16xf32>
    %52 = tpu.matmul %49, %51, %cst_35 {dimension_numbers = #tpu.dot_dimension_numbers<[1], [0], [0], [1], [0, 0, 1, 1], [], []>} : vector<16x16xbf16>, vector<16x16xbf16>, vector<16x16xf32> -> vector<16x16xf32>
    %53 = arith.addf %48, %52 : vector<16x16xf32>
    %54 = vector.extract_strided_slice %44 {offsets = [2, 0], sizes = [16, 16], strides = [1, 1]} : vector<20x16xbf16> to vector<16x16xbf16>
    %c2_36 = arith.constant 2 : index
    %c0_37 = arith.constant 0 : index
    %c0_38 = arith.constant 0 : index
    %55 = vector.load %arg6[%c2_36, %c0_37, %c0_38] : memref<5x16x16xbf16, #tpu.memory_space<vmem>>, vector<1x16x16xbf16>
    %56 = vector.shape_cast %55 : vector<1x16x16xbf16> to vector<16x16xbf16>
    %cst_39 = arith.constant dense<0.000000e+00> : vector<16x16xf32>
    %57 = tpu.matmul %54, %56, %cst_39 {dimension_numbers = #tpu.dot_dimension_numbers<[1], [0], [0], [1], [0, 0, 1, 1], [], []>} : vector<16x16xbf16>, vector<16x16xbf16>, vector<16x16xf32> -> vector<16x16xf32>
    %58 = arith.addf %53, %57 : vector<16x16xf32>
    %59 = vector.extract_strided_slice %44 {offsets = [3, 0], sizes = [16, 16], strides = [1, 1]} : vector<20x16xbf16> to vector<16x16xbf16>
    %c3_40 = arith.constant 3 : index
    %c0_41 = arith.constant 0 : index
    %c0_42 = arith.constant 0 : index
    %60 = vector.load %arg6[%c3_40, %c0_41, %c0_42] : memref<5x16x16xbf16, #tpu.memory_space<vmem>>, vector<1x16x16xbf16>
    %61 = vector.shape_cast %60 : vector<1x16x16xbf16> to vector<16x16xbf16>
    %cst_43 = arith.constant dense<0.000000e+00> : vector<16x16xf32>
    %62 = tpu.matmul %59, %61, %cst_43 {dimension_numbers = #tpu.dot_dimension_numbers<[1], [0], [0], [1], [0, 0, 1, 1], [], []>} : vector<16x16xbf16>, vector<16x16xbf16>, vector<16x16xf32> -> vector<16x16xf32>
    %63 = arith.addf %58, %62 : vector<16x16xf32>
    %64 = vector.extract_strided_slice %44 {offsets = [4, 0], sizes = [16, 16], strides = [1, 1]} : vector<20x16xbf16> to vector<16x16xbf16>
    %c4_44 = arith.constant 4 : index
    %c0_45 = arith.constant 0 : index
    %c0_46 = arith.constant 0 : index
    %65 = vector.load %arg6[%c4_44, %c0_45, %c0_46] : memref<5x16x16xbf16, #tpu.memory_space<vmem>>, vector<1x16x16xbf16>
    %66 = vector.shape_cast %65 : vector<1x16x16xbf16> to vector<16x16xbf16>
    %cst_47 = arith.constant dense<0.000000e+00> : vector<16x16xf32>
    %67 = tpu.matmul %64, %66, %cst_47 {dimension_numbers = #tpu.dot_dimension_numbers<[1], [0], [0], [1], [0, 0, 1, 1], [], []>} : vector<16x16xbf16>, vector<16x16xbf16>, vector<16x16xf32> -> vector<16x16xf32>
    %68 = arith.addf %63, %67 : vector<16x16xf32>
    %69 = vector.extract_strided_slice %4 {offsets = [8, 0], sizes = [16, 16], strides = [1, 1]} : vector<32x16xbf16> to vector<16x16xbf16>
    %70 = arith.extf %69 : vector<16x16xbf16> to vector<16x16xf32>
    %c0_48 = arith.constant 0 : index
    %c0_49 = arith.constant 0 : index
    %71 = vector.load %arg7[%c0_48, %c0_49] : memref<1x16xf32, #tpu.memory_space<vmem>>, vector<1x16xf32>
    %72 = vector.broadcast %71 : vector<1x16xf32> to vector<16x16xf32>
    %73 = arith.addf %68, %72 : vector<16x16xf32>
    %74 = arith.addf %73, %70 : vector<16x16xf32>
    %75 = arith.truncf %74 : vector<16x16xf32> to vector<16x16xbf16>
    %c0_50 = arith.constant 0 : index
    %c0_51 = arith.constant 0 : index
    %c0_52 = arith.constant 0 : index
    %76 = vector.load %arg8[%c0_50, %c0_51, %c0_52] : memref<1x16x16xbf16, #tpu.memory_space<vmem>>, vector<1x16x16xbf16>
    %77 = vector.shape_cast %76 : vector<1x16x16xbf16> to vector<16x16xbf16>
    %78 = vector.shape_cast %75 : vector<16x16xbf16> to vector<1x16x16xbf16>
    tpu.vector_store %arg8[%c0_50, %c0_51, %c0_52], %78 {strides = array<i32>} : memref<1x16x16xbf16, #tpu.memory_space<vmem>>, vector<1x16x16xbf16>,
    return
  }
  func.func @transform_0(%arg0: i32, %arg1: i32) -> (i32, i32, i32, i32) {
    %c0_i32 = arith.constant 0 : i32
    %c0_i32_0 = arith.constant 0 : i32
    %c0_i32_1 = arith.constant 0 : i32
    return %arg0, %arg1, %c0_i32, %c0_i32_0 : i32, i32, i32, i32
  }
  func.func @transform_1(%arg0: i32, %arg1: i32) -> (i32, i32, i32, i32) {
    %c1_i32 = arith.constant 1 : i32
    %0 = arith.addi %arg1, %c1_i32 : i32
    %c0_i32 = arith.constant 0 : i32
    %c0_i32_0 = arith.constant 0 : i32
    %c0_i32_1 = arith.constant 0 : i32
    return %arg0, %0, %c0_i32, %c0_i32_0 : i32, i32, i32, i32
  }
  func.func @transform_2(%arg0: i32, %arg1: i32) -> (i32, i32, i32) {
    %c0_i32 = arith.constant 0 : i32
    %c0_i32_0 = arith.constant 0 : i32
    %c0_i32_1 = arith.constant 0 : i32
    %c0_i32_2 = arith.constant 0 : i32
    return %c0_i32, %c0_i32_0, %c0_i32_1 : i32, i32, i32
  }
  func.func @transform_3(%arg0: i32, %arg1: i32) -> (i32, i32) {
    %c0_i32 = arith.constant 0 : i32
    %c0_i32_0 = arith.constant 0 : i32
    %c0_i32_1 = arith.constant 0 : i32
    return %c0_i32, %c0_i32_0 : i32, i32
  }
  func.func @transform_4(%arg0: i32, %arg1: i32) -> (i32, i32, i32) {
    %c0_i32 = arith.constant 0 : i32
    %c0_i32_0 = arith.constant 0 : i32
    %c0_i32_1 = arith.constant 0 : i32
    %c0_i32_2 = arith.constant 0 : i32
    return %c0_i32, %c0_i32_0, %c0_i32_1 : i32, i32, i32
  }
  func.func @transform_5(%arg0: i32, %arg1: i32) -> (i32, i32) {
    %c0_i32 = arith.constant 0 : i32
    %c0_i32_0 = arith.constant 0 : i32
    %c0_i32_1 = arith.constant 0 : i32
    return %c0_i32, %c0_i32_0 : i32, i32
  }
  func.func @transform_6(%arg0: i32, %arg1: i32) -> (i32, i32, i32) {
    %c0_i32 = arith.constant 0 : i32
    %c0_i32_0 = arith.constant 0 : i32
    return %arg0, %arg1, %c0_i32 : i32, i32, i32
  }
}

module attributes {stable_mosaic.version = 11 : i64} {
  func.func @_conv_kernel(%arg0: i32, %arg1: i32, %arg2: memref<1x1x16x16xbf16, #tpu.memory_space<vmem>>, %arg3: memref<1x1x16x16xbf16, #tpu.memory_space<vmem>>, %arg4: memref<3x16x16xbf16, #tpu.memory_space<vmem>>, %arg5: memref<1x16xf32, #tpu.memory_space<vmem>>, %arg6: memref<1x16x16xbf16, #tpu.memory_space<vmem>>) attributes {dimension_semantics = [#tpu.dimension_semantics<parallel>, #tpu.dimension_semantics<parallel>], iteration_bounds = array<i64: 2, 1>, scalar_prefetch = 0 : i64, scratch_operands = 0 : i64, tpu.core_type = #tpu.core_type<tc>, window_params = [{transform_indices = @transform_0, window_bounds = array<i64: 1, 1, 16, 16>}, {transform_indices = @transform_1, window_bounds = array<i64: 1, 1, 16, 16>}, {pipeline_mode = #tpu.pipeline_mode<synchronous>, transform_indices = @transform_2, window_bounds = array<i64: 3, 16, 16>}, {pipeline_mode = #tpu.pipeline_mode<synchronous>, transform_indices = @transform_3, window_bounds = array<i64: 1, 16>}, {transform_indices = @transform_4, window_bounds = array<i64: 1, 16, 16>}]} {
    %c0 = arith.constant 0 : index
    %c0_0 = arith.constant 0 : index
    %c0_1 = arith.constant 0 : index
    %c0_2 = arith.constant 0 : index
    %0 = vector.load %arg2[%c0, %c0_0, %c0_1, %c0_2] : memref<1x1x16x16xbf16, #tpu.memory_space<vmem>>, vector<1x1x16x16xbf16>
    %1 = vector.shape_cast %0 : vector<1x1x16x16xbf16> to vector<16x16xbf16>
    %c0_3 = arith.constant 0 : index
    %c0_4 = arith.constant 0 : index
    %c0_5 = arith.constant 0 : index
    %c0_6 = arith.constant 0 : index
    %2 = vector.load %arg3[%c0_3, %c0_4, %c0_5, %c0_6] : memref<1x1x16x16xbf16, #tpu.memory_space<vmem>>, vector<1x1x16x16xbf16>
    %3 = vector.shape_cast %2 : vector<1x1x16x16xbf16> to vector<16x16xbf16>
    %4 = tpu.concatenate %1, %3 in 0 : vector<16x16xbf16>, vector<16x16xbf16> -> vector<32x16xbf16>
    %5 = arith.extf %4 : vector<32x16xbf16> to vector<32x16xf32>
    %cst = arith.constant 0.000000e+00 : f32
    %6 = vector.broadcast %cst : f32 to vector<32x16xf32>
    %7 = arith.cmpf oge, %5, %6 : vector<32x16xf32>
    %cst_7 = arith.constant 1.000000e-01 : f32
    %8 = vector.broadcast %cst_7 : f32 to vector<32x16xf32>
    %9 = arith.mulf %8, %5 : vector<32x16xf32>
    %10 = arith.select %7, %5, %9 : vector<32x16xi1>, vector<32x16xf32>
    %11 = arith.truncf %10 : vector<32x16xf32> to vector<32x16xbf16>
    %12 = vector.extract_strided_slice %11 {offsets = [7, 0], sizes = [16, 16], strides = [1, 1]} : vector<32x16xbf16> to vector<16x16xbf16>
    %c0_8 = arith.constant 0 : index
    %c0_9 = arith.constant 0 : index
    %c0_10 = arith.constant 0 : index
    %13 = vector.load %arg4[%c0_8, %c0_9, %c0_10] : memref<3x16x16xbf16, #tpu.memory_space<vmem>>, vector<1x16x16xbf16>
    %14 = vector.shape_cast %13 : vector<1x16x16xbf16> to vector<16x16xbf16>
    %cst_11 = arith.constant dense<0.000000e+00> : vector<16x16xf32>
    %15 = tpu.matmul %12, %14, %cst_11 {dimension_numbers = #tpu.dot_dimension_numbers<[1], [0], [0], [1], [0, 0, 1, 1], [], []>} : vector<16x16xbf16>, vector<16x16xbf16>, vector<16x16xf32> -> vector<16x16xf32>
    %16 = vector.extract_strided_slice %11 {offsets = [8, 0], sizes = [16, 16], strides = [1, 1]} : vector<32x16xbf16> to vector<16x16xbf16>
    %c1 = arith.constant 1 : index
    %c0_12 = arith.constant 0 : index
    %c0_13 = arith.constant 0 : index
    %17 = vector.load %arg4[%c1, %c0_12, %c0_13] : memref<3x16x16xbf16, #tpu.memory_space<vmem>>, vector<1x16x16xbf16>
    %18 = vector.shape_cast %17 : vector<1x16x16xbf16> to vector<16x16xbf16>
    %cst_14 = arith.constant dense<0.000000e+00> : vector<16x16xf32>
    %19 = tpu.matmul %16, %18, %cst_14 {dimension_numbers = #tpu.dot_dimension_numbers<[1], [0], [0], [1], [0, 0, 1, 1], [], []>} : vector<16x16xbf16>, vector<16x16xbf16>, vector<16x16xf32> -> vector<16x16xf32>
    %20 = arith.addf %15, %19 : vector<16x16xf32>
    %21 = vector.extract_strided_slice %11 {offsets = [9, 0], sizes = [16, 16], strides = [1, 1]} : vector<32x16xbf16> to vector<16x16xbf16>
    %c2 = arith.constant 2 : index
    %c0_15 = arith.constant 0 : index
    %c0_16 = arith.constant 0 : index
    %22 = vector.load %arg4[%c2, %c0_15, %c0_16] : memref<3x16x16xbf16, #tpu.memory_space<vmem>>, vector<1x16x16xbf16>
    %23 = vector.shape_cast %22 : vector<1x16x16xbf16> to vector<16x16xbf16>
    %cst_17 = arith.constant dense<0.000000e+00> : vector<16x16xf32>
    %24 = tpu.matmul %21, %23, %cst_17 {dimension_numbers = #tpu.dot_dimension_numbers<[1], [0], [0], [1], [0, 0, 1, 1], [], []>} : vector<16x16xbf16>, vector<16x16xbf16>, vector<16x16xf32> -> vector<16x16xf32>
    %25 = arith.addf %20, %24 : vector<16x16xf32>
    %c0_18 = arith.constant 0 : index
    %c0_19 = arith.constant 0 : index
    %26 = vector.load %arg5[%c0_18, %c0_19] : memref<1x16xf32, #tpu.memory_space<vmem>>, vector<1x16xf32>
    %27 = vector.broadcast %26 : vector<1x16xf32> to vector<16x16xf32>
    %28 = arith.addf %25, %27 : vector<16x16xf32>
    %29 = arith.truncf %28 : vector<16x16xf32> to vector<16x16xbf16>
    %c0_20 = arith.constant 0 : index
    %c0_21 = arith.constant 0 : index
    %c0_22 = arith.constant 0 : index
    %30 = vector.load %arg6[%c0_20, %c0_21, %c0_22] : memref<1x16x16xbf16, #tpu.memory_space<vmem>>, vector<1x16x16xbf16>
    %31 = vector.shape_cast %30 : vector<1x16x16xbf16> to vector<16x16xbf16>
    %32 = vector.shape_cast %29 : vector<16x16xbf16> to vector<1x16x16xbf16>
    tpu.vector_store %arg6[%c0_20, %c0_21, %c0_22], %32 {strides = array<i32>} : memref<1x16x16xbf16, #tpu.memory_space<vmem>>, vector<1x16x16xbf16>,
    return
  }
  func.func @transform_0(%arg0: i32, %arg1: i32) -> (i32, i32, i32, i32) {
    %c0_i32 = arith.constant 0 : i32
    %c0_i32_0 = arith.constant 0 : i32
    %c0_i32_1 = arith.constant 0 : i32
    return %arg0, %arg1, %c0_i32, %c0_i32_0 : i32, i32, i32, i32
  }
  func.func @transform_1(%arg0: i32, %arg1: i32) -> (i32, i32, i32, i32) {
    %c1_i32 = arith.constant 1 : i32
    %0 = arith.addi %arg1, %c1_i32 : i32
    %c0_i32 = arith.constant 0 : i32
    %c0_i32_0 = arith.constant 0 : i32
    %c0_i32_1 = arith.constant 0 : i32
    return %arg0, %0, %c0_i32, %c0_i32_0 : i32, i32, i32, i32
  }
  func.func @transform_2(%arg0: i32, %arg1: i32) -> (i32, i32, i32) {
    %c0_i32 = arith.constant 0 : i32
    %c0_i32_0 = arith.constant 0 : i32
    %c0_i32_1 = arith.constant 0 : i32
    %c0_i32_2 = arith.constant 0 : i32
    return %c0_i32, %c0_i32_0, %c0_i32_1 : i32, i32, i32
  }
  func.func @transform_3(%arg0: i32, %arg1: i32) -> (i32, i32) {
    %c0_i32 = arith.constant 0 : i32
    %c0_i32_0 = arith.constant 0 : i32
    %c0_i32_1 = arith.constant 0 : i32
    return %c0_i32, %c0_i32_0 : i32, i32
  }
  func.func @transform_4(%arg0: i32, %arg1: i32) -> (i32, i32, i32) {
    %c0_i32 = arith.constant 0 : i32
    %c0_i32_0 = arith.constant 0 : i32
    return %arg0, %arg1, %c0_i32 : i32, i32, i32
  }
}

module attributes {stable_mosaic.version = 11 : i64} {
  func.func @_resblock_pair_kernel(%arg0: i32, %arg1: i32, %arg2: memref<1x1x32x8xbf16, #tpu.memory_space<vmem>>, %arg3: memref<1x1x16x8xbf16, #tpu.memory_space<vmem>>, %arg4: memref<3x8x8xbf16, #tpu.memory_space<vmem>>, %arg5: memref<1x8xf32, #tpu.memory_space<vmem>>, %arg6: memref<3x8x8xbf16, #tpu.memory_space<vmem>>, %arg7: memref<1x8xf32, #tpu.memory_space<vmem>>, %arg8: memref<1x32x8xbf16, #tpu.memory_space<vmem>>) attributes {dimension_semantics = [#tpu.dimension_semantics<parallel>, #tpu.dimension_semantics<parallel>], iteration_bounds = array<i64: 2, 1>, scalar_prefetch = 0 : i64, scratch_operands = 0 : i64, tpu.core_type = #tpu.core_type<tc>, window_params = [{transform_indices = @transform_0, window_bounds = array<i64: 1, 1, 32, 8>}, {transform_indices = @transform_1, window_bounds = array<i64: 1, 1, 16, 8>}, {pipeline_mode = #tpu.pipeline_mode<synchronous>, transform_indices = @transform_2, window_bounds = array<i64: 3, 8, 8>}, {pipeline_mode = #tpu.pipeline_mode<synchronous>, transform_indices = @transform_3, window_bounds = array<i64: 1, 8>}, {pipeline_mode = #tpu.pipeline_mode<synchronous>, transform_indices = @transform_4, window_bounds = array<i64: 3, 8, 8>}, {pipeline_mode = #tpu.pipeline_mode<synchronous>, transform_indices = @transform_5, window_bounds = array<i64: 1, 8>}, {transform_indices = @transform_6, window_bounds = array<i64: 1, 32, 8>}]} {
    %c0 = arith.constant 0 : index
    %c0_0 = arith.constant 0 : index
    %c0_1 = arith.constant 0 : index
    %c0_2 = arith.constant 0 : index
    %0 = vector.load %arg2[%c0, %c0_0, %c0_1, %c0_2] : memref<1x1x32x8xbf16, #tpu.memory_space<vmem>>, vector<1x1x32x8xbf16>
    %1 = vector.shape_cast %0 : vector<1x1x32x8xbf16> to vector<32x8xbf16>
    %c0_3 = arith.constant 0 : index
    %c0_4 = arith.constant 0 : index
    %c0_5 = arith.constant 0 : index
    %c0_6 = arith.constant 0 : index
    %2 = vector.load %arg3[%c0_3, %c0_4, %c0_5, %c0_6] : memref<1x1x16x8xbf16, #tpu.memory_space<vmem>>, vector<1x1x16x8xbf16>
    %3 = vector.shape_cast %2 : vector<1x1x16x8xbf16> to vector<16x8xbf16>
    %4 = tpu.concatenate %1, %3 in 0 : vector<32x8xbf16>, vector<16x8xbf16> -> vector<48x8xbf16>
    %5 = arith.extf %4 : vector<48x8xbf16> to vector<48x8xf32>
    %cst = arith.constant 0.000000e+00 : f32
    %6 = vector.broadcast %cst : f32 to vector<48x8xf32>
    %7 = arith.cmpf oge, %5, %6 : vector<48x8xf32>
    %cst_7 = arith.constant 1.000000e-01 : f32
    %8 = vector.broadcast %cst_7 : f32 to vector<48x8xf32>
    %9 = arith.mulf %8, %5 : vector<48x8xf32>
    %10 = arith.select %7, %5, %9 : vector<48x8xi1>, vector<48x8xf32>
    %11 = arith.truncf %10 : vector<48x8xf32> to vector<48x8xbf16>
    %12 = vector.extract_strided_slice %11 {offsets = [6, 0], sizes = [34, 8], strides = [1, 1]} : vector<48x8xbf16> to vector<34x8xbf16>
    %c0_8 = arith.constant 0 : index
    %c0_9 = arith.constant 0 : index
    %c0_10 = arith.constant 0 : index
    %13 = vector.load %arg4[%c0_8, %c0_9, %c0_10] : memref<3x8x8xbf16, #tpu.memory_space<vmem>>, vector<1x8x8xbf16>
    %14 = vector.shape_cast %13 : vector<1x8x8xbf16> to vector<8x8xbf16>
    %cst_11 = arith.constant dense<0.000000e+00> : vector<34x8xf32>
    %15 = tpu.matmul %12, %14, %cst_11 {dimension_numbers = #tpu.dot_dimension_numbers<[1], [0], [0], [1], [0, 0, 1, 1], [], []>} : vector<34x8xbf16>, vector<8x8xbf16>, vector<34x8xf32> -> vector<34x8xf32>
    %16 = vector.extract_strided_slice %11 {offsets = [7, 0], sizes = [34, 8], strides = [1, 1]} : vector<48x8xbf16> to vector<34x8xbf16>
    %c1 = arith.constant 1 : index
    %c0_12 = arith.constant 0 : index
    %c0_13 = arith.constant 0 : index
    %17 = vector.load %arg4[%c1, %c0_12, %c0_13] : memref<3x8x8xbf16, #tpu.memory_space<vmem>>, vector<1x8x8xbf16>
    %18 = vector.shape_cast %17 : vector<1x8x8xbf16> to vector<8x8xbf16>
    %cst_14 = arith.constant dense<0.000000e+00> : vector<34x8xf32>
    %19 = tpu.matmul %16, %18, %cst_14 {dimension_numbers = #tpu.dot_dimension_numbers<[1], [0], [0], [1], [0, 0, 1, 1], [], []>} : vector<34x8xbf16>, vector<8x8xbf16>, vector<34x8xf32> -> vector<34x8xf32>
    %20 = arith.addf %15, %19 : vector<34x8xf32>
    %21 = vector.extract_strided_slice %11 {offsets = [8, 0], sizes = [34, 8], strides = [1, 1]} : vector<48x8xbf16> to vector<34x8xbf16>
    %c2 = arith.constant 2 : index
    %c0_15 = arith.constant 0 : index
    %c0_16 = arith.constant 0 : index
    %22 = vector.load %arg4[%c2, %c0_15, %c0_16] : memref<3x8x8xbf16, #tpu.memory_space<vmem>>, vector<1x8x8xbf16>
    %23 = vector.shape_cast %22 : vector<1x8x8xbf16> to vector<8x8xbf16>
    %cst_17 = arith.constant dense<0.000000e+00> : vector<34x8xf32>
    %24 = tpu.matmul %21, %23, %cst_17 {dimension_numbers = #tpu.dot_dimension_numbers<[1], [0], [0], [1], [0, 0, 1, 1], [], []>} : vector<34x8xbf16>, vector<8x8xbf16>, vector<34x8xf32> -> vector<34x8xf32>
    %25 = arith.addf %20, %24 : vector<34x8xf32>
    %c0_18 = arith.constant 0 : index
    %c0_19 = arith.constant 0 : index
    %26 = vector.load %arg5[%c0_18, %c0_19] : memref<1x8xf32, #tpu.memory_space<vmem>>, vector<1x8xf32>
    %27 = vector.broadcast %26 : vector<1x8xf32> to vector<34x8xf32>
    %28 = arith.addf %25, %27 : vector<34x8xf32>
    %cst_20 = arith.constant 0.000000e+00 : f32
    %29 = vector.broadcast %cst_20 : f32 to vector<34x8xf32>
    %30 = arith.cmpf oge, %28, %29 : vector<34x8xf32>
    %cst_21 = arith.constant 1.000000e-01 : f32
    %31 = vector.broadcast %cst_21 : f32 to vector<34x8xf32>
    %32 = arith.mulf %31, %28 : vector<34x8xf32>
    %33 = arith.select %30, %28, %32 : vector<34x8xi1>, vector<34x8xf32>
    %34 = arith.truncf %33 : vector<34x8xf32> to vector<34x8xbf16>
    %35 = vector.extract_strided_slice %34 {offsets = [0, 0], sizes = [32, 8], strides = [1, 1]} : vector<34x8xbf16> to vector<32x8xbf16>
    %c0_22 = arith.constant 0 : index
    %c0_23 = arith.constant 0 : index
    %c0_24 = arith.constant 0 : index
    %36 = vector.load %arg6[%c0_22, %c0_23, %c0_24] : memref<3x8x8xbf16, #tpu.memory_space<vmem>>, vector<1x8x8xbf16>
    %37 = vector.shape_cast %36 : vector<1x8x8xbf16> to vector<8x8xbf16>
    %cst_25 = arith.constant dense<0.000000e+00> : vector<32x8xf32>
    %38 = tpu.matmul %35, %37, %cst_25 {dimension_numbers = #tpu.dot_dimension_numbers<[1], [0], [0], [1], [0, 0, 1, 1], [], []>} : vector<32x8xbf16>, vector<8x8xbf16>, vector<32x8xf32> -> vector<32x8xf32>
    %39 = vector.extract_strided_slice %34 {offsets = [1, 0], sizes = [32, 8], strides = [1, 1]} : vector<34x8xbf16> to vector<32x8xbf16>
    %c1_26 = arith.constant 1 : index
    %c0_27 = arith.constant 0 : index
    %c0_28 = arith.constant 0 : index
    %40 = vector.load %arg6[%c1_26, %c0_27, %c0_28] : memref<3x8x8xbf16, #tpu.memory_space<vmem>>, vector<1x8x8xbf16>
    %41 = vector.shape_cast %40 : vector<1x8x8xbf16> to vector<8x8xbf16>
    %cst_29 = arith.constant dense<0.000000e+00> : vector<32x8xf32>
    %42 = tpu.matmul %39, %41, %cst_29 {dimension_numbers = #tpu.dot_dimension_numbers<[1], [0], [0], [1], [0, 0, 1, 1], [], []>} : vector<32x8xbf16>, vector<8x8xbf16>, vector<32x8xf32> -> vector<32x8xf32>
    %43 = arith.addf %38, %42 : vector<32x8xf32>
    %44 = vector.extract_strided_slice %34 {offsets = [2, 0], sizes = [32, 8], strides = [1, 1]} : vector<34x8xbf16> to vector<32x8xbf16>
    %c2_30 = arith.constant 2 : index
    %c0_31 = arith.constant 0 : index
    %c0_32 = arith.constant 0 : index
    %45 = vector.load %arg6[%c2_30, %c0_31, %c0_32] : memref<3x8x8xbf16, #tpu.memory_space<vmem>>, vector<1x8x8xbf16>
    %46 = vector.shape_cast %45 : vector<1x8x8xbf16> to vector<8x8xbf16>
    %cst_33 = arith.constant dense<0.000000e+00> : vector<32x8xf32>
    %47 = tpu.matmul %44, %46, %cst_33 {dimension_numbers = #tpu.dot_dimension_numbers<[1], [0], [0], [1], [0, 0, 1, 1], [], []>} : vector<32x8xbf16>, vector<8x8xbf16>, vector<32x8xf32> -> vector<32x8xf32>
    %48 = arith.addf %43, %47 : vector<32x8xf32>
    %49 = vector.extract_strided_slice %4 {offsets = [8, 0], sizes = [32, 8], strides = [1, 1]} : vector<48x8xbf16> to vector<32x8xbf16>
    %50 = arith.extf %49 : vector<32x8xbf16> to vector<32x8xf32>
    %c0_34 = arith.constant 0 : index
    %c0_35 = arith.constant 0 : index
    %51 = vector.load %arg7[%c0_34, %c0_35] : memref<1x8xf32, #tpu.memory_space<vmem>>, vector<1x8xf32>
    %52 = vector.broadcast %51 : vector<1x8xf32> to vector<32x8xf32>
    %53 = arith.addf %48, %52 : vector<32x8xf32>
    %54 = arith.addf %53, %50 : vector<32x8xf32>
    %55 = arith.truncf %54 : vector<32x8xf32> to vector<32x8xbf16>
    %c0_36 = arith.constant 0 : index
    %c0_37 = arith.constant 0 : index
    %c0_38 = arith.constant 0 : index
    %56 = vector.load %arg8[%c0_36, %c0_37, %c0_38] : memref<1x32x8xbf16, #tpu.memory_space<vmem>>, vector<1x32x8xbf16>
    %57 = vector.shape_cast %56 : vector<1x32x8xbf16> to vector<32x8xbf16>
    %58 = vector.shape_cast %55 : vector<32x8xbf16> to vector<1x32x8xbf16>
    tpu.vector_store %arg8[%c0_36, %c0_37, %c0_38], %58 {strides = array<i32>} : memref<1x32x8xbf16, #tpu.memory_space<vmem>>, vector<1x32x8xbf16>,
    return
  }
  func.func @transform_0(%arg0: i32, %arg1: i32) -> (i32, i32, i32, i32) {
    %c0_i32 = arith.constant 0 : i32
    %c0_i32_0 = arith.constant 0 : i32
    %c0_i32_1 = arith.constant 0 : i32
    return %arg0, %arg1, %c0_i32, %c0_i32_0 : i32, i32, i32, i32
  }
  func.func @transform_1(%arg0: i32, %arg1: i32) -> (i32, i32, i32, i32) {
    %c1_i32 = arith.constant 1 : i32
    %0 = arith.addi %arg1, %c1_i32 : i32
    %c0_i32 = arith.constant 0 : i32
    %c0_i32_0 = arith.constant 0 : i32
    %c0_i32_1 = arith.constant 0 : i32
    return %arg0, %0, %c0_i32, %c0_i32_0 : i32, i32, i32, i32
  }
  func.func @transform_2(%arg0: i32, %arg1: i32) -> (i32, i32, i32) {
    %c0_i32 = arith.constant 0 : i32
    %c0_i32_0 = arith.constant 0 : i32
    %c0_i32_1 = arith.constant 0 : i32
    %c0_i32_2 = arith.constant 0 : i32
    return %c0_i32, %c0_i32_0, %c0_i32_1 : i32, i32, i32
  }
  func.func @transform_3(%arg0: i32, %arg1: i32) -> (i32, i32) {
    %c0_i32 = arith.constant 0 : i32
    %c0_i32_0 = arith.constant 0 : i32
    %c0_i32_1 = arith.constant 0 : i32
    return %c0_i32, %c0_i32_0 : i32, i32
  }
  func.func @transform_4(%arg0: i32, %arg1: i32) -> (i32, i32, i32) {
    %c0_i32 = arith.constant 0 : i32
    %c0_i32_0 = arith.constant 0 : i32
    %c0_i32_1 = arith.constant 0 : i32
    %c0_i32_2 = arith.constant 0 : i32
    return %c0_i32, %c0_i32_0, %c0_i32_1 : i32, i32, i32
  }
  func.func @transform_5(%arg0: i32, %arg1: i32) -> (i32, i32) {
    %c0_i32 = arith.constant 0 : i32
    %c0_i32_0 = arith.constant 0 : i32
    %c0_i32_1 = arith.constant 0 : i32
    return %c0_i32, %c0_i32_0 : i32, i32
  }
  func.func @transform_6(%arg0: i32, %arg1: i32) -> (i32, i32, i32) {
    %c0_i32 = arith.constant 0 : i32
    %c0_i32_0 = arith.constant 0 : i32
    return %arg0, %arg1, %c0_i32 : i32, i32, i32
  }
}

module attributes {stable_mosaic.version = 11 : i64} {
  func.func @_resblock_pair_kernel(%arg0: i32, %arg1: i32, %arg2: memref<1x1x32x8xbf16, #tpu.memory_space<vmem>>, %arg3: memref<1x1x16x8xbf16, #tpu.memory_space<vmem>>, %arg4: memref<3x8x8xbf16, #tpu.memory_space<vmem>>, %arg5: memref<1x8xf32, #tpu.memory_space<vmem>>, %arg6: memref<3x8x8xbf16, #tpu.memory_space<vmem>>, %arg7: memref<1x8xf32, #tpu.memory_space<vmem>>, %arg8: memref<1x32x8xbf16, #tpu.memory_space<vmem>>) attributes {dimension_semantics = [#tpu.dimension_semantics<parallel>, #tpu.dimension_semantics<parallel>], iteration_bounds = array<i64: 2, 1>, scalar_prefetch = 0 : i64, scratch_operands = 0 : i64, tpu.core_type = #tpu.core_type<tc>, window_params = [{transform_indices = @transform_0, window_bounds = array<i64: 1, 1, 32, 8>}, {transform_indices = @transform_1, window_bounds = array<i64: 1, 1, 16, 8>}, {pipeline_mode = #tpu.pipeline_mode<synchronous>, transform_indices = @transform_2, window_bounds = array<i64: 3, 8, 8>}, {pipeline_mode = #tpu.pipeline_mode<synchronous>, transform_indices = @transform_3, window_bounds = array<i64: 1, 8>}, {pipeline_mode = #tpu.pipeline_mode<synchronous>, transform_indices = @transform_4, window_bounds = array<i64: 3, 8, 8>}, {pipeline_mode = #tpu.pipeline_mode<synchronous>, transform_indices = @transform_5, window_bounds = array<i64: 1, 8>}, {transform_indices = @transform_6, window_bounds = array<i64: 1, 32, 8>}]} {
    %c0 = arith.constant 0 : index
    %c0_0 = arith.constant 0 : index
    %c0_1 = arith.constant 0 : index
    %c0_2 = arith.constant 0 : index
    %0 = vector.load %arg2[%c0, %c0_0, %c0_1, %c0_2] : memref<1x1x32x8xbf16, #tpu.memory_space<vmem>>, vector<1x1x32x8xbf16>
    %1 = vector.shape_cast %0 : vector<1x1x32x8xbf16> to vector<32x8xbf16>
    %c0_3 = arith.constant 0 : index
    %c0_4 = arith.constant 0 : index
    %c0_5 = arith.constant 0 : index
    %c0_6 = arith.constant 0 : index
    %2 = vector.load %arg3[%c0_3, %c0_4, %c0_5, %c0_6] : memref<1x1x16x8xbf16, #tpu.memory_space<vmem>>, vector<1x1x16x8xbf16>
    %3 = vector.shape_cast %2 : vector<1x1x16x8xbf16> to vector<16x8xbf16>
    %4 = tpu.concatenate %1, %3 in 0 : vector<32x8xbf16>, vector<16x8xbf16> -> vector<48x8xbf16>
    %5 = arith.extf %4 : vector<48x8xbf16> to vector<48x8xf32>
    %cst = arith.constant 0.000000e+00 : f32
    %6 = vector.broadcast %cst : f32 to vector<48x8xf32>
    %7 = arith.cmpf oge, %5, %6 : vector<48x8xf32>
    %cst_7 = arith.constant 1.000000e-01 : f32
    %8 = vector.broadcast %cst_7 : f32 to vector<48x8xf32>
    %9 = arith.mulf %8, %5 : vector<48x8xf32>
    %10 = arith.select %7, %5, %9 : vector<48x8xi1>, vector<48x8xf32>
    %11 = arith.truncf %10 : vector<48x8xf32> to vector<48x8xbf16>
    %12 = vector.extract_strided_slice %11 {offsets = [4, 0], sizes = [34, 8], strides = [1, 1]} : vector<48x8xbf16> to vector<34x8xbf16>
    %c0_8 = arith.constant 0 : index
    %c0_9 = arith.constant 0 : index
    %c0_10 = arith.constant 0 : index
    %13 = vector.load %arg4[%c0_8, %c0_9, %c0_10] : memref<3x8x8xbf16, #tpu.memory_space<vmem>>, vector<1x8x8xbf16>
    %14 = vector.shape_cast %13 : vector<1x8x8xbf16> to vector<8x8xbf16>
    %cst_11 = arith.constant dense<0.000000e+00> : vector<34x8xf32>
    %15 = tpu.matmul %12, %14, %cst_11 {dimension_numbers = #tpu.dot_dimension_numbers<[1], [0], [0], [1], [0, 0, 1, 1], [], []>} : vector<34x8xbf16>, vector<8x8xbf16>, vector<34x8xf32> -> vector<34x8xf32>
    %16 = vector.extract_strided_slice %11 {offsets = [7, 0], sizes = [34, 8], strides = [1, 1]} : vector<48x8xbf16> to vector<34x8xbf16>
    %c1 = arith.constant 1 : index
    %c0_12 = arith.constant 0 : index
    %c0_13 = arith.constant 0 : index
    %17 = vector.load %arg4[%c1, %c0_12, %c0_13] : memref<3x8x8xbf16, #tpu.memory_space<vmem>>, vector<1x8x8xbf16>
    %18 = vector.shape_cast %17 : vector<1x8x8xbf16> to vector<8x8xbf16>
    %cst_14 = arith.constant dense<0.000000e+00> : vector<34x8xf32>
    %19 = tpu.matmul %16, %18, %cst_14 {dimension_numbers = #tpu.dot_dimension_numbers<[1], [0], [0], [1], [0, 0, 1, 1], [], []>} : vector<34x8xbf16>, vector<8x8xbf16>, vector<34x8xf32> -> vector<34x8xf32>
    %20 = arith.addf %15, %19 : vector<34x8xf32>
    %21 = vector.extract_strided_slice %11 {offsets = [10, 0], sizes = [34, 8], strides = [1, 1]} : vector<48x8xbf16> to vector<34x8xbf16>
    %c2 = arith.constant 2 : index
    %c0_15 = arith.constant 0 : index
    %c0_16 = arith.constant 0 : index
    %22 = vector.load %arg4[%c2, %c0_15, %c0_16] : memref<3x8x8xbf16, #tpu.memory_space<vmem>>, vector<1x8x8xbf16>
    %23 = vector.shape_cast %22 : vector<1x8x8xbf16> to vector<8x8xbf16>
    %cst_17 = arith.constant dense<0.000000e+00> : vector<34x8xf32>
    %24 = tpu.matmul %21, %23, %cst_17 {dimension_numbers = #tpu.dot_dimension_numbers<[1], [0], [0], [1], [0, 0, 1, 1], [], []>} : vector<34x8xbf16>, vector<8x8xbf16>, vector<34x8xf32> -> vector<34x8xf32>
    %25 = arith.addf %20, %24 : vector<34x8xf32>
    %c0_18 = arith.constant 0 : index
    %c0_19 = arith.constant 0 : index
    %26 = vector.load %arg5[%c0_18, %c0_19] : memref<1x8xf32, #tpu.memory_space<vmem>>, vector<1x8xf32>
    %27 = vector.broadcast %26 : vector<1x8xf32> to vector<34x8xf32>
    %28 = arith.addf %25, %27 : vector<34x8xf32>
    %cst_20 = arith.constant 0.000000e+00 : f32
    %29 = vector.broadcast %cst_20 : f32 to vector<34x8xf32>
    %30 = arith.cmpf oge, %28, %29 : vector<34x8xf32>
    %cst_21 = arith.constant 1.000000e-01 : f32
    %31 = vector.broadcast %cst_21 : f32 to vector<34x8xf32>
    %32 = arith.mulf %31, %28 : vector<34x8xf32>
    %33 = arith.select %30, %28, %32 : vector<34x8xi1>, vector<34x8xf32>
    %34 = arith.truncf %33 : vector<34x8xf32> to vector<34x8xbf16>
    %35 = vector.extract_strided_slice %34 {offsets = [0, 0], sizes = [32, 8], strides = [1, 1]} : vector<34x8xbf16> to vector<32x8xbf16>
    %c0_22 = arith.constant 0 : index
    %c0_23 = arith.constant 0 : index
    %c0_24 = arith.constant 0 : index
    %36 = vector.load %arg6[%c0_22, %c0_23, %c0_24] : memref<3x8x8xbf16, #tpu.memory_space<vmem>>, vector<1x8x8xbf16>
    %37 = vector.shape_cast %36 : vector<1x8x8xbf16> to vector<8x8xbf16>
    %cst_25 = arith.constant dense<0.000000e+00> : vector<32x8xf32>
    %38 = tpu.matmul %35, %37, %cst_25 {dimension_numbers = #tpu.dot_dimension_numbers<[1], [0], [0], [1], [0, 0, 1, 1], [], []>} : vector<32x8xbf16>, vector<8x8xbf16>, vector<32x8xf32> -> vector<32x8xf32>
    %39 = vector.extract_strided_slice %34 {offsets = [1, 0], sizes = [32, 8], strides = [1, 1]} : vector<34x8xbf16> to vector<32x8xbf16>
    %c1_26 = arith.constant 1 : index
    %c0_27 = arith.constant 0 : index
    %c0_28 = arith.constant 0 : index
    %40 = vector.load %arg6[%c1_26, %c0_27, %c0_28] : memref<3x8x8xbf16, #tpu.memory_space<vmem>>, vector<1x8x8xbf16>
    %41 = vector.shape_cast %40 : vector<1x8x8xbf16> to vector<8x8xbf16>
    %cst_29 = arith.constant dense<0.000000e+00> : vector<32x8xf32>
    %42 = tpu.matmul %39, %41, %cst_29 {dimension_numbers = #tpu.dot_dimension_numbers<[1], [0], [0], [1], [0, 0, 1, 1], [], []>} : vector<32x8xbf16>, vector<8x8xbf16>, vector<32x8xf32> -> vector<32x8xf32>
    %43 = arith.addf %38, %42 : vector<32x8xf32>
    %44 = vector.extract_strided_slice %34 {offsets = [2, 0], sizes = [32, 8], strides = [1, 1]} : vector<34x8xbf16> to vector<32x8xbf16>
    %c2_30 = arith.constant 2 : index
    %c0_31 = arith.constant 0 : index
    %c0_32 = arith.constant 0 : index
    %45 = vector.load %arg6[%c2_30, %c0_31, %c0_32] : memref<3x8x8xbf16, #tpu.memory_space<vmem>>, vector<1x8x8xbf16>
    %46 = vector.shape_cast %45 : vector<1x8x8xbf16> to vector<8x8xbf16>
    %cst_33 = arith.constant dense<0.000000e+00> : vector<32x8xf32>
    %47 = tpu.matmul %44, %46, %cst_33 {dimension_numbers = #tpu.dot_dimension_numbers<[1], [0], [0], [1], [0, 0, 1, 1], [], []>} : vector<32x8xbf16>, vector<8x8xbf16>, vector<32x8xf32> -> vector<32x8xf32>
    %48 = arith.addf %43, %47 : vector<32x8xf32>
    %49 = vector.extract_strided_slice %4 {offsets = [8, 0], sizes = [32, 8], strides = [1, 1]} : vector<48x8xbf16> to vector<32x8xbf16>
    %50 = arith.extf %49 : vector<32x8xbf16> to vector<32x8xf32>
    %c0_34 = arith.constant 0 : index
    %c0_35 = arith.constant 0 : index
    %51 = vector.load %arg7[%c0_34, %c0_35] : memref<1x8xf32, #tpu.memory_space<vmem>>, vector<1x8xf32>
    %52 = vector.broadcast %51 : vector<1x8xf32> to vector<32x8xf32>
    %53 = arith.addf %48, %52 : vector<32x8xf32>
    %54 = arith.addf %53, %50 : vector<32x8xf32>
    %55 = arith.truncf %54 : vector<32x8xf32> to vector<32x8xbf16>
    %c0_36 = arith.constant 0 : index
    %c0_37 = arith.constant 0 : index
    %c0_38 = arith.constant 0 : index
    %56 = vector.load %arg8[%c0_36, %c0_37, %c0_38] : memref<1x32x8xbf16, #tpu.memory_space<vmem>>, vector<1x32x8xbf16>
    %57 = vector.shape_cast %56 : vector<1x32x8xbf16> to vector<32x8xbf16>
    %58 = vector.shape_cast %55 : vector<32x8xbf16> to vector<1x32x8xbf16>
    tpu.vector_store %arg8[%c0_36, %c0_37, %c0_38], %58 {strides = array<i32>} : memref<1x32x8xbf16, #tpu.memory_space<vmem>>, vector<1x32x8xbf16>,
    return
  }
  func.func @transform_0(%arg0: i32, %arg1: i32) -> (i32, i32, i32, i32) {
    %c0_i32 = arith.constant 0 : i32
    %c0_i32_0 = arith.constant 0 : i32
    %c0_i32_1 = arith.constant 0 : i32
    return %arg0, %arg1, %c0_i32, %c0_i32_0 : i32, i32, i32, i32
  }
  func.func @transform_1(%arg0: i32, %arg1: i32) -> (i32, i32, i32, i32) {
    %c1_i32 = arith.constant 1 : i32
    %0 = arith.addi %arg1, %c1_i32 : i32
    %c0_i32 = arith.constant 0 : i32
    %c0_i32_0 = arith.constant 0 : i32
    %c0_i32_1 = arith.constant 0 : i32
    return %arg0, %0, %c0_i32, %c0_i32_0 : i32, i32, i32, i32
  }
  func.func @transform_2(%arg0: i32, %arg1: i32) -> (i32, i32, i32) {
    %c0_i32 = arith.constant 0 : i32
    %c0_i32_0 = arith.constant 0 : i32
    %c0_i32_1 = arith.constant 0 : i32
    %c0_i32_2 = arith.constant 0 : i32
    return %c0_i32, %c0_i32_0, %c0_i32_1 : i32, i32, i32
  }
  func.func @transform_3(%arg0: i32, %arg1: i32) -> (i32, i32) {
    %c0_i32 = arith.constant 0 : i32
    %c0_i32_0 = arith.constant 0 : i32
    %c0_i32_1 = arith.constant 0 : i32
    return %c0_i32, %c0_i32_0 : i32, i32
  }
  func.func @transform_4(%arg0: i32, %arg1: i32) -> (i32, i32, i32) {
    %c0_i32 = arith.constant 0 : i32
    %c0_i32_0 = arith.constant 0 : i32
    %c0_i32_1 = arith.constant 0 : i32
    %c0_i32_2 = arith.constant 0 : i32
    return %c0_i32, %c0_i32_0, %c0_i32_1 : i32, i32, i32
  }
  func.func @transform_5(%arg0: i32, %arg1: i32) -> (i32, i32) {
    %c0_i32 = arith.constant 0 : i32
    %c0_i32_0 = arith.constant 0 : i32
    %c0_i32_1 = arith.constant 0 : i32
    return %c0_i32, %c0_i32_0 : i32, i32
  }
  func.func @transform_6(%arg0: i32, %arg1: i32) -> (i32, i32, i32) {
    %c0_i32 = arith.constant 0 : i32
    %c0_i32_0 = arith.constant 0 : i32
    return %arg0, %arg1, %c0_i32 : i32, i32, i32
  }
}

module attributes {stable_mosaic.version = 11 : i64} {
  func.func @_resblock_pair_kernel(%arg0: i32, %arg1: i32, %arg2: memref<1x1x32x8xbf16, #tpu.memory_space<vmem>>, %arg3: memref<1x1x16x8xbf16, #tpu.memory_space<vmem>>, %arg4: memref<5x8x8xbf16, #tpu.memory_space<vmem>>, %arg5: memref<1x8xf32, #tpu.memory_space<vmem>>, %arg6: memref<5x8x8xbf16, #tpu.memory_space<vmem>>, %arg7: memref<1x8xf32, #tpu.memory_space<vmem>>, %arg8: memref<1x32x8xbf16, #tpu.memory_space<vmem>>, %arg9: memref<1x32x8xbf16, #tpu.memory_space<vmem>>) attributes {dimension_semantics = [#tpu.dimension_semantics<parallel>, #tpu.dimension_semantics<parallel>], iteration_bounds = array<i64: 2, 1>, scalar_prefetch = 0 : i64, scratch_operands = 0 : i64, tpu.core_type = #tpu.core_type<tc>, window_params = [{transform_indices = @transform_0, window_bounds = array<i64: 1, 1, 32, 8>}, {transform_indices = @transform_1, window_bounds = array<i64: 1, 1, 16, 8>}, {pipeline_mode = #tpu.pipeline_mode<synchronous>, transform_indices = @transform_2, window_bounds = array<i64: 5, 8, 8>}, {pipeline_mode = #tpu.pipeline_mode<synchronous>, transform_indices = @transform_3, window_bounds = array<i64: 1, 8>}, {pipeline_mode = #tpu.pipeline_mode<synchronous>, transform_indices = @transform_4, window_bounds = array<i64: 5, 8, 8>}, {pipeline_mode = #tpu.pipeline_mode<synchronous>, transform_indices = @transform_5, window_bounds = array<i64: 1, 8>}, {transform_indices = @transform_6, window_bounds = array<i64: 1, 32, 8>}, {transform_indices = @transform_7, window_bounds = array<i64: 1, 32, 8>}]} {
    %c0 = arith.constant 0 : index
    %c0_0 = arith.constant 0 : index
    %c0_1 = arith.constant 0 : index
    %c0_2 = arith.constant 0 : index
    %0 = vector.load %arg2[%c0, %c0_0, %c0_1, %c0_2] : memref<1x1x32x8xbf16, #tpu.memory_space<vmem>>, vector<1x1x32x8xbf16>
    %1 = vector.shape_cast %0 : vector<1x1x32x8xbf16> to vector<32x8xbf16>
    %c0_3 = arith.constant 0 : index
    %c0_4 = arith.constant 0 : index
    %c0_5 = arith.constant 0 : index
    %c0_6 = arith.constant 0 : index
    %2 = vector.load %arg3[%c0_3, %c0_4, %c0_5, %c0_6] : memref<1x1x16x8xbf16, #tpu.memory_space<vmem>>, vector<1x1x16x8xbf16>
    %3 = vector.shape_cast %2 : vector<1x1x16x8xbf16> to vector<16x8xbf16>
    %4 = tpu.concatenate %1, %3 in 0 : vector<32x8xbf16>, vector<16x8xbf16> -> vector<48x8xbf16>
    %5 = arith.extf %4 : vector<48x8xbf16> to vector<48x8xf32>
    %cst = arith.constant 0.000000e+00 : f32
    %6 = vector.broadcast %cst : f32 to vector<48x8xf32>
    %7 = arith.cmpf oge, %5, %6 : vector<48x8xf32>
    %cst_7 = arith.constant 1.000000e-01 : f32
    %8 = vector.broadcast %cst_7 : f32 to vector<48x8xf32>
    %9 = arith.mulf %8, %5 : vector<48x8xf32>
    %10 = arith.select %7, %5, %9 : vector<48x8xi1>, vector<48x8xf32>
    %11 = arith.truncf %10 : vector<48x8xf32> to vector<48x8xbf16>
    %12 = vector.extract_strided_slice %11 {offsets = [0, 0], sizes = [36, 8], strides = [1, 1]} : vector<48x8xbf16> to vector<36x8xbf16>
    %c0_8 = arith.constant 0 : index
    %c0_9 = arith.constant 0 : index
    %c0_10 = arith.constant 0 : index
    %13 = vector.load %arg4[%c0_8, %c0_9, %c0_10] : memref<5x8x8xbf16, #tpu.memory_space<vmem>>, vector<1x8x8xbf16>
    %14 = vector.shape_cast %13 : vector<1x8x8xbf16> to vector<8x8xbf16>
    %cst_11 = arith.constant dense<0.000000e+00> : vector<36x8xf32>
    %15 = tpu.matmul %12, %14, %cst_11 {dimension_numbers = #tpu.dot_dimension_numbers<[1], [0], [0], [1], [0, 0, 1, 1], [], []>} : vector<36x8xbf16>, vector<8x8xbf16>, vector<36x8xf32> -> vector<36x8xf32>
    %16 = vector.extract_strided_slice %11 {offsets = [3, 0], sizes = [36, 8], strides = [1, 1]} : vector<48x8xbf16> to vector<36x8xbf16>
    %c1 = arith.constant 1 : index
    %c0_12 = arith.constant 0 : index
    %c0_13 = arith.constant 0 : index
    %17 = vector.load %arg4[%c1, %c0_12, %c0_13] : memref<5x8x8xbf16, #tpu.memory_space<vmem>>, vector<1x8x8xbf16>
    %18 = vector.shape_cast %17 : vector<1x8x8xbf16> to vector<8x8xbf16>
    %cst_14 = arith.constant dense<0.000000e+00> : vector<36x8xf32>
    %19 = tpu.matmul %16, %18, %cst_14 {dimension_numbers = #tpu.dot_dimension_numbers<[1], [0], [0], [1], [0, 0, 1, 1], [], []>} : vector<36x8xbf16>, vector<8x8xbf16>, vector<36x8xf32> -> vector<36x8xf32>
    %20 = arith.addf %15, %19 : vector<36x8xf32>
    %21 = vector.extract_strided_slice %11 {offsets = [6, 0], sizes = [36, 8], strides = [1, 1]} : vector<48x8xbf16> to vector<36x8xbf16>
    %c2 = arith.constant 2 : index
    %c0_15 = arith.constant 0 : index
    %c0_16 = arith.constant 0 : index
    %22 = vector.load %arg4[%c2, %c0_15, %c0_16] : memref<5x8x8xbf16, #tpu.memory_space<vmem>>, vector<1x8x8xbf16>
    %23 = vector.shape_cast %22 : vector<1x8x8xbf16> to vector<8x8xbf16>
    %cst_17 = arith.constant dense<0.000000e+00> : vector<36x8xf32>
    %24 = tpu.matmul %21, %23, %cst_17 {dimension_numbers = #tpu.dot_dimension_numbers<[1], [0], [0], [1], [0, 0, 1, 1], [], []>} : vector<36x8xbf16>, vector<8x8xbf16>, vector<36x8xf32> -> vector<36x8xf32>
    %25 = arith.addf %20, %24 : vector<36x8xf32>
    %26 = vector.extract_strided_slice %11 {offsets = [9, 0], sizes = [36, 8], strides = [1, 1]} : vector<48x8xbf16> to vector<36x8xbf16>
    %c3 = arith.constant 3 : index
    %c0_18 = arith.constant 0 : index
    %c0_19 = arith.constant 0 : index
    %27 = vector.load %arg4[%c3, %c0_18, %c0_19] : memref<5x8x8xbf16, #tpu.memory_space<vmem>>, vector<1x8x8xbf16>
    %28 = vector.shape_cast %27 : vector<1x8x8xbf16> to vector<8x8xbf16>
    %cst_20 = arith.constant dense<0.000000e+00> : vector<36x8xf32>
    %29 = tpu.matmul %26, %28, %cst_20 {dimension_numbers = #tpu.dot_dimension_numbers<[1], [0], [0], [1], [0, 0, 1, 1], [], []>} : vector<36x8xbf16>, vector<8x8xbf16>, vector<36x8xf32> -> vector<36x8xf32>
    %30 = arith.addf %25, %29 : vector<36x8xf32>
    %31 = vector.extract_strided_slice %11 {offsets = [12, 0], sizes = [36, 8], strides = [1, 1]} : vector<48x8xbf16> to vector<36x8xbf16>
    %c4 = arith.constant 4 : index
    %c0_21 = arith.constant 0 : index
    %c0_22 = arith.constant 0 : index
    %32 = vector.load %arg4[%c4, %c0_21, %c0_22] : memref<5x8x8xbf16, #tpu.memory_space<vmem>>, vector<1x8x8xbf16>
    %33 = vector.shape_cast %32 : vector<1x8x8xbf16> to vector<8x8xbf16>
    %cst_23 = arith.constant dense<0.000000e+00> : vector<36x8xf32>
    %34 = tpu.matmul %31, %33, %cst_23 {dimension_numbers = #tpu.dot_dimension_numbers<[1], [0], [0], [1], [0, 0, 1, 1], [], []>} : vector<36x8xbf16>, vector<8x8xbf16>, vector<36x8xf32> -> vector<36x8xf32>
    %35 = arith.addf %30, %34 : vector<36x8xf32>
    %c0_24 = arith.constant 0 : index
    %c0_25 = arith.constant 0 : index
    %36 = vector.load %arg5[%c0_24, %c0_25] : memref<1x8xf32, #tpu.memory_space<vmem>>, vector<1x8xf32>
    %37 = vector.broadcast %36 : vector<1x8xf32> to vector<36x8xf32>
    %38 = arith.addf %35, %37 : vector<36x8xf32>
    %cst_26 = arith.constant 0.000000e+00 : f32
    %39 = vector.broadcast %cst_26 : f32 to vector<36x8xf32>
    %40 = arith.cmpf oge, %38, %39 : vector<36x8xf32>
    %cst_27 = arith.constant 1.000000e-01 : f32
    %41 = vector.broadcast %cst_27 : f32 to vector<36x8xf32>
    %42 = arith.mulf %41, %38 : vector<36x8xf32>
    %43 = arith.select %40, %38, %42 : vector<36x8xi1>, vector<36x8xf32>
    %44 = arith.truncf %43 : vector<36x8xf32> to vector<36x8xbf16>
    %45 = vector.extract_strided_slice %44 {offsets = [0, 0], sizes = [32, 8], strides = [1, 1]} : vector<36x8xbf16> to vector<32x8xbf16>
    %c0_28 = arith.constant 0 : index
    %c0_29 = arith.constant 0 : index
    %c0_30 = arith.constant 0 : index
    %46 = vector.load %arg6[%c0_28, %c0_29, %c0_30] : memref<5x8x8xbf16, #tpu.memory_space<vmem>>, vector<1x8x8xbf16>
    %47 = vector.shape_cast %46 : vector<1x8x8xbf16> to vector<8x8xbf16>
    %cst_31 = arith.constant dense<0.000000e+00> : vector<32x8xf32>
    %48 = tpu.matmul %45, %47, %cst_31 {dimension_numbers = #tpu.dot_dimension_numbers<[1], [0], [0], [1], [0, 0, 1, 1], [], []>} : vector<32x8xbf16>, vector<8x8xbf16>, vector<32x8xf32> -> vector<32x8xf32>
    %49 = vector.extract_strided_slice %44 {offsets = [1, 0], sizes = [32, 8], strides = [1, 1]} : vector<36x8xbf16> to vector<32x8xbf16>
    %c1_32 = arith.constant 1 : index
    %c0_33 = arith.constant 0 : index
    %c0_34 = arith.constant 0 : index
    %50 = vector.load %arg6[%c1_32, %c0_33, %c0_34] : memref<5x8x8xbf16, #tpu.memory_space<vmem>>, vector<1x8x8xbf16>
    %51 = vector.shape_cast %50 : vector<1x8x8xbf16> to vector<8x8xbf16>
    %cst_35 = arith.constant dense<0.000000e+00> : vector<32x8xf32>
    %52 = tpu.matmul %49, %51, %cst_35 {dimension_numbers = #tpu.dot_dimension_numbers<[1], [0], [0], [1], [0, 0, 1, 1], [], []>} : vector<32x8xbf16>, vector<8x8xbf16>, vector<32x8xf32> -> vector<32x8xf32>
    %53 = arith.addf %48, %52 : vector<32x8xf32>
    %54 = vector.extract_strided_slice %44 {offsets = [2, 0], sizes = [32, 8], strides = [1, 1]} : vector<36x8xbf16> to vector<32x8xbf16>
    %c2_36 = arith.constant 2 : index
    %c0_37 = arith.constant 0 : index
    %c0_38 = arith.constant 0 : index
    %55 = vector.load %arg6[%c2_36, %c0_37, %c0_38] : memref<5x8x8xbf16, #tpu.memory_space<vmem>>, vector<1x8x8xbf16>
    %56 = vector.shape_cast %55 : vector<1x8x8xbf16> to vector<8x8xbf16>
    %cst_39 = arith.constant dense<0.000000e+00> : vector<32x8xf32>
    %57 = tpu.matmul %54, %56, %cst_39 {dimension_numbers = #tpu.dot_dimension_numbers<[1], [0], [0], [1], [0, 0, 1, 1], [], []>} : vector<32x8xbf16>, vector<8x8xbf16>, vector<32x8xf32> -> vector<32x8xf32>
    %58 = arith.addf %53, %57 : vector<32x8xf32>
    %59 = vector.extract_strided_slice %44 {offsets = [3, 0], sizes = [32, 8], strides = [1, 1]} : vector<36x8xbf16> to vector<32x8xbf16>
    %c3_40 = arith.constant 3 : index
    %c0_41 = arith.constant 0 : index
    %c0_42 = arith.constant 0 : index
    %60 = vector.load %arg6[%c3_40, %c0_41, %c0_42] : memref<5x8x8xbf16, #tpu.memory_space<vmem>>, vector<1x8x8xbf16>
    %61 = vector.shape_cast %60 : vector<1x8x8xbf16> to vector<8x8xbf16>
    %cst_43 = arith.constant dense<0.000000e+00> : vector<32x8xf32>
    %62 = tpu.matmul %59, %61, %cst_43 {dimension_numbers = #tpu.dot_dimension_numbers<[1], [0], [0], [1], [0, 0, 1, 1], [], []>} : vector<32x8xbf16>, vector<8x8xbf16>, vector<32x8xf32> -> vector<32x8xf32>
    %63 = arith.addf %58, %62 : vector<32x8xf32>
    %64 = vector.extract_strided_slice %44 {offsets = [4, 0], sizes = [32, 8], strides = [1, 1]} : vector<36x8xbf16> to vector<32x8xbf16>
    %c4_44 = arith.constant 4 : index
    %c0_45 = arith.constant 0 : index
    %c0_46 = arith.constant 0 : index
    %65 = vector.load %arg6[%c4_44, %c0_45, %c0_46] : memref<5x8x8xbf16, #tpu.memory_space<vmem>>, vector<1x8x8xbf16>
    %66 = vector.shape_cast %65 : vector<1x8x8xbf16> to vector<8x8xbf16>
    %cst_47 = arith.constant dense<0.000000e+00> : vector<32x8xf32>
    %67 = tpu.matmul %64, %66, %cst_47 {dimension_numbers = #tpu.dot_dimension_numbers<[1], [0], [0], [1], [0, 0, 1, 1], [], []>} : vector<32x8xbf16>, vector<8x8xbf16>, vector<32x8xf32> -> vector<32x8xf32>
    %68 = arith.addf %63, %67 : vector<32x8xf32>
    %69 = vector.extract_strided_slice %4 {offsets = [8, 0], sizes = [32, 8], strides = [1, 1]} : vector<48x8xbf16> to vector<32x8xbf16>
    %70 = arith.extf %69 : vector<32x8xbf16> to vector<32x8xf32>
    %c0_48 = arith.constant 0 : index
    %c0_49 = arith.constant 0 : index
    %71 = vector.load %arg7[%c0_48, %c0_49] : memref<1x8xf32, #tpu.memory_space<vmem>>, vector<1x8xf32>
    %72 = vector.broadcast %71 : vector<1x8xf32> to vector<32x8xf32>
    %73 = arith.addf %68, %72 : vector<32x8xf32>
    %74 = arith.addf %73, %70 : vector<32x8xf32>
    %c0_50 = arith.constant 0 : index
    %c0_51 = arith.constant 0 : index
    %c0_52 = arith.constant 0 : index
    %75 = vector.load %arg8[%c0_50, %c0_51, %c0_52] : memref<1x32x8xbf16, #tpu.memory_space<vmem>>, vector<1x32x8xbf16>
    %76 = vector.shape_cast %75 : vector<1x32x8xbf16> to vector<32x8xbf16>
    %77 = arith.extf %76 : vector<32x8xbf16> to vector<32x8xf32>
    %78 = arith.addf %74, %77 : vector<32x8xf32>
    %cst_53 = arith.constant 5.000000e-01 : f32
    %79 = vector.broadcast %cst_53 : f32 to vector<32x8xf32>
    %80 = arith.mulf %78, %79 : vector<32x8xf32>
    %81 = arith.truncf %80 : vector<32x8xf32> to vector<32x8xbf16>
    %c0_54 = arith.constant 0 : index
    %c0_55 = arith.constant 0 : index
    %c0_56 = arith.constant 0 : index
    %82 = vector.load %arg9[%c0_54, %c0_55, %c0_56] : memref<1x32x8xbf16, #tpu.memory_space<vmem>>, vector<1x32x8xbf16>
    %83 = vector.shape_cast %82 : vector<1x32x8xbf16> to vector<32x8xbf16>
    %84 = vector.shape_cast %81 : vector<32x8xbf16> to vector<1x32x8xbf16>
    tpu.vector_store %arg9[%c0_54, %c0_55, %c0_56], %84 {strides = array<i32>} : memref<1x32x8xbf16, #tpu.memory_space<vmem>>, vector<1x32x8xbf16>,
    return
  }
  func.func @transform_0(%arg0: i32, %arg1: i32) -> (i32, i32, i32, i32) {
    %c0_i32 = arith.constant 0 : i32
    %c0_i32_0 = arith.constant 0 : i32
    %c0_i32_1 = arith.constant 0 : i32
    return %arg0, %arg1, %c0_i32, %c0_i32_0 : i32, i32, i32, i32
  }
  func.func @transform_1(%arg0: i32, %arg1: i32) -> (i32, i32, i32, i32) {
    %c1_i32 = arith.constant 1 : i32
    %0 = arith.addi %arg1, %c1_i32 : i32
    %c0_i32 = arith.constant 0 : i32
    %c0_i32_0 = arith.constant 0 : i32
    %c0_i32_1 = arith.constant 0 : i32
    return %arg0, %0, %c0_i32, %c0_i32_0 : i32, i32, i32, i32
  }
  func.func @transform_2(%arg0: i32, %arg1: i32) -> (i32, i32, i32) {
    %c0_i32 = arith.constant 0 : i32
    %c0_i32_0 = arith.constant 0 : i32
    %c0_i32_1 = arith.constant 0 : i32
    %c0_i32_2 = arith.constant 0 : i32
    return %c0_i32, %c0_i32_0, %c0_i32_1 : i32, i32, i32
  }
  func.func @transform_3(%arg0: i32, %arg1: i32) -> (i32, i32) {
    %c0_i32 = arith.constant 0 : i32
    %c0_i32_0 = arith.constant 0 : i32
    %c0_i32_1 = arith.constant 0 : i32
    return %c0_i32, %c0_i32_0 : i32, i32
  }
  func.func @transform_4(%arg0: i32, %arg1: i32) -> (i32, i32, i32) {
    %c0_i32 = arith.constant 0 : i32
    %c0_i32_0 = arith.constant 0 : i32
    %c0_i32_1 = arith.constant 0 : i32
    %c0_i32_2 = arith.constant 0 : i32
    return %c0_i32, %c0_i32_0, %c0_i32_1 : i32, i32, i32
  }
  func.func @transform_5(%arg0: i32, %arg1: i32) -> (i32, i32) {
    %c0_i32 = arith.constant 0 : i32
    %c0_i32_0 = arith.constant 0 : i32
    %c0_i32_1 = arith.constant 0 : i32
    return %c0_i32, %c0_i32_0 : i32, i32
  }
  func.func @transform_6(%arg0: i32, %arg1: i32) -> (i32, i32, i32) {
    %c0_i32 = arith.constant 0 : i32
    %c0_i32_0 = arith.constant 0 : i32
    return %arg0, %arg1, %c0_i32 : i32, i32, i32
  }
  func.func @transform_7(%arg0: i32, %arg1: i32) -> (i32, i32, i32) {
    %c0_i32 = arith.constant 0 : i32
    %c0_i32_0 = arith.constant 0 : i32
    return %arg0, %arg1, %c0_i32 : i32, i32, i32
  }
}

module attributes {stable_mosaic.version = 11 : i64} {
  func.func @_resblock_pair_kernel(%arg0: i32, %arg1: i32, %arg2: memref<1x1x32x8xbf16, #tpu.memory_space<vmem>>, %arg3: memref<1x1x16x8xbf16, #tpu.memory_space<vmem>>, %arg4: memref<5x8x8xbf16, #tpu.memory_space<vmem>>, %arg5: memref<1x8xf32, #tpu.memory_space<vmem>>, %arg6: memref<5x8x8xbf16, #tpu.memory_space<vmem>>, %arg7: memref<1x8xf32, #tpu.memory_space<vmem>>, %arg8: memref<1x32x8xbf16, #tpu.memory_space<vmem>>) attributes {dimension_semantics = [#tpu.dimension_semantics<parallel>, #tpu.dimension_semantics<parallel>], iteration_bounds = array<i64: 2, 1>, scalar_prefetch = 0 : i64, scratch_operands = 0 : i64, tpu.core_type = #tpu.core_type<tc>, window_params = [{transform_indices = @transform_0, window_bounds = array<i64: 1, 1, 32, 8>}, {transform_indices = @transform_1, window_bounds = array<i64: 1, 1, 16, 8>}, {pipeline_mode = #tpu.pipeline_mode<synchronous>, transform_indices = @transform_2, window_bounds = array<i64: 5, 8, 8>}, {pipeline_mode = #tpu.pipeline_mode<synchronous>, transform_indices = @transform_3, window_bounds = array<i64: 1, 8>}, {pipeline_mode = #tpu.pipeline_mode<synchronous>, transform_indices = @transform_4, window_bounds = array<i64: 5, 8, 8>}, {pipeline_mode = #tpu.pipeline_mode<synchronous>, transform_indices = @transform_5, window_bounds = array<i64: 1, 8>}, {transform_indices = @transform_6, window_bounds = array<i64: 1, 32, 8>}]} {
    %c0 = arith.constant 0 : index
    %c0_0 = arith.constant 0 : index
    %c0_1 = arith.constant 0 : index
    %c0_2 = arith.constant 0 : index
    %0 = vector.load %arg2[%c0, %c0_0, %c0_1, %c0_2] : memref<1x1x32x8xbf16, #tpu.memory_space<vmem>>, vector<1x1x32x8xbf16>
    %1 = vector.shape_cast %0 : vector<1x1x32x8xbf16> to vector<32x8xbf16>
    %c0_3 = arith.constant 0 : index
    %c0_4 = arith.constant 0 : index
    %c0_5 = arith.constant 0 : index
    %c0_6 = arith.constant 0 : index
    %2 = vector.load %arg3[%c0_3, %c0_4, %c0_5, %c0_6] : memref<1x1x16x8xbf16, #tpu.memory_space<vmem>>, vector<1x1x16x8xbf16>
    %3 = vector.shape_cast %2 : vector<1x1x16x8xbf16> to vector<16x8xbf16>
    %4 = tpu.concatenate %1, %3 in 0 : vector<32x8xbf16>, vector<16x8xbf16> -> vector<48x8xbf16>
    %5 = arith.extf %4 : vector<48x8xbf16> to vector<48x8xf32>
    %cst = arith.constant 0.000000e+00 : f32
    %6 = vector.broadcast %cst : f32 to vector<48x8xf32>
    %7 = arith.cmpf oge, %5, %6 : vector<48x8xf32>
    %cst_7 = arith.constant 1.000000e-01 : f32
    %8 = vector.broadcast %cst_7 : f32 to vector<48x8xf32>
    %9 = arith.mulf %8, %5 : vector<48x8xf32>
    %10 = arith.select %7, %5, %9 : vector<48x8xi1>, vector<48x8xf32>
    %11 = arith.truncf %10 : vector<48x8xf32> to vector<48x8xbf16>
    %12 = vector.extract_strided_slice %11 {offsets = [4, 0], sizes = [36, 8], strides = [1, 1]} : vector<48x8xbf16> to vector<36x8xbf16>
    %c0_8 = arith.constant 0 : index
    %c0_9 = arith.constant 0 : index
    %c0_10 = arith.constant 0 : index
    %13 = vector.load %arg4[%c0_8, %c0_9, %c0_10] : memref<5x8x8xbf16, #tpu.memory_space<vmem>>, vector<1x8x8xbf16>
    %14 = vector.shape_cast %13 : vector<1x8x8xbf16> to vector<8x8xbf16>
    %cst_11 = arith.constant dense<0.000000e+00> : vector<36x8xf32>
    %15 = tpu.matmul %12, %14, %cst_11 {dimension_numbers = #tpu.dot_dimension_numbers<[1], [0], [0], [1], [0, 0, 1, 1], [], []>} : vector<36x8xbf16>, vector<8x8xbf16>, vector<36x8xf32> -> vector<36x8xf32>
    %16 = vector.extract_strided_slice %11 {offsets = [5, 0], sizes = [36, 8], strides = [1, 1]} : vector<48x8xbf16> to vector<36x8xbf16>
    %c1 = arith.constant 1 : index
    %c0_12 = arith.constant 0 : index
    %c0_13 = arith.constant 0 : index
    %17 = vector.load %arg4[%c1, %c0_12, %c0_13] : memref<5x8x8xbf16, #tpu.memory_space<vmem>>, vector<1x8x8xbf16>
    %18 = vector.shape_cast %17 : vector<1x8x8xbf16> to vector<8x8xbf16>
    %cst_14 = arith.constant dense<0.000000e+00> : vector<36x8xf32>
    %19 = tpu.matmul %16, %18, %cst_14 {dimension_numbers = #tpu.dot_dimension_numbers<[1], [0], [0], [1], [0, 0, 1, 1], [], []>} : vector<36x8xbf16>, vector<8x8xbf16>, vector<36x8xf32> -> vector<36x8xf32>
    %20 = arith.addf %15, %19 : vector<36x8xf32>
    %21 = vector.extract_strided_slice %11 {offsets = [6, 0], sizes = [36, 8], strides = [1, 1]} : vector<48x8xbf16> to vector<36x8xbf16>
    %c2 = arith.constant 2 : index
    %c0_15 = arith.constant 0 : index
    %c0_16 = arith.constant 0 : index
    %22 = vector.load %arg4[%c2, %c0_15, %c0_16] : memref<5x8x8xbf16, #tpu.memory_space<vmem>>, vector<1x8x8xbf16>
    %23 = vector.shape_cast %22 : vector<1x8x8xbf16> to vector<8x8xbf16>
    %cst_17 = arith.constant dense<0.000000e+00> : vector<36x8xf32>
    %24 = tpu.matmul %21, %23, %cst_17 {dimension_numbers = #tpu.dot_dimension_numbers<[1], [0], [0], [1], [0, 0, 1, 1], [], []>} : vector<36x8xbf16>, vector<8x8xbf16>, vector<36x8xf32> -> vector<36x8xf32>
    %25 = arith.addf %20, %24 : vector<36x8xf32>
    %26 = vector.extract_strided_slice %11 {offsets = [7, 0], sizes = [36, 8], strides = [1, 1]} : vector<48x8xbf16> to vector<36x8xbf16>
    %c3 = arith.constant 3 : index
    %c0_18 = arith.constant 0 : index
    %c0_19 = arith.constant 0 : index
    %27 = vector.load %arg4[%c3, %c0_18, %c0_19] : memref<5x8x8xbf16, #tpu.memory_space<vmem>>, vector<1x8x8xbf16>
    %28 = vector.shape_cast %27 : vector<1x8x8xbf16> to vector<8x8xbf16>
    %cst_20 = arith.constant dense<0.000000e+00> : vector<36x8xf32>
    %29 = tpu.matmul %26, %28, %cst_20 {dimension_numbers = #tpu.dot_dimension_numbers<[1], [0], [0], [1], [0, 0, 1, 1], [], []>} : vector<36x8xbf16>, vector<8x8xbf16>, vector<36x8xf32> -> vector<36x8xf32>
    %30 = arith.addf %25, %29 : vector<36x8xf32>
    %31 = vector.extract_strided_slice %11 {offsets = [8, 0], sizes = [36, 8], strides = [1, 1]} : vector<48x8xbf16> to vector<36x8xbf16>
    %c4 = arith.constant 4 : index
    %c0_21 = arith.constant 0 : index
    %c0_22 = arith.constant 0 : index
    %32 = vector.load %arg4[%c4, %c0_21, %c0_22] : memref<5x8x8xbf16, #tpu.memory_space<vmem>>, vector<1x8x8xbf16>
    %33 = vector.shape_cast %32 : vector<1x8x8xbf16> to vector<8x8xbf16>
    %cst_23 = arith.constant dense<0.000000e+00> : vector<36x8xf32>
    %34 = tpu.matmul %31, %33, %cst_23 {dimension_numbers = #tpu.dot_dimension_numbers<[1], [0], [0], [1], [0, 0, 1, 1], [], []>} : vector<36x8xbf16>, vector<8x8xbf16>, vector<36x8xf32> -> vector<36x8xf32>
    %35 = arith.addf %30, %34 : vector<36x8xf32>
    %c0_24 = arith.constant 0 : index
    %c0_25 = arith.constant 0 : index
    %36 = vector.load %arg5[%c0_24, %c0_25] : memref<1x8xf32, #tpu.memory_space<vmem>>, vector<1x8xf32>
    %37 = vector.broadcast %36 : vector<1x8xf32> to vector<36x8xf32>
    %38 = arith.addf %35, %37 : vector<36x8xf32>
    %cst_26 = arith.constant 0.000000e+00 : f32
    %39 = vector.broadcast %cst_26 : f32 to vector<36x8xf32>
    %40 = arith.cmpf oge, %38, %39 : vector<36x8xf32>
    %cst_27 = arith.constant 1.000000e-01 : f32
    %41 = vector.broadcast %cst_27 : f32 to vector<36x8xf32>
    %42 = arith.mulf %41, %38 : vector<36x8xf32>
    %43 = arith.select %40, %38, %42 : vector<36x8xi1>, vector<36x8xf32>
    %44 = arith.truncf %43 : vector<36x8xf32> to vector<36x8xbf16>
    %45 = vector.extract_strided_slice %44 {offsets = [0, 0], sizes = [32, 8], strides = [1, 1]} : vector<36x8xbf16> to vector<32x8xbf16>
    %c0_28 = arith.constant 0 : index
    %c0_29 = arith.constant 0 : index
    %c0_30 = arith.constant 0 : index
    %46 = vector.load %arg6[%c0_28, %c0_29, %c0_30] : memref<5x8x8xbf16, #tpu.memory_space<vmem>>, vector<1x8x8xbf16>
    %47 = vector.shape_cast %46 : vector<1x8x8xbf16> to vector<8x8xbf16>
    %cst_31 = arith.constant dense<0.000000e+00> : vector<32x8xf32>
    %48 = tpu.matmul %45, %47, %cst_31 {dimension_numbers = #tpu.dot_dimension_numbers<[1], [0], [0], [1], [0, 0, 1, 1], [], []>} : vector<32x8xbf16>, vector<8x8xbf16>, vector<32x8xf32> -> vector<32x8xf32>
    %49 = vector.extract_strided_slice %44 {offsets = [1, 0], sizes = [32, 8], strides = [1, 1]} : vector<36x8xbf16> to vector<32x8xbf16>
    %c1_32 = arith.constant 1 : index
    %c0_33 = arith.constant 0 : index
    %c0_34 = arith.constant 0 : index
    %50 = vector.load %arg6[%c1_32, %c0_33, %c0_34] : memref<5x8x8xbf16, #tpu.memory_space<vmem>>, vector<1x8x8xbf16>
    %51 = vector.shape_cast %50 : vector<1x8x8xbf16> to vector<8x8xbf16>
    %cst_35 = arith.constant dense<0.000000e+00> : vector<32x8xf32>
    %52 = tpu.matmul %49, %51, %cst_35 {dimension_numbers = #tpu.dot_dimension_numbers<[1], [0], [0], [1], [0, 0, 1, 1], [], []>} : vector<32x8xbf16>, vector<8x8xbf16>, vector<32x8xf32> -> vector<32x8xf32>
    %53 = arith.addf %48, %52 : vector<32x8xf32>
    %54 = vector.extract_strided_slice %44 {offsets = [2, 0], sizes = [32, 8], strides = [1, 1]} : vector<36x8xbf16> to vector<32x8xbf16>
    %c2_36 = arith.constant 2 : index
    %c0_37 = arith.constant 0 : index
    %c0_38 = arith.constant 0 : index
    %55 = vector.load %arg6[%c2_36, %c0_37, %c0_38] : memref<5x8x8xbf16, #tpu.memory_space<vmem>>, vector<1x8x8xbf16>
    %56 = vector.shape_cast %55 : vector<1x8x8xbf16> to vector<8x8xbf16>
    %cst_39 = arith.constant dense<0.000000e+00> : vector<32x8xf32>
    %57 = tpu.matmul %54, %56, %cst_39 {dimension_numbers = #tpu.dot_dimension_numbers<[1], [0], [0], [1], [0, 0, 1, 1], [], []>} : vector<32x8xbf16>, vector<8x8xbf16>, vector<32x8xf32> -> vector<32x8xf32>
    %58 = arith.addf %53, %57 : vector<32x8xf32>
    %59 = vector.extract_strided_slice %44 {offsets = [3, 0], sizes = [32, 8], strides = [1, 1]} : vector<36x8xbf16> to vector<32x8xbf16>
    %c3_40 = arith.constant 3 : index
    %c0_41 = arith.constant 0 : index
    %c0_42 = arith.constant 0 : index
    %60 = vector.load %arg6[%c3_40, %c0_41, %c0_42] : memref<5x8x8xbf16, #tpu.memory_space<vmem>>, vector<1x8x8xbf16>
    %61 = vector.shape_cast %60 : vector<1x8x8xbf16> to vector<8x8xbf16>
    %cst_43 = arith.constant dense<0.000000e+00> : vector<32x8xf32>
    %62 = tpu.matmul %59, %61, %cst_43 {dimension_numbers = #tpu.dot_dimension_numbers<[1], [0], [0], [1], [0, 0, 1, 1], [], []>} : vector<32x8xbf16>, vector<8x8xbf16>, vector<32x8xf32> -> vector<32x8xf32>
    %63 = arith.addf %58, %62 : vector<32x8xf32>
    %64 = vector.extract_strided_slice %44 {offsets = [4, 0], sizes = [32, 8], strides = [1, 1]} : vector<36x8xbf16> to vector<32x8xbf16>
    %c4_44 = arith.constant 4 : index
    %c0_45 = arith.constant 0 : index
    %c0_46 = arith.constant 0 : index
    %65 = vector.load %arg6[%c4_44, %c0_45, %c0_46] : memref<5x8x8xbf16, #tpu.memory_space<vmem>>, vector<1x8x8xbf16>
    %66 = vector.shape_cast %65 : vector<1x8x8xbf16> to vector<8x8xbf16>
    %cst_47 = arith.constant dense<0.000000e+00> : vector<32x8xf32>
    %67 = tpu.matmul %64, %66, %cst_47 {dimension_numbers = #tpu.dot_dimension_numbers<[1], [0], [0], [1], [0, 0, 1, 1], [], []>} : vector<32x8xbf16>, vector<8x8xbf16>, vector<32x8xf32> -> vector<32x8xf32>
    %68 = arith.addf %63, %67 : vector<32x8xf32>
    %69 = vector.extract_strided_slice %4 {offsets = [8, 0], sizes = [32, 8], strides = [1, 1]} : vector<48x8xbf16> to vector<32x8xbf16>
    %70 = arith.extf %69 : vector<32x8xbf16> to vector<32x8xf32>
    %c0_48 = arith.constant 0 : index
    %c0_49 = arith.constant 0 : index
    %71 = vector.load %arg7[%c0_48, %c0_49] : memref<1x8xf32, #tpu.memory_space<vmem>>, vector<1x8xf32>
    %72 = vector.broadcast %71 : vector<1x8xf32> to vector<32x8xf32>
    %73 = arith.addf %68, %72 : vector<32x8xf32>
    %74 = arith.addf %73, %70 : vector<32x8xf32>
    %75 = arith.truncf %74 : vector<32x8xf32> to vector<32x8xbf16>
    %c0_50 = arith.constant 0 : index
    %c0_51 = arith.constant 0 : index
    %c0_52 = arith.constant 0 : index
    %76 = vector.load %arg8[%c0_50, %c0_51, %c0_52] : memref<1x32x8xbf16, #tpu.memory_space<vmem>>, vector<1x32x8xbf16>
    %77 = vector.shape_cast %76 : vector<1x32x8xbf16> to vector<32x8xbf16>
    %78 = vector.shape_cast %75 : vector<32x8xbf16> to vector<1x32x8xbf16>
    tpu.vector_store %arg8[%c0_50, %c0_51, %c0_52], %78 {strides = array<i32>} : memref<1x32x8xbf16, #tpu.memory_space<vmem>>, vector<1x32x8xbf16>,
    return
  }
  func.func @transform_0(%arg0: i32, %arg1: i32) -> (i32, i32, i32, i32) {
    %c0_i32 = arith.constant 0 : i32
    %c0_i32_0 = arith.constant 0 : i32
    %c0_i32_1 = arith.constant 0 : i32
    return %arg0, %arg1, %c0_i32, %c0_i32_0 : i32, i32, i32, i32
  }
  func.func @transform_1(%arg0: i32, %arg1: i32) -> (i32, i32, i32, i32) {
    %c1_i32 = arith.constant 1 : i32
    %0 = arith.addi %arg1, %c1_i32 : i32
    %c0_i32 = arith.constant 0 : i32
    %c0_i32_0 = arith.constant 0 : i32
    %c0_i32_1 = arith.constant 0 : i32
    return %arg0, %0, %c0_i32, %c0_i32_0 : i32, i32, i32, i32
  }
  func.func @transform_2(%arg0: i32, %arg1: i32) -> (i32, i32, i32) {
    %c0_i32 = arith.constant 0 : i32
    %c0_i32_0 = arith.constant 0 : i32
    %c0_i32_1 = arith.constant 0 : i32
    %c0_i32_2 = arith.constant 0 : i32
    return %c0_i32, %c0_i32_0, %c0_i32_1 : i32, i32, i32
  }
  func.func @transform_3(%arg0: i32, %arg1: i32) -> (i32, i32) {
    %c0_i32 = arith.constant 0 : i32
    %c0_i32_0 = arith.constant 0 : i32
    %c0_i32_1 = arith.constant 0 : i32
    return %c0_i32, %c0_i32_0 : i32, i32
  }
  func.func @transform_4(%arg0: i32, %arg1: i32) -> (i32, i32, i32) {
    %c0_i32 = arith.constant 0 : i32
    %c0_i32_0 = arith.constant 0 : i32
    %c0_i32_1 = arith.constant 0 : i32
    %c0_i32_2 = arith.constant 0 : i32
    return %c0_i32, %c0_i32_0, %c0_i32_1 : i32, i32, i32
  }
  func.func @transform_5(%arg0: i32, %arg1: i32) -> (i32, i32) {
    %c0_i32 = arith.constant 0 : i32
    %c0_i32_0 = arith.constant 0 : i32
    %c0_i32_1 = arith.constant 0 : i32
    return %c0_i32, %c0_i32_0 : i32, i32
  }
  func.func @transform_6(%arg0: i32, %arg1: i32) -> (i32, i32, i32) {
    %c0_i32 = arith.constant 0 : i32
    %c0_i32_0 = arith.constant 0 : i32
    return %arg0, %arg1, %c0_i32 : i32, i32, i32
  }
}

module attributes {stable_mosaic.version = 11 : i64} {
  func.func @_conv_kernel(%arg0: i32, %arg1: i32, %arg2: memref<1x1x32x8xbf16, #tpu.memory_space<vmem>>, %arg3: memref<1x1x16x8xbf16, #tpu.memory_space<vmem>>, %arg4: memref<7x8x1xbf16, #tpu.memory_space<vmem>>, %arg5: memref<1x1xf32, #tpu.memory_space<vmem>>, %arg6: memref<1x32x1xf32, #tpu.memory_space<vmem>>) attributes {dimension_semantics = [#tpu.dimension_semantics<parallel>, #tpu.dimension_semantics<parallel>], iteration_bounds = array<i64: 2, 1>, scalar_prefetch = 0 : i64, scratch_operands = 0 : i64, tpu.core_type = #tpu.core_type<tc>, window_params = [{transform_indices = @transform_0, window_bounds = array<i64: 1, 1, 32, 8>}, {transform_indices = @transform_1, window_bounds = array<i64: 1, 1, 16, 8>}, {pipeline_mode = #tpu.pipeline_mode<synchronous>, transform_indices = @transform_2, window_bounds = array<i64: 7, 8, 1>}, {pipeline_mode = #tpu.pipeline_mode<synchronous>, transform_indices = @transform_3, window_bounds = array<i64: 1, 1>}, {transform_indices = @transform_4, window_bounds = array<i64: 1, 32, 1>}]} {
    %c0 = arith.constant 0 : index
    %c0_0 = arith.constant 0 : index
    %c0_1 = arith.constant 0 : index
    %c0_2 = arith.constant 0 : index
    %0 = vector.load %arg2[%c0, %c0_0, %c0_1, %c0_2] : memref<1x1x32x8xbf16, #tpu.memory_space<vmem>>, vector<1x1x32x8xbf16>
    %1 = vector.shape_cast %0 : vector<1x1x32x8xbf16> to vector<32x8xbf16>
    %c0_3 = arith.constant 0 : index
    %c0_4 = arith.constant 0 : index
    %c0_5 = arith.constant 0 : index
    %c0_6 = arith.constant 0 : index
    %2 = vector.load %arg3[%c0_3, %c0_4, %c0_5, %c0_6] : memref<1x1x16x8xbf16, #tpu.memory_space<vmem>>, vector<1x1x16x8xbf16>
    %3 = vector.shape_cast %2 : vector<1x1x16x8xbf16> to vector<16x8xbf16>
    %4 = tpu.concatenate %1, %3 in 0 : vector<32x8xbf16>, vector<16x8xbf16> -> vector<48x8xbf16>
    %5 = arith.extf %4 : vector<48x8xbf16> to vector<48x8xf32>
    %cst = arith.constant 0.000000e+00 : f32
    %6 = vector.broadcast %cst : f32 to vector<48x8xf32>
    %7 = arith.cmpf oge, %5, %6 : vector<48x8xf32>
    %cst_7 = arith.constant 0.00999999977 : f32
    %8 = vector.broadcast %cst_7 : f32 to vector<48x8xf32>
    %9 = arith.mulf %8, %5 : vector<48x8xf32>
    %10 = arith.select %7, %5, %9 : vector<48x8xi1>, vector<48x8xf32>
    %11 = arith.truncf %10 : vector<48x8xf32> to vector<48x8xbf16>
    %12 = vector.extract_strided_slice %11 {offsets = [5, 0], sizes = [32, 8], strides = [1, 1]} : vector<48x8xbf16> to vector<32x8xbf16>
    %c0_8 = arith.constant 0 : index
    %c0_9 = arith.constant 0 : index
    %c0_10 = arith.constant 0 : index
    %13 = vector.load %arg4[%c0_8, %c0_9, %c0_10] : memref<7x8x1xbf16, #tpu.memory_space<vmem>>, vector<1x8x1xbf16>
    %14 = vector.shape_cast %13 : vector<1x8x1xbf16> to vector<8x1xbf16>
    %cst_11 = arith.constant dense<0.000000e+00> : vector<32x1xf32>
    %15 = tpu.matmul %12, %14, %cst_11 {dimension_numbers = #tpu.dot_dimension_numbers<[1], [0], [0], [1], [0, 0, 1, 1], [], []>} : vector<32x8xbf16>, vector<8x1xbf16>, vector<32x1xf32> -> vector<32x1xf32>
    %16 = vector.extract_strided_slice %11 {offsets = [6, 0], sizes = [32, 8], strides = [1, 1]} : vector<48x8xbf16> to vector<32x8xbf16>
    %c1 = arith.constant 1 : index
    %c0_12 = arith.constant 0 : index
    %c0_13 = arith.constant 0 : index
    %17 = vector.load %arg4[%c1, %c0_12, %c0_13] : memref<7x8x1xbf16, #tpu.memory_space<vmem>>, vector<1x8x1xbf16>
    %18 = vector.shape_cast %17 : vector<1x8x1xbf16> to vector<8x1xbf16>
    %cst_14 = arith.constant dense<0.000000e+00> : vector<32x1xf32>
    %19 = tpu.matmul %16, %18, %cst_14 {dimension_numbers = #tpu.dot_dimension_numbers<[1], [0], [0], [1], [0, 0, 1, 1], [], []>} : vector<32x8xbf16>, vector<8x1xbf16>, vector<32x1xf32> -> vector<32x1xf32>
    %20 = arith.addf %15, %19 : vector<32x1xf32>
    %21 = vector.extract_strided_slice %11 {offsets = [7, 0], sizes = [32, 8], strides = [1, 1]} : vector<48x8xbf16> to vector<32x8xbf16>
    %c2 = arith.constant 2 : index
    %c0_15 = arith.constant 0 : index
    %c0_16 = arith.constant 0 : index
    %22 = vector.load %arg4[%c2, %c0_15, %c0_16] : memref<7x8x1xbf16, #tpu.memory_space<vmem>>, vector<1x8x1xbf16>
    %23 = vector.shape_cast %22 : vector<1x8x1xbf16> to vector<8x1xbf16>
    %cst_17 = arith.constant dense<0.000000e+00> : vector<32x1xf32>
    %24 = tpu.matmul %21, %23, %cst_17 {dimension_numbers = #tpu.dot_dimension_numbers<[1], [0], [0], [1], [0, 0, 1, 1], [], []>} : vector<32x8xbf16>, vector<8x1xbf16>, vector<32x1xf32> -> vector<32x1xf32>
    %25 = arith.addf %20, %24 : vector<32x1xf32>
    %26 = vector.extract_strided_slice %11 {offsets = [8, 0], sizes = [32, 8], strides = [1, 1]} : vector<48x8xbf16> to vector<32x8xbf16>
    %c3 = arith.constant 3 : index
    %c0_18 = arith.constant 0 : index
    %c0_19 = arith.constant 0 : index
    %27 = vector.load %arg4[%c3, %c0_18, %c0_19] : memref<7x8x1xbf16, #tpu.memory_space<vmem>>, vector<1x8x1xbf16>
    %28 = vector.shape_cast %27 : vector<1x8x1xbf16> to vector<8x1xbf16>
    %cst_20 = arith.constant dense<0.000000e+00> : vector<32x1xf32>
    %29 = tpu.matmul %26, %28, %cst_20 {dimension_numbers = #tpu.dot_dimension_numbers<[1], [0], [0], [1], [0, 0, 1, 1], [], []>} : vector<32x8xbf16>, vector<8x1xbf16>, vector<32x1xf32> -> vector<32x1xf32>
    %30 = arith.addf %25, %29 : vector<32x1xf32>
    %31 = vector.extract_strided_slice %11 {offsets = [9, 0], sizes = [32, 8], strides = [1, 1]} : vector<48x8xbf16> to vector<32x8xbf16>
    %c4 = arith.constant 4 : index
    %c0_21 = arith.constant 0 : index
    %c0_22 = arith.constant 0 : index
    %32 = vector.load %arg4[%c4, %c0_21, %c0_22] : memref<7x8x1xbf16, #tpu.memory_space<vmem>>, vector<1x8x1xbf16>
    %33 = vector.shape_cast %32 : vector<1x8x1xbf16> to vector<8x1xbf16>
    %cst_23 = arith.constant dense<0.000000e+00> : vector<32x1xf32>
    %34 = tpu.matmul %31, %33, %cst_23 {dimension_numbers = #tpu.dot_dimension_numbers<[1], [0], [0], [1], [0, 0, 1, 1], [], []>} : vector<32x8xbf16>, vector<8x1xbf16>, vector<32x1xf32> -> vector<32x1xf32>
    %35 = arith.addf %30, %34 : vector<32x1xf32>
    %36 = vector.extract_strided_slice %11 {offsets = [10, 0], sizes = [32, 8], strides = [1, 1]} : vector<48x8xbf16> to vector<32x8xbf16>
    %c5 = arith.constant 5 : index
    %c0_24 = arith.constant 0 : index
    %c0_25 = arith.constant 0 : index
    %37 = vector.load %arg4[%c5, %c0_24, %c0_25] : memref<7x8x1xbf16, #tpu.memory_space<vmem>>, vector<1x8x1xbf16>
    %38 = vector.shape_cast %37 : vector<1x8x1xbf16> to vector<8x1xbf16>
    %cst_26 = arith.constant dense<0.000000e+00> : vector<32x1xf32>
    %39 = tpu.matmul %36, %38, %cst_26 {dimension_numbers = #tpu.dot_dimension_numbers<[1], [0], [0], [1], [0, 0, 1, 1], [], []>} : vector<32x8xbf16>, vector<8x1xbf16>, vector<32x1xf32> -> vector<32x1xf32>
    %40 = arith.addf %35, %39 : vector<32x1xf32>
    %41 = vector.extract_strided_slice %11 {offsets = [11, 0], sizes = [32, 8], strides = [1, 1]} : vector<48x8xbf16> to vector<32x8xbf16>
    %c6 = arith.constant 6 : index
    %c0_27 = arith.constant 0 : index
    %c0_28 = arith.constant 0 : index
    %42 = vector.load %arg4[%c6, %c0_27, %c0_28] : memref<7x8x1xbf16, #tpu.memory_space<vmem>>, vector<1x8x1xbf16>
    %43 = vector.shape_cast %42 : vector<1x8x1xbf16> to vector<8x1xbf16>
    %cst_29 = arith.constant dense<0.000000e+00> : vector<32x1xf32>
    %44 = tpu.matmul %41, %43, %cst_29 {dimension_numbers = #tpu.dot_dimension_numbers<[1], [0], [0], [1], [0, 0, 1, 1], [], []>} : vector<32x8xbf16>, vector<8x1xbf16>, vector<32x1xf32> -> vector<32x1xf32>
    %45 = arith.addf %40, %44 : vector<32x1xf32>
    %c0_30 = arith.constant 0 : index
    %c0_31 = arith.constant 0 : index
    %46 = vector.load %arg5[%c0_30, %c0_31] : memref<1x1xf32, #tpu.memory_space<vmem>>, vector<1x1xf32>
    %47 = vector.broadcast %46 : vector<1x1xf32> to vector<32x1xf32>
    %48 = arith.addf %45, %47 : vector<32x1xf32>
    %49 = math.tanh %48 : vector<32x1xf32>
    %c0_32 = arith.constant 0 : index
    %c0_33 = arith.constant 0 : index
    %c0_34 = arith.constant 0 : index
    %50 = vector.load %arg6[%c0_32, %c0_33, %c0_34] : memref<1x32x1xf32, #tpu.memory_space<vmem>>, vector<1x32x1xf32>
    %51 = vector.shape_cast %50 : vector<1x32x1xf32> to vector<32x1xf32>
    %52 = vector.shape_cast %49 : vector<32x1xf32> to vector<1x32x1xf32>
    tpu.vector_store %arg6[%c0_32, %c0_33, %c0_34], %52 {strides = array<i32>} : memref<1x32x1xf32, #tpu.memory_space<vmem>>, vector<1x32x1xf32>,
    return
  }
  func.func @transform_0(%arg0: i32, %arg1: i32) -> (i32, i32, i32, i32) {
    %c0_i32 = arith.constant 0 : i32
    %c0_i32_0 = arith.constant 0 : i32
    %c0_i32_1 = arith.constant 0 : i32
    return %arg0, %arg1, %c0_i32, %c0_i32_0 : i32, i32, i32, i32
  }
  func.func @transform_1(%arg0: i32, %arg1: i32) -> (i32, i32, i32, i32) {
    %c1_i32 = arith.constant 1 : i32
    %0 = arith.addi %arg1, %c1_i32 : i32
    %c0_i32 = arith.constant 0 : i32
    %c0_i32_0 = arith.constant 0 : i32
    %c0_i32_1 = arith.constant 0 : i32
    return %arg0, %0, %c0_i32, %c0_i32_0 : i32, i32, i32, i32
  }
  func.func @transform_2(%arg0: i32, %arg1: i32) -> (i32, i32, i32) {
    %c0_i32 = arith.constant 0 : i32
    %c0_i32_0 = arith.constant 0 : i32
    %c0_i32_1 = arith.constant 0 : i32
    %c0_i32_2 = arith.constant 0 : i32
    return %c0_i32, %c0_i32_0, %c0_i32_1 : i32, i32, i32
  }
  func.func @transform_3(%arg0: i32, %arg1: i32) -> (i32, i32) {
    %c0_i32 = arith.constant 0 : i32
    %c0_i32_0 = arith.constant 0 : i32
    %c0_i32_1 = arith.constant 0 : i32
    return %c0_i32, %c0_i32_0 : i32, i32
  }
  func.func @transform_4(%arg0: i32, %arg1: i32) -> (i32, i32, i32) {
    %c0_i32 = arith.constant 0 : i32
    %c0_i32_0 = arith.constant 0 : i32
    return %arg0, %arg1, %c0_i32 : i32, i32, i32
  }
}

</mosaic_0001>

<bundles_post_ra>
// kernel: tile.13
= control target key start
LH: loop header
LB: loop body
LE: loop exit
PB: predicated region body
PF: predicated region fallthrough
CT: control target
= control target key end

     0   :  { %s22_s0 = inlined_call_operand.vmem [shape: f32[16], index: 0, kind: input, shape index: {}]   ;;  %s23_s1 = inlined_call_operand.vmem [shape: f32[2,16], index: 1, kind: output, shape index: {}]  }
   0x1   :  { %v4_v0 = vld [vmem:[%s22_s0] ss:$0 sm:$0xff] }
   0x2   :  { %5 = vst [vmem:[%s23_s1] sm:$0x3] %v4_v0 }

// kernel: tile.14
= control target key start
LH: loop header
LB: loop body
LE: loop exit
PB: predicated region body
PF: predicated region fallthrough
CT: control target
= control target key end

     0   :  { %vm7_vm0 = vcmask 130048   ;;  %vm13_vm1 = vcmask 261248   ;;  %s39_s0 = inlined_call_operand.vmem [shape: f32[2,16], index: 0, kind: input, shape index: {}]   ;;  %s40_s1 = inlined_call_operand.vmem [shape: f32[1,32], index: 1, kind: output, shape index: {}]  }
   0x1   :  { %v4_v0 = vld [vmem:[%s39_s0] sm:$0x3]  ;;  %s22_s0 = smov 16  }
   0x2   :  { %5 = vst [vmem:[#allocation1] sm:$0x3] %v4_v0 }
   0x9   :  { %v10_v1 = vld [vmem:[#allocation1 + $0x1] sm:$0x1]   ;;  %v6_v2 = vld [vmem:[#allocation1] sm:$0x1]  }
   0xa   :  { %11 = vrot.lane.b32.xlu0 %v10_v1, %s22_s0  ;;  %8 = vst.msk [vmem:[#allocation0] sm:$0x1] %vm7_vm0, %v6_v2  }
  0x7c   :  { %v12_v3 = vpop.permute.xlu0 %11  }
  0x7d   :  { %14 = vst.msk [vmem:[#allocation0] sm:$0x1] %vm13_vm1, %v12_v3  }
  0x84   :  { %v18_v4 = vld [vmem:[#allocation0] sm:$0x1] }
  0x85   :  { %20 = vst [vmem:[%s40_s1] sm:$0x1] %v18_v4 }

// kernel: generator_forward.15
= control target key start
LH: loop header
LB: loop body
LE: loop exit
PB: predicated region body
PF: predicated region fallthrough
CT: control target
= control target key end

     0   :  { %s1119_s21 = smov 0   ;;  %s1121_s22 = smov 0   ;;  %s1205_s0 = inlined_call_operand.vmem [shape: bf16[2,2,16,16], index: 0, kind: input, shape index: {}, may-alias: {0,1}]   ;;  %s1206_s1 = inlined_call_operand.vmem [shape: bf16[2,2,16,16], index: 1, kind: input, shape index: {}, may-alias: {0,1}]   ;;  %s1207_s2 = inlined_call_operand.vmem [shape: bf16[3,16,16], index: 2, kind: input, shape index: {}]   ;;  %s1208_s3 = inlined_call_operand.vmem [shape: f32[1,16], index: 3, kind: input, shape index: {}]   ;;  %s1209_s4 = inlined_call_operand.vmem [shape: bf16[3,16,16], index: 4, kind: input, shape index: {}]   ;;  %s1210_s5 = inlined_call_operand.vmem [shape: f32[1,16], index: 5, kind: input, shape index: {}]   ;;  %s1211_s6 = inlined_call_operand.vmem [shape: bf16[2,16,16], index: 6, kind: output, shape index: {}]  }
   0x1   :  { %s1123_s23 = smov 0  }
   0x2 LB: > { %s28_s24 = sadd.s32 1, %s1076_s22  ;;  %p928_p0 = scmp.ge.s32.totalorder %s1080_s23, 1  ;;  %s1080_s23 = sphi %s1123_s23, %s16_s23   ;;  %s1076_s22 = sphi %s1121_s22, %s1213_s22   ;;  %s1072_s21 = sphi %s1119_s21, %s1212_s21  }
   0x3   : > { %p30_p1 = scmp.ge.s32.totalorder %s28_s24, 2  ;;  %p252_p2 = scmp.lt.s32.totalorder %s1080_s23, 3 }
   0x5   : > { %s1215_s24 = smov (%p30_p1, %s28_s24), 0  ;;  %p253_p3 = pnand %p928_p0, %p252_p2 }
   0x6   : > { %v1050_v0 = vld [vmem:[%s1207_s2 + $0x8] sm:$0xff] (!%p253_p3)   ;;  %p300_p4 = scmp.lt.s32.totalorder (!%p253_p3), %s1072_s21, 1  ;;  %v1051_v1 = vld [vmem:[%s1207_s2] sm:$0xff] (!%p253_p3)   ;;  %v1054_v2 = vld [vmem:[%s1207_s2 + $0x10] sm:$0xff] (!%p253_p3)   ;;  %vm451_vm4 = vcmask (!%p253_p3), 1045504   ;;  %vm394_vm5 = vcmask (!%p253_p3), 130048  }
   0x7   : > { %256 = sbr.rel (%p253_p3) target bundleno = 504 (0x1f8), region = 44  ;;  %988 = vmatprep.subr.bf16.mxu0 (!%p253_p3), %v1050_v0  ;;  %994 = vmatprep.subr.bf16.mxu1 (!%p253_p3), %v1051_v1  ;;  %vm370_vm6 = vsmask.f32 (!%p253_p3), 4352  ;;  %vm518_vm7 = vcmask (!%p253_p3), 1042432   ;;  %v1055_v36 = vld [vmem:[%s1209_s4] sm:$0xff] (!%p253_p3)   ;;  %v1082_v37 = vmov (!%p253_p3), 0.0  }
   0x8   : > { %989 = vmatpush3.bf16.msra.mxu0 (!%p253_p3), %v1050_v0  ;;  %995 = vmatpush3.bf16.msra.mxu1 (!%p253_p3), %v1051_v1  ;;  %v1056_v38 = vld [vmem:[%s1209_s4 + $0x8] sm:$0xff] (!%p253_p3)   ;;  %vm1083_vm8 = vmmov (!%p253_p3), 0   ;;  %v950_v51 = vld [vmem:[%s1208_s3] ss:$0 sm:$0xff] (!%p253_p3)  ;;  %vm728_vm12 = vcmask (!%p253_p3), 1046528   ;;  %vm784_vm14 = vcmask (!%p253_p3), 1043456  }
   0x9   : > { %1000 = vmatprep.subr.bf16.mxu0 (!%p253_p3), %v1054_v2  ;;  %1006 = vmatprep.subr.bf16.mxu1 (!%p253_p3), %v1082_v37  ;;  %vm611_vm13 = vsmask.f32 (!%p253_p3), 7424  ;;  %vm810_vm15 = vcmask (!%p253_p3), 125952  }
   0xe   : > { %s1217_s21 = smov (!%p300_p4, %s1072_s21), 1 }
   0xf   : > { %s966_s7 = sshll.u32 %s1217_s21, 4  ;;  %s969_s29 = sshll.u32 %s1217_s21, 3 }
  0x10   : > { %s308_s10 = scalar_lea.vmem %s1205_s0, %s966_s7  ;;  %s968_s11 = sadd.s32 8, %s966_s7 }
  0x11   : > { %s318_s14 = scalar_lea.vmem %s1206_s1, %s968_s11  ;;  %v1155_v3 = vld [vmem:[%s308_s10] sm:$0xff]   ;;  %s328_s8 = scalar_lea.vmem %s1211_s6, %s969_s29 }
  0x12   : > { %v1157_v4 = vld [vmem:[%s318_s14] sm:$0xff]   ;;  %v347_v5 = vunpack.c.l.bf16 %v1155_v3  ;;  %v348_v6 = vunpack.c.h.bf16 %v1155_v3 }
  0x13   : > { %v349_v7 = vunpack.c.l.bf16 %v1157_v4  ;;  %v350_v8 = vunpack.c.h.bf16 %v1157_v4 }
  0x14   : > { %vm351_vm0 = vcmp.ge.f32.partialorder %v347_v5, 0.0  ;;  %vm352_vm1 = vcmp.ge.f32.partialorder %v348_v6, 0.0  ;;  %v355_v9 = vmul.f32 0.1, %v347_v5  ;;  %v356_v10 = vmul.f32 0.1, %v348_v6 }
  0x15   : > { %vm353_vm2 = vcmp.ge.f32.partialorder %v349_v7, 0.0  ;;  %vm354_vm3 = vcmp.ge.f32.partialorder %v350_v8, 0.0  ;;  %v357_v11 = vmul.f32 0.1, %v349_v7  ;;  %v358_v12 = vmul.f32 0.1, %v350_v8 }
  0x16   : > { %v359_v13 = vsel %vm351_vm0, %v347_v5, %v355_v9  ;;  %v360_v14 = vsel %vm352_vm1, %v348_v6, %v356_v10 }
  0x17   : > { %v361_v15 = vsel %vm353_vm2, %v349_v7, %v357_v11  ;;  %v362_v16 = vsel %vm354_vm3, %v350_v8, %v358_v12  ;;  %v363_v17 = vpack.c.bf16 %v360_v14, %v359_v13 }
  0x18   : > { %v364_v18 = vpack.c.bf16 %v362_v16, %v361_v15  ;;  %v1057_v16 = vld [vmem:[%s1209_s4 + $0x10] sm:$0xff]  }
  0x19   : > { %v372_v19 = vshrl.u32 %v363_v17, 16  ;;  %v375_v20 = vshll.u32 %v363_v17, 16  ;;  %v452_v21 = vrot.slane %v363_v17, 2  ;;  %v519_v27 = vrot.slane %v363_v17, 5 }
  0x1a   : > { %v380_v22 = vshrl.u32 %v364_v18, 16  ;;  %v383_v23 = vshll.u32 %v364_v18, 16  ;;  %v453_v24 = vrot.slane %v364_v18, 2  ;;  %v520_v31 = vrot.slane %v364_v18, 5 }
  0x1b   : > { %v374_v25 = vrot.slane %v372_v19, 3  ;;  %v377_v26 = vrot.slane %v375_v20, 4 }
  0x1c   : > { %v382_v28 = vrot.slane %v380_v22, 3  ;;  %v385_v29 = vrot.slane %v383_v23, 4  ;;  %v454_v30 = vsel %vm451_vm4, %v452_v21, %v453_v24  ;;  %v521_v35 = vsel %vm518_vm7, %v519_v27, %v520_v31 }
  0x1d   : > { %v378_v32 = vor.u32 %v377_v26, %v374_v25  ;;  %996 = vmatprep.mubr.msk.bf16.mxu1 %vm394_vm5, %v454_v30  ;;  %v785_v26 = vrot.slane %v1155_v3, 4  ;;  %v786_v27 = vrot.slane %v1157_v4, 4 }
  0x1e   : > { %v386_v33 = vor.u32 %v385_v29, %v382_v28  ;;  %997 = vmatmul.mubr.msk.bf16.vlgmr.msra.gmra.mrb[0].mxu1 %vm394_vm5, %v453_v24 }
  0x1f   : > { %1008 = vmatprep.mubr.msk.bf16.mxu1 %vm1083_vm8, %v1082_v37  ;;  %1007 = vmatpush3.bf16.msra.mxu1 %v1056_v38  ;;  %v787_v30 = vsel %vm784_vm14, %v785_v26, %v786_v27 }
  0x20   : > { %v387_v34 = vsel %vm370_vm6, %v378_v32, %v386_v33  ;;  %1018 = vmatprep.subr.bf16.mxu1 %v1082_v37  ;;  %v961_v32 = vld [vmem:[%s1210_s5] ss:$0 sm:$0xff] }
  0x21   : > { %990 = vmatprep.mubr.msk.bf16.mxu0 %vm394_vm5, %v387_v34  ;;  %v789_v34 = vunpack.c.l.bf16 %v787_v30 }
  0x22   : > { %991 = vmatmul.mubr.msk.bf16.vlgmr.msra.gmra.mrb[0].mxu0 %vm394_vm5, %v386_v33 }
  0x23   : > { %1001 = vmatpush3.bf16.msra.mxu0 %v1054_v2  ;;  %1002 = vmatprep.mubr.msk.bf16.mxu0 %vm394_vm5, %v521_v35 }
  0x24   : > { %1012 = vmatprep.subr.bf16.mxu0 %v1082_v37 }
  0x2a   : > { %1003 = vmatmul.mubr.msk.bf16.vlgmr.msra.gmra.mrb[4].mxu0 %vm394_vm5, %v520_v31 }
  0x2b   : > { %1013 = vmatpush3.bf16.msra.mxu0 %v1055_v36  ;;  %1014 = vmatprep.mubr.msk.bf16.mxu0 %vm1083_vm8, %v1082_v37 }
  0xf1   : > { %v998_v39 = vpop.f32.mrb[0].mxu1 }
  0xf2   : > { %v501_v40 = vpop.f32.mrb[1].mxu1 }
  0xf3   : > { %v999_v41 = vpop.f32.mrb[2].mxu1 }
  0xf4   : > { %v504_v42 = vpop.f32.mrb[3].mxu1 }
  0xf5   : > { %v992_v43 = vpop.f32.mrb[0].mxu0 }
  0xf6   : > { %v510_v44 = vadd.f32 %v998_v39, %v992_v43  ;;  %v435_v45 = vpop.f32.mrb[1].mxu0  ;;  %v790_v39 = vunpack.c.h.bf16 %v787_v30 }
  0xf7   : > { %v502_v46 = vadd.f32 %v501_v40, %v435_v45  ;;  %v993_v47 = vpop.f32.mrb[2].mxu0 }
  0xf8   : > { %v438_v48 = vpop.f32.mrb[3].mxu0 }
  0xf9   : > { %v505_v49 = vadd.f32 %v504_v42, %v438_v48 }
  0xfd   : > { %v1004_v50 = vpop.f32.mrb[4].mxu0 }
  0xfe   : > { %v584_v52 = vadd.f32 %v1004_v50, %v510_v44  ;;  %v568_v53 = vpop.f32.mrb[5].mxu0 }
  0xff   : > { %v582_v54 = vadd.f32 %v568_v53, %v502_v46  ;;  %v1005_v55 = vpop.f32.mrb[6].mxu0 }
 0x100   : > { %v594_v56 = vadd.f32 %v950_v51, %v584_v52  ;;  %v571_v57 = vpop.f32.mrb[7].mxu0 }
 0x101   : > { %v592_v58 = vadd.f32 %v950_v51, %v582_v54  ;;  %v583_v59 = vadd.f32 %v571_v57, %v505_v49 }
 0x102   : > { %vm597_vm9 = vcmp.ge.f32.partialorder %v594_v56, 0.0  ;;  %v600_v60 = vmul.f32 0.1, %v594_v56 }
 0x103   : > { %v598_v61 = vmul.f32 0.1, %v592_v58  ;;  %v593_v62 = vadd.f32 %v950_v51, %v583_v59  ;;  %vm595_vm10 = vcmp.ge.f32.partialorder %v592_v58, 0.0 }
 0x104   : > { %v603_v63 = vsel %vm597_vm9, %v594_v56, %v600_v60 }
 0x105   : > { %vm596_vm11 = vcmp.ge.f32.partialorder %v593_v62, 0.0  ;;  %v599_v0 = vmul.f32 0.1, %v593_v62  ;;  %v605_v1 = vpack.c.bf16 %v603_v63, %v603_v63  ;;  %v601_v2 = vsel %vm595_vm10, %v592_v58, %v598_v61 }
 0x107   : > { %v602_v5 = vsel %vm596_vm11, %v593_v62, %v599_v0  ;;  %v620_v7 = vshll.u32 %v605_v1, 16  ;;  %v730_v8 = vrot.slane %v605_v1, 1 }
 0x108   : > { %v604_v6 = vpack.c.bf16 %v602_v5, %v601_v2 }
 0x109   : > { %v622_v14 = vrot.slane %v620_v7, 1 }
 0x10a   : > { %1015 = vmatmul.mubr.msk.bf16.vlgmr.msra.gmra.mrb[8].mxu0 %vm394_vm5, %v604_v6  ;;  %v615_v9 = vshll.u32 %v604_v6, 16  ;;  %v729_v10 = vrot.slane %v604_v6, 1  ;;  %v613_v11 = vshrl.u32 %v604_v6, 16 }
 0x10c   : > { %v617_v12 = vrot.slane %v615_v9, 1  ;;  %v731_v13 = vsel %vm728_vm12, %v729_v10, %v730_v8 }
 0x10e   : > { %v618_v15 = vor.u32 %v617_v12, %v613_v11 }
 0x110   : > { %v623_v17 = vsel %vm611_vm13, %v618_v15, %v622_v14 }
 0x111   : > { %1009 = vmatmul.mubr.msk.bf16.vlgmr.msra.gmra.mrb[4].mxu1 %vm394_vm5, %v623_v17 }
 0x112   : > { %1019 = vmatpush3.bf16.msra.mxu1 %v1057_v16  ;;  %1020 = vmatprep.mubr.msk.bf16.mxu1 %vm1083_vm8, %v1082_v37 }
 0x119   : > { %1021 = vmatmul.mubr.msk.bf16.vlgmr.msra.gmra.mrb[8].mxu1 %vm394_vm5, %v731_v13 }
 0x1dd   : > { %v716_v18 = vpop.f32.mrb[8].mxu0 }
 0x1de   : > { %v1016_v19 = vpop.f32.mrb[9].mxu0 }
 0x1df   : > { %v719_v20 = vpop.f32.mrb[10].mxu0 }
 0x1e0   : > { %v1017_v21 = vpop.f32.mrb[11].mxu0 }
 0x1e4   : > { %v667_v22 = vpop.f32.mrb[4].mxu1 }
 0x1e5   : > { %v717_v23 = vadd.f32 %v716_v18, %v667_v22  ;;  %v1010_v24 = vpop.f32.mrb[5].mxu1 }
 0x1e6   : > { %v670_v25 = vpop.f32.mrb[6].mxu1 }
 0x1e7   : > { %v720_v28 = vadd.f32 %v719_v20, %v670_v25  ;;  %v1011_v29 = vpop.f32.mrb[7].mxu1 }
 0x1ec   : > { %v775_v31 = vpop.f32.mrb[8].mxu1 }
 0x1ed   : > { %v782_v33 = vadd.f32 %v775_v31, %v717_v23  ;;  %v1022_v35 = vpop.f32.mrb[9].mxu1 }
 0x1ee   : > { %v778_v36 = vpop.f32.mrb[10].mxu1 }
 0x1ef   : > { %v798_v37 = vadd.f32 %v961_v32, %v782_v33  ;;  %v783_v38 = vadd.f32 %v778_v36, %v720_v28  ;;  %v1023_v3 = vpop.f32.mrb[11].mxu1 }
 0x1f1   : > { %v800_v40 = vadd.f32 %v798_v37, %v789_v34  ;;  %v799_v4 = vadd.f32 %v961_v32, %v783_v38 }
 0x1f3   : > { %v970_v41 = vpack.c.bf16 %v800_v40, %v800_v40  ;;  %v801_v42 = vadd.f32 %v799_v4, %v790_v39 }
 0x1f5   : > { %811 = vst.msk [vmem:[%s328_s8] sm:$0xf] %vm810_vm15, %v970_v41  ;;  %v971_v43 = vpack.c.bf16 %v801_v42, %v801_v42 }
 0x1f7   : > { %812 = vst.msk [vmem:[%s328_s8 + $0x4] sm:$0xf] %vm810_vm15, %v971_v43 }
 0x1f8 PF: > { %s16_s23 = sadd.s32 1, %s1080_s23   ;;  %s1212_s21 = smov %s1076_s22 }
 0x1f9   : > { %p13_p5 = scmp.ge.s32.totalorder %s16_s23, 4   ;;  %s1213_s22 = smov %s1215_s24 }
 0x1fb   :  { %15 = sbr.rel (!%p13_p5) target bundleno = 2 (0x2), region = 81 }

// kernel: generator_forward.12
= control target key start
LH: loop header
LB: loop body
LE: loop exit
PB: predicated region body
PF: predicated region fallthrough
CT: control target
= control target key end

     0   :  { %s1050_s15 = smov 0   ;;  %s1052_s16 = smov 0   ;;  %s1174_s0 = inlined_call_operand.vmem [shape: bf16[2,2,16,16], index: 0, kind: input, shape index: {}, may-alias: {0,1}]   ;;  %s1175_s1 = inlined_call_operand.vmem [shape: bf16[2,2,16,16], index: 1, kind: input, shape index: {}, may-alias: {0,1}]   ;;  %s1176_s2 = inlined_call_operand.vmem [shape: bf16[7,16,32], index: 2, kind: input, shape index: {}]   ;;  %s1177_s3 = inlined_call_operand.vmem [shape: f32[1,32], index: 3, kind: input, shape index: {}]   ;;  %s1178_s4 = inlined_call_operand.vmem [shape: bf16[2,16,32], index: 4, kind: output, shape index: {}]  }
   0x1   :  { %s1054_s17 = smov 0  }
   0x2 LB: > { %s26_s18 = sadd.s32 1, %s1017_s16  ;;  %p861_p0 = scmp.ge.s32.totalorder %s1021_s17, 1  ;;  %s1021_s17 = sphi %s1054_s17, %s14_s17   ;;  %s1017_s16 = sphi %s1052_s16, %s1180_s16   ;;  %s1013_s15 = sphi %s1050_s15, %s1179_s15  }
   0x3   : > { %p28_p1 = scmp.ge.s32.totalorder %s26_s18, 2  ;;  %p202_p2 = scmp.lt.s32.totalorder %s1021_s17, 3 }
   0x5   : > { %s1182_s18 = smov (%p28_p1, %s26_s18), 0  ;;  %p203_p3 = pnand %p861_p0, %p202_p2 }
   0x6   : > { %v990_v0 = vld [vmem:[%s1176_s2 + $0x8] sm:$0xff] (!%p203_p3)   ;;  %v1023_v1 = vmov (!%p203_p3), 0.0   ;;  %p246_p4 = scmp.lt.s32.totalorder (!%p203_p3), %s1013_s15, 1  ;;  %vm1024_vm0 = vmmov (!%p203_p3), 0   ;;  %v994_v2 = vld [vmem:[%s1176_s2] sm:$0xff] (!%p203_p3)   ;;  %vm296_vm1 = vcmask (!%p203_p3), 1044480  }
   0x7   : > { %206 = sbr.rel (%p203_p3) target bundleno = 267 (0x10b), region = 36  ;;  %922 = vmatprep.subr.bf16.mxu0 (!%p203_p3), %v1023_v1  ;;  %928 = vmatprep.subr.bf16.mxu1 (!%p203_p3), %v1023_v1  ;;  %vm306_vm2 = vcmask (!%p203_p3), 130048   ;;  %v993_v9 = vld [vmem:[%s1176_s2 + $0x10] sm:$0xff] (!%p203_p3)   ;;  %vm351_vm3 = vsmask.f32 (!%p203_p3), 5376  ;;  %v995_v23 = vld [vmem:[%s1176_s2 + $0x18] sm:$0xff] (!%p203_p3)  }
   0x8   : > { %923 = vmatpush3.bf16.msra.mxu0 (!%p203_p3), %v990_v0  ;;  %924 = vmatprep.mubr.msk.bf16.mxu0 (!%p203_p3), %vm1024_vm0, %v1023_v1  ;;  %vm422_vm4 = vsmask.f32 (!%p203_p3), 4352  ;;  %v996_v31 = vld [vmem:[%s1176_s2 + $0x20] sm:$0xff] (!%p203_p3)   ;;  %vm485_vm5 = vcmask (!%p203_p3), 1043456   ;;  %v997_v36 = vld [vmem:[%s1176_s2 + $0x28] sm:$0xff] (!%p203_p3)   ;;  %v998_v43 = vld [vmem:[%s1176_s2 + $0x30] sm:$0xff] (!%p203_p3)  }
   0x9   : > { %934 = vmatprep.subr.bf16.mxu0 (!%p203_p3), %v1023_v1  ;;  %930 = vmatprep.mubr.msk.bf16.mxu1 (!%p203_p3), %vm1024_vm0, %v1023_v1  ;;  %vm544_vm6 = vsmask.f32 (!%p203_p3), 3328  ;;  %vm607_vm7 = vcmask (!%p203_p3), 1042432   ;;  %vm666_vm8 = vsmask.f32 (!%p203_p3), 2304  ;;  %vm743_vm9 = vcmask (!%p203_p3), 257024  }
   0xa   : > { %929 = vmatpush3.bf16.msra.mxu1 (!%p203_p3), %v994_v2 }
   0xb   : > { %940 = vmatprep.subr.bf16.mxu1 (!%p203_p3), %v1023_v1 }
   0xe   : > { %s1184_s15 = smov (!%p246_p4, %s1013_s15), 1 }
   0xf   : > { %s901_s23 = sshll.u32 %s1184_s15, 4  ;;  %s904_s21 = sshll.u32 %s1184_s15, 3 }
  0x10   : > { %s254_s26 = scalar_lea.vmem %s1174_s0, %s901_s23  ;;  %s903_s27 = sadd.s32 8, %s901_s23 }
  0x11   : > { %s264_s30 = scalar_lea.vmem %s1175_s1, %s903_s27  ;;  %v1091_v3 = vld [vmem:[%s254_s26] sm:$0xff]   ;;  %s274_s24 = scalar_lea.vmem %s1178_s4, %s904_s21 }
  0x12   : > { %v1093_v4 = vld [vmem:[%s264_s30] sm:$0xff]   ;;  %v297_v5 = vrot.slane %v1091_v3, 3  ;;  %v1097_v6 = vshrl.u32 %v1091_v3, 16  ;;  %v1100_v7 = vshll.u32 %v1091_v3, 16  ;;  %v486_v27 = vrot.slane %v1091_v3, 4 }
  0x13   : > { %v298_v8 = vrot.slane %v1093_v4, 3  ;;  %v1107_v10 = vshrl.u32 %v1093_v4, 16  ;;  %v364_v11 = vshll.u32 %v1093_v4, 16  ;;  %v487_v28 = vrot.slane %v1093_v4, 4 }
  0x14   : > { %v355_v12 = vrot.slane %v1097_v6, 2  ;;  %v358_v13 = vrot.slane %v1100_v7, 3  ;;  %v423_v14 = vrot.slane %v1097_v6, 3  ;;  %v424_v15 = vrot.slane %v1100_v7, 4 }
  0x15   : > { %v299_v16 = vsel %vm296_vm1, %v297_v5, %v298_v8  ;;  %v363_v17 = vrot.slane %v1107_v10, 2  ;;  %v366_v18 = vrot.slane %v364_v11, 3  ;;  %v426_v19 = vrot.slane %v1107_v10, 3 }
  0x16   : > { %925 = vmatmul.mubr.msk.bf16.vlgmr.msra.gmra.mrb[0].mxu0 %vm306_vm2, %v299_v16  ;;  %v359_v20 = vor.u32 %v358_v13, %v355_v12  ;;  %v427_v21 = vrot.slane %v364_v11, 4  ;;  %v425_v24 = vor.u32 %v424_v15, %v423_v14  ;;  %v545_v29 = vrot.slane %v1097_v6, 4 }
  0x17   : > { %935 = vmatpush3.bf16.msra.mxu0 %v993_v9  ;;  %v367_v22 = vor.u32 %v366_v18, %v363_v17  ;;  %936 = vmatprep.mubr.msk.bf16.mxu0 %vm1024_vm0, %v1023_v1  ;;  %v546_v32 = vrot.slane %v1100_v7, 5  ;;  %v548_v33 = vrot.slane %v1107_v10, 4  ;;  %v549_v34 = vrot.slane %v364_v11, 5 }
  0x18   : > { %946 = vmatprep.subr.bf16.mxu0 %v1023_v1  ;;  %v428_v25 = vor.u32 %v427_v21, %v426_v19  ;;  %v488_v35 = vsel %vm485_vm5, %v486_v27, %v487_v28  ;;  %v608_v39 = vrot.slane %v1091_v3, 5  ;;  %v609_v40 = vrot.slane %v1093_v4, 5 }
  0x19   : > { %v368_v26 = vsel %vm351_vm3, %v359_v20, %v367_v22  ;;  %v547_v37 = vor.u32 %v546_v32, %v545_v29  ;;  %v550_v38 = vor.u32 %v549_v34, %v548_v33  ;;  %v667_v41 = vrot.slane %v1097_v6, 5  ;;  %v896_v22 = vld [vmem:[%s1177_s3] ss:$0 sm:$0xff] }
  0x1a   : > { %931 = vmatmul.mubr.msk.bf16.vlgmr.msra.gmra.mrb[0].mxu1 %vm306_vm2, %v368_v26  ;;  %v429_v30 = vsel %vm422_vm4, %v425_v24, %v428_v25  ;;  %v668_v44 = vrot.slane %v1100_v7, 6  ;;  %v670_v45 = vrot.slane %v1107_v10, 5  ;;  %v671_v46 = vrot.slane %v364_v11, 6 }
  0x1b   : > { %941 = vmatpush3.bf16.msra.mxu1 %v995_v23  ;;  %942 = vmatprep.mubr.msk.bf16.mxu1 %vm1024_vm0, %v1023_v1  ;;  %v551_v42 = vsel %vm544_vm6, %v547_v37, %v550_v38  ;;  %v610_v47 = vsel %vm607_vm7, %v608_v39, %v609_v40 }
  0x1c   : > { %952 = vmatprep.subr.bf16.mxu1 %v1023_v1  ;;  %v669_v48 = vor.u32 %v668_v44, %v667_v41  ;;  %v672_v49 = vor.u32 %v671_v46, %v670_v45 }
  0x1e   : > { %937 = vmatmul.mubr.msk.bf16.vlgmr.msra.gmra.mrb[4].mxu0 %vm306_vm2, %v429_v30  ;;  %v673_v50 = vsel %vm666_vm8, %v669_v48, %v672_v49 }
  0x1f   : > { %947 = vmatpush3.bf16.msra.mxu0 %v996_v31  ;;  %948 = vmatprep.mubr.msk.bf16.mxu0 %vm1024_vm0, %v1023_v1 }
  0x20   : > { %958 = vmatprep.subr.bf16.mxu0 %v1023_v1 }
  0x22   : > { %943 = vmatmul.mubr.msk.bf16.vlgmr.msra.gmra.mrb[4].mxu1 %vm306_vm2, %v488_v35 }
  0x23   : > { %953 = vmatpush3.bf16.msra.mxu1 %v997_v36  ;;  %954 = vmatprep.mubr.msk.bf16.mxu1 %vm1024_vm0, %v1023_v1 }
  0x26   : > { %949 = vmatmul.mubr.msk.bf16.vlgmr.msra.gmra.mrb[8].mxu0 %vm306_vm2, %v551_v42 }
  0x27   : > { %959 = vmatpush3.bf16.msra.mxu0 %v998_v43  ;;  %960 = vmatprep.mubr.msk.bf16.mxu0 %vm1024_vm0, %v1023_v1 }
  0x2a   : > { %955 = vmatmul.mubr.msk.bf16.vlgmr.msra.gmra.mrb[8].mxu1 %vm306_vm2, %v610_v47 }
  0x2e   : > { %961 = vmatmul.mubr.msk.bf16.vlgmr.msra.gmra.mrb[12].mxu0 %vm306_vm2, %v673_v50 }
  0xe9   : > { %v344_v51 = vpop.f32.mrb[0].mxu0 }
  0xea   : > { %v926_v52 = vpop.f32.mrb[1].mxu0 }
  0xeb   : > { %v347_v53 = vpop.f32.mrb[2].mxu0 }
  0xec   : > { %v927_v54 = vpop.f32.mrb[3].mxu0 }
  0xed   : > { %v412_v55 = vpop.f32.mrb[0].mxu1 }
  0xee   : > { %v413_v56 = vadd.f32 %v412_v55, %v344_v51  ;;  %v932_v57 = vpop.f32.mrb[1].mxu1 }
  0xef   : > { %v415_v58 = vpop.f32.mrb[2].mxu1 }
  0xf0   : > { %v416_v59 = vadd.f32 %v415_v58, %v347_v53  ;;  %v933_v60 = vpop.f32.mrb[3].mxu1 }
  0xf1   : > { %v473_v61 = vpop.f32.mrb[4].mxu0 }
  0xf2   : > { %v480_v62 = vadd.f32 %v473_v61, %v413_v56  ;;  %v938_v63 = vpop.f32.mrb[5].mxu0 }
  0xf3   : > { %v476_v0 = vpop.f32.mrb[6].mxu0 }
  0xf4   : > { %v481_v1 = vadd.f32 %v476_v0, %v416_v59  ;;  %v939_v2 = vpop.f32.mrb[7].mxu0 }
  0xf5   : > { %v532_v3 = vpop.f32.mrb[4].mxu1 }
  0xf6   : > { %v539_v4 = vadd.f32 %v532_v3, %v480_v62  ;;  %v944_v5 = vpop.f32.mrb[5].mxu1 }
  0xf7   : > { %v535_v6 = vpop.f32.mrb[6].mxu1 }
  0xf8   : > { %v540_v7 = vadd.f32 %v535_v6, %v481_v1  ;;  %v945_v8 = vpop.f32.mrb[7].mxu1 }
  0xf9   : > { %v595_v9 = vpop.f32.mrb[8].mxu0 }
  0xfa   : > { %v602_v10 = vadd.f32 %v595_v9, %v539_v4  ;;  %v950_v11 = vpop.f32.mrb[9].mxu0 }
  0xfb   : > { %v598_v12 = vpop.f32.mrb[10].mxu0 }
  0xfc   : > { %v603_v13 = vadd.f32 %v598_v12, %v540_v7  ;;  %v951_v14 = vpop.f32.mrb[11].mxu0 }
  0xfd   : > { %v654_v15 = vpop.f32.mrb[8].mxu1 }
  0xfe   : > { %v661_v16 = vadd.f32 %v654_v15, %v602_v10  ;;  %v956_v17 = vpop.f32.mrb[9].mxu1 }
  0xff   : > { %v657_v18 = vpop.f32.mrb[10].mxu1 }
 0x100   : > { %v662_v19 = vadd.f32 %v657_v18, %v603_v13  ;;  %v957_v20 = vpop.f32.mrb[11].mxu1 }
 0x101   : > { %v717_v21 = vpop.f32.mrb[12].mxu0 }
 0x102   : > { %v724_v23 = vadd.f32 %v717_v21, %v661_v16  ;;  %v962_v24 = vpop.f32.mrb[13].mxu0 }
 0x103   : > { %v720_v25 = vpop.f32.mrb[14].mxu0 }
 0x104   : > { %v733_v26 = vadd.f32 %v896_v22, %v724_v23  ;;  %v725_v27 = vadd.f32 %v720_v25, %v662_v19  ;;  %v963_v28 = vpop.f32.mrb[15].mxu0 }
 0x106   : > { %v905_v29 = vpack.c.bf16 %v733_v26, %v733_v26  ;;  %v734_v30 = vadd.f32 %v896_v22, %v725_v27 }
 0x108   : > { %744 = vst.msk [vmem:[%s274_s24] sm:$0xf] %vm743_vm9, %v905_v29  ;;  %v906_v31 = vpack.c.bf16 %v734_v30, %v734_v30 }
 0x10a   : > { %745 = vst.msk [vmem:[%s274_s24 + $0x4] sm:$0xf] %vm743_vm9, %v906_v31 }
 0x10b PF: > { %s14_s17 = sadd.s32 1, %s1021_s17   ;;  %s1179_s15 = smov %s1017_s16 }
 0x10c   : > { %p11_p5 = scmp.ge.s32.totalorder %s14_s17, 4   ;;  %s1180_s16 = smov %s1182_s18 }
 0x10e   :  { %13 = sbr.rel (!%p11_p5) target bundleno = 2 (0x2), region = 75 }

// kernel: generator_forward.13
= control target key start
LH: loop header
LB: loop body
LE: loop exit
PB: predicated region body
PF: predicated region fallthrough
CT: control target
= control target key end

     0   :  { %s819_s15 = smov 0   ;;  %s821_s16 = smov 0   ;;  %s895_s0 = inlined_call_operand.vmem [shape: bf16[2,2,16,32], index: 0, kind: input, shape index: {}, may-alias: {0,1}]   ;;  %s896_s1 = inlined_call_operand.vmem [shape: bf16[2,2,16,32], index: 1, kind: input, shape index: {}, may-alias: {0,1}]   ;;  %s897_s2 = inlined_call_operand.vmem [shape: bf16[3,32,32], index: 2, kind: input, shape index: {}]   ;;  %s898_s3 = inlined_call_operand.vmem [shape: f32[1,32], index: 3, kind: input, shape index: {}]   ;;  %s899_s4 = inlined_call_operand.vmem [shape: bf16[2,16,32], index: 4, kind: output, shape index: {}]  }
   0x1   :  { %s823_s17 = smov 0  }
   0x2 LB: > { %s26_s18 = sadd.s32 1, %s786_s16  ;;  %p663_p0 = scmp.ge.s32.totalorder %s790_s17, 1  ;;  %s790_s17 = sphi %s823_s17, %s14_s17   ;;  %s786_s16 = sphi %s821_s16, %s901_s16   ;;  %s782_s15 = sphi %s819_s15, %s900_s15  }
   0x3   : > { %p28_p1 = scmp.ge.s32.totalorder %s26_s18, 2  ;;  %p202_p2 = scmp.lt.s32.totalorder %s790_s17, 3 }
   0x5   : > { %s903_s18 = smov (%p28_p1, %s26_s18), 0  ;;  %p203_p3 = pnand %p663_p0, %p202_p2 }
   0x6   : > { %v760_v0 = vld [vmem:[%s897_s2 + $0x10] sm:$0xff] (!%p203_p3)   ;;  %v792_v1 = vmov (!%p203_p3), 0.0   ;;  %v761_v2 = vld [vmem:[%s897_s2 + $0x18] sm:$0xff] (!%p203_p3)   ;;  %v762_v3 = vld [vmem:[%s897_s2] sm:$0xff] (!%p203_p3)   ;;  %vm793_vm0 = vmmov (!%p203_p3), 0   ;;  %p246_p4 = scmp.lt.s32.totalorder (!%p203_p3), %s782_s15, 1 }
   0x7   : > { %206 = sbr.rel (%p203_p3) target bundleno = 258 (0x102), region = 36  ;;  %710 = vmatprep.subr.bf16.mxu0 (!%p203_p3), %v792_v1  ;;  %718 = vmatprep.subr.bf16.mxu1 (!%p203_p3), %v792_v1  ;;  %v766_v4 = vld [vmem:[%s897_s2 + $0x8] sm:$0xff] (!%p203_p3)   ;;  %vm322_vm5 = vcmask (!%p203_p3), 1043456   ;;  %vm338_vm6 = vcmask (!%p203_p3), 261120   ;;  %v765_v25 = vld [vmem:[%s897_s2 + $0x20] sm:$0xff] (!%p203_p3)   ;;  %vm545_vm9 = vcmask (!%p203_p3), 257024  }
   0x8   : > { %711 = vmatpush3.bf16.msra.mxu0 (!%p203_p3), %v760_v0  ;;  %714 = vmatprep.mubr.msk.bf16.mxu0 (!%p203_p3), %vm793_vm0, %v792_v1  ;;  %vm383_vm7 = vsmask.f32 (!%p203_p3), 4352  ;;  %v767_v39 = vld [vmem:[%s897_s2 + $0x28] sm:$0xff] (!%p203_p3)   ;;  %vm462_vm8 = vsmask.f32 (!%p203_p3), 3328 }
   0x9   : > { %712 = vmatprep.subr.bf16.mxu0 (!%p203_p3), %v792_v1  ;;  %722 = vmatprep.mubr.msk.bf16.mxu1 (!%p203_p3), %vm793_vm0, %v792_v1  ;;  %v689_v55 = vld [vmem:[%s898_s3] ss:$0 sm:$0xff] (!%p203_p3) }
   0xa   : > { %719 = vmatpush3.bf16.msra.mxu1 (!%p203_p3), %v762_v3 }
   0xb   : > { %720 = vmatprep.subr.bf16.mxu1 (!%p203_p3), %v792_v1 }
   0xc   : > { %713 = vmatpush3.bf16.msra.mxu0 (!%p203_p3), %v761_v2 }
   0xd   : > { %726 = vmatprep.subr.bf16.mxu0 (!%p203_p3), %v792_v1 }
   0xe   : > { %s905_s15 = smov (!%p246_p4, %s782_s15), 1  ;;  %721 = vmatpush3.bf16.msra.mxu1 %v766_v4 }
   0xf   : > { %s694_s27 = sshll.u32 %s905_s15, 4  ;;  %s697_s19 = sshll.u32 %s905_s15, 3 }
  0x10   : > { %s254_s30 = scalar_lea.vmem %s895_s0, %s694_s27  ;;  %s696_s5 = sadd.s32 8, %s694_s27 }
  0x11   : > { %s264_s8 = scalar_lea.vmem %s896_s1, %s696_s5  ;;  %v763_v5 = vld [vmem:[%s254_s30] sm:$0xff]   ;;  %s274_s22 = scalar_lea.vmem %s899_s4, %s697_s19 }
  0x12   : > { %v764_v6 = vld [vmem:[%s264_s8] sm:$0xff]   ;;  %v293_v7 = vunpack.c.l.bf16 %v763_v5  ;;  %v294_v8 = vunpack.c.h.bf16 %v763_v5 }
  0x13   : > { %v295_v9 = vunpack.c.l.bf16 %v764_v6  ;;  %v296_v10 = vunpack.c.h.bf16 %v764_v6 }
  0x14   : > { %vm297_vm1 = vcmp.ge.f32.partialorder %v293_v7, 0.0  ;;  %vm298_vm2 = vcmp.ge.f32.partialorder %v294_v8, 0.0  ;;  %v301_v11 = vmul.f32 0.1, %v293_v7  ;;  %v302_v12 = vmul.f32 0.1, %v294_v8 }
  0x15   : > { %vm299_vm3 = vcmp.ge.f32.partialorder %v295_v9, 0.0  ;;  %vm300_vm4 = vcmp.ge.f32.partialorder %v296_v10, 0.0  ;;  %v303_v13 = vmul.f32 0.1, %v295_v9  ;;  %v304_v14 = vmul.f32 0.1, %v296_v10 }
  0x16   : > { %v305_v15 = vsel %vm297_vm1, %v293_v7, %v301_v11  ;;  %v306_v16 = vsel %vm298_vm2, %v294_v8, %v302_v12 }
  0x17   : > { %v307_v17 = vsel %vm299_vm3, %v295_v9, %v303_v13  ;;  %v308_v18 = vsel %vm300_vm4, %v296_v10, %v304_v14  ;;  %v309_v19 = vpack.c.bf16 %v306_v16, %v305_v15 }
  0x18   : > { %v310_v20 = vpack.c.bf16 %v308_v18, %v307_v17 }
  0x19   : > { %v323_v21 = vrot.slane %v309_v19, 4  ;;  %v385_v22 = vshrl.u32 %v309_v19, 16  ;;  %v388_v23 = vshll.u32 %v309_v19, 16 }
  0x1a   : > { %v324_v24 = vrot.slane %v310_v20, 4  ;;  %v393_v26 = vshrl.u32 %v310_v20, 16  ;;  %v396_v27 = vshll.u32 %v310_v20, 16 }
  0x1b   : > { %v387_v28 = vrot.slane %v385_v22, 3  ;;  %v390_v29 = vrot.slane %v388_v23, 4  ;;  %v463_v30 = vrot.slane %v385_v22, 4  ;;  %v464_v31 = vrot.slane %v388_v23, 5 }
  0x1c   : > { %v325_v32 = vsel %vm322_vm5, %v323_v21, %v324_v24  ;;  %v395_v33 = vrot.slane %v393_v26, 3  ;;  %v398_v34 = vrot.slane %v396_v27, 4  ;;  %v466_v35 = vrot.slane %v393_v26, 4 }
  0x1d   : > { %715 = vmatmul.mubr.msk.bf16.vlgmr.msra.gmra.mrb[0].mxu0 %vm338_vm6, %v325_v32  ;;  %v391_v36 = vor.u32 %v390_v29, %v387_v28  ;;  %v467_v37 = vrot.slane %v396_v27, 5  ;;  %v465_v40 = vor.u32 %v464_v31, %v463_v30 }
  0x1e   : > { %727 = vmatpush3.bf16.msra.mxu0 %v765_v25  ;;  %v399_v38 = vor.u32 %v398_v34, %v395_v33  ;;  %730 = vmatprep.mubr.msk.bf16.mxu0 %vm793_vm0, %v792_v1 }
  0x1f   : > { %728 = vmatprep.subr.bf16.mxu0 %v792_v1  ;;  %v468_v41 = vor.u32 %v467_v37, %v466_v35 }
  0x20   : > { %v400_v42 = vsel %vm383_vm7, %v391_v36, %v399_v38 }
  0x21   : > { %723 = vmatmul.mubr.msk.bf16.vlgmr.msra.gmra.mrb[0].mxu1 %vm338_vm6, %v400_v42  ;;  %v469_v43 = vsel %vm462_vm8, %v465_v40, %v468_v41 }
  0x22   : > { %729 = vmatpush3.bf16.msra.mxu0 %v767_v39 }
  0x25   : > { %731 = vmatmul.mubr.msk.bf16.vlgmr.msra.gmra.mrb[4].mxu0 %vm338_vm6, %v469_v43 }
  0xf0   : > { %v376_v44 = vpop.f32.mrb[0].mxu0 }
  0xf1   : > { %v716_v45 = vpop.f32.mrb[1].mxu0 }
  0xf2   : > { %v379_v46 = vpop.f32.mrb[2].mxu0 }
  0xf3   : > { %v717_v47 = vpop.f32.mrb[3].mxu0 }
  0xf4   : > { %v450_v48 = vpop.f32.mrb[0].mxu1 }
  0xf5   : > { %v451_v49 = vadd.f32 %v450_v48, %v376_v44  ;;  %v724_v50 = vpop.f32.mrb[1].mxu1 }
  0xf6   : > { %v453_v51 = vpop.f32.mrb[2].mxu1 }
  0xf7   : > { %v454_v52 = vadd.f32 %v453_v51, %v379_v46  ;;  %v725_v53 = vpop.f32.mrb[3].mxu1 }
  0xf8   : > { %v519_v54 = vpop.f32.mrb[4].mxu0 }
  0xf9   : > { %v526_v56 = vadd.f32 %v519_v54, %v451_v49  ;;  %v732_v57 = vpop.f32.mrb[5].mxu0 }
  0xfa   : > { %v522_v58 = vpop.f32.mrb[6].mxu0 }
  0xfb   : > { %v535_v59 = vadd.f32 %v689_v55, %v526_v56  ;;  %v527_v60 = vadd.f32 %v522_v58, %v454_v52  ;;  %v733_v61 = vpop.f32.mrb[7].mxu0 }
  0xfd   : > { %v698_v62 = vpack.c.bf16 %v535_v59, %v535_v59  ;;  %v536_v63 = vadd.f32 %v689_v55, %v527_v60 }
  0xff   : > { %546 = vst.msk [vmem:[%s274_s22] sm:$0xf] %vm545_vm9, %v698_v62  ;;  %v699_v0 = vpack.c.bf16 %v536_v63, %v536_v63 }
 0x101   : > { %547 = vst.msk [vmem:[%s274_s22 + $0x4] sm:$0xf] %vm545_vm9, %v699_v0 }
 0x102 PF: > { %s14_s17 = sadd.s32 1, %s790_s17   ;;  %s900_s15 = smov %s786_s16 }
 0x103   : > { %p11_p5 = scmp.ge.s32.totalorder %s14_s17, 4   ;;  %s901_s16 = smov %s903_s18 }
 0x105   :  { %13 = sbr.rel (!%p11_p5) target bundleno = 2 (0x2), region = 71 }

// kernel: generator_forward.14
= control target key start
LH: loop header
LB: loop body
LE: loop exit
PB: predicated region body
PF: predicated region fallthrough
CT: control target
= control target key end

     0   :  { %s1118_s21 = smov 0   ;;  %s1120_s22 = smov 0   ;;  %s1206_s0 = inlined_call_operand.vmem [shape: bf16[2,2,16,16], index: 0, kind: input, shape index: {}, may-alias: {0,1}]   ;;  %s1207_s1 = inlined_call_operand.vmem [shape: bf16[2,2,16,16], index: 1, kind: input, shape index: {}, may-alias: {0,1}]   ;;  %s1208_s2 = inlined_call_operand.vmem [shape: bf16[3,16,16], index: 2, kind: input, shape index: {}]   ;;  %s1209_s3 = inlined_call_operand.vmem [shape: f32[1,16], index: 3, kind: input, shape index: {}]   ;;  %s1210_s4 = inlined_call_operand.vmem [shape: bf16[3,16,16], index: 4, kind: input, shape index: {}]   ;;  %s1211_s5 = inlined_call_operand.vmem [shape: f32[1,16], index: 5, kind: input, shape index: {}]   ;;  %s1212_s6 = inlined_call_operand.vmem [shape: bf16[2,16,16], index: 6, kind: output, shape index: {}]  }
   0x1   :  { %s1122_s23 = smov 0  }
   0x2 LB: > { %s28_s24 = sadd.s32 1, %s1075_s22  ;;  %p927_p0 = scmp.ge.s32.totalorder %s1079_s23, 1  ;;  %s1079_s23 = sphi %s1122_s23, %s16_s23   ;;  %s1075_s22 = sphi %s1120_s22, %s1214_s22   ;;  %s1071_s21 = sphi %s1118_s21, %s1213_s21  }
   0x3   : > { %p30_p1 = scmp.ge.s32.totalorder %s28_s24, 2  ;;  %p252_p2 = scmp.lt.s32.totalorder %s1079_s23, 3 }
   0x5   : > { %s1216_s24 = smov (%p30_p1, %s28_s24), 0  ;;  %p253_p3 = pnand %p927_p0, %p252_p2 }
   0x6   : > { %v1049_v0 = vld [vmem:[%s1208_s2 + $0x8] sm:$0xff] (!%p253_p3)   ;;  %p300_p4 = scmp.lt.s32.totalorder (!%p253_p3), %s1071_s21, 1  ;;  %v1050_v1 = vld [vmem:[%s1208_s2] sm:$0xff] (!%p253_p3)   ;;  %v1053_v2 = vld [vmem:[%s1208_s2 + $0x10] sm:$0xff] (!%p253_p3)   ;;  %vm451_vm4 = vcmask (!%p253_p3), 1044480   ;;  %vm394_vm5 = vcmask (!%p253_p3), 130048  }
   0x7   : > { %256 = sbr.rel (%p253_p3) target bundleno = 504 (0x1f8), region = 44  ;;  %987 = vmatprep.subr.bf16.mxu0 (!%p253_p3), %v1049_v0  ;;  %993 = vmatprep.subr.bf16.mxu1 (!%p253_p3), %v1050_v1  ;;  %vm370_vm6 = vsmask.f32 (!%p253_p3), 4352  ;;  %vm518_vm7 = vcmask (!%p253_p3), 1043456   ;;  %v1054_v36 = vld [vmem:[%s1210_s4] sm:$0xff] (!%p253_p3)   ;;  %v1081_v37 = vmov (!%p253_p3), 0.0  }
   0x8   : > { %988 = vmatpush3.bf16.msra.mxu0 (!%p253_p3), %v1049_v0  ;;  %994 = vmatpush3.bf16.msra.mxu1 (!%p253_p3), %v1050_v1  ;;  %v1055_v38 = vld [vmem:[%s1210_s4 + $0x8] sm:$0xff] (!%p253_p3)   ;;  %vm1082_vm8 = vmmov (!%p253_p3), 0   ;;  %v949_v51 = vld [vmem:[%s1209_s3] ss:$0 sm:$0xff] (!%p253_p3)  ;;  %vm728_vm12 = vcmask (!%p253_p3), 1046528   ;;  %vm809_vm14 = vcmask (!%p253_p3), 125952  }
   0x9   : > { %999 = vmatprep.subr.bf16.mxu0 (!%p253_p3), %v1053_v2  ;;  %1005 = vmatprep.subr.bf16.mxu1 (!%p253_p3), %v1081_v37  ;;  %vm611_vm13 = vsmask.f32 (!%p253_p3), 7424 }
   0xe   : > { %s1218_s21 = smov (!%p300_p4, %s1071_s21), 1 }
   0xf   : > { %s965_s7 = sshll.u32 %s1218_s21, 4  ;;  %s968_s29 = sshll.u32 %s1218_s21, 3 }
  0x10   : > { %s308_s10 = scalar_lea.vmem %s1206_s0, %s965_s7  ;;  %s967_s11 = sadd.s32 8, %s965_s7 }
  0x11   : > { %s318_s14 = scalar_lea.vmem %s1207_s1, %s967_s11  ;;  %v1154_v3 = vld [vmem:[%s308_s10] sm:$0xff]   ;;  %s328_s8 = scalar_lea.vmem %s1212_s6, %s968_s29 }
  0x12   : > { %v1156_v4 = vld [vmem:[%s318_s14] sm:$0xff]   ;;  %v347_v5 = vunpack.c.l.bf16 %v1154_v3  ;;  %v348_v6 = vunpack.c.h.bf16 %v1154_v3 }
  0x13   : > { %v349_v7 = vunpack.c.l.bf16 %v1156_v4  ;;  %v350_v8 = vunpack.c.h.bf16 %v1156_v4 }
  0x14   : > { %vm351_vm0 = vcmp.ge.f32.partialorder %v347_v5, 0.0  ;;  %vm352_vm1 = vcmp.ge.f32.partialorder %v348_v6, 0.0  ;;  %v355_v9 = vmul.f32 0.1, %v347_v5  ;;  %v356_v10 = vmul.f32 0.1, %v348_v6 }
  0x15   : > { %vm353_vm2 = vcmp.ge.f32.partialorder %v349_v7, 0.0  ;;  %vm354_vm3 = vcmp.ge.f32.partialorder %v350_v8, 0.0  ;;  %v357_v11 = vmul.f32 0.1, %v349_v7  ;;  %v358_v12 = vmul.f32 0.1, %v350_v8 }
  0x16   : > { %v359_v13 = vsel %vm351_vm0, %v347_v5, %v355_v9  ;;  %v360_v14 = vsel %vm352_vm1, %v348_v6, %v356_v10 }
  0x17   : > { %v361_v15 = vsel %vm353_vm2, %v349_v7, %v357_v11  ;;  %v362_v16 = vsel %vm354_vm3, %v350_v8, %v358_v12  ;;  %v363_v17 = vpack.c.bf16 %v360_v14, %v359_v13 }
  0x18   : > { %v364_v18 = vpack.c.bf16 %v362_v16, %v361_v15  ;;  %v1056_v16 = vld [vmem:[%s1210_s4 + $0x10] sm:$0xff]  }
  0x19   : > { %v372_v19 = vshrl.u32 %v363_v17, 16  ;;  %v375_v20 = vshll.u32 %v363_v17, 16  ;;  %v452_v21 = vrot.slane %v363_v17, 3  ;;  %v519_v27 = vrot.slane %v363_v17, 4 }
  0x1a   : > { %v380_v22 = vshrl.u32 %v364_v18, 16  ;;  %v383_v23 = vshll.u32 %v364_v18, 16  ;;  %v453_v24 = vrot.slane %v364_v18, 3  ;;  %v520_v31 = vrot.slane %v364_v18, 4 }
  0x1b   : > { %v374_v25 = vrot.slane %v372_v19, 3  ;;  %v377_v26 = vrot.slane %v375_v20, 4 }
  0x1c   : > { %v382_v28 = vrot.slane %v380_v22, 3  ;;  %v385_v29 = vrot.slane %v383_v23, 4  ;;  %v454_v30 = vsel %vm451_vm4, %v452_v21, %v453_v24  ;;  %v521_v35 = vsel %vm518_vm7, %v519_v27, %v520_v31 }
  0x1d   : > { %v378_v32 = vor.u32 %v377_v26, %v374_v25  ;;  %995 = vmatprep.mubr.msk.bf16.mxu1 %vm394_vm5, %v454_v30  ;;  %v784_v26 = vrot.slane %v1154_v3, 4  ;;  %v785_v27 = vrot.slane %v1156_v4, 4 }
  0x1e   : > { %v386_v33 = vor.u32 %v385_v29, %v382_v28  ;;  %996 = vmatmul.mubr.msk.bf16.vlgmr.msra.gmra.mrb[0].mxu1 %vm394_vm5, %v453_v24 }
  0x1f   : > { %1007 = vmatprep.mubr.msk.bf16.mxu1 %vm1082_vm8, %v1081_v37  ;;  %1006 = vmatpush3.bf16.msra.mxu1 %v1055_v38  ;;  %v786_v30 = vsel %vm518_vm7, %v784_v26, %v785_v27 }
  0x20   : > { %v387_v34 = vsel %vm370_vm6, %v378_v32, %v386_v33  ;;  %1017 = vmatprep.subr.bf16.mxu1 %v1081_v37  ;;  %v960_v32 = vld [vmem:[%s1211_s5] ss:$0 sm:$0xff] }
  0x21   : > { %989 = vmatprep.mubr.msk.bf16.mxu0 %vm394_vm5, %v387_v34  ;;  %v788_v34 = vunpack.c.l.bf16 %v786_v30 }
  0x22   : > { %990 = vmatmul.mubr.msk.bf16.vlgmr.msra.gmra.mrb[0].mxu0 %vm394_vm5, %v386_v33 }
  0x23   : > { %1000 = vmatpush3.bf16.msra.mxu0 %v1053_v2  ;;  %1001 = vmatprep.mubr.msk.bf16.mxu0 %vm394_vm5, %v521_v35 }
  0x24   : > { %1011 = vmatprep.subr.bf16.mxu0 %v1081_v37 }
  0x2a   : > { %1002 = vmatmul.mubr.msk.bf16.vlgmr.msra.gmra.mrb[4].mxu0 %vm394_vm5, %v520_v31 }
  0x2b   : > { %1012 = vmatpush3.bf16.msra.mxu0 %v1054_v36  ;;  %1013 = vmatprep.mubr.msk.bf16.mxu0 %vm1082_vm8, %v1081_v37 }
  0xf1   : > { %v997_v39 = vpop.f32.mrb[0].mxu1 }
  0xf2   : > { %v501_v40 = vpop.f32.mrb[1].mxu1 }
  0xf3   : > { %v998_v41 = vpop.f32.mrb[2].mxu1 }
  0xf4   : > { %v504_v42 = vpop.f32.mrb[3].mxu1 }
  0xf5   : > { %v991_v43 = vpop.f32.mrb[0].mxu0 }
  0xf6   : > { %v510_v44 = vadd.f32 %v997_v39, %v991_v43  ;;  %v435_v45 = vpop.f32.mrb[1].mxu0  ;;  %v789_v39 = vunpack.c.h.bf16 %v786_v30 }
  0xf7   : > { %v502_v46 = vadd.f32 %v501_v40, %v435_v45  ;;  %v992_v47 = vpop.f32.mrb[2].mxu0 }
  0xf8   : > { %v438_v48 = vpop.f32.mrb[3].mxu0 }
  0xf9   : > { %v505_v49 = vadd.f32 %v504_v42, %v438_v48 }
  0xfd   : > { %v1003_v50 = vpop.f32.mrb[4].mxu0 }
  0xfe   : > { %v584_v52 = vadd.f32 %v1003_v50, %v510_v44  ;;  %v568_v53 = vpop.f32.mrb[5].mxu0 }
  0xff   : > { %v582_v54 = vadd.f32 %v568_v53, %v502_v46  ;;  %v1004_v55 = vpop.f32.mrb[6].mxu0 }
 0x100   : > { %v594_v56 = vadd.f32 %v949_v51, %v584_v52  ;;  %v571_v57 = vpop.f32.mrb[7].mxu0 }
 0x101   : > { %v592_v58 = vadd.f32 %v949_v51, %v582_v54  ;;  %v583_v59 = vadd.f32 %v571_v57, %v505_v49 }
 0x102   : > { %vm597_vm9 = vcmp.ge.f32.partialorder %v594_v56, 0.0  ;;  %v600_v60 = vmul.f32 0.1, %v594_v56 }
 0x103   : > { %v598_v61 = vmul.f32 0.1, %v592_v58  ;;  %v593_v62 = vadd.f32 %v949_v51, %v583_v59  ;;  %vm595_vm10 = vcmp.ge.f32.partialorder %v592_v58, 0.0 }
 0x104   : > { %v603_v63 = vsel %vm597_vm9, %v594_v56, %v600_v60 }
 0x105   : > { %vm596_vm11 = vcmp.ge.f32.partialorder %v593_v62, 0.0  ;;  %v599_v0 = vmul.f32 0.1, %v593_v62  ;;  %v605_v1 = vpack.c.bf16 %v603_v63, %v603_v63  ;;  %v601_v2 = vsel %vm595_vm10, %v592_v58, %v598_v61 }
 0x107   : > { %v602_v5 = vsel %vm596_vm11, %v593_v62, %v599_v0  ;;  %v620_v7 = vshll.u32 %v605_v1, 16  ;;  %v730_v8 = vrot.slane %v605_v1, 1 }
 0x108   : > { %v604_v6 = vpack.c.bf16 %v602_v5, %v601_v2 }
 0x109   : > { %v622_v14 = vrot.slane %v620_v7, 1 }
 0x10a   : > { %1014 = vmatmul.mubr.msk.bf16.vlgmr.msra.gmra.mrb[8].mxu0 %vm394_vm5, %v604_v6  ;;  %v615_v9 = vshll.u32 %v604_v6, 16  ;;  %v729_v10 = vrot.slane %v604_v6, 1  ;;  %v613_v11 = vshrl.u32 %v604_v6, 16 }
 0x10c   : > { %v617_v12 = vrot.slane %v615_v9, 1  ;;  %v731_v13 = vsel %vm728_vm12, %v729_v10, %v730_v8 }
 0x10e   : > { %v618_v15 = vor.u32 %v617_v12, %v613_v11 }
 0x110   : > { %v623_v17 = vsel %vm611_vm13, %v618_v15, %v622_v14 }
 0x111   : > { %1008 = vmatmul.mubr.msk.bf16.vlgmr.msra.gmra.mrb[4].mxu1 %vm394_vm5, %v623_v17 }
 0x112   : > { %1018 = vmatpush3.bf16.msra.mxu1 %v1056_v16  ;;  %1019 = vmatprep.mubr.msk.bf16.mxu1 %vm1082_vm8, %v1081_v37 }
 0x119   : > { %1020 = vmatmul.mubr.msk.bf16.vlgmr.msra.gmra.mrb[8].mxu1 %vm394_vm5, %v731_v13 }
 0x1dd   : > { %v716_v18 = vpop.f32.mrb[8].mxu0 }
 0x1de   : > { %v1015_v19 = vpop.f32.mrb[9].mxu0 }
 0x1df   : > { %v719_v20 = vpop.f32.mrb[10].mxu0 }
 0x1e0   : > { %v1016_v21 = vpop.f32.mrb[11].mxu0 }
 0x1e4   : > { %v667_v22 = vpop.f32.mrb[4].mxu1 }
 0x1e5   : > { %v717_v23 = vadd.f32 %v716_v18, %v667_v22  ;;  %v1009_v24 = vpop.f32.mrb[5].mxu1 }
 0x1e6   : > { %v670_v25 = vpop.f32.mrb[6].mxu1 }
 0x1e7   : > { %v720_v28 = vadd.f32 %v719_v20, %v670_v25  ;;  %v1010_v29 = vpop.f32.mrb[7].mxu1 }
 0x1ec   : > { %v775_v31 = vpop.f32.mrb[8].mxu1 }
 0x1ed   : > { %v782_v33 = vadd.f32 %v775_v31, %v717_v23  ;;  %v1021_v35 = vpop.f32.mrb[9].mxu1 }
 0x1ee   : > { %v778_v36 = vpop.f32.mrb[10].mxu1 }
 0x1ef   : > { %v797_v37 = vadd.f32 %v960_v32, %v782_v33  ;;  %v783_v38 = vadd.f32 %v778_v36, %v720_v28  ;;  %v1022_v3 = vpop.f32.mrb[11].mxu1 }
 0x1f1   : > { %v799_v40 = vadd.f32 %v797_v37, %v788_v34  ;;  %v798_v4 = vadd.f32 %v960_v32, %v783_v38 }
 0x1f3   : > { %v969_v41 = vpack.c.bf16 %v799_v40, %v799_v40  ;;  %v800_v42 = vadd.f32 %v798_v4, %v789_v39 }
 0x1f5   : > { %810 = vst.msk [vmem:[%s328_s8] sm:$0xf] %vm809_vm14, %v969_v41  ;;  %v970_v43 = vpack.c.bf16 %v800_v42, %v800_v42 }
 0x1f7   : > { %811 = vst.msk [vmem:[%s328_s8 + $0x4] sm:$0xf] %vm809_vm14, %v970_v43 }
 0x1f8 PF: > { %s16_s23 = sadd.s32 1, %s1079_s23   ;;  %s1213_s21 = smov %s1075_s22 }
 0x1f9   : > { %p13_p5 = scmp.ge.s32.totalorder %s16_s23, 4   ;;  %s1214_s22 = smov %s1216_s24 }
 0x1fb   :  { %15 = sbr.rel (!%p13_p5) target bundleno = 2 (0x2), region = 81 }

// kernel: generator_forward.17
= control target key start
LH: loop header
LB: loop body
LE: loop exit
PB: predicated region body
PF: predicated region fallthrough
CT: control target
= control target key end

     0   :  { %s1537_s24 = smov 0   ;;  %s1539_s25 = smov 0   ;;  %s1667_s0 = inlined_call_operand.vmem [shape: bf16[2,2,16,16], index: 0, kind: input, shape index: {}, may-alias: {0,1}]   ;;  %s1668_s1 = inlined_call_operand.vmem [shape: bf16[2,2,16,16], index: 1, kind: input, shape index: {}, may-alias: {0,1}]   ;;  %s1669_s2 = inlined_call_operand.vmem [shape: bf16[5,16,16], index: 2, kind: input, shape index: {}]   ;;  %s1670_s3 = inlined_call_operand.vmem [shape: f32[1,16], index: 3, kind: input, shape index: {}]   ;;  %s1671_s4 = inlined_call_operand.vmem [shape: bf16[5,16,16], index: 4, kind: input, shape index: {}]   ;;  %s1672_s5 = inlined_call_operand.vmem [shape: f32[1,16], index: 5, kind: input, shape index: {}]   ;;  %s1673_s6 = inlined_call_operand.vmem [shape: bf16[2,16,16], index: 6, kind: input, shape index: {}]   ;;  %s1674_s7 = inlined_call_operand.vmem [shape: bf16[2,16,16], index: 7, kind: output, shape index: {}]  }
   0x1   :  { %s1541_s26 = smov 0  }
   0x2 LB: > { %s29_s27 = sadd.s32 1, %s1489_s25  ;;  %p1278_p0 = scmp.ge.s32.totalorder %s1493_s26, 1  ;;  %s1493_s26 = sphi %s1541_s26, %s17_s26   ;;  %s1489_s25 = sphi %s1539_s25, %s1676_s25   ;;  %s1485_s24 = sphi %s1537_s24, %s1675_s24  }
   0x3   : > { %p31_p1 = scmp.ge.s32.totalorder %s29_s27, 2  ;;  %p294_p2 = scmp.lt.s32.totalorder %s1493_s26, 3 }
   0x5   : > { %s1678_s27 = smov (%p31_p1, %s29_s27), 0  ;;  %p295_p3 = pnand %p1278_p0, %p294_p2 }
   0x6   : > { %v1459_v0 = vld [vmem:[%s1669_s2 + $0x8] sm:$0xff] (!%p295_p3)   ;;  %p353_p4 = scmp.lt.s32.totalorder (!%p295_p3), %s1485_s24, 1  ;;  %v1460_v1 = vld [vmem:[%s1669_s2] sm:$0xff] (!%p295_p3)   ;;  %v1566_v2 = vld [vmem:[%s1669_s2 + $0x10] sm:$0xff] (!%p295_p3)   ;;  %vm457_vm0 = vcmask (!%p295_p3), 130048   ;;  %vm575_vm6 = vcmask (!%p295_p3), 1044480  }
   0x7   : > { %298 = sbr.rel (%p295_p3) target bundleno = 524 (0x20c), region = 48  ;;  %1373 = vmatprep.subr.bf16.mxu0 (!%p295_p3), %v1459_v0  ;;  %1379 = vmatprep.subr.bf16.mxu1 (!%p295_p3), %v1460_v1  ;;  %v1464_v3 = vld [vmem:[%s1669_s2 + $0x18] sm:$0xff] (!%p295_p3)   ;;  %vm433_vm5 = vsmask.f32 (!%p295_p3), 6400  ;;  %vm645_vm7 = vsmask.f32 (!%p295_p3), 3328 }
   0x8   : > { %1374 = vmatpush3.bf16.msra.mxu0 (!%p295_p3), %v1459_v0  ;;  %1380 = vmatpush3.bf16.msra.mxu1 (!%p295_p3), %v1460_v1  ;;  %v1465_v40 = vld [vmem:[%s1669_s2 + $0x20] sm:$0xff] (!%p295_p3)   ;;  %vm719_vm8 = vcmask (!%p295_p3), 1041408   ;;  %v1495_v46 = vmov (!%p295_p3), 0.0   ;;  %v1467_v47 = vld [vmem:[%s1671_s4 + $0x8] sm:$0xff] (!%p295_p3)   ;;  %vm1496_vm9 = vmmov (!%p295_p3), 0   ;;  %vm929_vm13 = vcmask (!%p295_p3), 1046528  }
   0x9   : > { %1385 = vmatprep.subr.bf16.mxu0 (!%p295_p3), %v1566_v2  ;;  %1391 = vmatprep.subr.bf16.mxu1 (!%p295_p3), %v1464_v3  ;;  %v1466_v45 = vld [vmem:[%s1671_s4] sm:$0xff] (!%p295_p3)   ;;  %vm1052_vm14 = vcmask (!%p295_p3), 1045504   ;;  %vm812_vm15 = vsmask.f32 (!%p295_p3), 7424 }
   0xe   : > { %s1680_s24 = smov (!%p353_p4, %s1485_s24), 1 }
   0xf   : > { %s1336_s11 = sshll.u32 %s1680_s24, 4 }
  0x10   : > { %s361_s16 = scalar_lea.vmem %s1667_s0, %s1336_s11  ;;  %s1338_s17 = sadd.s32 8, %s1336_s11 }
  0x11   : > { %s371_s20 = scalar_lea.vmem %s1668_s1, %s1338_s17  ;;  %v1579_v4 = vld [vmem:[%s361_s16] sm:$0xff]   ;;  %s1339_s16 = sshll.u32 %s1680_s24, 3 }
  0x12   : > { %v1581_v5 = vld [vmem:[%s371_s20] sm:$0xff]   ;;  %v410_v6 = vunpack.c.l.bf16 %v1579_v4  ;;  %v411_v7 = vunpack.c.h.bf16 %v1579_v4  ;;  %s381_s19 = scalar_lea.vmem %s1673_s6, %s1339_s16  ;;  %s391_s28 = scalar_lea.vmem %s1674_s7, %s1339_s16 }
  0x13   : > { %v412_v8 = vunpack.c.l.bf16 %v1581_v5  ;;  %v413_v9 = vunpack.c.h.bf16 %v1581_v5 }
  0x14   : > { %vm414_vm1 = vcmp.ge.f32.partialorder %v410_v6, 0.0  ;;  %vm415_vm2 = vcmp.ge.f32.partialorder %v411_v7, 0.0  ;;  %v418_v10 = vmul.f32 0.1, %v410_v6  ;;  %v419_v11 = vmul.f32 0.1, %v411_v7 }
  0x15   : > { %vm416_vm3 = vcmp.ge.f32.partialorder %v412_v8, 0.0  ;;  %vm417_vm4 = vcmp.ge.f32.partialorder %v413_v9, 0.0  ;;  %v420_v12 = vmul.f32 0.1, %v412_v8  ;;  %v421_v13 = vmul.f32 0.1, %v413_v9 }
  0x16   : > { %v422_v14 = vsel %vm414_vm1, %v410_v6, %v418_v10  ;;  %v423_v15 = vsel %vm415_vm2, %v411_v7, %v419_v11  ;;  %vm1142_vm1 = vcmask 125952  }
  0x17   : > { %v424_v16 = vsel %vm416_vm3, %v412_v8, %v420_v12  ;;  %v425_v17 = vsel %vm417_vm4, %v413_v9, %v421_v13  ;;  %v426_v18 = vpack.c.bf16 %v423_v15, %v422_v14  ;;  %v1312_v12 = vld [vmem:[%s1670_s3] ss:$0 sm:$0xff] }
  0x18   : > { %v427_v19 = vpack.c.bf16 %v425_v17, %v424_v16 }
  0x19   : > { %v435_v20 = vshrl.u32 %v426_v18, 16  ;;  %v438_v21 = vshll.u32 %v426_v18, 16  ;;  %1381 = vmatprep.mubr.msk.bf16.mxu1 %vm457_vm0, %v426_v18  ;;  %v576_v24 = vrot.slane %v426_v18, 3  ;;  %v720_v42 = vrot.slane %v426_v18, 6 }
  0x1a   : > { %v443_v22 = vshrl.u32 %v427_v19, 16  ;;  %v446_v23 = vshll.u32 %v427_v19, 16  ;;  %1382 = vmatmul.mubr.msk.bf16.vlgmr.msra.gmra.mrb[0].mxu1 %vm457_vm0, %v427_v19  ;;  %v577_v31 = vrot.slane %v427_v19, 3  ;;  %v721_v43 = vrot.slane %v427_v19, 6 }
  0x1b   : > { %v437_v25 = vrot.slane %v435_v20, 1  ;;  %v440_v26 = vrot.slane %v438_v21, 2  ;;  %1392 = vmatpush3.bf16.msra.mxu1 %v1464_v3  ;;  %v646_v27 = vrot.slane %v435_v20, 4  ;;  %v647_v28 = vrot.slane %v438_v21, 5 }
  0x1c   : > { %v445_v29 = vrot.slane %v443_v22, 1  ;;  %v448_v30 = vrot.slane %v446_v23, 2  ;;  %v649_v32 = vrot.slane %v443_v22, 4  ;;  %v650_v35 = vrot.slane %v446_v23, 5  ;;  %1403 = vmatprep.subr.bf16.mxu1 %v1495_v46 }
  0x1d   : > { %v441_v33 = vor.u32 %v440_v26, %v437_v25  ;;  %v648_v34 = vor.u32 %v647_v28, %v646_v27  ;;  %v578_v39 = vsel %vm575_vm6, %v576_v24, %v577_v31  ;;  %v722_v44 = vsel %vm719_vm8, %v720_v42, %v721_v43 }
  0x1e   : > { %v449_v36 = vor.u32 %v448_v30, %v445_v29  ;;  %v651_v37 = vor.u32 %v650_v35, %v649_v32  ;;  %v1468_v29 = vld [vmem:[%s1671_s4 + $0x18] sm:$0xff]  }
  0x20   : > { %v450_v38 = vsel %vm433_vm5, %v441_v33, %v449_v36  ;;  %v652_v41 = vsel %vm645_vm7, %v648_v34, %v651_v37 }
  0x21   : > { %1375 = vmatprep.mubr.msk.bf16.mxu0 %vm457_vm0, %v450_v38  ;;  %1393 = vmatprep.mubr.msk.bf16.mxu1 %vm457_vm0, %v652_v41 }
  0x22   : > { %1376 = vmatmul.mubr.msk.bf16.vlgmr.msra.gmra.mrb[0].mxu0 %vm457_vm0, %v449_v36  ;;  %1394 = vmatmul.mubr.msk.bf16.vlgmr.msra.gmra.mrb[4].mxu1 %vm457_vm0, %v651_v37 }
  0x23   : > { %1386 = vmatpush3.bf16.msra.mxu0 %v1566_v2  ;;  %1387 = vmatprep.mubr.msk.bf16.mxu0 %vm457_vm0, %v578_v39 }
  0x24   : > { %1397 = vmatprep.subr.bf16.mxu0 %v1465_v40  ;;  %1405 = vmatprep.mubr.msk.bf16.mxu1 %vm1496_vm9, %v1495_v46 }
  0x25   : > { %1404 = vmatpush3.bf16.msra.mxu1 %v1467_v47 }
  0x26   : > { %1415 = vmatprep.subr.bf16.mxu1 %v1495_v46 }
  0x2a   : > { %1388 = vmatmul.mubr.msk.bf16.vlgmr.msra.gmra.mrb[4].mxu0 %vm457_vm0, %v577_v31 }
  0x2b   : > { %1398 = vmatpush3.bf16.msra.mxu0 %v1465_v40  ;;  %1399 = vmatprep.mubr.msk.bf16.mxu0 %vm457_vm0, %v722_v44 }
  0x2c   : > { %1409 = vmatprep.subr.bf16.mxu0 %v1495_v46 }
  0x32   : > { %1400 = vmatmul.mubr.msk.bf16.vlgmr.msra.gmra.mrb[8].mxu0 %vm457_vm0, %v721_v43 }
  0x33   : > { %1410 = vmatpush3.bf16.msra.mxu0 %v1466_v45  ;;  %1411 = vmatprep.mubr.msk.bf16.mxu0 %vm1496_vm9, %v1495_v46 }
  0x34   : > { %1421 = vmatprep.subr.bf16.mxu0 %v1495_v46 }
  0xed   : > { %v1383_v48 = vpop.f32.mrb[0].mxu1 }
  0xee   : > { %v556_v49 = vpop.f32.mrb[1].mxu1 }
  0xef   : > { %v1384_v50 = vpop.f32.mrb[2].mxu1 }
  0xf0   : > { %v559_v51 = vpop.f32.mrb[3].mxu1 }
  0xf5   : > { %v1377_v52 = vpop.f32.mrb[0].mxu0  ;;  %v1395_v57 = vpop.f32.mrb[4].mxu1 }
  0xf6   : > { %v565_v53 = vadd.f32 %v1383_v48, %v1377_v52  ;;  %v498_v54 = vpop.f32.mrb[1].mxu0  ;;  %v699_v59 = vpop.f32.mrb[5].mxu1 }
  0xf7   : > { %v557_v55 = vadd.f32 %v556_v49, %v498_v54  ;;  %v1378_v56 = vpop.f32.mrb[2].mxu0  ;;  %v1396_v61 = vpop.f32.mrb[6].mxu1  ;;  %v1469_v49 = vld [vmem:[%s1671_s4 + $0x10] sm:$0xff]   ;;  %v1470_v54 = vld [vmem:[%s1671_s4 + $0x20] sm:$0xff]  }
  0xf8   : > { %v501_v58 = vpop.f32.mrb[3].mxu0  ;;  %v702_v62 = vpop.f32.mrb[7].mxu1 }
  0xf9   : > { %v560_v60 = vadd.f32 %v559_v51, %v501_v58 }
  0xfd   : > { %v1389_v63 = vpop.f32.mrb[4].mxu0 }
  0xfe   : > { %v641_v0 = vadd.f32 %v1389_v63, %v565_v53  ;;  %v625_v1 = vpop.f32.mrb[5].mxu0 }
  0xff   : > { %v639_v2 = vadd.f32 %v625_v1, %v557_v55  ;;  %v1390_v3 = vpop.f32.mrb[6].mxu0 }
 0x100   : > { %v715_v6 = vadd.f32 %v1395_v57, %v641_v0  ;;  %v628_v7 = vpop.f32.mrb[7].mxu0 }
 0x101   : > { %v640_v8 = vadd.f32 %v628_v7, %v560_v60  ;;  %v713_v9 = vadd.f32 %v699_v59, %v639_v2 }
 0x103   : > { %v714_v10 = vadd.f32 %v702_v62, %v640_v8 }
 0x105   : > { %v1401_v11 = vpop.f32.mrb[8].mxu0 }
 0x106   : > { %v785_v13 = vadd.f32 %v1401_v11, %v715_v6  ;;  %v769_v14 = vpop.f32.mrb[9].mxu0  ;;  %v1110_v11 = vrot.slane %v1581_v5, 4 }
 0x107   : > { %v783_v15 = vadd.f32 %v769_v14, %v713_v9  ;;  %v1402_v16 = vpop.f32.mrb[10].mxu0 }
 0x108   : > { %v795_v17 = vadd.f32 %v1312_v12, %v785_v13  ;;  %v772_v18 = vpop.f32.mrb[11].mxu0 }
 0x109   : > { %v793_v19 = vadd.f32 %v1312_v12, %v783_v15  ;;  %v784_v20 = vadd.f32 %v772_v18, %v714_v10  ;;  %v1109_v10 = vrot.slane %v1579_v4, 4  ;;  %v1331_v18 = vld [vmem:[%s1672_s5] ss:$0 sm:$0xff] }
 0x10a   : > { %vm798_vm10 = vcmp.ge.f32.partialorder %v795_v17, 0.0  ;;  %v801_v21 = vmul.f32 0.1, %v795_v17 }
 0x10b   : > { %v799_v22 = vmul.f32 0.1, %v793_v19  ;;  %v794_v23 = vadd.f32 %v1312_v12, %v784_v20  ;;  %vm796_vm11 = vcmp.ge.f32.partialorder %v793_v19, 0.0 }
 0x10c   : > { %v804_v24 = vsel %vm798_vm10, %v795_v17, %v801_v21 }
 0x10d   : > { %v806_v25 = vpack.c.bf16 %v804_v24, %v804_v24  ;;  %vm797_vm12 = vcmp.ge.f32.partialorder %v794_v23, 0.0  ;;  %v800_v26 = vmul.f32 0.1, %v794_v23  ;;  %v802_v27 = vsel %vm796_vm11, %v793_v19, %v799_v22  ;;  %v1344_v19 = vld [vmem:[%s381_s19] sm:$0xff]  }
 0x10f   : > { %v803_v28 = vsel %vm797_vm12, %v794_v23, %v800_v26  ;;  %v821_v30 = vshll.u32 %v806_v25, 16  ;;  %v991_v31 = vshrl.u32 %v806_v25, 16  ;;  %v931_v35 = vrot.slane %v806_v25, 1 }
 0x110   : > { %v805_v32 = vpack.c.bf16 %v803_v28, %v802_v27  ;;  %v1054_v40 = vrot.slane %v806_v25, 2  ;;  %v1345_v23 = vunpack.c.l.bf16 %v1344_v19 }
 0x111   : > { %v993_v33 = vrot.slane %v991_v31, 1  ;;  %v994_v34 = vrot.slane %v821_v30, 2  ;;  %v823_v48 = vrot.slane %v821_v30, 1 }
 0x112   : > { %1412 = vmatmul.mubr.msk.bf16.vlgmr.msra.gmra.mrb[12].mxu0 %vm457_vm0, %v805_v32  ;;  %v814_v36 = vshrl.u32 %v805_v32, 16  ;;  %v816_v37 = vshll.u32 %v805_v32, 16  ;;  %v930_v38 = vrot.slane %v805_v32, 1  ;;  %v1053_v39 = vrot.slane %v805_v32, 2 }
 0x113   : > { %1422 = vmatpush3.bf16.msra.mxu0 %v1468_v29  ;;  %1423 = vmatprep.mubr.msk.bf16.mxu0 %vm1496_vm9, %v1495_v46  ;;  %v995_v51 = vor.u32 %v994_v34, %v993_v33  ;;  %v1346_v29 = vunpack.c.h.bf16 %v1344_v19 }
 0x114   : > { %v818_v41 = vrot.slane %v816_v37, 1  ;;  %v988_v42 = vrot.slane %v814_v36, 1  ;;  %v989_v43 = vrot.slane %v816_v37, 2  ;;  %v932_v44 = vsel %vm929_vm13, %v930_v38, %v931_v35 }
 0x115   : > { %v1055_v45 = vsel %vm1052_vm14, %v1053_v39, %v1054_v40 }
 0x116   : > { %v819_v47 = vor.u32 %v818_v41, %v814_v36  ;;  %v990_v50 = vor.u32 %v989_v43, %v988_v42 }
 0x118   : > { %v824_v52 = vsel %vm812_vm15, %v819_v47, %v823_v48  ;;  %v996_v53 = vsel %vm433_vm5, %v990_v50, %v995_v51 }
 0x119   : > { %1406 = vmatmul.mubr.msk.bf16.vlgmr.msra.gmra.mrb[8].mxu1 %vm457_vm0, %v824_v52 }
 0x11a   : > { %1416 = vmatpush3.bf16.msra.mxu1 %v1469_v49  ;;  %1424 = vmatmul.mubr.msk.bf16.vlgmr.msra.gmra.mrb[16].mxu0 %vm457_vm0, %v996_v53 }
 0x11b   : > { %1417 = vmatprep.mubr.msk.bf16.mxu1 %vm1496_vm9, %v1495_v46  ;;  %1427 = vmatprep.subr.bf16.mxu1 %v1495_v46 }
 0x121   : > { %1418 = vmatmul.mubr.msk.bf16.vlgmr.msra.gmra.mrb[12].mxu1 %vm457_vm0, %v932_v44 }
 0x122   : > { %1428 = vmatpush3.bf16.msra.mxu1 %v1470_v54  ;;  %1429 = vmatprep.mubr.msk.bf16.mxu1 %vm1496_vm9, %v1495_v46 }
 0x129   : > { %1430 = vmatmul.mubr.msk.bf16.vlgmr.msra.gmra.mrb[16].mxu1 %vm457_vm0, %v1055_v45  ;;  %vm1108_vm0 = vcmask 1043456  }
 0x12a   : > { %v1111_v16 = vsel %vm1108_vm0, %v1109_v10, %v1110_v11 }
 0x12b   : > { %v1113_v5 = vunpack.c.l.bf16 %v1111_v16  ;;  %v1114_v25 = vunpack.c.h.bf16 %v1111_v16 }
 0x1e5   : > { %v917_v55 = vpop.f32.mrb[12].mxu0 }
 0x1e6   : > { %v1413_v56 = vpop.f32.mrb[13].mxu0 }
 0x1e7   : > { %v920_v57 = vpop.f32.mrb[14].mxu0 }
 0x1e8   : > { %v1414_v58 = vpop.f32.mrb[15].mxu0 }
 0x1ec   : > { %v868_v59 = vpop.f32.mrb[8].mxu1 }
 0x1ed   : > { %v918_v60 = vadd.f32 %v917_v55, %v868_v59  ;;  %v1407_v61 = vpop.f32.mrb[9].mxu1  ;;  %v1040_v62 = vpop.f32.mrb[16].mxu0 }
 0x1ee   : > { %v871_v63 = vpop.f32.mrb[10].mxu1  ;;  %v1425_v0 = vpop.f32.mrb[17].mxu0 }
 0x1ef   : > { %v921_v1 = vadd.f32 %v920_v57, %v871_v63  ;;  %v1408_v2 = vpop.f32.mrb[11].mxu1  ;;  %v1043_v3 = vpop.f32.mrb[18].mxu0 }
 0x1f0   : > { %v1426_v6 = vpop.f32.mrb[19].mxu0 }
 0x1f4   : > { %v976_v7 = vpop.f32.mrb[12].mxu1 }
 0x1f5   : > { %v983_v46 = vadd.f32 %v976_v7, %v918_v60  ;;  %v1419_v8 = vpop.f32.mrb[13].mxu1 }
 0x1f6   : > { %v979_v9 = vpop.f32.mrb[14].mxu1 }
 0x1f7   : > { %v984_v12 = vadd.f32 %v979_v9, %v921_v1  ;;  %v1420_v13 = vpop.f32.mrb[15].mxu1  ;;  %v1047_v14 = vadd.f32 %v1040_v62, %v983_v46 }
 0x1f9   : > { %v1048_v15 = vadd.f32 %v1043_v3, %v984_v12 }
 0x1fc   : > { %v1099_v17 = vpop.f32.mrb[16].mxu1 }
 0x1fd   : > { %v1106_v4 = vadd.f32 %v1099_v17, %v1047_v14  ;;  %v1431_v20 = vpop.f32.mrb[17].mxu1 }
 0x1fe   : > { %v1102_v21 = vpop.f32.mrb[18].mxu1 }
 0x1ff   : > { %v1122_v22 = vadd.f32 %v1331_v18, %v1106_v4  ;;  %v1107_v24 = vadd.f32 %v1102_v21, %v1048_v15  ;;  %v1432_v26 = vpop.f32.mrb[19].mxu1 }
 0x201   : > { %v1124_v27 = vadd.f32 %v1122_v22, %v1113_v5  ;;  %v1123_v28 = vadd.f32 %v1331_v18, %v1107_v24 }
 0x203   : > { %v1130_v30 = vadd.f32 %v1345_v23, %v1124_v27  ;;  %v1125_v31 = vadd.f32 %v1123_v28, %v1114_v25 }
 0x205   : > { %v1132_v32 = vmul.f32 0.5, %v1130_v30  ;;  %v1131_v33 = vadd.f32 %v1346_v29, %v1125_v31 }
 0x207   : > { %v1341_v34 = vpack.c.bf16 %v1132_v32, %v1132_v32  ;;  %v1133_v35 = vmul.f32 0.5, %v1131_v33 }
 0x209   : > { %1143 = vst.msk [vmem:[%s391_s28] sm:$0xf] %vm1142_vm1, %v1341_v34  ;;  %v1342_v36 = vpack.c.bf16 %v1133_v35, %v1133_v35 }
 0x20b   : > { %1144 = vst.msk [vmem:[%s391_s28 + $0x4] sm:$0xf] %vm1142_vm1, %v1342_v36 }
 0x20c PF: > { %s17_s26 = sadd.s32 1, %s1493_s26   ;;  %s1675_s24 = smov %s1489_s25 }
 0x20d   : > { %p14_p5 = scmp.ge.s32.totalorder %s17_s26, 4   ;;  %s1676_s25 = smov %s1678_s27 }
 0x20f   :  { %16 = sbr.rel (!%p14_p5) target bundleno = 2 (0x2), region = 92 }

// kernel: generator_forward.16
= control target key start
LH: loop header
LB: loop body
LE: loop exit
PB: predicated region body
PF: predicated region fallthrough
CT: control target
= control target key end

     0   :  { %s1441_s21 = smov 0   ;;  %s1443_s22 = smov 0   ;;  %s1567_s0 = inlined_call_operand.vmem [shape: bf16[2,2,16,16], index: 0, kind: input, shape index: {}, may-alias: {0,1}]   ;;  %s1568_s1 = inlined_call_operand.vmem [shape: bf16[2,2,16,16], index: 1, kind: input, shape index: {}, may-alias: {0,1}]   ;;  %s1569_s2 = inlined_call_operand.vmem [shape: bf16[5,16,16], index: 2, kind: input, shape index: {}]   ;;  %s1570_s3 = inlined_call_operand.vmem [shape: f32[1,16], index: 3, kind: input, shape index: {}]   ;;  %s1571_s4 = inlined_call_operand.vmem [shape: bf16[5,16,16], index: 4, kind: input, shape index: {}]   ;;  %s1572_s5 = inlined_call_operand.vmem [shape: f32[1,16], index: 5, kind: input, shape index: {}]   ;;  %s1573_s6 = inlined_call_operand.vmem [shape: bf16[2,16,16], index: 6, kind: output, shape index: {}]  }
   0x1   :  { %s1445_s23 = smov 0  }
   0x2 LB: > { %s28_s24 = sadd.s32 1, %s1398_s22  ;;  %p1194_p0 = scmp.ge.s32.totalorder %s1402_s23, 1  ;;  %s1402_s23 = sphi %s1445_s23, %s16_s23   ;;  %s1398_s22 = sphi %s1443_s22, %s1575_s22   ;;  %s1394_s21 = sphi %s1441_s21, %s1574_s21  }
   0x3   : > { %p30_p1 = scmp.ge.s32.totalorder %s28_s24, 2  ;;  %p252_p2 = scmp.lt.s32.totalorder %s1402_s23, 3 }
   0x5   : > { %s1577_s24 = smov (%p30_p1, %s28_s24), 0  ;;  %p253_p3 = pnand %p1194_p0, %p252_p2 }
   0x6   : > { %v1368_v0 = vld [vmem:[%s1569_s2 + $0x8] sm:$0xff] (!%p253_p3)   ;;  %p300_p4 = scmp.lt.s32.totalorder (!%p253_p3), %s1394_s21, 1  ;;  %v1369_v1 = vld [vmem:[%s1569_s2] sm:$0xff] (!%p253_p3)   ;;  %v1470_v2 = vld [vmem:[%s1569_s2 + $0x10] sm:$0xff] (!%p253_p3)   ;;  %vm370_vm4 = vsmask.f32 (!%p253_p3), 5376 }
   0x7   : > { %256 = sbr.rel (%p253_p3) target bundleno = 520 (0x208), region = 44  ;;  %1282 = vmatprep.subr.bf16.mxu0 (!%p253_p3), %v1368_v0  ;;  %1288 = vmatprep.subr.bf16.mxu1 (!%p253_p3), %v1369_v1  ;;  %v1373_v3 = vld [vmem:[%s1569_s2 + $0x18] sm:$0xff] (!%p253_p3)   ;;  %vm394_vm5 = vcmask (!%p253_p3), 130048   ;;  %vm451_vm6 = vcmask (!%p253_p3), 1045504   ;;  %vm518_vm7 = vcmask (!%p253_p3), 1044480   ;;  %v1374_v43 = vld [vmem:[%s1569_s2 + $0x20] sm:$0xff] (!%p253_p3)  }
   0x8   : > { %1283 = vmatpush3.bf16.msra.mxu0 (!%p253_p3), %v1368_v0  ;;  %1289 = vmatpush3.bf16.msra.mxu1 (!%p253_p3), %v1369_v1  ;;  %vm588_vm8 = vsmask.f32 (!%p253_p3), 4352  ;;  %vm662_vm9 = vcmask (!%p253_p3), 1043456   ;;  %v1375_v48 = vld [vmem:[%s1571_s4] sm:$0xff] (!%p253_p3)   ;;  %v1404_v49 = vmov (!%p253_p3), 0.0   ;;  %v1376_v50 = vld [vmem:[%s1571_s4 + $0x8] sm:$0xff] (!%p253_p3)  }
   0x9   : > { %1294 = vmatprep.subr.bf16.mxu0 (!%p253_p3), %v1470_v2  ;;  %1300 = vmatprep.subr.bf16.mxu1 (!%p253_p3), %v1373_v3  ;;  %vm1405_vm10 = vmmov (!%p253_p3), 0   ;;  %vm872_vm14 = vcmask (!%p253_p3), 1046528   ;;  %vm755_vm15 = vsmask.f32 (!%p253_p3), 7424 }
   0xe   : > { %s1579_s21 = smov (!%p300_p4, %s1394_s21), 1 }
   0xf   : > { %s1250_s7 = sshll.u32 %s1579_s21, 4 }
  0x10   : > { %s308_s12 = scalar_lea.vmem %s1567_s0, %s1250_s7  ;;  %s1252_s13 = sadd.s32 8, %s1250_s7 }
  0x11   : > { %s318_s16 = scalar_lea.vmem %s1568_s1, %s1252_s13  ;;  %v1483_v4 = vld [vmem:[%s308_s12] sm:$0xff]   ;;  %s1253_s13 = sshll.u32 %s1579_s21, 3 }
  0x12   : > { %v1485_v5 = vld [vmem:[%s318_s16] sm:$0xff]   ;;  %v347_v6 = vunpack.c.l.bf16 %v1483_v4  ;;  %v348_v7 = vunpack.c.h.bf16 %v1483_v4  ;;  %s328_s16 = scalar_lea.vmem %s1573_s6, %s1253_s13 }
  0x13   : > { %v349_v8 = vunpack.c.l.bf16 %v1485_v5  ;;  %v350_v9 = vunpack.c.h.bf16 %v1485_v5 }
  0x14   : > { %vm351_vm0 = vcmp.ge.f32.partialorder %v347_v6, 0.0  ;;  %vm352_vm1 = vcmp.ge.f32.partialorder %v348_v7, 0.0  ;;  %v355_v10 = vmul.f32 0.1, %v347_v6  ;;  %v356_v11 = vmul.f32 0.1, %v348_v7 }
  0x15   : > { %vm353_vm2 = vcmp.ge.f32.partialorder %v349_v8, 0.0  ;;  %vm354_vm3 = vcmp.ge.f32.partialorder %v350_v9, 0.0  ;;  %v357_v12 = vmul.f32 0.1, %v349_v8  ;;  %v358_v13 = vmul.f32 0.1, %v350_v9 }
  0x16   : > { %v359_v14 = vsel %vm351_vm0, %v347_v6, %v355_v10  ;;  %v360_v15 = vsel %vm352_vm1, %v348_v7, %v356_v11  ;;  %vm931_vm0 = vsmask.f32 6400  ;;  %vm1076_vm1 = vcmask 125952  }
  0x17   : > { %v361_v16 = vsel %vm353_vm2, %v349_v8, %v357_v12  ;;  %v362_v17 = vsel %vm354_vm3, %v350_v9, %v358_v13  ;;  %v363_v18 = vpack.c.bf16 %v360_v15, %v359_v14  ;;  %v1226_v15 = vld [vmem:[%s1570_s3] ss:$0 sm:$0xff] }
  0x18   : > { %v364_v19 = vpack.c.bf16 %v362_v17, %v361_v16 }
  0x19   : > { %v372_v20 = vshrl.u32 %v363_v18, 16  ;;  %v375_v21 = vshll.u32 %v363_v18, 16  ;;  %v452_v22 = vrot.slane %v363_v18, 2  ;;  %v519_v26 = vrot.slane %v363_v18, 3 }
  0x1a   : > { %v380_v23 = vshrl.u32 %v364_v19, 16  ;;  %v383_v24 = vshll.u32 %v364_v19, 16  ;;  %v453_v25 = vrot.slane %v364_v19, 2  ;;  %v520_v34 = vrot.slane %v364_v19, 3 }
  0x1b   : > { %v374_v27 = vrot.slane %v372_v20, 2  ;;  %v377_v28 = vrot.slane %v375_v21, 3  ;;  %v589_v29 = vrot.slane %v372_v20, 3  ;;  %v590_v30 = vrot.slane %v375_v21, 4 }
  0x1c   : > { %v382_v31 = vrot.slane %v380_v23, 2  ;;  %v385_v32 = vrot.slane %v383_v24, 3  ;;  %v454_v33 = vsel %vm451_vm6, %v452_v22, %v453_v25  ;;  %v592_v37 = vrot.slane %v380_v23, 3 }
  0x1d   : > { %v378_v35 = vor.u32 %v377_v28, %v374_v27  ;;  %1290 = vmatprep.mubr.msk.bf16.mxu1 %vm394_vm5, %v454_v33  ;;  %v591_v36 = vor.u32 %v590_v30, %v589_v29  ;;  %v593_v38 = vrot.slane %v383_v24, 4  ;;  %v521_v42 = vsel %vm518_vm7, %v519_v26, %v520_v34 }
  0x1e   : > { %v386_v39 = vor.u32 %v385_v32, %v382_v31  ;;  %1291 = vmatmul.mubr.msk.bf16.vlgmr.msra.gmra.mrb[0].mxu1 %vm394_vm5, %v453_v25  ;;  %v663_v45 = vrot.slane %v363_v18, 4  ;;  %v664_v46 = vrot.slane %v364_v19, 4  ;;  %v1377_v32 = vld [vmem:[%s1571_s4 + $0x18] sm:$0xff]  }
  0x1f   : > { %1301 = vmatpush3.bf16.msra.mxu1 %v1373_v3  ;;  %v594_v40 = vor.u32 %v593_v38, %v592_v37 }
  0x20   : > { %v387_v41 = vsel %vm370_vm4, %v378_v35, %v386_v39  ;;  %v665_v47 = vsel %vm662_vm9, %v663_v45, %v664_v46  ;;  %1312 = vmatprep.subr.bf16.mxu1 %v1404_v49 }
  0x21   : > { %1284 = vmatprep.mubr.msk.bf16.mxu0 %vm394_vm5, %v387_v41  ;;  %v595_v44 = vsel %vm588_vm8, %v591_v36, %v594_v40 }
  0x22   : > { %1285 = vmatmul.mubr.msk.bf16.vlgmr.msra.gmra.mrb[0].mxu0 %vm394_vm5, %v386_v39  ;;  %1302 = vmatprep.mubr.msk.bf16.mxu1 %vm394_vm5, %v595_v44 }
  0x23   : > { %1295 = vmatpush3.bf16.msra.mxu0 %v1470_v2  ;;  %1296 = vmatprep.mubr.msk.bf16.mxu0 %vm394_vm5, %v521_v42 }
  0x24   : > { %1306 = vmatprep.subr.bf16.mxu0 %v1374_v43 }
  0x26   : > { %1303 = vmatmul.mubr.msk.bf16.vlgmr.msra.gmra.mrb[4].mxu1 %vm394_vm5, %v594_v40 }
  0x27   : > { %1314 = vmatprep.mubr.msk.bf16.mxu1 %vm1405_vm10, %v1404_v49  ;;  %1313 = vmatpush3.bf16.msra.mxu1 %v1376_v50 }
  0x28   : > { %1324 = vmatprep.subr.bf16.mxu1 %v1404_v49 }
  0x2a   : > { %1297 = vmatmul.mubr.msk.bf16.vlgmr.msra.gmra.mrb[4].mxu0 %vm394_vm5, %v520_v34 }
  0x2b   : > { %1307 = vmatpush3.bf16.msra.mxu0 %v1374_v43  ;;  %1308 = vmatprep.mubr.msk.bf16.mxu0 %vm394_vm5, %v665_v47 }
  0x2c   : > { %1318 = vmatprep.subr.bf16.mxu0 %v1404_v49 }
  0x32   : > { %1309 = vmatmul.mubr.msk.bf16.vlgmr.msra.gmra.mrb[8].mxu0 %vm394_vm5, %v664_v46 }
  0x33   : > { %1319 = vmatpush3.bf16.msra.mxu0 %v1375_v48  ;;  %1320 = vmatprep.mubr.msk.bf16.mxu0 %vm1405_vm10, %v1404_v49 }
  0x34   : > { %1330 = vmatprep.subr.bf16.mxu0 %v1404_v49 }
  0xf1   : > { %v1292_v51 = vpop.f32.mrb[0].mxu1 }
  0xf2   : > { %v501_v52 = vpop.f32.mrb[1].mxu1 }
  0xf3   : > { %v1293_v53 = vpop.f32.mrb[2].mxu1 }
  0xf4   : > { %v504_v54 = vpop.f32.mrb[3].mxu1 }
  0xf5   : > { %v1286_v55 = vpop.f32.mrb[0].mxu0 }
  0xf6   : > { %v510_v56 = vadd.f32 %v1292_v51, %v1286_v55  ;;  %v435_v57 = vpop.f32.mrb[1].mxu0 }
  0xf7   : > { %v502_v58 = vadd.f32 %v501_v52, %v435_v57  ;;  %v1287_v59 = vpop.f32.mrb[2].mxu0  ;;  %v1378_v52 = vld [vmem:[%s1571_s4 + $0x10] sm:$0xff]   ;;  %v1379_v57 = vld [vmem:[%s1571_s4 + $0x20] sm:$0xff]  }
  0xf8   : > { %v438_v60 = vpop.f32.mrb[3].mxu0 }
  0xf9   : > { %v505_v61 = vadd.f32 %v504_v54, %v438_v60  ;;  %v1304_v62 = vpop.f32.mrb[4].mxu1 }
  0xfa   : > { %v642_v63 = vpop.f32.mrb[5].mxu1 }
  0xfb   : > { %v1305_v0 = vpop.f32.mrb[6].mxu1 }
  0xfc   : > { %v645_v1 = vpop.f32.mrb[7].mxu1 }
  0xfd   : > { %v1298_v2 = vpop.f32.mrb[4].mxu0 }
  0xfe   : > { %v584_v3 = vadd.f32 %v1298_v2, %v510_v56  ;;  %v568_v6 = vpop.f32.mrb[5].mxu0 }
  0xff   : > { %v582_v7 = vadd.f32 %v568_v6, %v502_v58  ;;  %v1299_v8 = vpop.f32.mrb[6].mxu0 }
 0x100   : > { %v658_v9 = vadd.f32 %v1304_v62, %v584_v3  ;;  %v571_v10 = vpop.f32.mrb[7].mxu0 }
 0x101   : > { %v583_v11 = vadd.f32 %v571_v10, %v505_v61  ;;  %v656_v12 = vadd.f32 %v642_v63, %v582_v7 }
 0x103   : > { %v657_v13 = vadd.f32 %v645_v1, %v583_v11 }
 0x105   : > { %v1310_v14 = vpop.f32.mrb[8].mxu0 }
 0x106   : > { %v728_v16 = vadd.f32 %v1310_v14, %v658_v9  ;;  %v712_v17 = vpop.f32.mrb[9].mxu0  ;;  %v1052_v14 = vrot.slane %v1485_v5, 4 }
 0x107   : > { %v726_v18 = vadd.f32 %v712_v17, %v656_v12  ;;  %v1311_v19 = vpop.f32.mrb[10].mxu0 }
 0x108   : > { %v738_v20 = vadd.f32 %v1226_v15, %v728_v16  ;;  %v715_v21 = vpop.f32.mrb[11].mxu0 }
 0x109   : > { %v736_v22 = vadd.f32 %v1226_v15, %v726_v18  ;;  %v727_v23 = vadd.f32 %v715_v21, %v657_v13  ;;  %v1051_v13 = vrot.slane %v1483_v4, 4  ;;  %v1245_v21 = vld [vmem:[%s1572_s5] ss:$0 sm:$0xff] }
 0x10a   : > { %vm741_vm11 = vcmp.ge.f32.partialorder %v738_v20, 0.0  ;;  %v744_v24 = vmul.f32 0.1, %v738_v20 }
 0x10b   : > { %v742_v25 = vmul.f32 0.1, %v736_v22  ;;  %v737_v26 = vadd.f32 %v1226_v15, %v727_v23  ;;  %vm739_vm12 = vcmp.ge.f32.partialorder %v736_v22, 0.0  ;;  %v1053_v19 = vsel %vm662_vm9, %v1051_v13, %v1052_v14 }
 0x10c   : > { %v747_v27 = vsel %vm741_vm11, %v738_v20, %v744_v24  ;;  %v1055_v23 = vunpack.c.l.bf16 %v1053_v19 }
 0x10d   : > { %v749_v28 = vpack.c.bf16 %v747_v27, %v747_v27  ;;  %vm740_vm13 = vcmp.ge.f32.partialorder %v737_v26, 0.0  ;;  %v743_v29 = vmul.f32 0.1, %v737_v26  ;;  %v745_v30 = vsel %vm739_vm12, %v736_v22, %v742_v25 }
 0x10e   : > { %v1056_v27 = vunpack.c.h.bf16 %v1053_v19 }
 0x10f   : > { %v746_v31 = vsel %vm740_vm13, %v737_v26, %v743_v29  ;;  %v764_v33 = vshll.u32 %v749_v28, 16  ;;  %v935_v34 = vshrl.u32 %v749_v28, 16  ;;  %v874_v38 = vrot.slane %v749_v28, 1 }
 0x110   : > { %v748_v35 = vpack.c.bf16 %v746_v31, %v745_v30  ;;  %v997_v43 = vrot.slane %v749_v28, 2 }
 0x111   : > { %v937_v36 = vrot.slane %v935_v34, 1  ;;  %v938_v37 = vrot.slane %v764_v33, 2  ;;  %v766_v51 = vrot.slane %v764_v33, 1 }
 0x112   : > { %1321 = vmatmul.mubr.msk.bf16.vlgmr.msra.gmra.mrb[12].mxu0 %vm394_vm5, %v748_v35  ;;  %v757_v39 = vshrl.u32 %v748_v35, 16  ;;  %v759_v40 = vshll.u32 %v748_v35, 16  ;;  %v873_v41 = vrot.slane %v748_v35, 1  ;;  %v996_v42 = vrot.slane %v748_v35, 2 }
 0x113   : > { %1331 = vmatpush3.bf16.msra.mxu0 %v1377_v32  ;;  %1332 = vmatprep.mubr.msk.bf16.mxu0 %vm1405_vm10, %v1404_v49  ;;  %v939_v54 = vor.u32 %v938_v37, %v937_v36 }
 0x114   : > { %v761_v44 = vrot.slane %v759_v40, 1  ;;  %v932_v45 = vrot.slane %v757_v39, 1  ;;  %v933_v46 = vrot.slane %v759_v40, 2  ;;  %v875_v47 = vsel %vm872_vm14, %v873_v41, %v874_v38 }
 0x115   : > { %v998_v48 = vsel %vm451_vm6, %v996_v42, %v997_v43 }
 0x116   : > { %v762_v50 = vor.u32 %v761_v44, %v757_v39  ;;  %v934_v53 = vor.u32 %v933_v46, %v932_v45 }
 0x118   : > { %v767_v55 = vsel %vm755_vm15, %v762_v50, %v766_v51  ;;  %v940_v56 = vsel %vm931_vm0, %v934_v53, %v939_v54 }
 0x119   : > { %1315 = vmatmul.mubr.msk.bf16.vlgmr.msra.gmra.mrb[8].mxu1 %vm394_vm5, %v767_v55 }
 0x11a   : > { %1325 = vmatpush3.bf16.msra.mxu1 %v1378_v52  ;;  %1333 = vmatmul.mubr.msk.bf16.vlgmr.msra.gmra.mrb[16].mxu0 %vm394_vm5, %v940_v56 }
 0x11b   : > { %1326 = vmatprep.mubr.msk.bf16.mxu1 %vm1405_vm10, %v1404_v49  ;;  %1336 = vmatprep.subr.bf16.mxu1 %v1404_v49 }
 0x121   : > { %1327 = vmatmul.mubr.msk.bf16.vlgmr.msra.gmra.mrb[12].mxu1 %vm394_vm5, %v875_v47 }
 0x122   : > { %1337 = vmatpush3.bf16.msra.mxu1 %v1379_v57  ;;  %1338 = vmatprep.mubr.msk.bf16.mxu1 %vm1405_vm10, %v1404_v49 }
 0x129   : > { %1339 = vmatmul.mubr.msk.bf16.vlgmr.msra.gmra.mrb[16].mxu1 %vm394_vm5, %v998_v48 }
 0x1e5   : > { %v860_v58 = vpop.f32.mrb[12].mxu0 }
 0x1e6   : > { %v1322_v59 = vpop.f32.mrb[13].mxu0 }
 0x1e7   : > { %v863_v60 = vpop.f32.mrb[14].mxu0 }
 0x1e8   : > { %v1323_v61 = vpop.f32.mrb[15].mxu0 }
 0x1ec   : > { %v811_v62 = vpop.f32.mrb[8].mxu1 }
 0x1ed   : > { %v861_v63 = vadd.f32 %v860_v58, %v811_v62  ;;  %v1316_v0 = vpop.f32.mrb[9].mxu1  ;;  %v984_v1 = vpop.f32.mrb[16].mxu0 }
 0x1ee   : > { %v814_v2 = vpop.f32.mrb[10].mxu1  ;;  %v1334_v3 = vpop.f32.mrb[17].mxu0 }
 0x1ef   : > { %v864_v6 = vadd.f32 %v863_v60, %v814_v2  ;;  %v1317_v7 = vpop.f32.mrb[11].mxu1  ;;  %v987_v8 = vpop.f32.mrb[18].mxu0 }
 0x1f0   : > { %v1335_v9 = vpop.f32.mrb[19].mxu0 }
 0x1f4   : > { %v919_v10 = vpop.f32.mrb[12].mxu1 }
 0x1f5   : > { %v926_v11 = vadd.f32 %v919_v10, %v861_v63  ;;  %v1328_v49 = vpop.f32.mrb[13].mxu1 }
 0x1f6   : > { %v922_v12 = vpop.f32.mrb[14].mxu1 }
 0x1f7   : > { %v927_v15 = vadd.f32 %v922_v12, %v864_v6  ;;  %v1329_v16 = vpop.f32.mrb[15].mxu1  ;;  %v991_v17 = vadd.f32 %v984_v1, %v926_v11 }
 0x1f9   : > { %v992_v18 = vadd.f32 %v987_v8, %v927_v15 }
 0x1fc   : > { %v1042_v20 = vpop.f32.mrb[16].mxu1 }
 0x1fd   : > { %v1049_v22 = vadd.f32 %v1042_v20, %v991_v17  ;;  %v1340_v24 = vpop.f32.mrb[17].mxu1 }
 0x1fe   : > { %v1045_v25 = vpop.f32.mrb[18].mxu1 }
 0x1ff   : > { %v1064_v26 = vadd.f32 %v1245_v21, %v1049_v22  ;;  %v1050_v4 = vadd.f32 %v1045_v25, %v992_v18  ;;  %v1341_v5 = vpop.f32.mrb[19].mxu1 }
 0x201   : > { %v1066_v28 = vadd.f32 %v1064_v26, %v1055_v23  ;;  %v1065_v29 = vadd.f32 %v1245_v21, %v1050_v4 }
 0x203   : > { %v1254_v30 = vpack.c.bf16 %v1066_v28, %v1066_v28  ;;  %v1067_v31 = vadd.f32 %v1065_v29, %v1056_v27 }
 0x205   : > { %1077 = vst.msk [vmem:[%s328_s16] sm:$0xf] %vm1076_vm1, %v1254_v30  ;;  %v1255_v32 = vpack.c.bf16 %v1067_v31, %v1067_v31 }
 0x207   : > { %1078 = vst.msk [vmem:[%s328_s16 + $0x4] sm:$0xf] %vm1076_vm1, %v1255_v32 }
 0x208 PF: > { %s16_s23 = sadd.s32 1, %s1402_s23   ;;  %s1574_s21 = smov %s1398_s22 }
 0x209   : > { %p13_p5 = scmp.ge.s32.totalorder %s16_s23, 4   ;;  %s1575_s22 = smov %s1577_s24 }
 0x20b   :  { %15 = sbr.rel (!%p13_p5) target bundleno = 2 (0x2), region = 85 }

// kernel: tile.18
= control target key start
LH: loop header
LB: loop body
LE: loop exit
PB: predicated region body
PF: predicated region fallthrough
CT: control target
= control target key end

     0   :  { %s22_s0 = inlined_call_operand.vmem [shape: f32[8], index: 0, kind: input, shape index: {}]   ;;  %s23_s1 = inlined_call_operand.vmem [shape: f32[2,8], index: 1, kind: output, shape index: {}]  }
   0x1   :  { %v4_v0 = vld [vmem:[%s22_s0] ss:$0 sm:$0xff] }
   0x2   :  { %5 = vst [vmem:[%s23_s1] sm:$0x3] %v4_v0 }

// kernel: tile.19
= control target key start
LH: loop header
LB: loop body
LE: loop exit
PB: predicated region body
PF: predicated region fallthrough
CT: control target
= control target key end

     0   :  { %vm7_vm0 = vcmask 64512   ;;  %vm13_vm1 = vcmask 130112   ;;  %s39_s0 = inlined_call_operand.vmem [shape: f32[2,8], index: 0, kind: input, shape index: {}]   ;;  %s40_s1 = inlined_call_operand.vmem [shape: f32[1,16], index: 1, kind: output, shape index: {}]  }
   0x1   :  { %v4_v0 = vld [vmem:[%s39_s0] sm:$0x3]  ;;  %s22_s0 = smov 8  }
   0x2   :  { %5 = vst [vmem:[#allocation1] sm:$0x3] %v4_v0 }
   0x9   :  { %v10_v1 = vld [vmem:[#allocation1 + $0x1] sm:$0x1]   ;;  %v6_v2 = vld [vmem:[#allocation1] sm:$0x1]  }
   0xa   :  { %11 = vrot.lane.b32.xlu0 %v10_v1, %s22_s0  ;;  %8 = vst.msk [vmem:[#allocation0] sm:$0x1] %vm7_vm0, %v6_v2  }
  0x7c   :  { %v12_v3 = vpop.permute.xlu0 %11  }
  0x7d   :  { %14 = vst.msk [vmem:[#allocation0] sm:$0x1] %vm13_vm1, %v12_v3  }
  0x84   :  { %v18_v4 = vld [vmem:[#allocation0] sm:$0x1] }
  0x85   :  { %20 = vst [vmem:[%s40_s1] sm:$0x1] %v18_v4 }

// kernel: generator_forward.18
= control target key start
LH: loop header
LB: loop body
LE: loop exit
PB: predicated region body
PF: predicated region fallthrough
CT: control target
= control target key end

     0   :  { %s776_s15 = smov 0   ;;  %s778_s16 = smov 0   ;;  %s834_s0 = inlined_call_operand.vmem [shape: bf16[2,2,16,16], index: 0, kind: input, shape index: {}, may-alias: {0,1}]   ;;  %s835_s1 = inlined_call_operand.vmem [shape: bf16[2,2,16,16], index: 1, kind: input, shape index: {}, may-alias: {0,1}]   ;;  %s836_s2 = inlined_call_operand.vmem [shape: bf16[3,16,16], index: 2, kind: input, shape index: {}]   ;;  %s837_s3 = inlined_call_operand.vmem [shape: f32[1,16], index: 3, kind: input, shape index: {}]   ;;  %s838_s4 = inlined_call_operand.vmem [shape: bf16[2,16,16], index: 4, kind: output, shape index: {}]  }
   0x1   :  { %s780_s17 = smov 0  }
   0x2 LB: > { %s26_s18 = sadd.s32 1, %s743_s16  ;;  %p639_p0 = scmp.ge.s32.totalorder %s747_s17, 1  ;;  %s747_s17 = sphi %s780_s17, %s14_s17   ;;  %s743_s16 = sphi %s778_s16, %s840_s16   ;;  %s739_s15 = sphi %s776_s15, %s839_s15  }
   0x3   : > { %p28_p1 = scmp.ge.s32.totalorder %s26_s18, 2  ;;  %p202_p2 = scmp.lt.s32.totalorder %s747_s17, 3 }
   0x5   : > { %s842_s18 = smov (%p28_p1, %s26_s18), 0  ;;  %p203_p3 = pnand %p639_p0, %p202_p2 }
   0x6   : > { %v720_v0 = vld [vmem:[%s836_s2 + $0x8] sm:$0xff] (!%p203_p3)   ;;  %v749_v1 = vmov (!%p203_p3), 0.0   ;;  %p246_p4 = scmp.lt.s32.totalorder (!%p203_p3), %s739_s15, 1  ;;  %vm750_vm0 = vmmov (!%p203_p3), 0   ;;  %v724_v2 = vld [vmem:[%s836_s2] sm:$0xff] (!%p203_p3)   ;;  %vm318_vm5 = vcmask (!%p203_p3), 1043456  }
   0x7   : > { %206 = sbr.rel (%p203_p3) target bundleno = 258 (0x102), region = 36  ;;  %676 = vmatprep.subr.bf16.mxu0 (!%p203_p3), %v749_v1  ;;  %682 = vmatprep.subr.bf16.mxu1 (!%p203_p3), %v749_v1  ;;  %vm328_vm6 = vcmask (!%p203_p3), 130048   ;;  %v723_v23 = vld [vmem:[%s836_s2 + $0x10] sm:$0xff] (!%p203_p3)   ;;  %vm373_vm7 = vsmask.f32 (!%p203_p3), 4352  ;;  %vm521_vm9 = vcmask (!%p203_p3), 125952  }
   0x8   : > { %677 = vmatpush3.bf16.msra.mxu0 (!%p203_p3), %v720_v0  ;;  %678 = vmatprep.mubr.msk.bf16.mxu0 (!%p203_p3), %vm750_vm0, %v749_v1  ;;  %vm444_vm8 = vsmask.f32 (!%p203_p3), 3328  ;;  %v658_v52 = vld [vmem:[%s837_s3] ss:$0 sm:$0xff] (!%p203_p3) }
   0x9   : > { %688 = vmatprep.subr.bf16.mxu0 (!%p203_p3), %v749_v1  ;;  %684 = vmatprep.mubr.msk.bf16.mxu1 (!%p203_p3), %vm750_vm0, %v749_v1 }
   0xa   : > { %683 = vmatpush3.bf16.msra.mxu1 (!%p203_p3), %v724_v2 }
   0xe   : > { %s844_s15 = smov (!%p246_p4, %s739_s15), 1 }
   0xf   : > { %s663_s23 = sshll.u32 %s844_s15, 4  ;;  %s666_s9 = sshll.u32 %s844_s15, 3 }
  0x10   : > { %s254_s26 = scalar_lea.vmem %s834_s0, %s663_s23  ;;  %s665_s27 = sadd.s32 8, %s663_s23 }
  0x11   : > { %s264_s30 = scalar_lea.vmem %s835_s1, %s665_s27  ;;  %v721_v3 = vld [vmem:[%s254_s26] sm:$0xff]   ;;  %s274_s12 = scalar_lea.vmem %s838_s4, %s666_s9 }
  0x12   : > { %v722_v4 = vld [vmem:[%s264_s30] sm:$0xff]   ;;  %v293_v5 = vunpack.c.l.bf16 %v721_v3  ;;  %v294_v6 = vunpack.c.h.bf16 %v721_v3 }
  0x13   : > { %v295_v7 = vunpack.c.l.bf16 %v722_v4  ;;  %v296_v8 = vunpack.c.h.bf16 %v722_v4 }
  0x14   : > { %vm297_vm1 = vcmp.ge.f32.partialorder %v293_v5, 0.0  ;;  %vm298_vm2 = vcmp.ge.f32.partialorder %v294_v6, 0.0  ;;  %v301_v9 = vmul.f32 0.1, %v293_v5  ;;  %v302_v10 = vmul.f32 0.1, %v294_v6 }
  0x15   : > { %vm299_vm3 = vcmp.ge.f32.partialorder %v295_v7, 0.0  ;;  %vm300_vm4 = vcmp.ge.f32.partialorder %v296_v8, 0.0  ;;  %v303_v11 = vmul.f32 0.1, %v295_v7  ;;  %v304_v12 = vmul.f32 0.1, %v296_v8 }
  0x16   : > { %v305_v13 = vsel %vm297_vm1, %v293_v5, %v301_v9  ;;  %v306_v14 = vsel %vm298_vm2, %v294_v6, %v302_v10 }
  0x17   : > { %v307_v15 = vsel %vm299_vm3, %v295_v7, %v303_v11  ;;  %v308_v16 = vsel %vm300_vm4, %v296_v8, %v304_v12  ;;  %v309_v17 = vpack.c.bf16 %v306_v14, %v305_v13 }
  0x18   : > { %v310_v18 = vpack.c.bf16 %v308_v16, %v307_v15 }
  0x19   : > { %v319_v19 = vrot.slane %v309_v17, 4  ;;  %v375_v20 = vshrl.u32 %v309_v17, 16  ;;  %v378_v21 = vshll.u32 %v309_v17, 16 }
  0x1a   : > { %v320_v22 = vrot.slane %v310_v18, 4  ;;  %v383_v24 = vshrl.u32 %v310_v18, 16  ;;  %v386_v25 = vshll.u32 %v310_v18, 16 }
  0x1b   : > { %v377_v26 = vrot.slane %v375_v20, 3  ;;  %v380_v27 = vrot.slane %v378_v21, 4  ;;  %v445_v28 = vrot.slane %v375_v20, 4  ;;  %v446_v29 = vrot.slane %v378_v21, 5 }
  0x1c   : > { %v321_v30 = vsel %vm318_vm5, %v319_v19, %v320_v22  ;;  %v385_v31 = vrot.slane %v383_v24, 3  ;;  %v388_v32 = vrot.slane %v386_v25, 4  ;;  %v448_v33 = vrot.slane %v383_v24, 4 }
  0x1d   : > { %679 = vmatmul.mubr.msk.bf16.vlgmr.msra.gmra.mrb[0].mxu0 %vm328_vm6, %v321_v30  ;;  %v381_v34 = vor.u32 %v380_v27, %v377_v26  ;;  %v449_v35 = vrot.slane %v386_v25, 5  ;;  %v447_v37 = vor.u32 %v446_v29, %v445_v28 }
  0x1e   : > { %689 = vmatpush3.bf16.msra.mxu0 %v723_v23  ;;  %v389_v36 = vor.u32 %v388_v32, %v385_v31  ;;  %690 = vmatprep.mubr.msk.bf16.mxu0 %vm750_vm0, %v749_v1 }
  0x1f   : > { %v450_v38 = vor.u32 %v449_v35, %v448_v33 }
  0x20   : > { %v390_v39 = vsel %vm373_vm7, %v381_v34, %v389_v36 }
  0x21   : > { %685 = vmatmul.mubr.msk.bf16.vlgmr.msra.gmra.mrb[0].mxu1 %vm328_vm6, %v390_v39  ;;  %v451_v40 = vsel %vm444_vm8, %v447_v37, %v450_v38 }
  0x25   : > { %691 = vmatmul.mubr.msk.bf16.vlgmr.msra.gmra.mrb[4].mxu0 %vm328_vm6, %v451_v40 }
  0xf0   : > { %v366_v41 = vpop.f32.mrb[0].mxu0 }
  0xf1   : > { %v680_v42 = vpop.f32.mrb[1].mxu0 }
  0xf2   : > { %v369_v43 = vpop.f32.mrb[2].mxu0 }
  0xf3   : > { %v681_v44 = vpop.f32.mrb[3].mxu0 }
  0xf4   : > { %v434_v45 = vpop.f32.mrb[0].mxu1 }
  0xf5   : > { %v435_v46 = vadd.f32 %v434_v45, %v366_v41  ;;  %v686_v47 = vpop.f32.mrb[1].mxu1 }
  0xf6   : > { %v437_v48 = vpop.f32.mrb[2].mxu1 }
  0xf7   : > { %v438_v49 = vadd.f32 %v437_v48, %v369_v43  ;;  %v687_v50 = vpop.f32.mrb[3].mxu1 }
  0xf8   : > { %v495_v51 = vpop.f32.mrb[4].mxu0 }
  0xf9   : > { %v502_v53 = vadd.f32 %v495_v51, %v435_v46  ;;  %v692_v54 = vpop.f32.mrb[5].mxu0 }
  0xfa   : > { %v498_v55 = vpop.f32.mrb[6].mxu0 }
  0xfb   : > { %v511_v56 = vadd.f32 %v658_v52, %v502_v53  ;;  %v503_v57 = vadd.f32 %v498_v55, %v438_v49  ;;  %v693_v58 = vpop.f32.mrb[7].mxu0 }
  0xfd   : > { %v667_v59 = vpack.c.bf16 %v511_v56, %v511_v56  ;;  %v512_v60 = vadd.f32 %v658_v52, %v503_v57 }
  0xff   : > { %522 = vst.msk [vmem:[%s274_s12] sm:$0xf] %vm521_vm9, %v667_v59  ;;  %v668_v61 = vpack.c.bf16 %v512_v60, %v512_v60 }
 0x101   : > { %523 = vst.msk [vmem:[%s274_s12 + $0x4] sm:$0xf] %vm521_vm9, %v668_v61 }
 0x102 PF: > { %s14_s17 = sadd.s32 1, %s747_s17   ;;  %s839_s15 = smov %s743_s16 }
 0x103   : > { %p11_p5 = scmp.ge.s32.totalorder %s14_s17, 4   ;;  %s840_s16 = smov %s842_s18 }
 0x105   :  { %13 = sbr.rel (!%p11_p5) target bundleno = 2 (0x2), region = 71 }

// kernel: generator_forward.19
= control target key start
LH: loop header
LB: loop body
LE: loop exit
PB: predicated region body
PF: predicated region fallthrough
CT: control target
= control target key end

     0   :  { %s1271_s21 = smov 0   ;;  %s1273_s22 = smov 0   ;;  %s1409_s0 = inlined_call_operand.vmem [shape: bf16[2,2,32,8], index: 0, kind: input, shape index: {}, may-alias: {0,1}]   ;;  %s1410_s1 = inlined_call_operand.vmem [shape: bf16[2,2,32,8], index: 1, kind: input, shape index: {}, may-alias: {0,1}]   ;;  %s1411_s2 = inlined_call_operand.vmem [shape: bf16[3,8,8], index: 2, kind: input, shape index: {}]   ;;  %s1412_s3 = inlined_call_operand.vmem [shape: f32[1,8], index: 3, kind: input, shape index: {}]   ;;  %s1413_s4 = inlined_call_operand.vmem [shape: bf16[3,8,8], index: 4, kind: input, shape index: {}]   ;;  %s1414_s5 = inlined_call_operand.vmem [shape: f32[1,8], index: 5, kind: input, shape index: {}]   ;;  %s1415_s6 = inlined_call_operand.vmem [shape: bf16[2,32,8], index: 6, kind: output, shape index: {}]  }
   0x1   :  { %s1275_s23 = smov 0  }
   0x2 LB: > { %s28_s24 = sadd.s32 1, %s1228_s22  ;;  %p1043_p0 = scmp.ge.s32.totalorder %s1232_s23, 1  ;;  %s1232_s23 = sphi %s1275_s23, %s16_s23   ;;  %s1228_s22 = sphi %s1273_s22, %s1417_s22   ;;  %s1224_s21 = sphi %s1271_s21, %s1416_s21  }
   0x3   : > { %p30_p1 = scmp.ge.s32.totalorder %s28_s24, 2  ;;  %p252_p2 = scmp.lt.s32.totalorder %s1232_s23, 3 }
   0x5   : > { %s1419_s24 = smov (%p30_p1, %s28_s24), 0  ;;  %p253_p3 = pnand %p1043_p0, %p252_p2 }
   0x6   : > { %v1053_v0 = vld [vmem:[%s1411_s2 + $0x4] sm:$0xf] (!%p253_p3)  ;;  %vm422_vm0 = vcmask (!%p253_p3), 1043456   ;;  %v382_v1 = vld [vmem:[%s1411_s2] sm:$0xf] (!%p253_p3)  ;;  %v1234_v2 = vmov (!%p253_p3), 0.0  }
   0x7   : > { %256 = sbr.rel (%p253_p3) target bundleno = 546 (0x222), region = 44  ;;  %1110 = vmatprep.subr.bf16.mxu0 (!%p253_p3), %v1234_v2  ;;  %v424_v3 = vsel (!%p253_p3), %vm422_vm0, %v1053_v0, 0  ;;  %1124 = vmatprep.subr.bf16.mxu1 (!%p253_p3), %v1234_v2  ;;  %v501_v4 = vsel (!%p253_p3), %vm422_vm0, %v382_v1, 0  ;;  %p300_p4 = scmp.lt.s32.totalorder (!%p253_p3), %s1224_s21, 1  ;;  %vm1235_vm1 = vmmov (!%p253_p3), 0   ;;  %vm485_vm8 = vcmask (!%p253_p3), 1044480  }
   0x8   : > { %1111 = vmatpush3.bf16.msra.mxu0 (!%p253_p3), %v424_v3  ;;  %1125 = vmatpush3.bf16.msra.mxu1 (!%p253_p3), %v501_v4  ;;  %vm412_vm9 = vcmask (!%p253_p3), 64512   ;;  %v1060_v42 = vld [vmem:[%s1411_s2 + $0x8] sm:$0xf] (!%p253_p3)  ;;  %vm385_vm10 = vsmask.f32 (!%p253_p3), 4352  ;;  %vm813_vm15 = vcmask (!%p253_p3), 1046528  }
   0x9   : > { %1112 = vmatprep.mubr.msk.bf16.mxu0 (!%p253_p3), %vm1235_vm1, %v1234_v2  ;;  %1126 = vmatprep.mubr.msk.bf16.mxu1 (!%p253_p3), %vm1235_vm1, %v1234_v2  ;;  %v577_v48 = vsel (!%p253_p3), %vm422_vm0, %v1060_v42, 0  ;;  %v1065_v58 = vld [vmem:[%s1413_s4 + $0x4] sm:$0xf] (!%p253_p3)  ;;  %v1366_v60 = vld [vmem:[%s1413_s4] sm:$0xf] (!%p253_p3) }
   0xa   : > { %1138 = vmatprep.subr.bf16.mxu0 (!%p253_p3), %v1234_v2  ;;  %1178 = vmatprep.subr.msk.bf16.mxu1 (!%p253_p3), %vm422_vm0, %v1065_v58  ;;  %v701_v59 = vsel (!%p253_p3), %vm422_vm0, %v1065_v58, 0 }
   0xe   : > { %s1421_s21 = smov (!%p300_p4, %s1224_s21), 1 }
   0xf   : > { %s1080_s29 = sshll.u32 %s1421_s21, 5 }
  0x10   : > { %s308_s8 = scalar_lea.vmem %s1409_s0, %s1080_s29  ;;  %s1082_s9 = sadd.s32 16, %s1080_s29 }
  0x11   : > { %s318_s12 = scalar_lea.vmem %s1410_s1, %s1082_s9  ;;  %v1313_v5 = vld [vmem:[%s308_s8] sm:$0xff]   ;;  %v1315_v6 = vld [vmem:[%s308_s8 + $0x8] sm:$0xff]   ;;  %s1083_s29 = sshll.u32 %s1421_s21, 4 }
  0x12   : > { %v1317_v7 = vld [vmem:[%s318_s12] sm:$0xff]   ;;  %v355_v8 = vunpack.c.l.bf16 %v1313_v5  ;;  %v356_v9 = vunpack.c.h.bf16 %v1313_v5  ;;  %v357_v10 = vunpack.c.l.bf16 %v1315_v6  ;;  %v358_v11 = vunpack.c.h.bf16 %v1315_v6  ;;  %s328_s8 = scalar_lea.vmem %s1415_s6, %s1083_s29 }
  0x13   : > { %v359_v12 = vunpack.c.l.bf16 %v1317_v7  ;;  %v360_v13 = vunpack.c.h.bf16 %v1317_v7 }
  0x14   : > { %vm361_vm2 = vcmp.ge.f32.partialorder %v355_v8, 0.0  ;;  %vm362_vm3 = vcmp.ge.f32.partialorder %v356_v9, 0.0  ;;  %vm363_vm4 = vcmp.ge.f32.partialorder %v357_v10, 0.0  ;;  %vm364_vm5 = vcmp.ge.f32.partialorder %v358_v11, 0.0 }
  0x15   : > { %v367_v14 = vmul.f32 0.1, %v355_v8  ;;  %v368_v15 = vmul.f32 0.1, %v356_v9  ;;  %v369_v16 = vmul.f32 0.1, %v357_v10 }
  0x16   : > { %v370_v17 = vmul.f32 0.1, %v358_v11  ;;  %vm365_vm6 = vcmp.ge.f32.partialorder %v359_v12, 0.0  ;;  %vm366_vm7 = vcmp.ge.f32.partialorder %v360_v13, 0.0  ;;  %v371_v18 = vmul.f32 0.1, %v359_v12 }
  0x17   : > { %v373_v19 = vsel %vm361_vm2, %v355_v8, %v367_v14  ;;  %v374_v20 = vsel %vm362_vm3, %v356_v9, %v368_v15  ;;  %v375_v21 = vsel %vm363_vm4, %v357_v10, %v369_v16  ;;  %v372_v22 = vmul.f32 0.1, %v360_v13 }
  0x18   : > { %v376_v23 = vsel %vm364_vm5, %v358_v11, %v370_v17  ;;  %v379_v24 = vpack.c.bf16 %v374_v20, %v373_v19  ;;  %v377_v25 = vsel %vm365_vm6, %v359_v12, %v371_v18  ;;  %vm673_vm2 = vsmask.f32 7424 }
  0x19   : > { %v380_v26 = vpack.c.bf16 %v376_v23, %v375_v21  ;;  %v378_v27 = vsel %vm366_vm7, %v360_v13, %v372_v22 }
  0x1a   : > { %v387_v28 = vshrl.u32 %v379_v24, 16  ;;  %v390_v29 = vshll.u32 %v379_v24, 16  ;;  %v486_v30 = vrot.slane %v379_v24, 3  ;;  %v381_v31 = vpack.c.bf16 %v378_v27, %v377_v25 }
  0x1b   : > { %v395_v32 = vshrl.u32 %v380_v26, 16  ;;  %v398_v33 = vshll.u32 %v380_v26, 16  ;;  %v487_v34 = vrot.slane %v380_v26, 3  ;;  %v562_v53 = vrot.slane %v379_v24, 4 }
  0x1c   : > { %v389_v35 = vrot.slane %v387_v28, 3  ;;  %v392_v36 = vrot.slane %v390_v29, 4  ;;  %v404_v37 = vshrl.u32 %v381_v31, 16  ;;  %v407_v38 = vshll.u32 %v381_v31, 16 }
  0x1d   : > { %v397_v39 = vrot.slane %v395_v32, 3  ;;  %v400_v40 = vrot.slane %v398_v33, 4  ;;  %v488_v41 = vsel %vm485_vm8, %v486_v30, %v487_v34  ;;  %v489_v47 = vrot.slane %v381_v31, 3  ;;  %v1064_v30 = vld [vmem:[%s1412_s3] ss:$0 sm:$0xff] }
  0x1e   : > { %v393_v43 = vor.u32 %v392_v36, %v389_v35  ;;  %1127 = vmatmul.mubr.msk.bf16.vlgmr.msra.gmra.mrb[0].mxu1 %vm412_vm9, %v488_v41  ;;  %v406_v45 = vrot.slane %v404_v37, 3  ;;  %v409_v46 = vrot.slane %v407_v38, 4  ;;  %v563_v54 = vrot.slane %v380_v26, 4 }
  0x1f   : > { %v401_v44 = vor.u32 %v400_v40, %v397_v39  ;;  %1130 = vmatprep.mubr.msk.bf16.mxu1 %vm1235_vm1, %v1234_v2  ;;  %v490_v51 = vsel %vm485_vm8, %v487_v34, %v489_v47  ;;  %v565_v56 = vrot.slane %v381_v31, 4  ;;  %1153 = vmatpush3.bf16.msra.mxu1 %v701_v59 }
  0x20   : > { %v410_v50 = vor.u32 %v409_v46, %v406_v45  ;;  %v564_v55 = vsel %vm422_vm0, %v562_v53, %v563_v54  ;;  %1179 = vmatprep.subr.msk.bf16.mxu1 %vm422_vm0, %v1366_v60 }
  0x21   : > { %v402_v49 = vsel %vm385_vm10, %v393_v43, %v401_v44  ;;  %v566_v57 = vsel %vm422_vm0, %v563_v54, %v565_v56 }
  0x22   : > { %1113 = vmatmul.mubr.msk.bf16.vlgmr.msra.gmra.mrb[0].mxu0 %vm412_vm9, %v402_v49  ;;  %v411_v52 = vsel %vm385_vm10, %v401_v44, %v410_v50 }
  0x23   : > { %1139 = vmatpush3.bf16.msra.mxu0 %v577_v48  ;;  %1116 = vmatprep.mubr.msk.bf16.mxu0 %vm1235_vm1, %v1234_v2 }
  0x26   : > { %1131 = vmatmul.mubr.msk.bf16.gmra.mrb[4].mxu1 %vm412_vm9, %v490_v51 }
  0x27   : > { %1134 = vmatprep.mubr.msk.bf16.mxu1 %vm1235_vm1, %v1234_v2 }
  0x2a   : > { %1117 = vmatmul.mubr.msk.bf16.gmra.mrb[4].mxu0 %vm412_vm9, %v411_v52 }
  0x2b   : > { %1120 = vmatprep.mubr.msk.bf16.mxu0 %vm1235_vm1, %v1234_v2 }
  0x2e   : > { %1135 = vmatmul.mubr.msk.bf16.gmra.mrb[8].mxu1 %vm412_vm9, %v489_v47 }
  0x32   : > { %1121 = vmatmul.mubr.msk.bf16.gmra.mrb[8].mxu0 %vm412_vm9, %v410_v50 }
  0x33   : > { %1140 = vmatprep.mubr.msk.bf16.mxu0 %vm1235_vm1, %v1234_v2 }
  0x3a   : > { %1141 = vmatmul.mubr.msk.bf16.vlgmr.msra.gmra.mrb[12].mxu0 %vm412_vm9, %v564_v55 }
  0x3b   : > { %1144 = vmatprep.mubr.msk.bf16.mxu0 %vm1235_vm1, %v1234_v2 }
  0x42   : > { %1145 = vmatmul.mubr.msk.bf16.gmra.mrb[16].mxu0 %vm412_vm9, %v566_v57 }
  0x43   : > { %1148 = vmatprep.mubr.msk.bf16.mxu0 %vm1235_vm1, %v1234_v2 }
  0x4a   : > { %1149 = vmatmul.mubr.msk.bf16.gmra.mrb[20].mxu0 %vm412_vm9, %v565_v56 }
  0xf1   : > { %v537_v61 = vpop.f32.mrb[0].mxu1 }
  0xf2   : > { %v1128_v62 = vpop.f32.mrb[1].mxu1 }
  0xf3   : > { %v540_v63 = vpop.f32.mrb[2].mxu1 }
  0xf4   : > { %v1129_v0 = vpop.f32.mrb[3].mxu1 }
  0xf5   : > { %v460_v1 = vpop.f32.mrb[0].mxu0 }
  0xf6   : > { %v538_v2 = vadd.f32 %v537_v61, %v460_v1  ;;  %v1114_v3 = vpop.f32.mrb[1].mxu0 }
  0xf7   : > { %v463_v4 = vpop.f32.mrb[2].mxu0 }
  0xf8   : > { %v541_v8 = vadd.f32 %v540_v63, %v463_v4  ;;  %v1115_v9 = vpop.f32.mrb[3].mxu0 }
  0xf9   : > { %v545_v10 = vpop.f32.mrb[4].mxu1 }
  0xfa   : > { %v1132_v11 = vpop.f32.mrb[5].mxu1 }
  0xfb   : > { %v548_v12 = vpop.f32.mrb[6].mxu1 }
  0xfc   : > { %v1133_v13 = vpop.f32.mrb[7].mxu1 }
  0xfd   : > { %v468_v14 = vpop.f32.mrb[4].mxu0 }
  0xfe   : > { %v546_v15 = vadd.f32 %v545_v10, %v468_v14  ;;  %v1118_v16 = vpop.f32.mrb[5].mxu0 }
  0xff   : > { %v471_v17 = vpop.f32.mrb[6].mxu0 }
 0x100   : > { %v549_v18 = vadd.f32 %v548_v12, %v471_v17  ;;  %v1119_v19 = vpop.f32.mrb[7].mxu0 }
 0x101   : > { %v553_v20 = vpop.f32.mrb[8].mxu1 }
 0x102   : > { %v1136_v21 = vpop.f32.mrb[9].mxu1 }
 0x103   : > { %v556_v22 = vpop.f32.mrb[10].mxu1  ;;  %v757_v21 = vsel %vm422_vm0, %v1366_v60, 0  ;;  %v882_v60 = vrot.slane %v1315_v6, 4 }
 0x104   : > { %v1137_v23 = vpop.f32.mrb[11].mxu1 }
 0x105   : > { %v476_v24 = vpop.f32.mrb[8].mxu0  ;;  %v1070_v23 = vld [vmem:[%s1413_s4 + $0x8] sm:$0xf] }
 0x106   : > { %v554_v25 = vadd.f32 %v553_v20, %v476_v24  ;;  %v1122_v26 = vpop.f32.mrb[9].mxu0  ;;  %v826_v24 = vsel %vm422_vm0, %v1070_v23, 0 }
 0x107   : > { %v479_v27 = vpop.f32.mrb[10].mxu0  ;;  %v881_v26 = vrot.slane %v1313_v5, 4 }
 0x108   : > { %v1123_v28 = vpop.f32.mrb[11].mxu0 }
 0x109   : > { %v883_v28 = vsel %vm422_vm0, %v881_v26, %v882_v60 }
 0x10d   : > { %v613_v29 = vpop.f32.mrb[12].mxu0 }
 0x10e   : > { %v635_v31 = vadd.f32 %v613_v29, %v538_v2  ;;  %v1142_v32 = vpop.f32.mrb[13].mxu0  ;;  %v1073_v29 = vld [vmem:[%s1414_s5] ss:$0 sm:$0xff] }
 0x10f   : > { %v616_v33 = vpop.f32.mrb[14].mxu0  ;;  %v888_v32 = vunpack.c.l.bf16 %v883_v28 }
 0x110   : > { %v647_v34 = vadd.f32 %v1064_v30, %v635_v31  ;;  %v636_v35 = vadd.f32 %v616_v33, %v541_v8  ;;  %v1143_v36 = vpop.f32.mrb[15].mxu0 }
 0x112   : > { %v657_v37 = vmul.f32 0.1, %v647_v34  ;;  %v648_v38 = vadd.f32 %v1064_v30, %v636_v35  ;;  %vm652_vm11 = vcmp.ge.f32.partialorder %v647_v34, 0.0 }
 0x114   : > { %vm653_vm12 = vcmp.ge.f32.partialorder %v648_v38, 0.0  ;;  %v658_v39 = vmul.f32 0.1, %v648_v38  ;;  %v662_v41 = vsel %vm652_vm11, %v647_v34, %v657_v37 }
 0x115   : > { %v621_v40 = vpop.f32.mrb[16].mxu0 }
 0x116   : > { %v663_v42 = vsel %vm653_vm12, %v648_v38, %v658_v39  ;;  %v637_v43 = vadd.f32 %v621_v40, %v546_v15  ;;  %v1146_v44 = vpop.f32.mrb[17].mxu0 }
 0x117   : > { %v667_v45 = vpack.c.bf16 %v663_v42, %v662_v41  ;;  %v624_v46 = vpop.f32.mrb[18].mxu0 }
 0x118   : > { %v649_v47 = vadd.f32 %v1064_v30, %v637_v43  ;;  %v638_v48 = vadd.f32 %v624_v46, %v549_v18  ;;  %v1147_v49 = vpop.f32.mrb[19].mxu0 }
 0x119   : > { %v677_v52 = vshll.u32 %v667_v45, 16  ;;  %v675_v1 = vshrl.u32 %v667_v45, 16  ;;  %v814_v3 = vrot.slane %v667_v45, 1 }
 0x11a   : > { %v659_v50 = vmul.f32 0.1, %v649_v47  ;;  %v650_v51 = vadd.f32 %v1064_v30, %v638_v48  ;;  %vm654_vm13 = vcmp.ge.f32.partialorder %v649_v47, 0.0 }
 0x11b   : > { %v679_v62 = vrot.slane %v677_v52, 1 }
 0x11c   : > { %vm655_vm14 = vcmp.ge.f32.partialorder %v650_v51, 0.0  ;;  %v660_v53 = vmul.f32 0.1, %v650_v51  ;;  %v664_v55 = vsel %vm654_vm13, %v649_v47, %v659_v50 }
 0x11d   : > { %v629_v54 = vpop.f32.mrb[20].mxu0  ;;  %v680_v9 = vor.u32 %v679_v62, %v675_v1 }
 0x11e   : > { %v665_v56 = vsel %vm655_vm14, %v650_v51, %v660_v53  ;;  %v639_v57 = vadd.f32 %v629_v54, %v554_v25  ;;  %v1150_v58 = vpop.f32.mrb[21].mxu0  ;;  %v884_v25 = vrot.slane %v1317_v7, 4  ;;  %v889_v7 = vunpack.c.h.bf16 %v883_v28 }
 0x11f   : > { %v668_v59 = vpack.c.bf16 %v665_v56, %v664_v55  ;;  %v632_v61 = vpop.f32.mrb[22].mxu0 }
 0x120   : > { %v651_v63 = vadd.f32 %v1064_v30, %v639_v57  ;;  %v1151_v0 = vpop.f32.mrb[23].mxu0  ;;  %v885_v27 = vsel %vm422_vm0, %v882_v60, %v884_v25 }
 0x121   : > { %v682_v2 = vshll.u32 %v668_v59, 16  ;;  %v815_v4 = vrot.slane %v668_v59, 1  ;;  %v686_v17 = vshrl.u32 %v668_v59, 16  ;;  %v890_v30 = vunpack.c.l.bf16 %v885_v27 }
 0x122   : > { %vm656_vm1 = vcmp.ge.f32.partialorder %v651_v63, 0.0  ;;  %v661_v8 = vmul.f32 0.1, %v651_v63  ;;  %v891_v35 = vunpack.c.h.bf16 %v885_v27 }
 0x123   : > { %v684_v10 = vrot.slane %v682_v2, 1  ;;  %v816_v11 = vsel %vm813_vm15, %v814_v3, %v815_v4 }
 0x124   : > { %v666_v12 = vsel %vm656_vm1, %v651_v63, %v661_v8 }
 0x125   : > { %v669_v13 = vpack.c.bf16 %v666_v12, %v666_v12  ;;  %v685_v14 = vsel %vm673_vm2, %v680_v9, %v684_v10  ;;  %v688_v19 = vor.u32 %v686_v17, %v684_v10 }
 0x126   : > { %1154 = vmatprep.mubr.msk.bf16.mxu1 %vm412_vm9, %v685_v14 }
 0x127   : > { %v690_v15 = vshll.u32 %v669_v13, 16  ;;  %v817_v16 = vrot.slane %v669_v13, 1 }
 0x129   : > { %v692_v18 = vrot.slane %v690_v15, 1  ;;  %v818_v20 = vsel %vm813_vm15, %v815_v4, %v817_v16 }
 0x12b   : > { %v693_v22 = vsel %vm673_vm2, %v688_v19, %v692_v18 }
 0x12c   : > { %1155 = vmatmul.mubr.msk.bf16.vlgmr.msra.gmra.mrb[12].mxu1 %vm412_vm9, %v693_v22 }
 0x12d   : > { %1159 = vmatpush3.bf16.msra.mxu1 %v757_v21  ;;  %1160 = vmatprep.mubr.msk.bf16.mxu1 %vm412_vm9, %v667_v45 }
 0x12e   : > { %1180 = vmatprep.subr.msk.bf16.mxu1 %vm422_vm0, %v1070_v23  ;;  %vm923_vm0 = vcmask 60416  }
 0x138   : > { %1161 = vmatmul.mubr.msk.bf16.vlgmr.msra.gmra.mrb[12].mxu1 %vm412_vm9, %v668_v59 }
 0x139   : > { %1165 = vmatpush3.bf16.msra.mxu1 %v826_v24  ;;  %1166 = vmatprep.mubr.msk.bf16.mxu1 %vm412_vm9, %v816_v11 }
 0x144   : > { %1167 = vmatmul.mubr.msk.bf16.vlgmr.msra.gmra.mrb[12].mxu1 %vm412_vm9, %v818_v20 }
 0x217   : > { %v1168_v31 = vpop.f32.mrb[12].mxu1 }
 0x218   : > { %v901_v33 = vadd.f32 %v1168_v31, %v1073_v29  ;;  %v862_v34 = vpop.f32.mrb[13].mxu1 }
 0x219   : > { %v899_v6 = vadd.f32 %v1073_v29, %v862_v34  ;;  %v1169_v36 = vpop.f32.mrb[14].mxu1 }
 0x21a   : > { %v905_v37 = vadd.f32 %v901_v33, %v890_v30  ;;  %v902_v5 = vadd.f32 %v1169_v36, %v1073_v29  ;;  %v865_v38 = vpop.f32.mrb[15].mxu1 }
 0x21b   : > { %v903_v39 = vadd.f32 %v899_v6, %v888_v32  ;;  %v900_v40 = vadd.f32 %v1073_v29, %v865_v38 }
 0x21c   : > { %v1086_v41 = vpack.c.bf16 %v905_v37, %v905_v37  ;;  %v906_v42 = vadd.f32 %v902_v5, %v891_v35 }
 0x21d   : > { %v1084_v43 = vpack.c.bf16 %v903_v39, %v903_v39  ;;  %v904_v44 = vadd.f32 %v900_v40, %v889_v7 }
 0x21e   : > { %926 = vst.msk [vmem:[%s328_s8 + $0x8] sm:$0xf] %vm923_vm0, %v1086_v41  ;;  %v1087_v45 = vpack.c.bf16 %v906_v42, %v906_v42 }
 0x21f   : > { %924 = vst.msk [vmem:[%s328_s8] sm:$0xf] %vm923_vm0, %v1084_v43  ;;  %v1085_v46 = vpack.c.bf16 %v904_v44, %v904_v44 }
 0x220   : > { %927 = vst.msk [vmem:[%s328_s8 + $0xc] sm:$0xf] %vm923_vm0, %v1087_v45 }
 0x221   : > { %925 = vst.msk [vmem:[%s328_s8 + $0x4] sm:$0xf] %vm923_vm0, %v1085_v46 }
 0x222 PF: > { %s16_s23 = sadd.s32 1, %s1232_s23   ;;  %s1416_s21 = smov %s1228_s22 }
 0x223   : > { %p13_p5 = scmp.ge.s32.totalorder %s16_s23, 4   ;;  %s1417_s22 = smov %s1419_s24 }
 0x225   :  { %15 = sbr.rel (!%p13_p5) target bundleno = 2 (0x2), region = 81 }

// kernel: generator_forward.20
= control target key start
LH: loop header
LB: loop body
LE: loop exit
PB: predicated region body
PF: predicated region fallthrough
CT: control target
= control target key end

     0   :  { %s1272_s21 = smov 0   ;;  %s1274_s22 = smov 0   ;;  %s1408_s0 = inlined_call_operand.vmem [shape: bf16[2,2,32,8], index: 0, kind: input, shape index: {}, may-alias: {0,1}]   ;;  %s1409_s1 = inlined_call_operand.vmem [shape: bf16[2,2,32,8], index: 1, kind: input, shape index: {}, may-alias: {0,1}]   ;;  %s1410_s2 = inlined_call_operand.vmem [shape: bf16[3,8,8], index: 2, kind: input, shape index: {}]   ;;  %s1411_s3 = inlined_call_operand.vmem [shape: f32[1,8], index: 3, kind: input, shape index: {}]   ;;  %s1412_s4 = inlined_call_operand.vmem [shape: bf16[3,8,8], index: 4, kind: input, shape index: {}]   ;;  %s1413_s5 = inlined_call_operand.vmem [shape: f32[1,8], index: 5, kind: input, shape index: {}]   ;;  %s1414_s6 = inlined_call_operand.vmem [shape: bf16[2,32,8], index: 6, kind: output, shape index: {}]  }
   0x1   :  { %s1276_s23 = smov 0  }
   0x2 LB: > { %s28_s24 = sadd.s32 1, %s1229_s22  ;;  %p1044_p0 = scmp.ge.s32.totalorder %s1233_s23, 1  ;;  %s1233_s23 = sphi %s1276_s23, %s16_s23   ;;  %s1229_s22 = sphi %s1274_s22, %s1416_s22   ;;  %s1225_s21 = sphi %s1272_s21, %s1415_s21  }
   0x3   : > { %p30_p1 = scmp.ge.s32.totalorder %s28_s24, 2  ;;  %p252_p2 = scmp.lt.s32.totalorder %s1233_s23, 3 }
   0x5   : > { %s1418_s24 = smov (%p30_p1, %s28_s24), 0  ;;  %p253_p3 = pnand %p1044_p0, %p252_p2 }
   0x6   : > { %v1054_v0 = vld [vmem:[%s1410_s2 + $0x4] sm:$0xf] (!%p253_p3)  ;;  %vm422_vm0 = vcmask (!%p253_p3), 1043456   ;;  %v382_v1 = vld [vmem:[%s1410_s2] sm:$0xf] (!%p253_p3)  ;;  %v1235_v2 = vmov (!%p253_p3), 0.0  }
   0x7   : > { %256 = sbr.rel (%p253_p3) target bundleno = 546 (0x222), region = 44  ;;  %1111 = vmatprep.subr.bf16.mxu0 (!%p253_p3), %v1235_v2  ;;  %v424_v3 = vsel (!%p253_p3), %vm422_vm0, %v1054_v0, 0  ;;  %1125 = vmatprep.subr.bf16.mxu1 (!%p253_p3), %v1235_v2  ;;  %v501_v4 = vsel (!%p253_p3), %vm422_vm0, %v382_v1, 0  ;;  %p300_p4 = scmp.lt.s32.totalorder (!%p253_p3), %s1225_s21, 1  ;;  %vm1236_vm1 = vmmov (!%p253_p3), 0   ;;  %vm485_vm8 = vcmask (!%p253_p3), 1045504  }
   0x8   : > { %1112 = vmatpush3.bf16.msra.mxu0 (!%p253_p3), %v424_v3  ;;  %1126 = vmatpush3.bf16.msra.mxu1 (!%p253_p3), %v501_v4  ;;  %vm412_vm9 = vcmask (!%p253_p3), 64512   ;;  %v1061_v42 = vld [vmem:[%s1410_s2 + $0x8] sm:$0xf] (!%p253_p3)  ;;  %vm385_vm10 = vsmask.f32 (!%p253_p3), 4352  ;;  %vm561_vm11 = vcmask (!%p253_p3), 1042432  }
   0x9   : > { %1113 = vmatprep.mubr.msk.bf16.mxu0 (!%p253_p3), %vm1236_vm1, %v1235_v2  ;;  %1127 = vmatprep.mubr.msk.bf16.mxu1 (!%p253_p3), %vm1236_vm1, %v1235_v2  ;;  %v577_v48 = vsel (!%p253_p3), %vm422_vm0, %v1061_v42, 0  ;;  %v1066_v58 = vld [vmem:[%s1412_s4 + $0x4] sm:$0xf] (!%p253_p3)  ;;  %v1365_v60 = vld [vmem:[%s1412_s4] sm:$0xf] (!%p253_p3) }
   0xa   : > { %1139 = vmatprep.subr.bf16.mxu0 (!%p253_p3), %v1235_v2  ;;  %1179 = vmatprep.subr.msk.bf16.mxu1 (!%p253_p3), %vm422_vm0, %v1066_v58  ;;  %v701_v59 = vsel (!%p253_p3), %vm422_vm0, %v1066_v58, 0 }
   0xe   : > { %s1420_s21 = smov (!%p300_p4, %s1225_s21), 1 }
   0xf   : > { %s1081_s29 = sshll.u32 %s1420_s21, 5 }
  0x10   : > { %s308_s8 = scalar_lea.vmem %s1408_s0, %s1081_s29  ;;  %s1083_s9 = sadd.s32 16, %s1081_s29 }
  0x11   : > { %s318_s12 = scalar_lea.vmem %s1409_s1, %s1083_s9  ;;  %v1314_v5 = vld [vmem:[%s308_s8] sm:$0xff]   ;;  %v1316_v6 = vld [vmem:[%s308_s8 + $0x8] sm:$0xff]   ;;  %s1084_s29 = sshll.u32 %s1420_s21, 4 }
  0x12   : > { %v1318_v7 = vld [vmem:[%s318_s12] sm:$0xff]   ;;  %v355_v8 = vunpack.c.l.bf16 %v1314_v5  ;;  %v356_v9 = vunpack.c.h.bf16 %v1314_v5  ;;  %v357_v10 = vunpack.c.l.bf16 %v1316_v6  ;;  %v358_v11 = vunpack.c.h.bf16 %v1316_v6  ;;  %s328_s8 = scalar_lea.vmem %s1414_s6, %s1084_s29 }
  0x13   : > { %v359_v12 = vunpack.c.l.bf16 %v1318_v7  ;;  %v360_v13 = vunpack.c.h.bf16 %v1318_v7 }
  0x14   : > { %vm361_vm2 = vcmp.ge.f32.partialorder %v355_v8, 0.0  ;;  %vm362_vm3 = vcmp.ge.f32.partialorder %v356_v9, 0.0  ;;  %vm363_vm4 = vcmp.ge.f32.partialorder %v357_v10, 0.0  ;;  %vm364_vm5 = vcmp.ge.f32.partialorder %v358_v11, 0.0 }
  0x15   : > { %v367_v14 = vmul.f32 0.1, %v355_v8  ;;  %v368_v15 = vmul.f32 0.1, %v356_v9  ;;  %v369_v16 = vmul.f32 0.1, %v357_v10 }
  0x16   : > { %v370_v17 = vmul.f32 0.1, %v358_v11  ;;  %vm365_vm6 = vcmp.ge.f32.partialorder %v359_v12, 0.0  ;;  %vm366_vm7 = vcmp.ge.f32.partialorder %v360_v13, 0.0  ;;  %v371_v18 = vmul.f32 0.1, %v359_v12 }
  0x17   : > { %v373_v19 = vsel %vm361_vm2, %v355_v8, %v367_v14  ;;  %v374_v20 = vsel %vm362_vm3, %v356_v9, %v368_v15  ;;  %v375_v21 = vsel %vm363_vm4, %v357_v10, %v369_v16  ;;  %v372_v22 = vmul.f32 0.1, %v360_v13 }
  0x18   : > { %v376_v23 = vsel %vm364_vm5, %v358_v11, %v370_v17  ;;  %v379_v24 = vpack.c.bf16 %v374_v20, %v373_v19  ;;  %v377_v25 = vsel %vm365_vm6, %v359_v12, %v371_v18  ;;  %vm673_vm3 = vsmask.f32 7424 }
  0x19   : > { %v380_v26 = vpack.c.bf16 %v376_v23, %v375_v21  ;;  %v378_v27 = vsel %vm366_vm7, %v360_v13, %v372_v22 }
  0x1a   : > { %v387_v28 = vshrl.u32 %v379_v24, 16  ;;  %v390_v29 = vshll.u32 %v379_v24, 16  ;;  %v486_v30 = vrot.slane %v379_v24, 2  ;;  %v381_v31 = vpack.c.bf16 %v378_v27, %v377_v25 }
  0x1b   : > { %v395_v32 = vshrl.u32 %v380_v26, 16  ;;  %v398_v33 = vshll.u32 %v380_v26, 16  ;;  %v487_v34 = vrot.slane %v380_v26, 2  ;;  %v562_v53 = vrot.slane %v379_v24, 5 }
  0x1c   : > { %v389_v35 = vrot.slane %v387_v28, 3  ;;  %v392_v36 = vrot.slane %v390_v29, 4  ;;  %v404_v37 = vshrl.u32 %v381_v31, 16  ;;  %v407_v38 = vshll.u32 %v381_v31, 16 }
  0x1d   : > { %v397_v39 = vrot.slane %v395_v32, 3  ;;  %v400_v40 = vrot.slane %v398_v33, 4  ;;  %v488_v41 = vsel %vm485_vm8, %v486_v30, %v487_v34  ;;  %v489_v47 = vrot.slane %v381_v31, 2  ;;  %v1065_v30 = vld [vmem:[%s1411_s3] ss:$0 sm:$0xff] }
  0x1e   : > { %v393_v43 = vor.u32 %v392_v36, %v389_v35  ;;  %1128 = vmatmul.mubr.msk.bf16.vlgmr.msra.gmra.mrb[0].mxu1 %vm412_vm9, %v488_v41  ;;  %v406_v45 = vrot.slane %v404_v37, 3  ;;  %v409_v46 = vrot.slane %v407_v38, 4  ;;  %v563_v54 = vrot.slane %v380_v26, 5 }
  0x1f   : > { %v401_v44 = vor.u32 %v400_v40, %v397_v39  ;;  %1131 = vmatprep.mubr.msk.bf16.mxu1 %vm1236_vm1, %v1235_v2  ;;  %v490_v51 = vsel %vm485_vm8, %v487_v34, %v489_v47  ;;  %v565_v56 = vrot.slane %v381_v31, 5  ;;  %1154 = vmatpush3.bf16.msra.mxu1 %v701_v59 }
  0x20   : > { %v410_v50 = vor.u32 %v409_v46, %v406_v45  ;;  %v564_v55 = vsel %vm561_vm11, %v562_v53, %v563_v54  ;;  %1180 = vmatprep.subr.msk.bf16.mxu1 %vm422_vm0, %v1365_v60 }
  0x21   : > { %v402_v49 = vsel %vm385_vm10, %v393_v43, %v401_v44  ;;  %v566_v57 = vsel %vm561_vm11, %v563_v54, %v565_v56 }
  0x22   : > { %1114 = vmatmul.mubr.msk.bf16.vlgmr.msra.gmra.mrb[0].mxu0 %vm412_vm9, %v402_v49  ;;  %v411_v52 = vsel %vm385_vm10, %v401_v44, %v410_v50 }
  0x23   : > { %1140 = vmatpush3.bf16.msra.mxu0 %v577_v48  ;;  %1117 = vmatprep.mubr.msk.bf16.mxu0 %vm1236_vm1, %v1235_v2 }
  0x26   : > { %1132 = vmatmul.mubr.msk.bf16.gmra.mrb[4].mxu1 %vm412_vm9, %v490_v51 }
  0x27   : > { %1135 = vmatprep.mubr.msk.bf16.mxu1 %vm1236_vm1, %v1235_v2 }
  0x2a   : > { %1118 = vmatmul.mubr.msk.bf16.gmra.mrb[4].mxu0 %vm412_vm9, %v411_v52 }
  0x2b   : > { %1121 = vmatprep.mubr.msk.bf16.mxu0 %vm1236_vm1, %v1235_v2 }
  0x2e   : > { %1136 = vmatmul.mubr.msk.bf16.gmra.mrb[8].mxu1 %vm412_vm9, %v489_v47 }
  0x32   : > { %1122 = vmatmul.mubr.msk.bf16.gmra.mrb[8].mxu0 %vm412_vm9, %v410_v50 }
  0x33   : > { %1141 = vmatprep.mubr.msk.bf16.mxu0 %vm1236_vm1, %v1235_v2 }
  0x3a   : > { %1142 = vmatmul.mubr.msk.bf16.vlgmr.msra.gmra.mrb[12].mxu0 %vm412_vm9, %v564_v55 }
  0x3b   : > { %1145 = vmatprep.mubr.msk.bf16.mxu0 %vm1236_vm1, %v1235_v2 }
  0x42   : > { %1146 = vmatmul.mubr.msk.bf16.gmra.mrb[16].mxu0 %vm412_vm9, %v566_v57 }
  0x43   : > { %1149 = vmatprep.mubr.msk.bf16.mxu0 %vm1236_vm1, %v1235_v2  ;;  %vm813_vm1 = vcmask 1046528  }
  0x4a   : > { %1150 = vmatmul.mubr.msk.bf16.gmra.mrb[20].mxu0 %vm412_vm9, %v565_v56 }
  0xf1   : > { %v537_v61 = vpop.f32.mrb[0].mxu1 }
  0xf2   : > { %v1129_v62 = vpop.f32.mrb[1].mxu1 }
  0xf3   : > { %v540_v63 = vpop.f32.mrb[2].mxu1 }
  0xf4   : > { %v1130_v0 = vpop.f32.mrb[3].mxu1 }
  0xf5   : > { %v460_v1 = vpop.f32.mrb[0].mxu0 }
  0xf6   : > { %v538_v2 = vadd.f32 %v537_v61, %v460_v1  ;;  %v1115_v3 = vpop.f32.mrb[1].mxu0 }
  0xf7   : > { %v463_v4 = vpop.f32.mrb[2].mxu0 }
  0xf8   : > { %v541_v8 = vadd.f32 %v540_v63, %v463_v4  ;;  %v1116_v9 = vpop.f32.mrb[3].mxu0 }
  0xf9   : > { %v545_v10 = vpop.f32.mrb[4].mxu1 }
  0xfa   : > { %v1133_v11 = vpop.f32.mrb[5].mxu1 }
  0xfb   : > { %v548_v12 = vpop.f32.mrb[6].mxu1 }
  0xfc   : > { %v1134_v13 = vpop.f32.mrb[7].mxu1 }
  0xfd   : > { %v468_v14 = vpop.f32.mrb[4].mxu0 }
  0xfe   : > { %v546_v15 = vadd.f32 %v545_v10, %v468_v14  ;;  %v1119_v16 = vpop.f32.mrb[5].mxu0 }
  0xff   : > { %v471_v17 = vpop.f32.mrb[6].mxu0 }
 0x100   : > { %v549_v18 = vadd.f32 %v548_v12, %v471_v17  ;;  %v1120_v19 = vpop.f32.mrb[7].mxu0 }
 0x101   : > { %v553_v20 = vpop.f32.mrb[8].mxu1 }
 0x102   : > { %v1137_v21 = vpop.f32.mrb[9].mxu1 }
 0x103   : > { %v556_v22 = vpop.f32.mrb[10].mxu1  ;;  %v757_v21 = vsel %vm422_vm0, %v1365_v60, 0  ;;  %v883_v60 = vrot.slane %v1316_v6, 4 }
 0x104   : > { %v1138_v23 = vpop.f32.mrb[11].mxu1 }
 0x105   : > { %v476_v24 = vpop.f32.mrb[8].mxu0  ;;  %v1071_v23 = vld [vmem:[%s1412_s4 + $0x8] sm:$0xf] }
 0x106   : > { %v554_v25 = vadd.f32 %v553_v20, %v476_v24  ;;  %v1123_v26 = vpop.f32.mrb[9].mxu0  ;;  %v826_v24 = vsel %vm422_vm0, %v1071_v23, 0 }
 0x107   : > { %v479_v27 = vpop.f32.mrb[10].mxu0  ;;  %v882_v26 = vrot.slane %v1314_v5, 4 }
 0x108   : > { %v1124_v28 = vpop.f32.mrb[11].mxu0 }
 0x109   : > { %v884_v28 = vsel %vm422_vm0, %v882_v26, %v883_v60 }
 0x10d   : > { %v613_v29 = vpop.f32.mrb[12].mxu0 }
 0x10e   : > { %v635_v31 = vadd.f32 %v613_v29, %v538_v2  ;;  %v1143_v32 = vpop.f32.mrb[13].mxu0  ;;  %v1074_v29 = vld [vmem:[%s1413_s5] ss:$0 sm:$0xff] }
 0x10f   : > { %v616_v33 = vpop.f32.mrb[14].mxu0  ;;  %v889_v32 = vunpack.c.l.bf16 %v884_v28 }
 0x110   : > { %v647_v34 = vadd.f32 %v1065_v30, %v635_v31  ;;  %v636_v35 = vadd.f32 %v616_v33, %v541_v8  ;;  %v1144_v36 = vpop.f32.mrb[15].mxu0 }
 0x112   : > { %v657_v37 = vmul.f32 0.1, %v647_v34  ;;  %v648_v38 = vadd.f32 %v1065_v30, %v636_v35  ;;  %vm652_vm12 = vcmp.ge.f32.partialorder %v647_v34, 0.0 }
 0x114   : > { %vm653_vm13 = vcmp.ge.f32.partialorder %v648_v38, 0.0  ;;  %v658_v39 = vmul.f32 0.1, %v648_v38  ;;  %v662_v41 = vsel %vm652_vm12, %v647_v34, %v657_v37 }
 0x115   : > { %v621_v40 = vpop.f32.mrb[16].mxu0 }
 0x116   : > { %v663_v42 = vsel %vm653_vm13, %v648_v38, %v658_v39  ;;  %v637_v43 = vadd.f32 %v621_v40, %v546_v15  ;;  %v1147_v44 = vpop.f32.mrb[17].mxu0 }
 0x117   : > { %v667_v45 = vpack.c.bf16 %v663_v42, %v662_v41  ;;  %v624_v46 = vpop.f32.mrb[18].mxu0 }
 0x118   : > { %v649_v47 = vadd.f32 %v1065_v30, %v637_v43  ;;  %v638_v48 = vadd.f32 %v624_v46, %v549_v18  ;;  %v1148_v49 = vpop.f32.mrb[19].mxu0 }
 0x119   : > { %v677_v52 = vshll.u32 %v667_v45, 16  ;;  %v675_v1 = vshrl.u32 %v667_v45, 16  ;;  %v814_v3 = vrot.slane %v667_v45, 1 }
 0x11a   : > { %v659_v50 = vmul.f32 0.1, %v649_v47  ;;  %v650_v51 = vadd.f32 %v1065_v30, %v638_v48  ;;  %vm654_vm14 = vcmp.ge.f32.partialorder %v649_v47, 0.0 }
 0x11b   : > { %v679_v62 = vrot.slane %v677_v52, 1 }
 0x11c   : > { %vm655_vm15 = vcmp.ge.f32.partialorder %v650_v51, 0.0  ;;  %v660_v53 = vmul.f32 0.1, %v650_v51  ;;  %v664_v55 = vsel %vm654_vm14, %v649_v47, %v659_v50 }
 0x11d   : > { %v629_v54 = vpop.f32.mrb[20].mxu0  ;;  %v680_v9 = vor.u32 %v679_v62, %v675_v1 }
 0x11e   : > { %v665_v56 = vsel %vm655_vm15, %v650_v51, %v660_v53  ;;  %v639_v57 = vadd.f32 %v629_v54, %v554_v25  ;;  %v1151_v58 = vpop.f32.mrb[21].mxu0  ;;  %v885_v25 = vrot.slane %v1318_v7, 4  ;;  %v890_v7 = vunpack.c.h.bf16 %v884_v28 }
 0x11f   : > { %v668_v59 = vpack.c.bf16 %v665_v56, %v664_v55  ;;  %v632_v61 = vpop.f32.mrb[22].mxu0 }
 0x120   : > { %v651_v63 = vadd.f32 %v1065_v30, %v639_v57  ;;  %v1152_v0 = vpop.f32.mrb[23].mxu0  ;;  %v886_v27 = vsel %vm422_vm0, %v883_v60, %v885_v25 }
 0x121   : > { %v682_v2 = vshll.u32 %v668_v59, 16  ;;  %v815_v4 = vrot.slane %v668_v59, 1  ;;  %v686_v17 = vshrl.u32 %v668_v59, 16  ;;  %v891_v30 = vunpack.c.l.bf16 %v886_v27 }
 0x122   : > { %vm656_vm2 = vcmp.ge.f32.partialorder %v651_v63, 0.0  ;;  %v661_v8 = vmul.f32 0.1, %v651_v63  ;;  %v892_v35 = vunpack.c.h.bf16 %v886_v27 }
 0x123   : > { %v684_v10 = vrot.slane %v682_v2, 1  ;;  %v816_v11 = vsel %vm813_vm1, %v814_v3, %v815_v4 }
 0x124   : > { %v666_v12 = vsel %vm656_vm2, %v651_v63, %v661_v8 }
 0x125   : > { %v669_v13 = vpack.c.bf16 %v666_v12, %v666_v12  ;;  %v685_v14 = vsel %vm673_vm3, %v680_v9, %v684_v10  ;;  %v688_v19 = vor.u32 %v686_v17, %v684_v10 }
 0x126   : > { %1155 = vmatprep.mubr.msk.bf16.mxu1 %vm412_vm9, %v685_v14 }
 0x127   : > { %v690_v15 = vshll.u32 %v669_v13, 16  ;;  %v817_v16 = vrot.slane %v669_v13, 1 }
 0x129   : > { %v692_v18 = vrot.slane %v690_v15, 1  ;;  %v818_v20 = vsel %vm813_vm1, %v815_v4, %v817_v16 }
 0x12b   : > { %v693_v22 = vsel %vm673_vm3, %v688_v19, %v692_v18 }
 0x12c   : > { %1156 = vmatmul.mubr.msk.bf16.vlgmr.msra.gmra.mrb[12].mxu1 %vm412_vm9, %v693_v22 }
 0x12d   : > { %1160 = vmatpush3.bf16.msra.mxu1 %v757_v21  ;;  %1161 = vmatprep.mubr.msk.bf16.mxu1 %vm412_vm9, %v667_v45 }
 0x12e   : > { %1181 = vmatprep.subr.msk.bf16.mxu1 %vm422_vm0, %v1071_v23  ;;  %vm924_vm0 = vcmask 60416  }
 0x138   : > { %1162 = vmatmul.mubr.msk.bf16.vlgmr.msra.gmra.mrb[12].mxu1 %vm412_vm9, %v668_v59 }
 0x139   : > { %1166 = vmatpush3.bf16.msra.mxu1 %v826_v24  ;;  %1167 = vmatprep.mubr.msk.bf16.mxu1 %vm412_vm9, %v816_v11 }
 0x144   : > { %1168 = vmatmul.mubr.msk.bf16.vlgmr.msra.gmra.mrb[12].mxu1 %vm412_vm9, %v818_v20 }
 0x217   : > { %v1169_v31 = vpop.f32.mrb[12].mxu1 }
 0x218   : > { %v902_v33 = vadd.f32 %v1169_v31, %v1074_v29  ;;  %v862_v34 = vpop.f32.mrb[13].mxu1 }
 0x219   : > { %v900_v6 = vadd.f32 %v1074_v29, %v862_v34  ;;  %v1170_v36 = vpop.f32.mrb[14].mxu1 }
 0x21a   : > { %v906_v37 = vadd.f32 %v902_v33, %v891_v30  ;;  %v903_v5 = vadd.f32 %v1170_v36, %v1074_v29  ;;  %v865_v38 = vpop.f32.mrb[15].mxu1 }
 0x21b   : > { %v904_v39 = vadd.f32 %v900_v6, %v889_v32  ;;  %v901_v40 = vadd.f32 %v1074_v29, %v865_v38 }
 0x21c   : > { %v1087_v41 = vpack.c.bf16 %v906_v37, %v906_v37  ;;  %v907_v42 = vadd.f32 %v903_v5, %v892_v35 }
 0x21d   : > { %v1085_v43 = vpack.c.bf16 %v904_v39, %v904_v39  ;;  %v905_v44 = vadd.f32 %v901_v40, %v890_v7 }
 0x21e   : > { %927 = vst.msk [vmem:[%s328_s8 + $0x8] sm:$0xf] %vm924_vm0, %v1087_v41  ;;  %v1088_v45 = vpack.c.bf16 %v907_v42, %v907_v42 }
 0x21f   : > { %925 = vst.msk [vmem:[%s328_s8] sm:$0xf] %vm924_vm0, %v1085_v43  ;;  %v1086_v46 = vpack.c.bf16 %v905_v44, %v905_v44 }
 0x220   : > { %928 = vst.msk [vmem:[%s328_s8 + $0xc] sm:$0xf] %vm924_vm0, %v1088_v45 }
 0x221   : > { %926 = vst.msk [vmem:[%s328_s8 + $0x4] sm:$0xf] %vm924_vm0, %v1086_v46 }
 0x222 PF: > { %s16_s23 = sadd.s32 1, %s1233_s23   ;;  %s1415_s21 = smov %s1229_s22 }
 0x223   : > { %p13_p5 = scmp.ge.s32.totalorder %s16_s23, 4   ;;  %s1416_s22 = smov %s1418_s24 }
 0x225   :  { %15 = sbr.rel (!%p13_p5) target bundleno = 2 (0x2), region = 81 }

// kernel: generator_forward.22
= control target key start
LH: loop header
LB: loop body
LE: loop exit
PB: predicated region body
PF: predicated region fallthrough
CT: control target
= control target key end

     0   :  { %s1772_s24 = smov 0   ;;  %s1774_s25 = smov 0   ;;  %s1994_s0 = inlined_call_operand.vmem [shape: bf16[2,2,32,8], index: 0, kind: input, shape index: {}, may-alias: {0,1}]   ;;  %s1995_s1 = inlined_call_operand.vmem [shape: bf16[2,2,32,8], index: 1, kind: input, shape index: {}, may-alias: {0,1}]   ;;  %s1996_s2 = inlined_call_operand.vmem [shape: bf16[5,8,8], index: 2, kind: input, shape index: {}]   ;;  %s1997_s3 = inlined_call_operand.vmem [shape: f32[1,8], index: 3, kind: input, shape index: {}]   ;;  %s1998_s4 = inlined_call_operand.vmem [shape: bf16[5,8,8], index: 4, kind: input, shape index: {}]   ;;  %s1999_s5 = inlined_call_operand.vmem [shape: f32[1,8], index: 5, kind: input, shape index: {}]   ;;  %s2000_s6 = inlined_call_operand.vmem [shape: bf16[2,32,8], index: 6, kind: input, shape index: {}]   ;;  %s2001_s7 = inlined_call_operand.vmem [shape: bf16[2,32,8], index: 7, kind: output, shape index: {}]  }
   0x1   :  { %s1776_s26 = smov 0  }
   0x2 LB: > { %s29_s27 = sadd.s32 1, %s1724_s25  ;;  %p1447_p0 = scmp.ge.s32.totalorder %s1728_s26, 1  ;;  %s1728_s26 = sphi %s1776_s26, %s17_s26   ;;  %s1724_s25 = sphi %s1774_s25, %s2003_s25   ;;  %s1720_s24 = sphi %s1772_s24, %s2002_s24  }
   0x3   : > { %p31_p1 = scmp.ge.s32.totalorder %s29_s27, 2  ;;  %p294_p2 = scmp.lt.s32.totalorder %s1728_s26, 3 }
   0x5   : > { %s2005_s27 = smov (%p31_p1, %s29_s27), 0  ;;  %p295_p3 = pnand %p1447_p0, %p294_p2 }
   0x6   : > { %v1459_v0 = vld [vmem:[%s1996_s2 + $0x4] sm:$0xf] (!%p295_p3)  ;;  %vm485_vm0 = vcmask (!%p295_p3), 1043456   ;;  %p353_p4 = scmp.lt.s32.totalorder (!%p295_p3), %s1720_s24, 1  ;;  %v1730_v1 = vmov (!%p295_p3), 0.0   ;;  %vm1731_vm1 = vmmov (!%p295_p3), 0  }
   0x7   : > { %298 = sbr.rel (%p295_p3) target bundleno = 606 (0x25e), region = 48  ;;  %1554 = vmatprep.subr.bf16.mxu0 (!%p295_p3), %v1730_v1  ;;  %v487_v2 = vsel (!%p295_p3), %vm485_vm0, %v1459_v0, 0  ;;  %1556 = vmatprep.mubr.msk.bf16.mxu0 (!%p295_p3), %vm1731_vm1, %v1730_v1  ;;  %v445_v3 = vld [vmem:[%s1996_s2] sm:$0xf] (!%p295_p3)  ;;  %v1470_v14 = vld [vmem:[%s1996_s2 + $0xc] sm:$0xf] (!%p295_p3) }
   0x8   : > { %1555 = vmatpush3.bf16.msra.mxu0 (!%p295_p3), %v487_v2  ;;  %v1803_v4 = vsel (!%p295_p3), %vm485_vm0, %v445_v3, 0  ;;  %1654 = vmatprep.subr.bf16.mxu1 (!%p295_p3), %v1730_v1  ;;  %v718_v29 = vsel (!%p295_p3), %vm485_vm0, %v1470_v14, 0  ;;  %vm475_vm8 = vcmask (!%p295_p3), 64512   ;;  %vm448_vm9 = vsmask.f32 (!%p295_p3), 6400 }
   0x9   : > { %1568 = vmatprep.subr.bf16.mxu0 (!%p295_p3), %v1730_v1  ;;  %1655 = vmatpush3.bf16.msra.mxu1 (!%p295_p3), %v1803_v4  ;;  %vm696_vm10 = vsmask.f32 (!%p295_p3), 3328  ;;  %v1466_v59 = vld [vmem:[%s1996_s2 + $0x8] sm:$0xf] (!%p295_p3)  ;;  %vm615_vm11 = vcmask (!%p295_p3), 1044480   ;;  %vm783_vm12 = vcmask (!%p295_p3), 1041408  }
   0xa   : > { %1574 = vmatprep.mubr.msk.bf16.mxu1 (!%p295_p3), %vm1731_vm1, %v1730_v1  ;;  %1596 = vmatprep.subr.bf16.mxu1 (!%p295_p3), %v1730_v1  ;;  %v631_v60 = vsel (!%p295_p3), %vm485_vm0, %v1466_v59, 0  ;;  %v1474_v63 = vld [vmem:[%s1996_s2 + $0x10] sm:$0xf] (!%p295_p3) }
   0xb   : > { %v799_v2 = vsel (!%p295_p3), %vm485_vm0, %v1474_v63, 0 }
   0xe   : > { %s2007_s24 = smov (!%p353_p4, %s1720_s24), 1 }
   0xf   : > { %s1500_s9 = sshll.u32 %s2007_s24, 5 }
  0x10   : > { %s361_s12 = scalar_lea.vmem %s1994_s0, %s1500_s9  ;;  %s1502_s13 = sadd.s32 16, %s1500_s9 }
  0x11   : > { %s371_s16 = scalar_lea.vmem %s1995_s1, %s1502_s13  ;;  %v1818_v5 = vld [vmem:[%s361_s12] sm:$0xff]   ;;  %v1820_v6 = vld [vmem:[%s361_s12 + $0x8] sm:$0xff]  }
  0x12   : > { %v1822_v7 = vld [vmem:[%s371_s16] sm:$0xff]   ;;  %v418_v8 = vunpack.c.l.bf16 %v1818_v5  ;;  %v419_v9 = vunpack.c.h.bf16 %v1818_v5  ;;  %v420_v10 = vunpack.c.l.bf16 %v1820_v6  ;;  %v421_v11 = vunpack.c.h.bf16 %v1820_v6  ;;  %s1503_s16 = sshll.u32 %s2007_s24, 4 }
  0x13   : > { %v422_v12 = vunpack.c.l.bf16 %v1822_v7  ;;  %v423_v13 = vunpack.c.h.bf16 %v1822_v7  ;;  %s381_s19 = scalar_lea.vmem %s2000_s6, %s1503_s16  ;;  %s391_s28 = scalar_lea.vmem %s2001_s7, %s1503_s16 }
  0x14   : > { %vm424_vm2 = vcmp.ge.f32.partialorder %v418_v8, 0.0  ;;  %vm425_vm3 = vcmp.ge.f32.partialorder %v419_v9, 0.0  ;;  %vm426_vm4 = vcmp.ge.f32.partialorder %v420_v10, 0.0  ;;  %vm427_vm5 = vcmp.ge.f32.partialorder %v421_v11, 0.0 }
  0x15   : > { %v430_v15 = vmul.f32 0.1, %v418_v8  ;;  %v431_v16 = vmul.f32 0.1, %v419_v9  ;;  %v432_v17 = vmul.f32 0.1, %v420_v10 }
  0x16   : > { %v433_v18 = vmul.f32 0.1, %v421_v11  ;;  %vm428_vm6 = vcmp.ge.f32.partialorder %v422_v12, 0.0  ;;  %vm429_vm7 = vcmp.ge.f32.partialorder %v423_v13, 0.0  ;;  %v434_v19 = vmul.f32 0.1, %v422_v12 }
  0x17   : > { %v436_v20 = vsel %vm424_vm2, %v418_v8, %v430_v15  ;;  %v437_v21 = vsel %vm425_vm3, %v419_v9, %v431_v16  ;;  %v438_v22 = vsel %vm426_vm4, %v420_v10, %v432_v17  ;;  %v435_v23 = vmul.f32 0.1, %v423_v13  ;;  %v1917_v15 = vld [vmem:[%s1998_s4] sm:$0xf] }
  0x18   : > { %v439_v24 = vsel %vm427_vm5, %v421_v11, %v433_v18  ;;  %v1833_v25 = vpack.c.bf16 %v437_v21, %v436_v20  ;;  %v440_v26 = vsel %vm428_vm6, %v422_v12, %v434_v19  ;;  %vm895_vm2 = vsmask.f32 7424 }
  0x19   : > { %v1835_v27 = vpack.c.bf16 %v439_v24, %v438_v22  ;;  %v441_v28 = vsel %vm429_vm7, %v423_v13, %v435_v23  ;;  %v1479_v13 = vld [vmem:[%s1998_s4 + $0x4] sm:$0xf]  ;;  %vm1035_vm3 = vcmask 1046528   ;;  %vm1182_vm4 = vcmask 1045504  }
  0x1a   : > { %v450_v30 = vshrl.u32 %v1833_v25, 16  ;;  %v453_v31 = vshll.u32 %v1833_v25, 16  ;;  %v1840_v32 = vpack.c.bf16 %v441_v28, %v440_v26  ;;  %v616_v61 = vrot.slane %v1833_v25, 3 }
  0x1b   : > { %v458_v33 = vshrl.u32 %v1835_v27, 16  ;;  %v461_v34 = vshll.u32 %v1835_v27, 16  ;;  %1575 = vmatmul.mubr.msk.bf16.vlgmr.msra.gmra.mrb[0].mxu1 %vm475_vm8, %v1835_v27  ;;  %v617_v62 = vrot.slane %v1835_v27, 3  ;;  %v784_v8 = vrot.slane %v1833_v25, 6 }
  0x1c   : > { %v452_v35 = vrot.slane %v450_v30, 1  ;;  %v455_v36 = vrot.slane %v453_v31, 2  ;;  %1578 = vmatprep.mubr.msk.bf16.mxu1 %vm1731_vm1, %v1730_v1  ;;  %1597 = vmatpush3.bf16.msra.mxu1 %v718_v29  ;;  %v467_v40 = vshrl.u32 %v1840_v32, 16  ;;  %v470_v41 = vshll.u32 %v1840_v32, 16 }
  0x1d   : > { %v460_v37 = vrot.slane %v458_v33, 1  ;;  %v463_v38 = vrot.slane %v461_v34, 2  ;;  %v697_v43 = vrot.slane %v450_v30, 4  ;;  %v698_v47 = vrot.slane %v453_v31, 5  ;;  %1672 = vmatprep.subr.msk.bf16.mxu1 %vm485_vm0, %v1479_v13 }
  0x1e   : > { %v456_v39 = vor.u32 %v455_v36, %v452_v35  ;;  %v469_v44 = vrot.slane %v467_v40, 1  ;;  %v472_v45 = vrot.slane %v470_v41, 2  ;;  %v700_v48 = vrot.slane %v458_v33, 4 }
  0x1f   : > { %v464_v42 = vor.u32 %v463_v38, %v460_v37  ;;  %v701_v49 = vrot.slane %v461_v34, 5  ;;  %v699_v51 = vor.u32 %v698_v47, %v697_v43  ;;  %v704_v55 = vrot.slane %v467_v40, 4 }
  0x20   : > { %v473_v50 = vor.u32 %v472_v45, %v469_v44  ;;  %v705_v56 = vrot.slane %v470_v41, 5  ;;  %v618_v0 = vsel %vm615_vm11, %v616_v61, %v617_v62  ;;  %v619_v3 = vrot.slane %v1840_v32, 3 }
  0x21   : > { %v465_v46 = vsel %vm448_vm9, %v456_v39, %v464_v42  ;;  %v702_v52 = vor.u32 %v701_v49, %v700_v48  ;;  %v785_v9 = vrot.slane %v1835_v27, 6  ;;  %v787_v11 = vrot.slane %v1840_v32, 6 }
  0x22   : > { %1557 = vmatmul.mubr.msk.bf16.vlgmr.msra.gmra.mrb[0].mxu0 %vm475_vm8, %v465_v46  ;;  %v474_v53 = vsel %vm448_vm9, %v464_v42, %v473_v50  ;;  %v706_v57 = vor.u32 %v705_v56, %v704_v55  ;;  %v923_v14 = vsel %vm485_vm0, %v1479_v13, 0 }
  0x23   : > { %1569 = vmatpush3.bf16.msra.mxu0 %v1803_v4  ;;  %1560 = vmatprep.mubr.msk.bf16.mxu0 %vm1731_vm1, %v1730_v1  ;;  %v703_v54 = vsel %vm696_vm10, %v699_v51, %v702_v52  ;;  %v620_v4 = vsel %vm615_vm11, %v617_v62, %v619_v3  ;;  %v786_v10 = vsel %vm783_vm12, %v784_v8, %v785_v9 }
  0x24   : > { %1579 = vmatmul.mubr.msk.bf16.gmra.mrb[4].mxu1 %vm475_vm8, %v1840_v32  ;;  %1582 = vmatprep.subr.bf16.mxu0 %v1730_v1  ;;  %v707_v58 = vsel %vm696_vm10, %v702_v52, %v706_v57  ;;  %v788_v12 = vsel %vm783_vm12, %v785_v9, %v787_v11 }
  0x25   : > { %1598 = vmatprep.mubr.msk.bf16.mxu1 %vm1731_vm1, %v1730_v1 }
  0x2a   : > { %1561 = vmatmul.mubr.msk.bf16.gmra.mrb[4].mxu0 %vm475_vm8, %v474_v53 }
  0x2b   : > { %1564 = vmatprep.mubr.msk.bf16.mxu0 %vm1731_vm1, %v1730_v1 }
  0x2c   : > { %1599 = vmatmul.mubr.msk.bf16.vlgmr.msra.gmra.mrb[8].mxu1 %vm475_vm8, %v703_v54 }
  0x2d   : > { %1602 = vmatprep.mubr.msk.bf16.mxu1 %vm1731_vm1, %v1730_v1  ;;  %1625 = vmatpush3.bf16.msra.mxu1 %v923_v14 }
  0x2e   : > { %1673 = vmatprep.subr.msk.bf16.mxu1 %vm485_vm0, %v1917_v15 }
  0x32   : > { %1565 = vmatmul.mubr.msk.bf16.gmra.mrb[8].mxu0 %vm475_vm8, %v473_v50 }
  0x33   : > { %1570 = vmatprep.mubr.msk.bf16.mxu0 %vm1731_vm1, %v1730_v1 }
  0x34   : > { %1603 = vmatmul.mubr.msk.bf16.gmra.mrb[12].mxu1 %vm475_vm8, %v707_v58 }
  0x35   : > { %1606 = vmatprep.mubr.msk.bf16.mxu1 %vm1731_vm1, %v1730_v1 }
  0x3a   : > { %1571 = vmatmul.mubr.msk.bf16.vlgmr.msra.gmra.mrb[12].mxu0 %vm475_vm8, %v1833_v25 }
  0x3b   : > { %1583 = vmatpush3.bf16.msra.mxu0 %v631_v60  ;;  %1584 = vmatprep.mubr.msk.bf16.mxu0 %vm1731_vm1, %v1730_v1 }
  0x3c   : > { %1610 = vmatprep.subr.bf16.mxu0 %v1730_v1  ;;  %1607 = vmatmul.mubr.msk.bf16.gmra.mrb[16].mxu1 %vm475_vm8, %v706_v57 }
  0x42   : > { %1585 = vmatmul.mubr.msk.bf16.vlgmr.msra.gmra.mrb[16].mxu0 %vm475_vm8, %v618_v0 }
  0x43   : > { %1611 = vmatpush3.bf16.msra.mxu0 %v799_v2  ;;  %1588 = vmatprep.mubr.msk.bf16.mxu0 %vm1731_vm1, %v1730_v1 }
  0x4a   : > { %1589 = vmatmul.mubr.msk.bf16.gmra.mrb[20].mxu0 %vm475_vm8, %v620_v4 }
  0x4b   : > { %1592 = vmatprep.mubr.msk.bf16.mxu0 %vm1731_vm1, %v1730_v1 }
  0x52   : > { %1593 = vmatmul.mubr.msk.bf16.gmra.mrb[24].mxu0 %vm475_vm8, %v619_v3 }
  0x53   : > { %1612 = vmatprep.mubr.msk.bf16.mxu0 %vm1731_vm1, %v1730_v1 }
  0x5a   : > { %1613 = vmatmul.mubr.msk.bf16.vlgmr.msra.gmra.mrb[28].mxu0 %vm475_vm8, %v786_v10 }
  0x5b   : > { %1616 = vmatprep.mubr.msk.bf16.mxu0 %vm1731_vm1, %v1730_v1 }
  0x62   : > { %1617 = vmatmul.mubr.msk.bf16.gmra.mrb[32].mxu0 %vm475_vm8, %v788_v12 }
  0x63   : > { %1620 = vmatprep.mubr.msk.bf16.mxu0 %vm1731_vm1, %v1730_v1 }
  0x6a   : > { %1621 = vmatmul.mubr.msk.bf16.gmra.mrb[36].mxu0 %vm475_vm8, %v787_v11 }
  0xee   : > { %v596_v1 = vpop.f32.mrb[0].mxu1 }
  0xef   : > { %v1576_v16 = vpop.f32.mrb[1].mxu1 }
  0xf0   : > { %v599_v17 = vpop.f32.mrb[2].mxu1 }
  0xf1   : > { %v1577_v18 = vpop.f32.mrb[3].mxu1 }
  0xf5   : > { %v523_v19 = vpop.f32.mrb[0].mxu0 }
  0xf6   : > { %v1558_v20 = vpop.f32.mrb[1].mxu0 }
  0xf7   : > { %v526_v21 = vpop.f32.mrb[2].mxu0  ;;  %v604_v22 = vpop.f32.mrb[4].mxu1 }
  0xf8   : > { %v1559_v23 = vpop.f32.mrb[3].mxu0  ;;  %v1580_v24 = vpop.f32.mrb[5].mxu1 }
  0xf9   : > { %v607_v25 = vpop.f32.mrb[6].mxu1 }
  0xfa   : > { %v1581_v26 = vpop.f32.mrb[7].mxu1 }
  0xfd   : > { %v531_v27 = vpop.f32.mrb[4].mxu0 }
  0xfe   : > { %v597_v28 = vadd.f32 %v596_v1, %v531_v27  ;;  %v1562_v29 = vpop.f32.mrb[5].mxu0 }
  0xff   : > { %v534_v30 = vpop.f32.mrb[6].mxu0  ;;  %v754_v31 = vpop.f32.mrb[8].mxu1 }
 0x100   : > { %v600_v32 = vadd.f32 %v599_v17, %v534_v30  ;;  %v1563_v33 = vpop.f32.mrb[7].mxu0  ;;  %v1600_v34 = vpop.f32.mrb[9].mxu1 }
 0x101   : > { %v757_v35 = vpop.f32.mrb[10].mxu1 }
 0x102   : > { %v1601_v36 = vpop.f32.mrb[11].mxu1 }
 0x105   : > { %v539_v37 = vpop.f32.mrb[8].mxu0 }
 0x106   : > { %v605_v38 = vadd.f32 %v604_v22, %v539_v37  ;;  %v1566_v39 = vpop.f32.mrb[9].mxu0 }
 0x107   : > { %v542_v40 = vpop.f32.mrb[10].mxu0  ;;  %v762_v41 = vpop.f32.mrb[12].mxu1 }
 0x108   : > { %v1567_v42 = vpop.f32.mrb[11].mxu0  ;;  %v1604_v43 = vpop.f32.mrb[13].mxu1 }
 0x109   : > { %v765_v44 = vpop.f32.mrb[14].mxu1 }
 0x10a   : > { %v1605_v45 = vpop.f32.mrb[15].mxu1 }
 0x10d   : > { %v588_v46 = vpop.f32.mrb[12].mxu0 }
 0x10e   : > { %v589_v47 = vadd.f32 %v588_v46, %v523_v19  ;;  %v1572_v48 = vpop.f32.mrb[13].mxu0  ;;  %v1478_v19 = vld [vmem:[%s1997_s3] ss:$0 sm:$0xff] }
 0x10f   : > { %v591_v49 = vpop.f32.mrb[14].mxu0  ;;  %v770_v50 = vpop.f32.mrb[16].mxu1 }
 0x110   : > { %v592_v51 = vadd.f32 %v591_v49, %v526_v21  ;;  %v1573_v52 = vpop.f32.mrb[15].mxu0  ;;  %v1608_v53 = vpop.f32.mrb[17].mxu1 }
 0x111   : > { %v773_v54 = vpop.f32.mrb[18].mxu1 }
 0x112   : > { %v1609_v55 = vpop.f32.mrb[19].mxu1 }
 0x115   : > { %v667_v56 = vpop.f32.mrb[16].mxu0 }
 0x116   : > { %v689_v57 = vadd.f32 %v667_v56, %v589_v47  ;;  %v1586_v58 = vpop.f32.mrb[17].mxu0 }
 0x117   : > { %v670_v59 = vpop.f32.mrb[18].mxu0 }
 0x118   : > { %v690_v60 = vadd.f32 %v670_v59, %v592_v51  ;;  %v776_v61 = vadd.f32 %v754_v31, %v689_v57  ;;  %v1587_v62 = vpop.f32.mrb[19].mxu0 }
 0x11a   : > { %v777_v63 = vadd.f32 %v757_v35, %v690_v60 }
 0x11d   : > { %v675_v0 = vpop.f32.mrb[20].mxu0 }
 0x11e   : > { %v691_v2 = vadd.f32 %v675_v0, %v597_v28  ;;  %v1590_v3 = vpop.f32.mrb[21].mxu0 }
 0x11f   : > { %v678_v4 = vpop.f32.mrb[22].mxu0 }
 0x120   : > { %v692_v8 = vadd.f32 %v678_v4, %v600_v32  ;;  %v778_v9 = vadd.f32 %v762_v41, %v691_v2  ;;  %v1591_v10 = vpop.f32.mrb[23].mxu0 }
 0x122   : > { %v779_v11 = vadd.f32 %v765_v44, %v692_v8 }
 0x125   : > { %v683_v12 = vpop.f32.mrb[24].mxu0 }
 0x126   : > { %v693_v13 = vadd.f32 %v683_v12, %v605_v38  ;;  %v1594_v14 = vpop.f32.mrb[25].mxu0 }
 0x127   : > { %v686_v1 = vpop.f32.mrb[26].mxu0 }
 0x128   : > { %v780_v16 = vadd.f32 %v770_v50, %v693_v13  ;;  %v1595_v17 = vpop.f32.mrb[27].mxu0 }
 0x12d   : > { %v835_v18 = vpop.f32.mrb[28].mxu0 }
 0x12e   : > { %v857_v20 = vadd.f32 %v835_v18, %v776_v61  ;;  %v1614_v21 = vpop.f32.mrb[29].mxu0 }
 0x12f   : > { %v838_v22 = vpop.f32.mrb[30].mxu0 }
 0x130   : > { %v869_v23 = vadd.f32 %v1478_v19, %v857_v20  ;;  %v858_v24 = vadd.f32 %v838_v22, %v777_v63  ;;  %v1615_v25 = vpop.f32.mrb[31].mxu0 }
 0x132   : > { %v879_v26 = vmul.f32 0.1, %v869_v23  ;;  %v870_v27 = vadd.f32 %v1478_v19, %v858_v24  ;;  %vm874_vm13 = vcmp.ge.f32.partialorder %v869_v23, 0.0  ;;  %v979_v24 = vsel %vm485_vm0, %v1917_v15, 0 }
 0x134   : > { %vm875_vm14 = vcmp.ge.f32.partialorder %v870_v27, 0.0  ;;  %v880_v28 = vmul.f32 0.1, %v870_v27  ;;  %v884_v30 = vsel %vm874_vm13, %v869_v23, %v879_v26 }
 0x135   : > { %v843_v29 = vpop.f32.mrb[32].mxu0 }
 0x136   : > { %v885_v31 = vsel %vm875_vm14, %v870_v27, %v880_v28  ;;  %v859_v32 = vadd.f32 %v843_v29, %v778_v9  ;;  %v1618_v33 = vpop.f32.mrb[33].mxu0  ;;  %v1484_v27 = vld [vmem:[%s1998_s4 + $0x8] sm:$0xf] }
 0x137   : > { %v1924_v34 = vpack.c.bf16 %v885_v31, %v884_v30  ;;  %v846_v35 = vpop.f32.mrb[34].mxu0  ;;  %v1048_v15 = vsel %vm485_vm0, %v1484_v27, 0  ;;  %v1487_v30 = vld [vmem:[%s1998_s4 + $0xc] sm:$0xf] }
 0x138   : > { %v871_v36 = vadd.f32 %v1478_v19, %v859_v32  ;;  %v860_v37 = vadd.f32 %v846_v35, %v779_v11  ;;  %v1619_v38 = vpop.f32.mrb[35].mxu0  ;;  %v1125_v31 = vsel %vm485_vm0, %v1487_v30, 0  ;;  %v1490_v32 = vld [vmem:[%s1998_s4 + $0x10] sm:$0xf]  ;;  %v1254_v35 = vrot.slane %v1822_v7, 4 }
 0x139   : > { %v899_v41 = vshll.u32 %v1924_v34, 16  ;;  %v897_v43 = vshrl.u32 %v1924_v34, 16  ;;  %v1036_v54 = vrot.slane %v1924_v34, 1  ;;  %v1183_v63 = vrot.slane %v1924_v34, 2 }
 0x13a   : > { %v881_v39 = vmul.f32 0.1, %v871_v36  ;;  %v872_v40 = vadd.f32 %v1478_v19, %v860_v37  ;;  %vm876_vm15 = vcmp.ge.f32.partialorder %v871_v36, 0.0  ;;  %v1195_v33 = vsel %vm485_vm0, %v1490_v32, 0 }
 0x13b   : > { %v901_v49 = vrot.slane %v899_v41, 1  ;;  %v1105_v55 = vrot.slane %v897_v43, 1  ;;  %v1106_v56 = vrot.slane %v899_v41, 2 }
 0x13c   : > { %vm877_vm1 = vcmp.ge.f32.partialorder %v872_v40, 0.0  ;;  %v882_v42 = vmul.f32 0.1, %v872_v40  ;;  %v886_v45 = vsel %vm876_vm15, %v871_v36, %v881_v39  ;;  %v1251_v36 = vrot.slane %v1818_v5, 4  ;;  %v1493_v39 = vld [vmem:[%s1999_s5] ss:$0 sm:$0xff] }
 0x13d   : > { %v851_v44 = vpop.f32.mrb[36].mxu0  ;;  %v902_v62 = vor.u32 %v901_v49, %v897_v43  ;;  %v1107_v12 = vor.u32 %v1106_v56, %v1105_v55 }
 0x13e   : > { %v887_v46 = vsel %vm877_vm1, %v872_v40, %v882_v42  ;;  %v861_v47 = vadd.f32 %v851_v44, %v780_v16  ;;  %v1622_v48 = vpop.f32.mrb[37].mxu0  ;;  %v1518_v40 = vld [vmem:[%s381_s19 + $0x8] sm:$0xff]  }
 0x13f   : > { %v890_v50 = vpack.c.bf16 %v887_v46, %v886_v45  ;;  %v854_v51 = vpop.f32.mrb[38].mxu0  ;;  %v1515_v5 = vunpack.c.l.bf16 %v1518_v40 }
 0x140   : > { %v873_v52 = vadd.f32 %v1478_v19, %v861_v47  ;;  %v1623_v53 = vpop.f32.mrb[39].mxu0 }
 0x141   : > { %v904_v57 = vshll.u32 %v890_v50, 16  ;;  %v908_v58 = vshrl.u32 %v890_v50, 16  ;;  %v1037_v59 = vrot.slane %v890_v50, 1  ;;  %v1184_v60 = vrot.slane %v890_v50, 2 }
 0x142   : > { %vm878_vm5 = vcmp.ge.f32.partialorder %v873_v52, 0.0  ;;  %v883_v61 = vmul.f32 0.1, %v873_v52 }
 0x143   : > { %v906_v0 = vrot.slane %v904_v57, 1  ;;  %v1038_v2 = vsel %vm1035_vm3, %v1036_v54, %v1037_v59  ;;  %v1108_v3 = vrot.slane %v908_v58, 1  ;;  %v1109_v4 = vrot.slane %v904_v57, 2 }
 0x144   : > { %v888_v8 = vsel %vm878_vm5, %v873_v52, %v883_v61  ;;  %v1185_v9 = vsel %vm1182_vm4, %v1183_v63, %v1184_v60  ;;  %v1516_v52 = vunpack.c.h.bf16 %v1518_v40 }
 0x145   : > { %v891_v10 = vpack.c.bf16 %v888_v8, %v888_v8  ;;  %v907_v11 = vsel %vm895_vm2, %v902_v62, %v906_v0  ;;  %v1110_v13 = vor.u32 %v1109_v4, %v1108_v3  ;;  %v910_v18 = vor.u32 %v908_v58, %v906_v0 }
 0x146   : > { %1626 = vmatprep.mubr.msk.bf16.mxu1 %vm475_vm8, %v907_v11 }
 0x147   : > { %v912_v14 = vshll.u32 %v891_v10, 16  ;;  %v1039_v1 = vrot.slane %v891_v10, 1  ;;  %v1111_v16 = vsel %vm448_vm9, %v1107_v12, %v1110_v13  ;;  %v1112_v17 = vshrl.u32 %v891_v10, 16 }
 0x148   : > { %v1186_v19 = vrot.slane %v891_v10, 2 }
 0x149   : > { %v914_v20 = vrot.slane %v912_v14, 1  ;;  %v1040_v21 = vsel %vm1035_vm3, %v1037_v59, %v1039_v1  ;;  %v1114_v22 = vrot.slane %v1112_v17, 1  ;;  %v1115_v23 = vrot.slane %v912_v14, 2 }
 0x14a   : > { %v1187_v25 = vsel %vm1182_vm4, %v1184_v60, %v1186_v19 }
 0x14b   : > { %v915_v26 = vsel %vm895_vm2, %v910_v18, %v914_v20  ;;  %v1116_v28 = vor.u32 %v1115_v23, %v1114_v22 }
 0x14c   : > { %1627 = vmatmul.mubr.msk.bf16.vlgmr.msra.gmra.mrb[20].mxu1 %vm475_vm8, %v915_v26 }
 0x14d   : > { %1631 = vmatpush3.bf16.msra.mxu1 %v979_v24  ;;  %1632 = vmatprep.mubr.msk.bf16.mxu1 %vm475_vm8, %v1924_v34  ;;  %v1117_v29 = vsel %vm448_vm9, %v1110_v13, %v1116_v28  ;;  %v1252_v34 = vrot.slane %v1820_v6, 4  ;;  %v1510_v6 = vld [vmem:[%s381_s19] sm:$0xff]  }
 0x14e   : > { %1674 = vmatprep.subr.msk.bf16.mxu1 %vm485_vm0, %v1484_v27  ;;  %v1511_v47 = vunpack.c.l.bf16 %v1510_v6  ;;  %v1512_v56 = vunpack.c.h.bf16 %v1510_v6 }
 0x14f   : > { %v1255_v37 = vsel %vm485_vm0, %v1252_v34, %v1254_v35  ;;  %v1253_v38 = vsel %vm485_vm0, %v1251_v36, %v1252_v34 }
 0x150   : > { %v1260_v41 = vunpack.c.l.bf16 %v1255_v37  ;;  %v1258_v7 = vunpack.c.l.bf16 %v1253_v38  ;;  %v1261_v45 = vunpack.c.h.bf16 %v1255_v37  ;;  %v1259_v49 = vunpack.c.h.bf16 %v1253_v38 }
 0x158   : > { %1633 = vmatmul.mubr.msk.bf16.vlgmr.msra.gmra.mrb[20].mxu1 %vm475_vm8, %v890_v50 }
 0x159   : > { %1637 = vmatpush3.bf16.msra.mxu1 %v1048_v15  ;;  %1638 = vmatprep.mubr.msk.bf16.mxu1 %vm475_vm8, %v1038_v2 }
 0x15a   : > { %1675 = vmatprep.subr.msk.bf16.mxu1 %vm485_vm0, %v1487_v30 }
 0x164   : > { %1639 = vmatmul.mubr.msk.bf16.vlgmr.msra.gmra.mrb[20].mxu1 %vm475_vm8, %v1040_v21 }
 0x165   : > { %1643 = vmatpush3.bf16.msra.mxu1 %v1125_v31  ;;  %1644 = vmatprep.mubr.msk.bf16.mxu1 %vm475_vm8, %v1111_v16 }
 0x166   : > { %1676 = vmatprep.subr.msk.bf16.mxu1 %vm485_vm0, %v1490_v32  ;;  %vm1309_vm0 = vcmask 60416  }
 0x170   : > { %1645 = vmatmul.mubr.msk.bf16.vlgmr.msra.gmra.mrb[20].mxu1 %vm475_vm8, %v1117_v29 }
 0x171   : > { %1649 = vmatpush3.bf16.msra.mxu1 %v1195_v33  ;;  %1650 = vmatprep.mubr.msk.bf16.mxu1 %vm475_vm8, %v1185_v9 }
 0x17c   : > { %1651 = vmatmul.mubr.msk.bf16.vlgmr.msra.gmra.mrb[20].mxu1 %vm475_vm8, %v1187_v25 }
 0x24f   : > { %v1652_v42 = vpop.f32.mrb[20].mxu1 }
 0x250   : > { %v1271_v43 = vadd.f32 %v1652_v42, %v1493_v39  ;;  %v1231_v44 = vpop.f32.mrb[21].mxu1 }
 0x251   : > { %v1269_v46 = vadd.f32 %v1493_v39, %v1231_v44  ;;  %v1653_v48 = vpop.f32.mrb[22].mxu1 }
 0x252   : > { %v1275_v50 = vadd.f32 %v1271_v43, %v1260_v41  ;;  %v1272_v51 = vadd.f32 %v1653_v48, %v1493_v39  ;;  %v1234_v53 = vpop.f32.mrb[23].mxu1 }
 0x253   : > { %v1273_v54 = vadd.f32 %v1269_v46, %v1258_v7  ;;  %v1270_v55 = vadd.f32 %v1493_v39, %v1234_v53 }
 0x254   : > { %v1287_v57 = vadd.f32 %v1515_v5, %v1275_v50  ;;  %v1276_v58 = vadd.f32 %v1272_v51, %v1261_v45 }
 0x255   : > { %v1285_v59 = vadd.f32 %v1511_v47, %v1273_v54  ;;  %v1274_v60 = vadd.f32 %v1270_v55, %v1259_v49 }
 0x256   : > { %v1291_v61 = vmul.f32 0.5, %v1287_v57  ;;  %v1288_v62 = vadd.f32 %v1516_v52, %v1276_v58 }
 0x257   : > { %v1289_v63 = vmul.f32 0.5, %v1285_v59  ;;  %v1286_v0 = vadd.f32 %v1512_v56, %v1274_v60 }
 0x258   : > { %v1507_v2 = vpack.c.bf16 %v1291_v61, %v1291_v61  ;;  %v1292_v3 = vmul.f32 0.5, %v1288_v62 }
 0x259   : > { %v1505_v4 = vpack.c.bf16 %v1289_v63, %v1289_v63  ;;  %v1290_v8 = vmul.f32 0.5, %v1286_v0 }
 0x25a   : > { %1312 = vst.msk [vmem:[%s391_s28 + $0x8] sm:$0xf] %vm1309_vm0, %v1507_v2  ;;  %v1508_v9 = vpack.c.bf16 %v1292_v3, %v1292_v3 }
 0x25b   : > { %1310 = vst.msk [vmem:[%s391_s28] sm:$0xf] %vm1309_vm0, %v1505_v4  ;;  %v1506_v10 = vpack.c.bf16 %v1290_v8, %v1290_v8 }
 0x25c   : > { %1313 = vst.msk [vmem:[%s391_s28 + $0xc] sm:$0xf] %vm1309_vm0, %v1508_v9 }
 0x25d   : > { %1311 = vst.msk [vmem:[%s391_s28 + $0x4] sm:$0xf] %vm1309_vm0, %v1506_v10 }
 0x25e PF: > { %s17_s26 = sadd.s32 1, %s1728_s26   ;;  %s2002_s24 = smov %s1724_s25 }
 0x25f   : > { %p14_p5 = scmp.ge.s32.totalorder %s17_s26, 4   ;;  %s2003_s25 = smov %s2005_s27 }
 0x261   :  { %16 = sbr.rel (!%p14_p5) target bundleno = 2 (0x2), region = 92 }

// kernel: generator_forward.21
= control target key start
LH: loop header
LB: loop body
LE: loop exit
PB: predicated region body
PF: predicated region fallthrough
CT: control target
= control target key end

     0   :  { %s1666_s21 = smov 0   ;;  %s1668_s22 = smov 0   ;;  %s1885_s0 = inlined_call_operand.vmem [shape: bf16[2,2,32,8], index: 0, kind: input, shape index: {}, may-alias: {0,1}]   ;;  %s1886_s1 = inlined_call_operand.vmem [shape: bf16[2,2,32,8], index: 1, kind: input, shape index: {}, may-alias: {0,1}]   ;;  %s1887_s2 = inlined_call_operand.vmem [shape: bf16[5,8,8], index: 2, kind: input, shape index: {}]   ;;  %s1888_s3 = inlined_call_operand.vmem [shape: f32[1,8], index: 3, kind: input, shape index: {}]   ;;  %s1889_s4 = inlined_call_operand.vmem [shape: bf16[5,8,8], index: 4, kind: input, shape index: {}]   ;;  %s1890_s5 = inlined_call_operand.vmem [shape: f32[1,8], index: 5, kind: input, shape index: {}]   ;;  %s1891_s6 = inlined_call_operand.vmem [shape: bf16[2,32,8], index: 6, kind: output, shape index: {}]  }
   0x1   :  { %s1670_s23 = smov 0  }
   0x2 LB: > { %s28_s24 = sadd.s32 1, %s1623_s22  ;;  %p1358_p0 = scmp.ge.s32.totalorder %s1627_s23, 1  ;;  %s1627_s23 = sphi %s1670_s23, %s16_s23   ;;  %s1623_s22 = sphi %s1668_s22, %s1893_s22   ;;  %s1619_s21 = sphi %s1666_s21, %s1892_s21  }
   0x3   : > { %p30_p1 = scmp.ge.s32.totalorder %s28_s24, 2  ;;  %p252_p2 = scmp.lt.s32.totalorder %s1627_s23, 3 }
   0x5   : > { %s1895_s24 = smov (%p30_p1, %s28_s24), 0  ;;  %p253_p3 = pnand %p1358_p0, %p252_p2 }
   0x6   : > { %v1368_v0 = vld [vmem:[%s1887_s2 + $0x4] sm:$0xf] (!%p253_p3)  ;;  %vm422_vm0 = vcmask (!%p253_p3), 1043456   ;;  %p300_p4 = scmp.lt.s32.totalorder (!%p253_p3), %s1619_s21, 1  ;;  %v1629_v1 = vmov (!%p253_p3), 0.0   ;;  %vm1630_vm1 = vmmov (!%p253_p3), 0  }
   0x7   : > { %256 = sbr.rel (%p253_p3) target bundleno = 602 (0x25a), region = 44  ;;  %1453 = vmatprep.subr.bf16.mxu0 (!%p253_p3), %v1629_v1  ;;  %v424_v2 = vsel (!%p253_p3), %vm422_vm0, %v1368_v0, 0  ;;  %1455 = vmatprep.mubr.msk.bf16.mxu0 (!%p253_p3), %vm1630_vm1, %v1629_v1  ;;  %v382_v3 = vld [vmem:[%s1887_s2] sm:$0xf] (!%p253_p3)  ;;  %vm385_vm8 = vsmask.f32 (!%p253_p3), 5376 }
   0x8   : > { %1454 = vmatpush3.bf16.msra.mxu0 (!%p253_p3), %v424_v2  ;;  %v1697_v4 = vsel (!%p253_p3), %vm422_vm0, %v382_v3, 0  ;;  %1553 = vmatprep.subr.bf16.mxu1 (!%p253_p3), %v1629_v1  ;;  %vm485_vm9 = vcmask (!%p253_p3), 1045504   ;;  %v1379_v42 = vld [vmem:[%s1887_s2 + $0xc] sm:$0xf] (!%p253_p3)  ;;  %vm412_vm10 = vcmask (!%p253_p3), 64512   ;;  %vm561_vm12 = vcmask (!%p253_p3), 1044480  }
   0x9   : > { %1467 = vmatprep.subr.bf16.mxu0 (!%p253_p3), %v1629_v1  ;;  %1554 = vmatpush3.bf16.msra.mxu1 (!%p253_p3), %v1697_v4  ;;  %v664_v48 = vsel (!%p253_p3), %vm422_vm0, %v1379_v42, 0  ;;  %vm642_vm11 = vsmask.f32 (!%p253_p3), 4352  ;;  %v1375_v62 = vld [vmem:[%s1887_s2 + $0x8] sm:$0xf] (!%p253_p3) }
   0xa   : > { %1473 = vmatprep.mubr.msk.bf16.mxu1 (!%p253_p3), %vm1630_vm1, %v1629_v1  ;;  %1495 = vmatprep.subr.bf16.mxu1 (!%p253_p3), %v1629_v1  ;;  %v577_v2 = vsel (!%p253_p3), %vm422_vm0, %v1375_v62, 0 }
   0xe   : > { %s1897_s21 = smov (!%p300_p4, %s1619_s21), 1 }
   0xf   : > { %s1409_s29 = sshll.u32 %s1897_s21, 5  ;;  %s1412_s13 = sshll.u32 %s1897_s21, 4 }
  0x10   : > { %s308_s8 = scalar_lea.vmem %s1885_s0, %s1409_s29  ;;  %s1411_s9 = sadd.s32 16, %s1409_s29 }
  0x11   : > { %s318_s12 = scalar_lea.vmem %s1886_s1, %s1411_s9  ;;  %v1712_v5 = vld [vmem:[%s308_s8] sm:$0xff]   ;;  %v1714_v6 = vld [vmem:[%s308_s8 + $0x8] sm:$0xff]   ;;  %s328_s16 = scalar_lea.vmem %s1891_s6, %s1412_s13 }
  0x12   : > { %v1716_v7 = vld [vmem:[%s318_s12] sm:$0xff]   ;;  %v355_v8 = vunpack.c.l.bf16 %v1712_v5  ;;  %v356_v9 = vunpack.c.h.bf16 %v1712_v5  ;;  %v357_v10 = vunpack.c.l.bf16 %v1714_v6  ;;  %v358_v11 = vunpack.c.h.bf16 %v1714_v6 }
  0x13   : > { %v359_v12 = vunpack.c.l.bf16 %v1716_v7  ;;  %v360_v13 = vunpack.c.h.bf16 %v1716_v7 }
  0x14   : > { %vm361_vm2 = vcmp.ge.f32.partialorder %v355_v8, 0.0  ;;  %vm362_vm3 = vcmp.ge.f32.partialorder %v356_v9, 0.0  ;;  %vm363_vm4 = vcmp.ge.f32.partialorder %v357_v10, 0.0  ;;  %vm364_vm5 = vcmp.ge.f32.partialorder %v358_v11, 0.0 }
  0x15   : > { %v367_v14 = vmul.f32 0.1, %v355_v8  ;;  %v368_v15 = vmul.f32 0.1, %v356_v9  ;;  %v369_v16 = vmul.f32 0.1, %v357_v10 }
  0x16   : > { %v370_v17 = vmul.f32 0.1, %v358_v11  ;;  %vm365_vm6 = vcmp.ge.f32.partialorder %v359_v12, 0.0  ;;  %vm366_vm7 = vcmp.ge.f32.partialorder %v360_v13, 0.0  ;;  %v371_v18 = vmul.f32 0.1, %v359_v12 }
  0x17   : > { %v373_v19 = vsel %vm361_vm2, %v355_v8, %v367_v14  ;;  %v374_v20 = vsel %vm362_vm3, %v356_v9, %v368_v15  ;;  %v375_v21 = vsel %vm363_vm4, %v357_v10, %v369_v16  ;;  %v372_v22 = vmul.f32 0.1, %v360_v13  ;;  %v1383_v8 = vld [vmem:[%s1887_s2 + $0x10] sm:$0xf] }
  0x18   : > { %v376_v23 = vsel %vm364_vm5, %v358_v11, %v370_v17  ;;  %v1724_v24 = vpack.c.bf16 %v374_v20, %v373_v19  ;;  %v377_v25 = vsel %vm365_vm6, %v359_v12, %v371_v18  ;;  %v745_v10 = vsel %vm422_vm0, %v1383_v8, 0  ;;  %v1388_v18 = vld [vmem:[%s1889_s4 + $0x4] sm:$0xf]  ;;  %v1815_v20 = vld [vmem:[%s1889_s4] sm:$0xf] }
  0x19   : > { %v1726_v26 = vpack.c.bf16 %v376_v23, %v375_v21  ;;  %v378_v27 = vsel %vm366_vm7, %v360_v13, %v372_v22  ;;  %v869_v19 = vsel %vm422_vm0, %v1388_v18, 0  ;;  %vm841_vm2 = vsmask.f32 7424 }
  0x1a   : > { %v387_v28 = vshrl.u32 %v1724_v24, 16  ;;  %v390_v29 = vshll.u32 %v1724_v24, 16  ;;  %v1730_v30 = vpack.c.bf16 %v378_v27, %v377_v25  ;;  %v486_v61 = vrot.slane %v1724_v24, 2 }
  0x1b   : > { %v395_v31 = vshrl.u32 %v1726_v26, 16  ;;  %v398_v32 = vshll.u32 %v1726_v26, 16  ;;  %v487_v35 = vrot.slane %v1726_v26, 2  ;;  %v562_v3 = vrot.slane %v1724_v24, 3 }
  0x1c   : > { %v389_v33 = vrot.slane %v387_v28, 2  ;;  %v392_v34 = vrot.slane %v390_v29, 3  ;;  %v404_v39 = vshrl.u32 %v1730_v30, 16  ;;  %v407_v40 = vshll.u32 %v1730_v30, 16 }
  0x1d   : > { %v397_v36 = vrot.slane %v395_v31, 2  ;;  %v400_v37 = vrot.slane %v398_v32, 3  ;;  %v489_v41 = vrot.slane %v1730_v30, 2  ;;  %v643_v50 = vrot.slane %v387_v28, 3 }
  0x1e   : > { %v393_v38 = vor.u32 %v392_v34, %v389_v33  ;;  %v406_v44 = vrot.slane %v404_v39, 2  ;;  %v409_v45 = vrot.slane %v407_v40, 3  ;;  %v644_v51 = vrot.slane %v390_v29, 4 }
  0x1f   : > { %v401_v43 = vor.u32 %v400_v37, %v397_v36  ;;  %v490_v46 = vsel %vm485_vm9, %v487_v35, %v489_v41  ;;  %v646_v52 = vrot.slane %v395_v31, 3  ;;  %v647_v53 = vrot.slane %v398_v32, 4 }
  0x20   : > { %1474 = vmatmul.mubr.msk.bf16.vlgmr.msra.gmra.mrb[0].mxu1 %vm412_vm10, %v490_v46  ;;  %v410_v49 = vor.u32 %v409_v45, %v406_v44  ;;  %v645_v55 = vor.u32 %v644_v51, %v643_v50  ;;  %v650_v58 = vrot.slane %v404_v39, 3  ;;  %v651_v59 = vrot.slane %v407_v40, 4 }
  0x21   : > { %v402_v47 = vsel %vm385_vm8, %v393_v38, %v401_v43  ;;  %1477 = vmatprep.mubr.msk.bf16.mxu1 %vm1630_vm1, %v1629_v1  ;;  %1496 = vmatpush3.bf16.msra.mxu1 %v664_v48  ;;  %v648_v56 = vor.u32 %v647_v53, %v646_v52  ;;  %v488_v0 = vsel %vm485_vm9, %v486_v61, %v487_v35  ;;  %v565_v11 = vrot.slane %v1730_v30, 3 }
  0x22   : > { %1456 = vmatmul.mubr.msk.bf16.vlgmr.msra.gmra.mrb[0].mxu0 %vm412_vm10, %v402_v47  ;;  %v411_v54 = vsel %vm385_vm8, %v401_v43, %v410_v49  ;;  %v652_v60 = vor.u32 %v651_v59, %v650_v58  ;;  %v730_v13 = vrot.slane %v1724_v24, 4  ;;  %v731_v14 = vrot.slane %v1726_v26, 4  ;;  %1571 = vmatprep.subr.msk.bf16.mxu1 %vm422_vm0, %v1388_v18 }
  0x23   : > { %1468 = vmatpush3.bf16.msra.mxu0 %v1697_v4  ;;  %1459 = vmatprep.mubr.msk.bf16.mxu0 %vm1630_vm1, %v1629_v1  ;;  %v649_v57 = vsel %vm642_vm11, %v645_v55, %v648_v56  ;;  %v563_v4 = vrot.slane %v1726_v26, 3  ;;  %v733_v16 = vrot.slane %v1730_v30, 4  ;;  %vm981_vm3 = vcmask 1046528  }
  0x24   : > { %1481 = vmatprep.subr.bf16.mxu0 %v1629_v1  ;;  %v653_v63 = vsel %vm642_vm11, %v648_v56, %v652_v60  ;;  %v732_v15 = vsel %vm422_vm0, %v730_v13, %v731_v14  ;;  %vm1051_vm5 = vsmask.f32 6400 }
  0x25   : > { %v564_v9 = vsel %vm561_vm12, %v562_v3, %v563_v4  ;;  %v566_v12 = vsel %vm561_vm12, %v563_v4, %v565_v11  ;;  %v734_v17 = vsel %vm422_vm0, %v731_v14, %v733_v16 }
  0x28   : > { %1478 = vmatmul.mubr.msk.bf16.gmra.mrb[4].mxu1 %vm412_vm10, %v489_v41 }
  0x29   : > { %1497 = vmatprep.mubr.msk.bf16.mxu1 %vm1630_vm1, %v1629_v1 }
  0x2a   : > { %1460 = vmatmul.mubr.msk.bf16.gmra.mrb[4].mxu0 %vm412_vm10, %v411_v54 }
  0x2b   : > { %1463 = vmatprep.mubr.msk.bf16.mxu0 %vm1630_vm1, %v1629_v1 }
  0x30   : > { %1498 = vmatmul.mubr.msk.bf16.vlgmr.msra.gmra.mrb[8].mxu1 %vm412_vm10, %v649_v57 }
  0x31   : > { %1501 = vmatprep.mubr.msk.bf16.mxu1 %vm1630_vm1, %v1629_v1  ;;  %1524 = vmatpush3.bf16.msra.mxu1 %v869_v19 }
  0x32   : > { %1464 = vmatmul.mubr.msk.bf16.gmra.mrb[8].mxu0 %vm412_vm10, %v410_v49  ;;  %1572 = vmatprep.subr.msk.bf16.mxu1 %vm422_vm0, %v1815_v20 }
  0x33   : > { %1469 = vmatprep.mubr.msk.bf16.mxu0 %vm1630_vm1, %v1629_v1 }
  0x38   : > { %1502 = vmatmul.mubr.msk.bf16.gmra.mrb[12].mxu1 %vm412_vm10, %v653_v63 }
  0x39   : > { %1505 = vmatprep.mubr.msk.bf16.mxu1 %vm1630_vm1, %v1629_v1 }
  0x3a   : > { %1470 = vmatmul.mubr.msk.bf16.vlgmr.msra.gmra.mrb[12].mxu0 %vm412_vm10, %v488_v0 }
  0x3b   : > { %1482 = vmatpush3.bf16.msra.mxu0 %v577_v2  ;;  %1483 = vmatprep.mubr.msk.bf16.mxu0 %vm1630_vm1, %v1629_v1 }
  0x3c   : > { %1509 = vmatprep.subr.bf16.mxu0 %v1629_v1 }
  0x40   : > { %1506 = vmatmul.mubr.msk.bf16.gmra.mrb[16].mxu1 %vm412_vm10, %v652_v60 }
  0x42   : > { %1484 = vmatmul.mubr.msk.bf16.vlgmr.msra.gmra.mrb[16].mxu0 %vm412_vm10, %v564_v9 }
  0x43   : > { %1510 = vmatpush3.bf16.msra.mxu0 %v745_v10  ;;  %1487 = vmatprep.mubr.msk.bf16.mxu0 %vm1630_vm1, %v1629_v1 }
  0x4a   : > { %1488 = vmatmul.mubr.msk.bf16.gmra.mrb[20].mxu0 %vm412_vm10, %v566_v12 }
  0x4b   : > { %1491 = vmatprep.mubr.msk.bf16.mxu0 %vm1630_vm1, %v1629_v1 }
  0x52   : > { %1492 = vmatmul.mubr.msk.bf16.gmra.mrb[24].mxu0 %vm412_vm10, %v565_v11 }
  0x53   : > { %1511 = vmatprep.mubr.msk.bf16.mxu0 %vm1630_vm1, %v1629_v1 }
  0x5a   : > { %1512 = vmatmul.mubr.msk.bf16.vlgmr.msra.gmra.mrb[28].mxu0 %vm412_vm10, %v732_v15 }
  0x5b   : > { %1515 = vmatprep.mubr.msk.bf16.mxu0 %vm1630_vm1, %v1629_v1 }
  0x62   : > { %1516 = vmatmul.mubr.msk.bf16.gmra.mrb[32].mxu0 %vm412_vm10, %v734_v17 }
  0x63   : > { %1519 = vmatprep.mubr.msk.bf16.mxu0 %vm1630_vm1, %v1629_v1 }
  0x6a   : > { %1520 = vmatmul.mubr.msk.bf16.gmra.mrb[36].mxu0 %vm412_vm10, %v733_v16 }
  0xf3   : > { %v545_v1 = vpop.f32.mrb[0].mxu1 }
  0xf4   : > { %v1475_v22 = vpop.f32.mrb[1].mxu1 }
  0xf5   : > { %v460_v21 = vpop.f32.mrb[0].mxu0  ;;  %v548_v24 = vpop.f32.mrb[2].mxu1 }
  0xf6   : > { %v1457_v23 = vpop.f32.mrb[1].mxu0  ;;  %v1476_v26 = vpop.f32.mrb[3].mxu1 }
  0xf7   : > { %v463_v25 = vpop.f32.mrb[2].mxu0 }
  0xf8   : > { %v1458_v27 = vpop.f32.mrb[3].mxu0 }
  0xfb   : > { %v553_v28 = vpop.f32.mrb[4].mxu1 }
  0xfc   : > { %v1479_v30 = vpop.f32.mrb[5].mxu1 }
  0xfd   : > { %v468_v29 = vpop.f32.mrb[4].mxu0  ;;  %v556_v33 = vpop.f32.mrb[6].mxu1 }
  0xfe   : > { %v546_v31 = vadd.f32 %v545_v1, %v468_v29  ;;  %v1461_v32 = vpop.f32.mrb[5].mxu0  ;;  %v1480_v35 = vpop.f32.mrb[7].mxu1 }
  0xff   : > { %v471_v34 = vpop.f32.mrb[6].mxu0 }
 0x100   : > { %v549_v36 = vadd.f32 %v548_v24, %v471_v34  ;;  %v1462_v37 = vpop.f32.mrb[7].mxu0  ;;  %v1387_v24 = vld [vmem:[%s1888_s3] ss:$0 sm:$0xff] }
 0x103   : > { %v700_v38 = vpop.f32.mrb[8].mxu1 }
 0x104   : > { %v1499_v40 = vpop.f32.mrb[9].mxu1 }
 0x105   : > { %v476_v39 = vpop.f32.mrb[8].mxu0  ;;  %v703_v43 = vpop.f32.mrb[10].mxu1 }
 0x106   : > { %v554_v41 = vadd.f32 %v553_v28, %v476_v39  ;;  %v1465_v42 = vpop.f32.mrb[9].mxu0  ;;  %v1500_v45 = vpop.f32.mrb[11].mxu1 }
 0x107   : > { %v479_v44 = vpop.f32.mrb[10].mxu0 }
 0x108   : > { %v1466_v46 = vpop.f32.mrb[11].mxu0 }
 0x10b   : > { %v708_v47 = vpop.f32.mrb[12].mxu1 }
 0x10c   : > { %v1503_v49 = vpop.f32.mrb[13].mxu1 }
 0x10d   : > { %v537_v48 = vpop.f32.mrb[12].mxu0  ;;  %v711_v52 = vpop.f32.mrb[14].mxu1 }
 0x10e   : > { %v538_v50 = vadd.f32 %v537_v48, %v460_v21  ;;  %v1471_v51 = vpop.f32.mrb[13].mxu0  ;;  %v1504_v54 = vpop.f32.mrb[15].mxu1 }
 0x10f   : > { %v540_v53 = vpop.f32.mrb[14].mxu0 }
 0x110   : > { %v541_v55 = vadd.f32 %v540_v53, %v463_v25  ;;  %v1472_v56 = vpop.f32.mrb[15].mxu0 }
 0x113   : > { %v716_v57 = vpop.f32.mrb[16].mxu1 }
 0x114   : > { %v1507_v59 = vpop.f32.mrb[17].mxu1 }
 0x115   : > { %v613_v58 = vpop.f32.mrb[16].mxu0  ;;  %v719_v62 = vpop.f32.mrb[18].mxu1 }
 0x116   : > { %v635_v60 = vadd.f32 %v613_v58, %v538_v50  ;;  %v1485_v61 = vpop.f32.mrb[17].mxu0  ;;  %v1508_v0 = vpop.f32.mrb[19].mxu1 }
 0x117   : > { %v616_v63 = vpop.f32.mrb[18].mxu0 }
 0x118   : > { %v636_v2 = vadd.f32 %v616_v63, %v541_v55  ;;  %v722_v3 = vadd.f32 %v700_v38, %v635_v60  ;;  %v1486_v4 = vpop.f32.mrb[19].mxu0 }
 0x11a   : > { %v723_v8 = vadd.f32 %v703_v43, %v636_v2 }
 0x11d   : > { %v621_v9 = vpop.f32.mrb[20].mxu0 }
 0x11e   : > { %v637_v10 = vadd.f32 %v621_v9, %v546_v31  ;;  %v1489_v11 = vpop.f32.mrb[21].mxu0 }
 0x11f   : > { %v624_v12 = vpop.f32.mrb[22].mxu0 }
 0x120   : > { %v638_v13 = vadd.f32 %v624_v12, %v549_v36  ;;  %v724_v14 = vadd.f32 %v708_v47, %v637_v10  ;;  %v1490_v15 = vpop.f32.mrb[23].mxu0 }
 0x122   : > { %v725_v16 = vadd.f32 %v711_v52, %v638_v13 }
 0x125   : > { %v629_v17 = vpop.f32.mrb[24].mxu0 }
 0x126   : > { %v639_v18 = vadd.f32 %v629_v17, %v554_v41  ;;  %v1493_v19 = vpop.f32.mrb[25].mxu0 }
 0x127   : > { %v632_v1 = vpop.f32.mrb[26].mxu0 }
 0x128   : > { %v726_v21 = vadd.f32 %v716_v57, %v639_v18  ;;  %v1494_v22 = vpop.f32.mrb[27].mxu0 }
 0x12d   : > { %v781_v23 = vpop.f32.mrb[28].mxu0 }
 0x12e   : > { %v803_v25 = vadd.f32 %v781_v23, %v722_v3  ;;  %v1513_v26 = vpop.f32.mrb[29].mxu0 }
 0x12f   : > { %v784_v27 = vpop.f32.mrb[30].mxu0 }
 0x130   : > { %v815_v28 = vadd.f32 %v1387_v24, %v803_v25  ;;  %v804_v29 = vadd.f32 %v784_v27, %v723_v8  ;;  %v1514_v30 = vpop.f32.mrb[31].mxu0 }
 0x132   : > { %v825_v31 = vmul.f32 0.1, %v815_v28  ;;  %v816_v32 = vadd.f32 %v1387_v24, %v804_v29  ;;  %vm820_vm13 = vcmp.ge.f32.partialorder %v815_v28, 0.0  ;;  %v925_v29 = vsel %vm422_vm0, %v1815_v20, 0 }
 0x134   : > { %vm821_vm14 = vcmp.ge.f32.partialorder %v816_v32, 0.0  ;;  %v826_v33 = vmul.f32 0.1, %v816_v32  ;;  %v830_v35 = vsel %vm820_vm13, %v815_v28, %v825_v31 }
 0x135   : > { %v789_v34 = vpop.f32.mrb[32].mxu0 }
 0x136   : > { %v831_v36 = vsel %vm821_vm14, %v816_v32, %v826_v33  ;;  %v805_v37 = vadd.f32 %v789_v34, %v724_v14  ;;  %v1517_v38 = vpop.f32.mrb[33].mxu0  ;;  %v1393_v32 = vld [vmem:[%s1889_s4 + $0x8] sm:$0xf] }
 0x137   : > { %v1822_v39 = vpack.c.bf16 %v831_v36, %v830_v35  ;;  %v792_v40 = vpop.f32.mrb[34].mxu0  ;;  %v994_v20 = vsel %vm422_vm0, %v1393_v32, 0  ;;  %v1396_v35 = vld [vmem:[%s1889_s4 + $0xc] sm:$0xf] }
 0x138   : > { %v817_v41 = vadd.f32 %v1387_v24, %v805_v37  ;;  %v806_v42 = vadd.f32 %v792_v40, %v725_v16  ;;  %v1518_v43 = vpop.f32.mrb[35].mxu0  ;;  %v1072_v36 = vsel %vm422_vm0, %v1396_v35, 0  ;;  %v1399_v37 = vld [vmem:[%s1889_s4 + $0x10] sm:$0xf]  ;;  %v1199_v40 = vrot.slane %v1716_v7, 4 }
 0x139   : > { %v845_v46 = vshll.u32 %v1822_v39, 16  ;;  %v843_v48 = vshrl.u32 %v1822_v39, 16  ;;  %v982_v59 = vrot.slane %v1822_v39, 1  ;;  %v1129_v8 = vrot.slane %v1822_v39, 2 }
 0x13a   : > { %v827_v44 = vmul.f32 0.1, %v817_v41  ;;  %v818_v45 = vadd.f32 %v1387_v24, %v806_v42  ;;  %vm822_vm15 = vcmp.ge.f32.partialorder %v817_v41, 0.0  ;;  %v1141_v38 = vsel %vm422_vm0, %v1399_v37, 0 }
 0x13b   : > { %v847_v54 = vrot.slane %v845_v46, 1  ;;  %v1052_v60 = vrot.slane %v843_v48, 1  ;;  %v1053_v61 = vrot.slane %v845_v46, 2 }
 0x13c   : > { %vm823_vm1 = vcmp.ge.f32.partialorder %v818_v45, 0.0  ;;  %v828_v47 = vmul.f32 0.1, %v818_v45  ;;  %v832_v50 = vsel %vm822_vm15, %v817_v41, %v827_v44  ;;  %v1196_v41 = vrot.slane %v1712_v5, 4  ;;  %v1402_v44 = vld [vmem:[%s1890_s5] ss:$0 sm:$0xff] }
 0x13d   : > { %v797_v49 = vpop.f32.mrb[36].mxu0  ;;  %v848_v4 = vor.u32 %v847_v54, %v843_v48  ;;  %v1054_v17 = vor.u32 %v1053_v61, %v1052_v60 }
 0x13e   : > { %v833_v51 = vsel %vm823_vm1, %v818_v45, %v828_v47  ;;  %v807_v52 = vadd.f32 %v797_v49, %v726_v21  ;;  %v1521_v53 = vpop.f32.mrb[37].mxu0 }
 0x13f   : > { %v836_v55 = vpack.c.bf16 %v833_v51, %v832_v50  ;;  %v800_v56 = vpop.f32.mrb[38].mxu0 }
 0x140   : > { %v819_v57 = vadd.f32 %v1387_v24, %v807_v52  ;;  %v1522_v58 = vpop.f32.mrb[39].mxu0 }
 0x141   : > { %v850_v62 = vshll.u32 %v836_v55, 16  ;;  %v854_v63 = vshrl.u32 %v836_v55, 16  ;;  %v983_v0 = vrot.slane %v836_v55, 1  ;;  %v1130_v2 = vrot.slane %v836_v55, 2 }
 0x142   : > { %vm824_vm4 = vcmp.ge.f32.partialorder %v819_v57, 0.0  ;;  %v829_v3 = vmul.f32 0.1, %v819_v57 }
 0x143   : > { %v852_v9 = vrot.slane %v850_v62, 1  ;;  %v984_v10 = vsel %vm981_vm3, %v982_v59, %v983_v0  ;;  %v1055_v11 = vrot.slane %v854_v63, 1  ;;  %v1056_v12 = vrot.slane %v850_v62, 2 }
 0x144   : > { %v834_v13 = vsel %vm824_vm4, %v819_v57, %v829_v3  ;;  %v1131_v14 = vsel %vm485_vm9, %v1129_v8, %v1130_v2 }
 0x145   : > { %v837_v15 = vpack.c.bf16 %v834_v13, %v834_v13  ;;  %v853_v16 = vsel %vm841_vm2, %v848_v4, %v852_v9  ;;  %v1057_v18 = vor.u32 %v1056_v12, %v1055_v11  ;;  %v856_v23 = vor.u32 %v854_v63, %v852_v9 }
 0x146   : > { %1525 = vmatprep.mubr.msk.bf16.mxu1 %vm412_vm10, %v853_v16 }
 0x147   : > { %v858_v19 = vshll.u32 %v837_v15, 16  ;;  %v985_v1 = vrot.slane %v837_v15, 1  ;;  %v1058_v21 = vsel %vm1051_vm5, %v1054_v17, %v1057_v18  ;;  %v1059_v22 = vshrl.u32 %v837_v15, 16 }
 0x148   : > { %v1132_v24 = vrot.slane %v837_v15, 2 }
 0x149   : > { %v860_v25 = vrot.slane %v858_v19, 1  ;;  %v986_v26 = vsel %vm981_vm3, %v983_v0, %v985_v1  ;;  %v1061_v27 = vrot.slane %v1059_v22, 1  ;;  %v1062_v28 = vrot.slane %v858_v19, 2 }
 0x14a   : > { %v1133_v30 = vsel %vm485_vm9, %v1130_v2, %v1132_v24 }
 0x14b   : > { %v861_v31 = vsel %vm841_vm2, %v856_v23, %v860_v25  ;;  %v1063_v33 = vor.u32 %v1062_v28, %v1061_v27 }
 0x14c   : > { %1526 = vmatmul.mubr.msk.bf16.vlgmr.msra.gmra.mrb[20].mxu1 %vm412_vm10, %v861_v31 }
 0x14d   : > { %1530 = vmatpush3.bf16.msra.mxu1 %v925_v29  ;;  %1531 = vmatprep.mubr.msk.bf16.mxu1 %vm412_vm10, %v1822_v39  ;;  %v1064_v34 = vsel %vm1051_vm5, %v1057_v18, %v1063_v33  ;;  %v1197_v39 = vrot.slane %v1714_v6, 4 }
 0x14e   : > { %1573 = vmatprep.subr.msk.bf16.mxu1 %vm422_vm0, %v1393_v32 }
 0x14f   : > { %v1200_v42 = vsel %vm422_vm0, %v1197_v39, %v1199_v40  ;;  %v1198_v43 = vsel %vm422_vm0, %v1196_v41, %v1197_v39 }
 0x150   : > { %v1205_v45 = vunpack.c.l.bf16 %v1200_v42  ;;  %v1203_v47 = vunpack.c.l.bf16 %v1198_v43  ;;  %v1206_v50 = vunpack.c.h.bf16 %v1200_v42  ;;  %v1204_v7 = vunpack.c.h.bf16 %v1198_v43 }
 0x158   : > { %1532 = vmatmul.mubr.msk.bf16.vlgmr.msra.gmra.mrb[20].mxu1 %vm412_vm10, %v836_v55 }
 0x159   : > { %1536 = vmatpush3.bf16.msra.mxu1 %v994_v20  ;;  %1537 = vmatprep.mubr.msk.bf16.mxu1 %vm412_vm10, %v984_v10 }
 0x15a   : > { %1574 = vmatprep.subr.msk.bf16.mxu1 %vm422_vm0, %v1396_v35 }
 0x164   : > { %1538 = vmatmul.mubr.msk.bf16.vlgmr.msra.gmra.mrb[20].mxu1 %vm412_vm10, %v986_v26 }
 0x165   : > { %1542 = vmatpush3.bf16.msra.mxu1 %v1072_v36  ;;  %1543 = vmatprep.mubr.msk.bf16.mxu1 %vm412_vm10, %v1058_v21 }
 0x166   : > { %1575 = vmatprep.subr.msk.bf16.mxu1 %vm422_vm0, %v1399_v37  ;;  %vm1238_vm0 = vcmask 60416  }
 0x170   : > { %1544 = vmatmul.mubr.msk.bf16.vlgmr.msra.gmra.mrb[20].mxu1 %vm412_vm10, %v1064_v34 }
 0x171   : > { %1548 = vmatpush3.bf16.msra.mxu1 %v1141_v38  ;;  %1549 = vmatprep.mubr.msk.bf16.mxu1 %vm412_vm10, %v1131_v14 }
 0x17c   : > { %1550 = vmatmul.mubr.msk.bf16.vlgmr.msra.gmra.mrb[20].mxu1 %vm412_vm10, %v1133_v30 }
 0x24f   : > { %v1551_v46 = vpop.f32.mrb[20].mxu1 }
 0x250   : > { %v1216_v48 = vadd.f32 %v1551_v46, %v1402_v44  ;;  %v1177_v49 = vpop.f32.mrb[21].mxu1 }
 0x251   : > { %v1214_v6 = vadd.f32 %v1402_v44, %v1177_v49  ;;  %v1552_v51 = vpop.f32.mrb[22].mxu1 }
 0x252   : > { %v1220_v52 = vadd.f32 %v1216_v48, %v1205_v45  ;;  %v1217_v5 = vadd.f32 %v1552_v51, %v1402_v44  ;;  %v1180_v53 = vpop.f32.mrb[23].mxu1 }
 0x253   : > { %v1218_v54 = vadd.f32 %v1214_v6, %v1203_v47  ;;  %v1215_v55 = vadd.f32 %v1402_v44, %v1180_v53 }
 0x254   : > { %v1415_v56 = vpack.c.bf16 %v1220_v52, %v1220_v52  ;;  %v1221_v57 = vadd.f32 %v1217_v5, %v1206_v50 }
 0x255   : > { %v1413_v58 = vpack.c.bf16 %v1218_v54, %v1218_v54  ;;  %v1219_v59 = vadd.f32 %v1215_v55, %v1204_v7 }
 0x256   : > { %1241 = vst.msk [vmem:[%s328_s16 + $0x8] sm:$0xf] %vm1238_vm0, %v1415_v56  ;;  %v1416_v60 = vpack.c.bf16 %v1221_v57, %v1221_v57 }
 0x257   : > { %1239 = vst.msk [vmem:[%s328_s16] sm:$0xf] %vm1238_vm0, %v1413_v58  ;;  %v1414_v61 = vpack.c.bf16 %v1219_v59, %v1219_v59 }
 0x258   : > { %1242 = vst.msk [vmem:[%s328_s16 + $0xc] sm:$0xf] %vm1238_vm0, %v1416_v60 }
 0x259   : > { %1240 = vst.msk [vmem:[%s328_s16 + $0x4] sm:$0xf] %vm1238_vm0, %v1414_v61 }
 0x25a PF: > { %s16_s23 = sadd.s32 1, %s1627_s23   ;;  %s1892_s21 = smov %s1623_s22 }
 0x25b   : > { %p13_p5 = scmp.ge.s32.totalorder %s16_s23, 4   ;;  %s1893_s22 = smov %s1895_s24 }
 0x25d   :  { %15 = sbr.rel (!%p13_p5) target bundleno = 2 (0x2), region = 85 }

// kernel: generator_forward.23
= control target key start
LH: loop header
LB: loop body
LE: loop exit
PB: predicated region body
PF: predicated region fallthrough
CT: control target
= control target key end

     0   :  { %s1209_s17 = smov 0   ;;  %s1211_s18 = smov 0   ;;  %s1356_s0 = inlined_call_operand.vmem [shape: bf16[2,2,32,8], index: 0, kind: input, shape index: {}, may-alias: {0,1}]   ;;  %s1357_s1 = inlined_call_operand.vmem [shape: bf16[2,2,32,8], index: 1, kind: input, shape index: {}, may-alias: {0,1}]   ;;  %s1358_s2 = inlined_call_operand.vmem [shape: bf16[7,8,1], index: 2, kind: input, shape index: {}]   ;;  %s1359_s3 = inlined_call_operand.<no memory space> [shape: f32[1,1], index: 3, kind: input, shape index: {}]   ;;  %s1360_s4 = inlined_call_operand.vmem [shape: f32[2,32,1], index: 4, kind: output, shape index: {}]  }
   0x1   :  { %v9_v0 = vstv %s1359_s3  ;;  %s1213_s19 = smov 0  }
   0x2   :  { %10 = vst [vmem:[#allocation2] sm:$0x1] %v9_v0 }
   0x3 LB: > { %s28_s3 = sadd.s32 1, %s1175_s18  ;;  %p990_p0 = scmp.ge.s32.totalorder %s1179_s19, 1  ;;  %s1179_s19 = sphi %s1213_s19, %s16_s19   ;;  %s1175_s18 = sphi %s1211_s18, %s1362_s18   ;;  %s1171_s17 = sphi %s1209_s17, %s1361_s17  }
   0x4   : > { %p30_p1 = scmp.ge.s32.totalorder %s28_s3, 2  ;;  %p204_p2 = scmp.lt.s32.totalorder %s1179_s19, 3 }
   0x6   : > { %s1364_s3 = smov (%p30_p1, %s28_s3), 0  ;;  %p205_p3 = pnand %p990_p0, %p204_p2 }
   0x7   : > { %vm349_vm0 = vcmask (!%p205_p3), 1043456   ;;  %v1008_v1 = vld [vmem:[%s1358_s2 + $0xc] sm:$0xf] (!%p205_p3)  ;;  %v1000_v2 = vld [vmem:[%s1358_s2 + $0x4] sm:$0xf] (!%p205_p3)  ;;  %p248_p4 = scmp.lt.s32.totalorder (!%p205_p3), %s1171_s17, 1 }
   0x8   : > { %208 = sbr.rel (%p205_p3) target bundleno = 299 (0x12b), region = 36  ;;  %1118 = vmatprep.subr.msk.bf16.mxu0 (!%p205_p3), %vm349_vm0, %v1008_v1  ;;  %1115 = vmatprep.subr.msk.bf16.mxu1 (!%p205_p3), %vm349_vm0, %v1000_v2  ;;  %v578_v3 = vsel (!%p205_p3), %vm349_vm0, %v1008_v1, 0  ;;  %v351_v4 = vsel (!%p205_p3), %vm349_vm0, %v1000_v2, 0  ;;  %v1011_v5 = vld [vmem:[%s1358_s2 + $0x10] sm:$0xf] (!%p205_p3)  ;;  %vm336_vm1 = vcmask (!%p205_p3), 1044480  }
   0x9   : > { %1068 = vmatpush3.bf16.msra.mxu0 (!%p205_p3), %v578_v3  ;;  %1050 = vmatpush3.bf16.msra.mxu1 (!%p205_p3), %v351_v4  ;;  %v330_v6 = vld [vmem:[%s1358_s2] sm:$0xf] (!%p205_p3)  ;;  %vm342_vm2 = vcmask (!%p205_p3), 64512   ;;  %v654_v16 = vsel (!%p205_p3), %vm349_vm0, %v1011_v5, 0  ;;  %vm402_vm9 = vsmask.f32 (!%p205_p3), 5376 }
   0xa   : > { %1119 = vmatprep.subr.msk.bf16.mxu0 (!%p205_p3), %vm349_vm0, %v1011_v5  ;;  %1116 = vmatprep.subr.msk.bf16.mxu1 (!%p205_p3), %vm349_vm0, %v330_v6  ;;  %v436_v31 = vsel (!%p205_p3), %vm349_vm0, %v330_v6, 0  ;;  %vm635_vm10 = vsmask.f32 (!%p205_p3), 3328  ;;  %v1014_v52 = vld [vmem:[%s1358_s2 + $0x14] sm:$0xf] (!%p205_p3)  ;;  %vm711_vm12 = vcmask (!%p205_p3), 1042432  }
   0xb   : > { %v1005_v53 = vld [vmem:[%s1358_s2 + $0x8] sm:$0xf] (!%p205_p3)  ;;  %vm489_vm11 = vsmask.f32 (!%p205_p3), 4352  ;;  %vm781_vm13 = vsmask.f32 (!%p205_p3), 2304 }
   0xc   : > { %vm870_vm14 = vcmask (!%p205_p3), 7168  }
   0xf   : > { %s1366_s17 = smov (!%p248_p4, %s1171_s17), 1 }
  0x10   : > { %s1245_s28 = sshll.u32 %s1366_s17, 5 }
  0x11   : > { %s256_s5 = scalar_lea.vmem %s1356_s0, %s1245_s28  ;;  %s1025_s6 = sadd.s32 16, %s1245_s28 }
  0x12   : > { %s266_s9 = scalar_lea.vmem %s1357_s1, %s1025_s6  ;;  %v1146_v7 = vld [vmem:[%s256_s5] sm:$0xff]   ;;  %v1147_v8 = vld [vmem:[%s256_s5 + $0x8] sm:$0xff]   ;;  %s276_s20 = scalar_lea.vmem %s1360_s4, %s1245_s28 }
  0x13   : > { %v1148_v9 = vld [vmem:[%s266_s9] sm:$0xff]   ;;  %v303_v10 = vunpack.c.l.bf16 %v1146_v7  ;;  %v304_v11 = vunpack.c.h.bf16 %v1146_v7  ;;  %v305_v12 = vunpack.c.l.bf16 %v1147_v8  ;;  %v306_v13 = vunpack.c.h.bf16 %v1147_v8 }
  0x14   : > { %v307_v14 = vunpack.c.l.bf16 %v1148_v9  ;;  %v308_v15 = vunpack.c.h.bf16 %v1148_v9 }
  0x15   : > { %vm309_vm3 = vcmp.ge.f32.partialorder %v303_v10, 0.0  ;;  %vm310_vm4 = vcmp.ge.f32.partialorder %v304_v11, 0.0  ;;  %vm311_vm5 = vcmp.ge.f32.partialorder %v305_v12, 0.0  ;;  %vm312_vm6 = vcmp.ge.f32.partialorder %v306_v13, 0.0 }
  0x16   : > { %v315_v17 = vmul.f32 0.01, %v303_v10  ;;  %v316_v18 = vmul.f32 0.01, %v304_v11  ;;  %v317_v19 = vmul.f32 0.01, %v305_v12 }
  0x17   : > { %v318_v20 = vmul.f32 0.01, %v306_v13  ;;  %vm313_vm7 = vcmp.ge.f32.partialorder %v307_v14, 0.0  ;;  %vm314_vm8 = vcmp.ge.f32.partialorder %v308_v15, 0.0  ;;  %v319_v21 = vmul.f32 0.01, %v307_v14 }
  0x18   : > { %v321_v22 = vsel %vm309_vm3, %v303_v10, %v315_v17  ;;  %v322_v23 = vsel %vm310_vm4, %v304_v11, %v316_v18  ;;  %v323_v24 = vsel %vm311_vm5, %v305_v12, %v317_v19  ;;  %v320_v25 = vmul.f32 0.01, %v308_v15 }
  0x19   : > { %v324_v26 = vsel %vm312_vm6, %v306_v13, %v318_v20  ;;  %v1256_v27 = vpack.c.bf16 %v322_v23, %v321_v22  ;;  %v325_v28 = vsel %vm313_vm7, %v307_v14, %v319_v21  ;;  %v724_v17 = vsel %vm349_vm0, %v1014_v52, 0  ;;  %v1017_v21 = vld [vmem:[%s1358_s2 + $0x18] sm:$0xf] }
  0x1a   : > { %v1258_v29 = vpack.c.bf16 %v324_v26, %v323_v24  ;;  %v326_v30 = vsel %vm314_vm8, %v308_v15, %v320_v25  ;;  %v508_v18 = vsel %vm349_vm0, %v1005_v53, 0 }
  0x1b   : > { %v337_v32 = vrot.slane %v1256_v27, 3  ;;  %v566_v33 = vrot.slane %v1256_v27, 4  ;;  %v1263_v34 = vpack.c.bf16 %v326_v30, %v325_v28  ;;  %v1266_v35 = vshrl.u32 %v1256_v27, 16 }
  0x1c   : > { %v338_v36 = vrot.slane %v1258_v29, 3  ;;  %v567_v37 = vrot.slane %v1258_v29, 4  ;;  %v1271_v38 = vshll.u32 %v1256_v27, 16  ;;  %v1274_v39 = vshrl.u32 %v1258_v29, 16 }
  0x1d   : > { %v340_v40 = vrot.slane %v1263_v34, 3  ;;  %v569_v41 = vrot.slane %v1263_v34, 4  ;;  %v406_v42 = vrot.slane %v1266_v35, 2  ;;  %v1280_v43 = vshll.u32 %v1258_v29, 16 }
  0x1e   : > { %v339_v44 = vsel %vm336_vm1, %v337_v32, %v338_v36  ;;  %v568_v45 = vsel %vm349_vm0, %v566_v33, %v567_v37  ;;  %v409_v46 = vrot.slane %v1271_v38, 3  ;;  %v414_v47 = vrot.slane %v1274_v39, 2 }
  0x1f   : > { %1051 = vmatprep.mubr.msk.bf16.mxu1 %vm342_vm2, %v339_v44  ;;  %1069 = vmatprep.mubr.msk.bf16.mxu0 %vm342_vm2, %v568_v45  ;;  %v341_v48 = vsel %vm336_vm1, %v338_v36, %v340_v40  ;;  %v570_v49 = vsel %vm349_vm0, %v567_v37, %v569_v41  ;;  %v417_v50 = vrot.slane %v1280_v43, 3  ;;  %v636_v51 = vrot.slane %v1266_v35, 4  ;;  %v1020_v45 = vld [vmem:[#allocation2] ss:$0 sm:$0xff] }
  0x20   : > { %1052 = vmatmul.mubr.msk.bf16.vlgmr.msra.gmra.mrb[0].mxu1 %vm342_vm2, %v341_v48  ;;  %1070 = vmatmul.mubr.msk.bf16.vlgmr.msra.gmra.mrb[0].mxu0 %vm342_vm2, %v570_v49  ;;  %v410_v54 = vor.u32 %v409_v46, %v406_v42  ;;  %v637_v55 = vrot.slane %v1271_v38, 5  ;;  %v639_v56 = vrot.slane %v1274_v39, 4  ;;  %v640_v57 = vrot.slane %v1280_v43, 5 }
  0x21   : > { %1074 = vmatpush3.bf16.msra.mxu0 %v654_v16  ;;  %1056 = vmatpush3.bf16.msra.mxu1 %v436_v31  ;;  %v418_v58 = vor.u32 %v417_v50, %v414_v47  ;;  %v421_v59 = vshrl.u32 %v1263_v34, 16  ;;  %v424_v60 = vshll.u32 %v1263_v34, 16  ;;  %v490_v61 = vrot.slane %v1266_v35, 3 }
  0x22   : > { %v638_v62 = vor.u32 %v637_v55, %v636_v51  ;;  %v641_v63 = vor.u32 %v640_v57, %v639_v56  ;;  %1120 = vmatprep.subr.msk.bf16.mxu0 %vm349_vm0, %v1014_v52  ;;  %1117 = vmatprep.subr.msk.bf16.mxu1 %vm349_vm0, %v1005_v53  ;;  %v491_v0 = vrot.slane %v1271_v38, 4  ;;  %v493_v1 = vrot.slane %v1274_v39, 3 }
  0x23   : > { %v419_v2 = vsel %vm402_vm9, %v410_v54, %v418_v58  ;;  %v423_v3 = vrot.slane %v421_v59, 2  ;;  %v426_v4 = vrot.slane %v424_v60, 3  ;;  %v643_v5 = vrot.slane %v421_v59, 4 }
  0x24   : > { %1057 = vmatprep.mubr.msk.bf16.mxu1 %vm342_vm2, %v419_v2  ;;  %v642_v6 = vsel %vm635_vm10, %v638_v62, %v641_v63  ;;  %v644_v7 = vrot.slane %v424_v60, 5  ;;  %v494_v8 = vrot.slane %v1280_v43, 4  ;;  %v492_v11 = vor.u32 %v491_v0, %v490_v61 }
  0x25   : > { %1075 = vmatprep.mubr.msk.bf16.mxu0 %vm342_vm2, %v642_v6  ;;  %v427_v9 = vor.u32 %v426_v4, %v423_v3  ;;  %v712_v13 = vrot.slane %v1256_v27, 5  ;;  %v713_v14 = vrot.slane %v1258_v29, 5  ;;  %v497_v22 = vrot.slane %v421_v59, 3 }
  0x26   : > { %v645_v10 = vor.u32 %v644_v7, %v643_v5  ;;  %v495_v12 = vor.u32 %v494_v8, %v493_v1  ;;  %v498_v23 = vrot.slane %v424_v60, 4  ;;  %v782_v24 = vrot.slane %v1266_v35, 5 }
  0x27   : > { %v428_v15 = vsel %vm402_vm9, %v418_v58, %v427_v9  ;;  %v714_v20 = vsel %vm711_vm12, %v712_v13, %v713_v14  ;;  %v783_v25 = vrot.slane %v1271_v38, 6  ;;  %v785_v26 = vrot.slane %v1274_v39, 5 }
  0x28   : > { %v646_v16 = vsel %vm635_vm10, %v641_v63, %v645_v10  ;;  %v496_v19 = vsel %vm489_vm11, %v492_v11, %v495_v12  ;;  %v786_v27 = vrot.slane %v1280_v43, 6  ;;  %v499_v28 = vor.u32 %v498_v23, %v497_v22 }
  0x29   : > { %v715_v29 = vrot.slane %v1263_v34, 5  ;;  %v784_v30 = vor.u32 %v783_v25, %v782_v24  ;;  %v800_v35 = vsel %vm349_vm0, %v1017_v21, 0  ;;  %v789_v37 = vrot.slane %v421_v59, 5 }
  0x2a   : > { %v787_v31 = vor.u32 %v786_v27, %v785_v26  ;;  %v500_v32 = vsel %vm489_vm11, %v495_v12, %v499_v28  ;;  %v790_v38 = vrot.slane %v424_v60, 6 }
  0x2b   : > { %v716_v33 = vsel %vm711_vm12, %v713_v14, %v715_v29 }
  0x2c   : > { %1058 = vmatmul.mubr.msk.bf16.vlgmr.msra.gmra.mrb[0].mxu1 %vm342_vm2, %v428_v15  ;;  %1076 = vmatmul.mubr.msk.bf16.vlgmr.msra.gmra.mrb[0].mxu0 %vm342_vm2, %v646_v16  ;;  %v788_v36 = vsel %vm781_vm13, %v784_v30, %v787_v31  ;;  %v791_v34 = vor.u32 %v790_v38, %v789_v37 }
  0x2d   : > { %1080 = vmatpush3.bf16.msra.mxu0 %v724_v17  ;;  %1062 = vmatpush3.bf16.msra.mxu1 %v508_v18 }
  0x2e   : > { %1063 = vmatprep.mubr.msk.bf16.mxu1 %vm342_vm2, %v496_v19  ;;  %1081 = vmatprep.mubr.msk.bf16.mxu0 %vm342_vm2, %v714_v20  ;;  %v792_v39 = vsel %vm781_vm13, %v787_v31, %v791_v34 }
  0x2f   : > { %1121 = vmatprep.subr.msk.bf16.mxu0 %vm349_vm0, %v1017_v21 }
  0x38   : > { %1064 = vmatmul.mubr.msk.bf16.vlgmr.msra.gmra.mrb[0].mxu1 %vm342_vm2, %v500_v32  ;;  %1082 = vmatmul.mubr.msk.bf16.vlgmr.msra.gmra.mrb[0].mxu0 %vm342_vm2, %v716_v33 }
  0x39   : > { %1086 = vmatpush3.bf16.msra.mxu0 %v800_v35  ;;  %1087 = vmatprep.mubr.msk.bf16.mxu0 %vm342_vm2, %v788_v36 }
  0x44   : > { %1088 = vmatmul.mubr.msk.bf16.vlgmr.msra.gmra.mrb[0].mxu0 %vm342_vm2, %v792_v39 }
 0x10b   : > { %v1065_v40 = vpop.f32.mrb[0].mxu1 }
 0x10c   : > { %v544_v41 = vpop.f32.mrb[1].mxu1 }
 0x10d   : > { %v1066_v42 = vpop.f32.mrb[2].mxu1 }
 0x10e   : > { %v547_v43 = vpop.f32.mrb[3].mxu1 }
 0x117   : > { %v1089_v44 = vpop.f32.mrb[0].mxu0 }
 0x118   : > { %v1091_v46 = vadd.f32 %v1089_v44, %v1065_v40  ;;  %v836_v47 = vpop.f32.mrb[1].mxu0 }
 0x119   : > { %v1092_v48 = vadd.f32 %v836_v47, %v544_v41  ;;  %v1090_v49 = vpop.f32.mrb[2].mxu0 }
 0x11a   : > { %v864_v50 = vadd.f32 %v1091_v46, %v1020_v45  ;;  %v1093_v51 = vadd.f32 %v1090_v49, %v1066_v42  ;;  %v839_v52 = vpop.f32.mrb[3].mxu0 }
 0x11b   : > { %v862_v53 = vadd.f32 %v1092_v48, %v1020_v45  ;;  %v1094_v54 = vadd.f32 %v839_v52, %v547_v43 }
 0x11c   : > { %1149 = vtanh.f32 %v864_v50  ;;  %v865_v55 = vadd.f32 %v1093_v51, %v1020_v45 }
 0x11d   : > { %1151 = vtanh.f32 %v862_v53  ;;  %v863_v56 = vadd.f32 %v1094_v54, %v1020_v45 }
 0x11e   : > { %1153 = vtanh.f32 %v865_v55 }
 0x11f   : > { %1155 = vtanh.f32 %v863_v56 }
 0x126   : > { %v1150_v57 = vpop.eup %1149 }
 0x127   : > { %v1152_v58 = vpop.eup %1151  ;;  %873 = vst.msk [vmem:[%s276_s20 + $0x10] sm:$0xff] %vm870_vm14, %v1150_v57 }
 0x128   : > { %v1154_v59 = vpop.eup %1153  ;;  %871 = vst.msk [vmem:[%s276_s20] sm:$0xff] %vm870_vm14, %v1152_v58 }
 0x129   : > { %v1156_v60 = vpop.eup %1155  ;;  %874 = vst.msk [vmem:[%s276_s20 + $0x18] sm:$0xff] %vm870_vm14, %v1154_v59 }
 0x12a   : > { %872 = vst.msk [vmem:[%s276_s20 + $0x8] sm:$0xff] %vm870_vm14, %v1156_v60 }
 0x12b PF: > { %s16_s19 = sadd.s32 1, %s1179_s19   ;;  %s1361_s17 = smov %s1175_s18 }
 0x12c   : > { %p13_p5 = scmp.ge.s32.totalorder %s16_s19, 4   ;;  %s1362_s18 = smov %s1364_s3 }
 0x12e   :  { %15 = sbr.rel (!%p13_p5) target bundleno = 3 (0x3), region = 75 }

</bundles_post_ra>
